<compile_context>
chip_gen: v5e
topology: v5e:2x2
jax: 0.10.0
libtpu: 0.0.40
codegen_flags: <defaults>
</compile_context>

<pallas_src>
import functools

import jax
import jax.numpy as jnp
import numpy as np
from jax import lax
from jax.experimental import pallas as pl
from jax.experimental.pallas import tpu as pltpu


TM_MAX = 256      # max M tile (rows of the im2col matrix) for non-BN layers
TC_MAX = 128      # Cout tile (lane-dense, gives megacore a second axis)
TM_BN_MAX = 1024  # BN layers need all M rows in one tile for exact batch stats


def _round_up(x, m):
    return (x + m - 1) // m * m


# -----------------------------------------------------------------------------
# Pallas kernels (single K block; no program_id / when / scratch needed)
# -----------------------------------------------------------------------------
def _gemm_act_kernel(a_ref, w_ref, b_ref, o_ref, *, act):
    """GEMM + bias + activation (no BatchNorm). f32 accumulate, bf16 store."""
    z = jnp.dot(a_ref[...], w_ref[...], preferred_element_type=jnp.float32)
    z = z + b_ref[...]
    if act == "leaky":
        z = jnp.where(z >= 0.0, z, 0.2 * z)
    else:  # sigmoid
        z = 1.0 / (1.0 + jnp.exp(-z))
    o_ref[...] = z.astype(o_ref.dtype)


def _gemm_bn_leaky_kernel(a_ref, w_ref, b_ref, g_ref, beta_ref, o_ref,
                          *, m_valid):
    """GEMM + bias + train-mode BatchNorm (batch stats over the valid rows of
    this tile == all rows of the layer) + LeakyReLU(0.2), fused epilogue."""
    z = jnp.dot(a_ref[...], w_ref[...], preferred_element_type=jnp.float32)
    z = z + b_ref[...]
    tm = z.shape[0]
    inv_m = 1.0 / float(m_valid)
    if tm == m_valid:
        mean = jnp.sum(z, axis=0, keepdims=True) * inv_m
        d = z - mean
        var = jnp.sum(d * d, axis=0, keepdims=True) * inv_m
    else:
        row = lax.broadcasted_iota(jnp.int32, (tm, 1), 0)
        valid = row < m_valid
        zm = jnp.where(valid, z, 0.0)
        mean = jnp.sum(zm, axis=0, keepdims=True) * inv_m
        d = z - mean
        dm = jnp.where(valid, d, 0.0)
        var = jnp.sum(dm * dm, axis=0, keepdims=True) * inv_m
    y = d * lax.rsqrt(var + 1e-5) * g_ref[...] + beta_ref[...]
    o_ref[...] = jnp.where(y >= 0.0, y, 0.2 * y).astype(o_ref.dtype)


# -----------------------------------------------------------------------------
# Layer wrappers
# -----------------------------------------------------------------------------
def conv_gemm_act(a, w_mat, bias, *, act):
    """a: (M, K) bf16, w_mat: (K, Cout) bf16, bias: (1, Cout) f32 -> (M, Cout) bf16."""
    M, K = a.shape
    cout = w_mat.shape[1]
    tm = min(TM_MAX, _round_up(M, 16))
    m_pad = _round_up(M, tm)
    if m_pad != M:
        a = jnp.pad(a, ((0, m_pad - M), (0, 0)))
    tc = min(cout, TC_MAX)
    nm, nc = m_pad // tm, cout // tc

    cost = pl.CostEstimate(
        flops=2 * m_pad * K * cout,
        transcendentals=(m_pad * cout) if act == "sigmoid" else 0,
        bytes_accessed=nc * m_pad * K * 2 + K * cout * 2 + cout * 4
        + m_pad * cout * 2,
    )
    out = pl.pallas_call(
        functools.partial(_gemm_act_kernel, act=act),
        out_shape=jax.ShapeDtypeStruct((m_pad, cout), jnp.bfloat16),
        grid=(nm, nc),
        in_specs=[
            pl.BlockSpec((tm, K), lambda i, c: (i, 0)),
            pl.BlockSpec((K, tc), lambda i, c: (0, c)),
            pl.BlockSpec((1, tc), lambda i, c: (0, c)),
        ],
        out_specs=pl.BlockSpec((tm, tc), lambda i, c: (i, c)),
        compiler_params=pltpu.CompilerParams(
            dimension_semantics=("parallel", "parallel")),
        cost_estimate=cost,
    )(a, w_mat, bias)
    return out[:M]


def conv_gemm_bn_leaky(a, w_mat, bias, gamma, beta):
    """GEMM + bias + fused train-mode BatchNorm + LeakyReLU(0.2).

    All M rows live in one tile so the batch statistics computed inside the
    kernel are the exact global (biased) statistics of the layer.
    """
    M, K = a.shape
    cout = w_mat.shape[1]
    m_pad = _round_up(M, 16)
    if m_pad > TM_BN_MAX:
        raise NotImplementedError(
            "BN layer M exceeds single-tile budget; two-phase stats path TODO")
    if m_pad != M:
        a = jnp.pad(a, ((0, m_pad - M), (0, 0)))
    tc = min(cout, TC_MAX)
    nc = cout // tc

    cost = pl.CostEstimate(
        flops=2 * m_pad * K * cout + 8 * m_pad * cout,
        transcendentals=cout,
        bytes_accessed=nc * m_pad * K * 2 + K * cout * 2 + 3 * cout * 4
        + m_pad * cout * 2,
    )
    out = pl.pallas_call(
        functools.partial(_gemm_bn_leaky_kernel, m_valid=M),
        out_shape=jax.ShapeDtypeStruct((m_pad, cout), jnp.bfloat16),
        grid=(nc,),
        in_specs=[
            pl.BlockSpec((m_pad, K), lambda c: (0, 0)),
            pl.BlockSpec((K, tc), lambda c: (0, c)),
            pl.BlockSpec((1, tc), lambda c: (0, c)),
            pl.BlockSpec((1, tc), lambda c: (0, c)),
            pl.BlockSpec((1, tc), lambda c: (0, c)),
        ],
        out_specs=pl.BlockSpec((m_pad, tc), lambda c: (0, c)),
        compiler_params=pltpu.CompilerParams(
            dimension_semantics=("parallel",)),
        cost_estimate=cost,
    )(a, w_mat, bias, gamma, beta)
    return out[:M]


# -----------------------------------------------------------------------------
# Glue: im2col (NHWC), parameters, full forward
# -----------------------------------------------------------------------------
def im2col_nhwc(x, kh, kw, stride, pad):
    """x: (N, H, W, C) -> patches (N*OH*OW, KH*KW*C), column order (kh, kw, c)."""
    n, h, w, c = x.shape
    xp = jnp.pad(x, ((0, 0), (pad, pad), (pad, pad), (0, 0)))
    oh = (h + 2 * pad - kh) // stride + 1
    ow = (w + 2 * pad - kw) // stride + 1
    cols = []
    for i in range(kh):
        for j in range(kw):
            cols.append(xp[:, i:i + stride * oh:stride, j:j + stride * ow:stride, :])
    patches = jnp.stack(cols, axis=3)               # (N, OH, OW, KH*KW, C)
    return patches.reshape(n * oh * ow, kh * kw * c), oh, ow


# (cin, cout, kernel, stride, pad, use_bn, activation)
LAYER_CFG = [
    (6, 64, 4, 2, 1, False, "leaky"),
    (64, 128, 4, 2, 1, True, "leaky"),
    (128, 256, 4, 2, 1, True, "leaky"),
    (256, 512, 4, 1, 1, True, "leaky"),
    (512, 1, 4, 1, 1, False, "sigmoid"),
]


def init_params(key):
    params = []
    for (cin, cout, k, _, _, _, _) in LAYER_CFG:
        key, kw_, kb_ = jax.random.split(key, 3)
        w = 0.02 * jax.random.normal(kw_, (k, k, cin, cout), jnp.float32)  # HWIO
        b = 0.01 * jax.random.normal(kb_, (1, cout), jnp.float32)
        gamma = jnp.ones((1, cout), jnp.float32)    # BatchNorm2d default init
        beta = jnp.zeros((1, cout), jnp.float32)
        params.append((w, b, gamma, beta))
    return params


def discriminator_forward(params, x_nchw, y_nchw):
    """x, y: (N, 3, H, W) f32 -> (N, 1, OH, OW) f32, matching the PyTorch module
    (fresh module => train-mode BatchNorm with batch statistics)."""
    inp = jnp.concatenate([x_nchw, y_nchw], axis=1)            # (N, 6, H, W)
    h = jnp.transpose(inp, (0, 2, 3, 1)).astype(jnp.bfloat16)  # NHWC bf16
    # Pad cin 6 -> 8 (zero channels) so layer-1 K = 4*4*8 = 128 (lane aligned).
    h = jnp.pad(h, ((0, 0), (0, 0), (0, 0), (0, 2)))
    n = h.shape[0]
    for (cin, cout, k, stride, pad, use_bn, act), (w, b, g, beta) in zip(
            LAYER_CFG, params):
        cin_eff = h.shape[-1]
        if cin_eff != cin:  # layer 1: zero-pad weight input channels to match
            w = jnp.pad(w, ((0, 0), (0, 0), (0, cin_eff - cin), (0, 0)))
        a, oh, ow = im2col_nhwc(h, k, k, stride, pad)          # (M, K) bf16
        w_mat = w.reshape(k * k * cin_eff, cout).astype(jnp.bfloat16)
        bias = b.reshape(1, cout).astype(jnp.float32)
        cout_eff = 128 if cout < 64 else cout  # lane-dense MXU output for Cout=1
        if cout_eff != cout:
            w_mat = jnp.pad(w_mat, ((0, 0), (0, cout_eff - cout)))
            bias = jnp.pad(bias, ((0, 0), (0, cout_eff - cout)))
        if use_bn:
            out = conv_gemm_bn_leaky(a, w_mat, bias,
                                     g.reshape(1, cout).astype(jnp.float32),
                                     beta.reshape(1, cout).astype(jnp.float32))
        else:
            out = conv_gemm_act(a, w_mat, bias, act=act)
        out = out[:, :cout]                                    # drop padded cols
        h = out.reshape(n, oh, ow, cout)
    return jnp.transpose(h, (0, 3, 1, 2)).astype(jnp.float32)  # back to NCHW


# -----------------------------------------------------------------------------
# Reference (lax.conv with matching bf16 operand casts) for a sanity check
# -----------------------------------------------------------------------------
def discriminator_reference(params, x_nchw, y_nchw):
    inp = jnp.concatenate([x_nchw, y_nchw], axis=1)
    h = jnp.transpose(inp, (0, 2, 3, 1)).astype(jnp.bfloat16)
    for (cin, cout, k, stride, pad, use_bn, act), (w, b, g, beta) in zip(
            LAYER_CFG, params):
        z = lax.conv_general_dilated(
            h, w.astype(jnp.bfloat16), window_strides=(stride, stride),
            padding=[(pad, pad), (pad, pad)],
            dimension_numbers=("NHWC", "HWIO", "NHWC"),
            preferred_element_type=jnp.float32)
        z = z + b.reshape(1, 1, 1, cout)
        if use_bn:
            mean = jnp.mean(z, axis=(0, 1, 2), keepdims=True)
            var = jnp.mean(jnp.square(z - mean), axis=(0, 1, 2), keepdims=True)
            z = (z - mean) * lax.rsqrt(var + 1e-5) * g.reshape(1, 1, 1, cout) \
                + beta.reshape(1, 1, 1, cout)
        if act == "leaky":
            z = jnp.where(z >= 0.0, z, 0.2 * z)
        else:
            z = jax.nn.sigmoid(z)
        h = z.astype(jnp.bfloat16)
    return jnp.transpose(h, (0, 3, 1, 2)).astype(jnp.float32)


if __name__ == "__main__":
    key = jax.random.PRNGKey(0)
    kp, kx, ky = jax.random.split(key, 3)

    params = init_params(kp)
    # Small shapes consistent with the module: two RGB images, 32x32 spatial.
    x = jax.random.normal(kx, (2, 3, 32, 32), jnp.float32)
    y = jax.random.normal(ky, (2, 3, 32, 32), jnp.float32)

    fwd = jax.jit(discriminator_forward)
    out = jax.block_until_ready(fwd(params, x, y))
    assert out.shape == (2, 1, 2, 2), out.shape

    ref = jax.block_until_ready(discriminator_reference(params, x, y))
    # bf16 MXU operands on both sides; residual diff is f32 reduction order only.
    np.testing.assert_allclose(np.asarray(out), np.asarray(ref),
                               rtol=5e-2, atol=5e-2)

    print("KERNEL_OK")
</pallas_src>

<mosaic_0001>
module attributes {stable_mosaic.version = 11 : i64} {
  func.func @_gemm_act_kernel(%arg0: i32, %arg1: i32, %arg2: memref<256x128xbf16, #tpu.memory_space<vmem>>, %arg3: memref<128x64xbf16, #tpu.memory_space<vmem>>, %arg4: memref<1x64xf32, #tpu.memory_space<vmem>>, %arg5: memref<256x64xbf16, #tpu.memory_space<vmem>>) attributes {dimension_semantics = [#tpu.dimension_semantics<parallel>, #tpu.dimension_semantics<parallel>], iteration_bounds = array<i64: 2, 1>, scalar_prefetch = 0 : i64, scratch_operands = 0 : i64, tpu.core_type = #tpu.core_type<tc>, window_params = [{transform_indices = @transform_0, window_bounds = array<i64: 256, 128>}, {transform_indices = @transform_1, window_bounds = array<i64: 128, 64>}, {transform_indices = @transform_2, window_bounds = array<i64: 1, 64>}, {transform_indices = @transform_3, window_bounds = array<i64: 256, 64>}]} {
    %c0 = arith.constant 0 : index
    %c0_0 = arith.constant 0 : index
    %0 = vector.load %arg2[%c0, %c0_0] : memref<256x128xbf16, #tpu.memory_space<vmem>>, vector<256x128xbf16>
    %c0_1 = arith.constant 0 : index
    %c0_2 = arith.constant 0 : index
    %1 = vector.load %arg3[%c0_1, %c0_2] : memref<128x64xbf16, #tpu.memory_space<vmem>>, vector<128x64xbf16>
    %cst = arith.constant dense<0.000000e+00> : vector<256x64xf32>
    %2 = tpu.matmul %0, %1, %cst {dimension_numbers = #tpu.dot_dimension_numbers<[1], [0], [0], [1], [0, 0, 1, 1], [], []>} : vector<256x128xbf16>, vector<128x64xbf16>, vector<256x64xf32> -> vector<256x64xf32>
    %c0_3 = arith.constant 0 : index
    %c0_4 = arith.constant 0 : index
    %3 = vector.load %arg4[%c0_3, %c0_4] : memref<1x64xf32, #tpu.memory_space<vmem>>, vector<1x64xf32>
    %4 = vector.broadcast %3 : vector<1x64xf32> to vector<256x64xf32>
    %5 = arith.addf %2, %4 : vector<256x64xf32>
    %cst_5 = arith.constant 0.000000e+00 : f32
    %6 = vector.broadcast %cst_5 : f32 to vector<256x64xf32>
    %7 = arith.cmpf oge, %5, %6 : vector<256x64xf32>
    %cst_6 = arith.constant 2.000000e-01 : f32
    %8 = vector.broadcast %cst_6 : f32 to vector<256x64xf32>
    %9 = arith.mulf %8, %5 : vector<256x64xf32>
    %10 = arith.select %7, %5, %9 : vector<256x64xi1>, vector<256x64xf32>
    %11 = arith.truncf %10 : vector<256x64xf32> to vector<256x64xbf16>
    %c0_7 = arith.constant 0 : index
    %c0_8 = arith.constant 0 : index
    %12 = vector.load %arg5[%c0_7, %c0_8] : memref<256x64xbf16, #tpu.memory_space<vmem>>, vector<256x64xbf16>
    tpu.vector_store %arg5[%c0_7, %c0_8], %11 {strides = array<i32>} : memref<256x64xbf16, #tpu.memory_space<vmem>>, vector<256x64xbf16>,
    return
  }
  func.func @transform_0(%arg0: i32, %arg1: i32) -> (i32, i32) {
    %c0_i32 = arith.constant 0 : i32
    %c0_i32_0 = arith.constant 0 : i32
    return %arg0, %c0_i32 : i32, i32
  }
  func.func @transform_1(%arg0: i32, %arg1: i32) -> (i32, i32) {
    %c0_i32 = arith.constant 0 : i32
    %c0_i32_0 = arith.constant 0 : i32
    return %c0_i32, %arg1 : i32, i32
  }
  func.func @transform_2(%arg0: i32, %arg1: i32) -> (i32, i32) {
    %c0_i32 = arith.constant 0 : i32
    %c0_i32_0 = arith.constant 0 : i32
    return %c0_i32, %arg1 : i32, i32
  }
  func.func @transform_3(%arg0: i32, %arg1: i32) -> (i32, i32) {
    %c0_i32 = arith.constant 0 : i32
    return %arg0, %arg1 : i32, i32
  }
}

module attributes {stable_mosaic.version = 11 : i64} {
  func.func @_gemm_bn_leaky_kernel(%arg0: i32, %arg1: memref<128x1024xbf16, #tpu.memory_space<vmem>>, %arg2: memref<1024x128xbf16, #tpu.memory_space<vmem>>, %arg3: memref<1x128xf32, #tpu.memory_space<vmem>>, %arg4: memref<1x128xf32, #tpu.memory_space<vmem>>, %arg5: memref<1x128xf32, #tpu.memory_space<vmem>>, %arg6: memref<128x128xbf16, #tpu.memory_space<vmem>>) attributes {dimension_semantics = [#tpu.dimension_semantics<parallel>], iteration_bounds = array<i64: 1>, scalar_prefetch = 0 : i64, scratch_operands = 0 : i64, tpu.core_type = #tpu.core_type<tc>, window_params = [{pipeline_mode = #tpu.pipeline_mode<synchronous>, transform_indices = @transform_0, window_bounds = array<i64: 128, 1024>}, {transform_indices = @transform_1, window_bounds = array<i64: 1024, 128>}, {transform_indices = @transform_2, window_bounds = array<i64: 1, 128>}, {transform_indices = @transform_3, window_bounds = array<i64: 1, 128>}, {transform_indices = @transform_4, window_bounds = array<i64: 1, 128>}, {transform_indices = @transform_5, window_bounds = array<i64: 128, 128>}]} {
    %c0 = arith.constant 0 : index
    %c0_0 = arith.constant 0 : index
    %0 = vector.load %arg1[%c0, %c0_0] : memref<128x1024xbf16, #tpu.memory_space<vmem>>, vector<128x1024xbf16>
    %c0_1 = arith.constant 0 : index
    %c0_2 = arith.constant 0 : index
    %1 = vector.load %arg2[%c0_1, %c0_2] : memref<1024x128xbf16, #tpu.memory_space<vmem>>, vector<1024x128xbf16>
    %cst = arith.constant dense<0.000000e+00> : vector<128x128xf32>
    %2 = tpu.matmul %0, %1, %cst {dimension_numbers = #tpu.dot_dimension_numbers<[1], [0], [0], [1], [0, 0, 1, 1], [], []>} : vector<128x1024xbf16>, vector<1024x128xbf16>, vector<128x128xf32> -> vector<128x128xf32>
    %c0_3 = arith.constant 0 : index
    %c0_4 = arith.constant 0 : index
    %3 = vector.load %arg3[%c0_3, %c0_4] : memref<1x128xf32, #tpu.memory_space<vmem>>, vector<1x128xf32>
    %4 = vector.broadcast %3 : vector<1x128xf32> to vector<128x128xf32>
    %5 = arith.addf %2, %4 : vector<128x128xf32>
    %cst_5 = arith.constant dense<0.000000e+00> : vector<128xf32>
    %6 = vector.multi_reduction <add>, %5, %cst_5 [0] : vector<128x128xf32> to vector<128xf32>
    %7 = vector.shape_cast %6 : vector<128xf32> to vector<1x128xf32>
    %cst_6 = arith.constant 7.812500e-03 : f32
    %8 = vector.broadcast %cst_6 : f32 to vector<1x128xf32>
    %9 = arith.mulf %7, %8 : vector<1x128xf32>
    %10 = vector.broadcast %9 : vector<1x128xf32> to vector<128x128xf32>
    %11 = arith.subf %5, %10 : vector<128x128xf32>
    %12 = arith.mulf %11, %11 : vector<128x128xf32>
    %cst_7 = arith.constant dense<0.000000e+00> : vector<128xf32>
    %13 = vector.multi_reduction <add>, %12, %cst_7 [0] : vector<128x128xf32> to vector<128xf32>
    %14 = vector.shape_cast %13 : vector<128xf32> to vector<1x128xf32>
    %cst_8 = arith.constant 7.812500e-03 : f32
    %15 = vector.broadcast %cst_8 : f32 to vector<1x128xf32>
    %16 = arith.mulf %14, %15 : vector<1x128xf32>
    %cst_9 = arith.constant 9.99999974E-6 : f32
    %17 = vector.broadcast %cst_9 : f32 to vector<1x128xf32>
    %18 = arith.addf %16, %17 : vector<1x128xf32>
    %19 = math.rsqrt %18 : vector<1x128xf32>
    %20 = vector.broadcast %19 : vector<1x128xf32> to vector<128x128xf32>
    %21 = arith.mulf %11, %20 : vector<128x128xf32>
    %c0_10 = arith.constant 0 : index
    %c0_11 = arith.constant 0 : index
    %22 = vector.load %arg4[%c0_10, %c0_11] : memref<1x128xf32, #tpu.memory_space<vmem>>, vector<1x128xf32>
    %23 = vector.broadcast %22 : vector<1x128xf32> to vector<128x128xf32>
    %24 = arith.mulf %21, %23 : vector<128x128xf32>
    %c0_12 = arith.constant 0 : index
    %c0_13 = arith.constant 0 : index
    %25 = vector.load %arg5[%c0_12, %c0_13] : memref<1x128xf32, #tpu.memory_space<vmem>>, vector<1x128xf32>
    %26 = vector.broadcast %25 : vector<1x128xf32> to vector<128x128xf32>
    %27 = arith.addf %24, %26 : vector<128x128xf32>
    %cst_14 = arith.constant 0.000000e+00 : f32
    %28 = vector.broadcast %cst_14 : f32 to vector<128x128xf32>
    %29 = arith.cmpf oge, %27, %28 : vector<128x128xf32>
    %cst_15 = arith.constant 2.000000e-01 : f32
    %30 = vector.broadcast %cst_15 : f32 to vector<128x128xf32>
    %31 = arith.mulf %30, %27 : vector<128x128xf32>
    %32 = arith.select %29, %27, %31 : vector<128x128xi1>, vector<128x128xf32>
    %33 = arith.truncf %32 : vector<128x128xf32> to vector<128x128xbf16>
    %c0_16 = arith.constant 0 : index
    %c0_17 = arith.constant 0 : index
    %34 = vector.load %arg6[%c0_16, %c0_17] : memref<128x128xbf16, #tpu.memory_space<vmem>>, vector<128x128xbf16>
    tpu.vector_store %arg6[%c0_16, %c0_17], %33 {strides = array<i32>} : memref<128x128xbf16, #tpu.memory_space<vmem>>, vector<128x128xbf16>,
    return
  }
  func.func @transform_0(%arg0: i32) -> (i32, i32) {
    %c0_i32 = arith.constant 0 : i32
    %c0_i32_0 = arith.constant 0 : i32
    %c0_i32_1 = arith.constant 0 : i32
    return %c0_i32, %c0_i32_0 : i32, i32
  }
  func.func @transform_1(%arg0: i32) -> (i32, i32) {
    %c0_i32 = arith.constant 0 : i32
    %c0_i32_0 = arith.constant 0 : i32
    return %c0_i32, %arg0 : i32, i32
  }
  func.func @transform_2(%arg0: i32) -> (i32, i32) {
    %c0_i32 = arith.constant 0 : i32
    %c0_i32_0 = arith.constant 0 : i32
    return %c0_i32, %arg0 : i32, i32
  }
  func.func @transform_3(%arg0: i32) -> (i32, i32) {
    %c0_i32 = arith.constant 0 : i32
    %c0_i32_0 = arith.constant 0 : i32
    return %c0_i32, %arg0 : i32, i32
  }
  func.func @transform_4(%arg0: i32) -> (i32, i32) {
    %c0_i32 = arith.constant 0 : i32
    %c0_i32_0 = arith.constant 0 : i32
    return %c0_i32, %arg0 : i32, i32
  }
  func.func @transform_5(%arg0: i32) -> (i32, i32) {
    %c0_i32 = arith.constant 0 : i32
    %c0_i32_0 = arith.constant 0 : i32
    return %c0_i32, %arg0 : i32, i32
  }
}

module attributes {stable_mosaic.version = 11 : i64} {
  func.func @_gemm_bn_leaky_kernel(%arg0: i32, %arg1: memref<32x2048xbf16, #tpu.memory_space<vmem>>, %arg2: memref<2048x128xbf16, #tpu.memory_space<vmem>>, %arg3: memref<1x128xf32, #tpu.memory_space<vmem>>, %arg4: memref<1x128xf32, #tpu.memory_space<vmem>>, %arg5: memref<1x128xf32, #tpu.memory_space<vmem>>, %arg6: memref<32x128xbf16, #tpu.memory_space<vmem>>) attributes {dimension_semantics = [#tpu.dimension_semantics<parallel>], iteration_bounds = array<i64: 2>, scalar_prefetch = 0 : i64, scratch_operands = 0 : i64, tpu.core_type = #tpu.core_type<tc>, window_params = [{pipeline_mode = #tpu.pipeline_mode<synchronous>, transform_indices = @transform_0, window_bounds = array<i64: 32, 2048>}, {transform_indices = @transform_1, window_bounds = array<i64: 2048, 128>}, {transform_indices = @transform_2, window_bounds = array<i64: 1, 128>}, {transform_indices = @transform_3, window_bounds = array<i64: 1, 128>}, {transform_indices = @transform_4, window_bounds = array<i64: 1, 128>}, {transform_indices = @transform_5, window_bounds = array<i64: 32, 128>}]} {
    %c0 = arith.constant 0 : index
    %c0_0 = arith.constant 0 : index
    %0 = vector.load %arg1[%c0, %c0_0] : memref<32x2048xbf16, #tpu.memory_space<vmem>>, vector<32x2048xbf16>
    %c0_1 = arith.constant 0 : index
    %c0_2 = arith.constant 0 : index
    %1 = vector.load %arg2[%c0_1, %c0_2] : memref<2048x128xbf16, #tpu.memory_space<vmem>>, vector<2048x128xbf16>
    %cst = arith.constant dense<0.000000e+00> : vector<32x128xf32>
    %2 = tpu.matmul %0, %1, %cst {dimension_numbers = #tpu.dot_dimension_numbers<[1], [0], [0], [1], [0, 0, 1, 1], [], []>} : vector<32x2048xbf16>, vector<2048x128xbf16>, vector<32x128xf32> -> vector<32x128xf32>
    %c0_3 = arith.constant 0 : index
    %c0_4 = arith.constant 0 : index
    %3 = vector.load %arg3[%c0_3, %c0_4] : memref<1x128xf32, #tpu.memory_space<vmem>>, vector<1x128xf32>
    %4 = vector.broadcast %3 : vector<1x128xf32> to vector<32x128xf32>
    %5 = arith.addf %2, %4 : vector<32x128xf32>
    %cst_5 = arith.constant dense<0.000000e+00> : vector<128xf32>
    %6 = vector.multi_reduction <add>, %5, %cst_5 [0] : vector<32x128xf32> to vector<128xf32>
    %7 = vector.shape_cast %6 : vector<128xf32> to vector<1x128xf32>
    %cst_6 = arith.constant 3.125000e-02 : f32
    %8 = vector.broadcast %cst_6 : f32 to vector<1x128xf32>
    %9 = arith.mulf %7, %8 : vector<1x128xf32>
    %10 = vector.broadcast %9 : vector<1x128xf32> to vector<32x128xf32>
    %11 = arith.subf %5, %10 : vector<32x128xf32>
    %12 = arith.mulf %11, %11 : vector<32x128xf32>
    %cst_7 = arith.constant dense<0.000000e+00> : vector<128xf32>
    %13 = vector.multi_reduction <add>, %12, %cst_7 [0] : vector<32x128xf32> to vector<128xf32>
    %14 = vector.shape_cast %13 : vector<128xf32> to vector<1x128xf32>
    %cst_8 = arith.constant 3.125000e-02 : f32
    %15 = vector.broadcast %cst_8 : f32 to vector<1x128xf32>
    %16 = arith.mulf %14, %15 : vector<1x128xf32>
    %cst_9 = arith.constant 9.99999974E-6 : f32
    %17 = vector.broadcast %cst_9 : f32 to vector<1x128xf32>
    %18 = arith.addf %16, %17 : vector<1x128xf32>
    %19 = math.rsqrt %18 : vector<1x128xf32>
    %20 = vector.broadcast %19 : vector<1x128xf32> to vector<32x128xf32>
    %21 = arith.mulf %11, %20 : vector<32x128xf32>
    %c0_10 = arith.constant 0 : index
    %c0_11 = arith.constant 0 : index
    %22 = vector.load %arg4[%c0_10, %c0_11] : memref<1x128xf32, #tpu.memory_space<vmem>>, vector<1x128xf32>
    %23 = vector.broadcast %22 : vector<1x128xf32> to vector<32x128xf32>
    %24 = arith.mulf %21, %23 : vector<32x128xf32>
    %c0_12 = arith.constant 0 : index
    %c0_13 = arith.constant 0 : index
    %25 = vector.load %arg5[%c0_12, %c0_13] : memref<1x128xf32, #tpu.memory_space<vmem>>, vector<1x128xf32>
    %26 = vector.broadcast %25 : vector<1x128xf32> to vector<32x128xf32>
    %27 = arith.addf %24, %26 : vector<32x128xf32>
    %cst_14 = arith.constant 0.000000e+00 : f32
    %28 = vector.broadcast %cst_14 : f32 to vector<32x128xf32>
    %29 = arith.cmpf oge, %27, %28 : vector<32x128xf32>
    %cst_15 = arith.constant 2.000000e-01 : f32
    %30 = vector.broadcast %cst_15 : f32 to vector<32x128xf32>
    %31 = arith.mulf %30, %27 : vector<32x128xf32>
    %32 = arith.select %29, %27, %31 : vector<32x128xi1>, vector<32x128xf32>
    %33 = arith.truncf %32 : vector<32x128xf32> to vector<32x128xbf16>
    %c0_16 = arith.constant 0 : index
    %c0_17 = arith.constant 0 : index
    %34 = vector.load %arg6[%c0_16, %c0_17] : memref<32x128xbf16, #tpu.memory_space<vmem>>, vector<32x128xbf16>
    tpu.vector_store %arg6[%c0_16, %c0_17], %33 {strides = array<i32>} : memref<32x128xbf16, #tpu.memory_space<vmem>>, vector<32x128xbf16>,
    return
  }
  func.func @transform_0(%arg0: i32) -> (i32, i32) {
    %c0_i32 = arith.constant 0 : i32
    %c0_i32_0 = arith.constant 0 : i32
    %c0_i32_1 = arith.constant 0 : i32
    return %c0_i32, %c0_i32_0 : i32, i32
  }
  func.func @transform_1(%arg0: i32) -> (i32, i32) {
    %c0_i32 = arith.constant 0 : i32
    %c0_i32_0 = arith.constant 0 : i32
    return %c0_i32, %arg0 : i32, i32
  }
  func.func @transform_2(%arg0: i32) -> (i32, i32) {
    %c0_i32 = arith.constant 0 : i32
    %c0_i32_0 = arith.constant 0 : i32
    return %c0_i32, %arg0 : i32, i32
  }
  func.func @transform_3(%arg0: i32) -> (i32, i32) {
    %c0_i32 = arith.constant 0 : i32
    %c0_i32_0 = arith.constant 0 : i32
    return %c0_i32, %arg0 : i32, i32
  }
  func.func @transform_4(%arg0: i32) -> (i32, i32) {
    %c0_i32 = arith.constant 0 : i32
    %c0_i32_0 = arith.constant 0 : i32
    return %c0_i32, %arg0 : i32, i32
  }
  func.func @transform_5(%arg0: i32) -> (i32, i32) {
    %c0_i32 = arith.constant 0 : i32
    %c0_i32_0 = arith.constant 0 : i32
    return %c0_i32, %arg0 : i32, i32
  }
}

module attributes {stable_mosaic.version = 11 : i64} {
  func.func @_gemm_bn_leaky_kernel(%arg0: i32, %arg1: memref<32x4096xbf16, #tpu.memory_space<vmem>>, %arg2: memref<4096x128xbf16, #tpu.memory_space<vmem>>, %arg3: memref<1x128xf32, #tpu.memory_space<vmem>>, %arg4: memref<1x128xf32, #tpu.memory_space<vmem>>, %arg5: memref<1x128xf32, #tpu.memory_space<vmem>>, %arg6: memref<32x128xbf16, #tpu.memory_space<vmem>>) attributes {dimension_semantics = [#tpu.dimension_semantics<parallel>], iteration_bounds = array<i64: 4>, scalar_prefetch = 0 : i64, scratch_operands = 0 : i64, tpu.core_type = #tpu.core_type<tc>, window_params = [{pipeline_mode = #tpu.pipeline_mode<synchronous>, transform_indices = @transform_0, window_bounds = array<i64: 32, 4096>}, {transform_indices = @transform_1, window_bounds = array<i64: 4096, 128>}, {transform_indices = @transform_2, window_bounds = array<i64: 1, 128>}, {transform_indices = @transform_3, window_bounds = array<i64: 1, 128>}, {transform_indices = @transform_4, window_bounds = array<i64: 1, 128>}, {transform_indices = @transform_5, window_bounds = array<i64: 32, 128>}]} {
    %c0 = arith.constant 0 : index
    %c0_0 = arith.constant 0 : index
    %0 = vector.load %arg1[%c0, %c0_0] : memref<32x4096xbf16, #tpu.memory_space<vmem>>, vector<32x4096xbf16>
    %c0_1 = arith.constant 0 : index
    %c0_2 = arith.constant 0 : index
    %1 = vector.load %arg2[%c0_1, %c0_2] : memref<4096x128xbf16, #tpu.memory_space<vmem>>, vector<4096x128xbf16>
    %cst = arith.constant dense<0.000000e+00> : vector<32x128xf32>
    %2 = tpu.matmul %0, %1, %cst {dimension_numbers = #tpu.dot_dimension_numbers<[1], [0], [0], [1], [0, 0, 1, 1], [], []>} : vector<32x4096xbf16>, vector<4096x128xbf16>, vector<32x128xf32> -> vector<32x128xf32>
    %c0_3 = arith.constant 0 : index
    %c0_4 = arith.constant 0 : index
    %3 = vector.load %arg3[%c0_3, %c0_4] : memref<1x128xf32, #tpu.memory_space<vmem>>, vector<1x128xf32>
    %4 = vector.broadcast %3 : vector<1x128xf32> to vector<32x128xf32>
    %5 = arith.addf %2, %4 : vector<32x128xf32>
    %6 = tpu.iota {dimensions = array<i32: 0>} : vector<32x1xi32>
    %c18_i32 = arith.constant 18 : i32
    %7 = vector.broadcast %c18_i32 : i32 to vector<32x1xi32>
    %8 = arith.cmpi slt, %6, %7 : vector<32x1xi32>
    %cst_5 = arith.constant 0.000000e+00 : f32
    %9 = vector.shape_cast %8 : vector<32x1xi1> to vector<32x1xi1>
    %10 = vector.broadcast %9 : vector<32x1xi1> to vector<32x128xi1>
    %11 = vector.broadcast %cst_5 : f32 to vector<32x128xf32>
    %12 = arith.select %10, %5, %11 : vector<32x128xi1>, vector<32x128xf32>
    %cst_6 = arith.constant dense<0.000000e+00> : vector<128xf32>
    %13 = vector.multi_reduction <add>, %12, %cst_6 [0] : vector<32x128xf32> to vector<128xf32>
    %14 = vector.shape_cast %13 : vector<128xf32> to vector<1x128xf32>
    %cst_7 = arith.constant 0.055555556 : f32
    %15 = vector.broadcast %cst_7 : f32 to vector<1x128xf32>
    %16 = arith.mulf %14, %15 : vector<1x128xf32>
    %17 = vector.broadcast %16 : vector<1x128xf32> to vector<32x128xf32>
    %18 = arith.subf %5, %17 : vector<32x128xf32>
    %cst_8 = arith.constant 0.000000e+00 : f32
    %19 = vector.shape_cast %8 : vector<32x1xi1> to vector<32x1xi1>
    %20 = vector.broadcast %19 : vector<32x1xi1> to vector<32x128xi1>
    %21 = vector.broadcast %cst_8 : f32 to vector<32x128xf32>
    %22 = arith.select %20, %18, %21 : vector<32x128xi1>, vector<32x128xf32>
    %23 = arith.mulf %22, %22 : vector<32x128xf32>
    %cst_9 = arith.constant dense<0.000000e+00> : vector<128xf32>
    %24 = vector.multi_reduction <add>, %23, %cst_9 [0] : vector<32x128xf32> to vector<128xf32>
    %25 = vector.shape_cast %24 : vector<128xf32> to vector<1x128xf32>
    %cst_10 = arith.constant 0.055555556 : f32
    %26 = vector.broadcast %cst_10 : f32 to vector<1x128xf32>
    %27 = arith.mulf %25, %26 : vector<1x128xf32>
    %cst_11 = arith.constant 9.99999974E-6 : f32
    %28 = vector.broadcast %cst_11 : f32 to vector<1x128xf32>
    %29 = arith.addf %27, %28 : vector<1x128xf32>
    %30 = math.rsqrt %29 : vector<1x128xf32>
    %31 = vector.broadcast %30 : vector<1x128xf32> to vector<32x128xf32>
    %32 = arith.mulf %18, %31 : vector<32x128xf32>
    %c0_12 = arith.constant 0 : index
    %c0_13 = arith.constant 0 : index
    %33 = vector.load %arg4[%c0_12, %c0_13] : memref<1x128xf32, #tpu.memory_space<vmem>>, vector<1x128xf32>
    %34 = vector.broadcast %33 : vector<1x128xf32> to vector<32x128xf32>
    %35 = arith.mulf %32, %34 : vector<32x128xf32>
    %c0_14 = arith.constant 0 : index
    %c0_15 = arith.constant 0 : index
    %36 = vector.load %arg5[%c0_14, %c0_15] : memref<1x128xf32, #tpu.memory_space<vmem>>, vector<1x128xf32>
    %37 = vector.broadcast %36 : vector<1x128xf32> to vector<32x128xf32>
    %38 = arith.addf %35, %37 : vector<32x128xf32>
    %cst_16 = arith.constant 0.000000e+00 : f32
    %39 = vector.broadcast %cst_16 : f32 to vector<32x128xf32>
    %40 = arith.cmpf oge, %38, %39 : vector<32x128xf32>
    %cst_17 = arith.constant 2.000000e-01 : f32
    %41 = vector.broadcast %cst_17 : f32 to vector<32x128xf32>
    %42 = arith.mulf %41, %38 : vector<32x128xf32>
    %43 = arith.select %40, %38, %42 : vector<32x128xi1>, vector<32x128xf32>
    %44 = arith.truncf %43 : vector<32x128xf32> to vector<32x128xbf16>
    %c0_18 = arith.constant 0 : index
    %c0_19 = arith.constant 0 : index
    %45 = vector.load %arg6[%c0_18, %c0_19] : memref<32x128xbf16, #tpu.memory_space<vmem>>, vector<32x128xbf16>
    tpu.vector_store %arg6[%c0_18, %c0_19], %44 {strides = array<i32>} : memref<32x128xbf16, #tpu.memory_space<vmem>>, vector<32x128xbf16>,
    return
  }
  func.func @transform_0(%arg0: i32) -> (i32, i32) {
    %c0_i32 = arith.constant 0 : i32
    %c0_i32_0 = arith.constant 0 : i32
    %c0_i32_1 = arith.constant 0 : i32
    return %c0_i32, %c0_i32_0 : i32, i32
  }
  func.func @transform_1(%arg0: i32) -> (i32, i32) {
    %c0_i32 = arith.constant 0 : i32
    %c0_i32_0 = arith.constant 0 : i32
    return %c0_i32, %arg0 : i32, i32
  }
  func.func @transform_2(%arg0: i32) -> (i32, i32) {
    %c0_i32 = arith.constant 0 : i32
    %c0_i32_0 = arith.constant 0 : i32
    return %c0_i32, %arg0 : i32, i32
  }
  func.func @transform_3(%arg0: i32) -> (i32, i32) {
    %c0_i32 = arith.constant 0 : i32
    %c0_i32_0 = arith.constant 0 : i32
    return %c0_i32, %arg0 : i32, i32
  }
  func.func @transform_4(%arg0: i32) -> (i32, i32) {
    %c0_i32 = arith.constant 0 : i32
    %c0_i32_0 = arith.constant 0 : i32
    return %c0_i32, %arg0 : i32, i32
  }
  func.func @transform_5(%arg0: i32) -> (i32, i32) {
    %c0_i32 = arith.constant 0 : i32
    %c0_i32_0 = arith.constant 0 : i32
    return %c0_i32, %arg0 : i32, i32
  }
}

module attributes {stable_mosaic.version = 11 : i64} {
  func.func @_gemm_act_kernel(%arg0: i32, %arg1: i32, %arg2: memref<16x8192xbf16, #tpu.memory_space<vmem>>, %arg3: memref<8192x128xbf16, #tpu.memory_space<vmem>>, %arg4: memref<1x128xf32, #tpu.memory_space<vmem>>, %arg5: memref<16x128xbf16, #tpu.memory_space<vmem>>) attributes {dimension_semantics = [#tpu.dimension_semantics<parallel>, #tpu.dimension_semantics<parallel>], iteration_bounds = array<i64: 1, 1>, scalar_prefetch = 0 : i64, scratch_operands = 0 : i64, tpu.core_type = #tpu.core_type<tc>, window_params = [{transform_indices = @transform_0, window_bounds = array<i64: 16, 8192>}, {transform_indices = @transform_1, window_bounds = array<i64: 8192, 128>}, {transform_indices = @transform_2, window_bounds = array<i64: 1, 128>}, {transform_indices = @transform_3, window_bounds = array<i64: 16, 128>}]} {
    %c0 = arith.constant 0 : index
    %c0_0 = arith.constant 0 : index
    %0 = vector.load %arg2[%c0, %c0_0] : memref<16x8192xbf16, #tpu.memory_space<vmem>>, vector<16x8192xbf16>
    %c0_1 = arith.constant 0 : index
    %c0_2 = arith.constant 0 : index
    %1 = vector.load %arg3[%c0_1, %c0_2] : memref<8192x128xbf16, #tpu.memory_space<vmem>>, vector<8192x128xbf16>
    %cst = arith.constant dense<0.000000e+00> : vector<16x128xf32>
    %2 = tpu.matmul %0, %1, %cst {dimension_numbers = #tpu.dot_dimension_numbers<[1], [0], [0], [1], [0, 0, 1, 1], [], []>} : vector<16x8192xbf16>, vector<8192x128xbf16>, vector<16x128xf32> -> vector<16x128xf32>
    %c0_3 = arith.constant 0 : index
    %c0_4 = arith.constant 0 : index
    %3 = vector.load %arg4[%c0_3, %c0_4] : memref<1x128xf32, #tpu.memory_space<vmem>>, vector<1x128xf32>
    %4 = vector.broadcast %3 : vector<1x128xf32> to vector<16x128xf32>
    %5 = arith.addf %2, %4 : vector<16x128xf32>
    %cst_5 = arith.constant 0.000000e+00 : f32
    %6 = vector.broadcast %cst_5 : f32 to vector<16x128xf32>
    %7 = arith.subf %6, %5 : vector<16x128xf32>
    %8 = math.exp %7 : vector<16x128xf32>
    %cst_6 = arith.constant 1.000000e+00 : f32
    %9 = vector.broadcast %cst_6 : f32 to vector<16x128xf32>
    %10 = arith.addf %9, %8 : vector<16x128xf32>
    %cst_7 = arith.constant 1.000000e+00 : f32
    %11 = vector.broadcast %cst_7 : f32 to vector<16x128xf32>
    %12 = arith.divf %11, %10 : vector<16x128xf32>
    %13 = arith.truncf %12 : vector<16x128xf32> to vector<16x128xbf16>
    %c0_8 = arith.constant 0 : index
    %c0_9 = arith.constant 0 : index
    %14 = vector.load %arg5[%c0_8, %c0_9] : memref<16x128xbf16, #tpu.memory_space<vmem>>, vector<16x128xbf16>
    tpu.vector_store %arg5[%c0_8, %c0_9], %13 {strides = array<i32>} : memref<16x128xbf16, #tpu.memory_space<vmem>>, vector<16x128xbf16>,
    return
  }
  func.func @transform_0(%arg0: i32, %arg1: i32) -> (i32, i32) {
    %c0_i32 = arith.constant 0 : i32
    %c0_i32_0 = arith.constant 0 : i32
    return %arg0, %c0_i32 : i32, i32
  }
  func.func @transform_1(%arg0: i32, %arg1: i32) -> (i32, i32) {
    %c0_i32 = arith.constant 0 : i32
    %c0_i32_0 = arith.constant 0 : i32
    return %c0_i32, %arg1 : i32, i32
  }
  func.func @transform_2(%arg0: i32, %arg1: i32) -> (i32, i32) {
    %c0_i32 = arith.constant 0 : i32
    %c0_i32_0 = arith.constant 0 : i32
    return %c0_i32, %arg1 : i32, i32
  }
  func.func @transform_3(%arg0: i32, %arg1: i32) -> (i32, i32) {
    %c0_i32 = arith.constant 0 : i32
    return %arg0, %arg1 : i32, i32
  }
}

</mosaic_0001>

<bundles_post_ra>
// kernel: discriminator_forward.5
= control target key start
LH: loop header
LB: loop body
LE: loop exit
PB: predicated region body
PF: predicated region fallthrough
CT: control target
= control target key end

     0   :  { %s999_s12 = smov 0   ;;  %s1001_s13 = smov 0   ;;  %s1187_s0 = inlined_call_operand.vmem [shape: bf16[512,128], index: 0, kind: input, shape index: {}]   ;;  %s1188_s1 = inlined_call_operand.vmem [shape: bf16[128,64], index: 1, kind: input, shape index: {}]   ;;  %s1189_s2 = inlined_call_operand.vmem [shape: f32[1,64], index: 2, kind: input, shape index: {}]   ;;  %s1190_s3 = inlined_call_operand.vmem [shape: bf16[512,64], index: 3, kind: output, shape index: {}]  }
   0x1   :  { %s1003_s14 = smov 0  }
   0x2 LB: > { %s25_s15 = sadd.s32 1, %s973_s13  ;;  %p779_p0 = scmp.ge.s32.totalorder %s977_s14, 1  ;;  %s977_s14 = sphi %s1003_s14, %s13_s14   ;;  %s973_s13 = sphi %s1001_s13, %s1192_s13   ;;  %s969_s12 = sphi %s999_s12, %s1191_s12  }
   0x3   : > { %p27_p1 = scmp.ge.s32.totalorder %s25_s15, 2  ;;  %p169_p2 = scmp.lt.s32.totalorder %s977_s14, 3 }
   0x5   : > { %s1194_s15 = smov (%p27_p1, %s25_s15), 0  ;;  %p170_p3 = pnand %p779_p0, %p169_p2 }
   0x6   : > { %s780_s24 = sshll.u32 (!%p170_p3), %s969_s12, 5 }
   0x7   : > { %173 = sbr.rel (%p170_p3) target bundleno = 242 (0xf2), region = 32  ;;  %p204_p4 = scmp.lt.s32.totalorder (!%p170_p3), %s780_s24, 63 }
   0xc   : > { %v905_v0 = vld [vmem:[%s1188_s1 + $0x38] sm:$0xff]  ;;  %v904_v1 = vld [vmem:[%s1188_s1 + $0x30] sm:$0xff]  ;;  %v903_v2 = vld [vmem:[%s1188_s1 + $0x28] sm:$0xff]  ;;  %s1196_s24 = smov (!%p204_p4, %s780_s24), 63  ;;  %vm638_vm2 = vcmask 519168  }
   0xd   : > { %421 = vmatpush.bf16.msra.mxu0 %v905_v0  ;;  %906 = vmatpush.bf16.msra.mxu1 %v905_v0  ;;  %v902_v3 = vld [vmem:[%s1188_s1 + $0x20] sm:$0xff]  ;;  %v901_v4 = vld [vmem:[%s1188_s1 + $0x18] sm:$0xff]  ;;  %v900_v5 = vld [vmem:[%s1188_s1 + $0x10] sm:$0xff]  ;;  %s781_s4 = sshll.u32 %s1196_s24, 2 }
   0xe   : > { %907 = vmatpush.bf16.msra.mxu2 %v905_v0  ;;  %908 = vmatpush.bf16.msra.mxu3 %v905_v0  ;;  %v899_v6 = vld [vmem:[%s1188_s1 + $0x8] sm:$0xff]  ;;  %v898_v7 = vld [vmem:[%s1188_s1] sm:$0xff]  ;;  %s1052_s9 = scalar_lea.vmem %s1187_s0, %s781_s4  ;;  %s1082_s17 = scalar_lea.vmem %s1190_s3, %s781_s4 }
   0xf   : > { %v882_v8 = vld [vmem:[%s1052_s9] sm:$0xff]  ;;  %v883_v12 = vld [vmem:[%s1052_s9 + $0x8] sm:$0xff]  ;;  %v884_v16 = vld [vmem:[%s1052_s9 + $0x10] sm:$0xff] }
  0x10   : > { %v886_v9 = vld [vmem:[%s1052_s9 + $0x20] sm:$0xff]  ;;  %v887_v13 = vld [vmem:[%s1052_s9 + $0x28] sm:$0xff]  ;;  %v888_v17 = vld [vmem:[%s1052_s9 + $0x30] sm:$0xff] }
  0x11   : > { %422 = vmatpush.bf16.msra.mxu0 %v904_v1  ;;  %909 = vmatpush.bf16.msra.mxu1 %v904_v1  ;;  %v890_v10 = vld [vmem:[%s1052_s9 + $0x40] sm:$0xff]  ;;  %v891_v14 = vld [vmem:[%s1052_s9 + $0x48] sm:$0xff]  ;;  %v892_v18 = vld [vmem:[%s1052_s9 + $0x50] sm:$0xff] }
  0x12   : > { %910 = vmatpush.bf16.msra.mxu2 %v904_v1  ;;  %911 = vmatpush.bf16.msra.mxu3 %v904_v1  ;;  %v894_v11 = vld [vmem:[%s1052_s9 + $0x60] sm:$0xff]  ;;  %v895_v15 = vld [vmem:[%s1052_s9 + $0x68] sm:$0xff]  ;;  %v896_v19 = vld [vmem:[%s1052_s9 + $0x70] sm:$0xff] }
  0x13   : > { %v885_v20 = vld [vmem:[%s1052_s9 + $0x18] sm:$0xff]  ;;  %v1073_v24 = vld [vmem:[%s1189_s2] ss:$0 sm:$0xff] }
  0x14   : > { %v889_v21 = vld [vmem:[%s1052_s9 + $0x38] sm:$0xff] }
  0x15   : > { %423 = vmatpush.bf16.msra.mxu0 %v903_v2  ;;  %912 = vmatpush.bf16.msra.mxu1 %v903_v2  ;;  %v893_v22 = vld [vmem:[%s1052_s9 + $0x58] sm:$0xff] }
  0x16   : > { %913 = vmatpush.bf16.msra.mxu2 %v903_v2  ;;  %914 = vmatpush.bf16.msra.mxu3 %v903_v2  ;;  %v897_v23 = vld [vmem:[%s1052_s9 + $0x78] sm:$0xff] }
  0x19   : > { %424 = vmatpush.bf16.msra.mxu0 %v902_v3  ;;  %915 = vmatpush.bf16.msra.mxu1 %v902_v3 }
  0x1a   : > { %916 = vmatpush.bf16.msra.mxu2 %v902_v3  ;;  %917 = vmatpush.bf16.msra.mxu3 %v902_v3 }
  0x1d   : > { %425 = vmatpush.bf16.msra.mxu0 %v901_v4  ;;  %918 = vmatpush.bf16.msra.mxu1 %v901_v4 }
  0x1e   : > { %919 = vmatpush.bf16.msra.mxu2 %v901_v4  ;;  %920 = vmatpush.bf16.msra.mxu3 %v901_v4 }
  0x21   : > { %426 = vmatpush.bf16.msra.mxu0 %v900_v5  ;;  %921 = vmatpush.bf16.msra.mxu1 %v900_v5 }
  0x22   : > { %922 = vmatpush.bf16.msra.mxu2 %v900_v5  ;;  %923 = vmatpush.bf16.msra.mxu3 %v900_v5 }
  0x25   : > { %427 = vmatpush.bf16.msra.mxu0 %v899_v6  ;;  %924 = vmatpush.bf16.msra.mxu1 %v899_v6 }
  0x26   : > { %925 = vmatpush.bf16.msra.mxu2 %v899_v6  ;;  %926 = vmatpush.bf16.msra.mxu3 %v899_v6 }
  0x29   : > { %428 = vmatpush.bf16.msra.mxu0 %v898_v7  ;;  %927 = vmatpush.bf16.msra.mxu1 %v898_v7 }
  0x2a   : > { %928 = vmatpush.bf16.msra.mxu2 %v898_v7  ;;  %929 = vmatpush.bf16.msra.mxu3 %v898_v7 }
  0x2c   : > { %429 = vmatmul.bf16.vlgmr.msra.gmra.mxu0 %v882_v8  ;;  %449 = vmatmul.bf16.vlgmr.msra.gmra.mxu1 %v886_v9 }
  0x2d   : > { %469 = vmatmul.bf16.vlgmr.msra.gmra.mxu2 %v890_v10  ;;  %489 = vmatmul.bf16.vlgmr.msra.gmra.mxu3 %v894_v11 }
  0x3c   : > { %434 = vmatmul.bf16.gmra.mxu0 %v883_v12  ;;  %454 = vmatmul.bf16.gmra.mxu1 %v887_v13 }
  0x3d   : > { %474 = vmatmul.bf16.gmra.mxu2 %v891_v14  ;;  %494 = vmatmul.bf16.gmra.mxu3 %v895_v15 }
  0x4c   : > { %439 = vmatmul.bf16.gmra.mxu0 %v884_v16  ;;  %459 = vmatmul.bf16.gmra.mxu1 %v888_v17 }
  0x4d   : > { %479 = vmatmul.bf16.gmra.mxu2 %v892_v18  ;;  %499 = vmatmul.bf16.gmra.mxu3 %v896_v19 }
  0x5c   : > { %444 = vmatmul.bf16.gmra.mxu0 %v885_v20  ;;  %464 = vmatmul.bf16.gmra.mxu1 %v889_v21 }
  0x5d   : > { %484 = vmatmul.bf16.gmra.mxu2 %v893_v22  ;;  %504 = vmatmul.bf16.gmra.mxu3 %v897_v23 }
  0xa9   : > { %v430_v25 = vpop.f32.mrf.mxu0  ;;  %v450_v26 = vpop.f32.mrf.mxu1 }
  0xaa   : > { %v431_v27 = vadd.f32 %v1073_v24, %v430_v25  ;;  %v451_v28 = vadd.f32 %v1073_v24, %v450_v26 }
  0xac   : > { %vm510_vm0 = vcmp.ge.f32.partialorder %v431_v27, 0.0  ;;  %v542_v29 = vmul.f32 0.2, %v431_v27  ;;  %vm518_vm1 = vcmp.ge.f32.partialorder %v451_v28, 0.0  ;;  %v550_v30 = vmul.f32 0.2, %v451_v28 }
  0xae   : > { %v574_v31 = vsel %vm510_vm0, %v431_v27, %v542_v29  ;;  %v582_v32 = vsel %vm518_vm1, %v451_v28, %v550_v30 }
  0xaf   : > { %v606_v33 = vpack.c.bf16 %v574_v31, %v574_v31  ;;  %v614_v34 = vpack.c.bf16 %v582_v32, %v582_v32 }
  0xb0   : > { %v470_v35 = vpop.f32.mrf.mxu2  ;;  %v490_v36 = vpop.f32.mrf.mxu3 }
  0xb1   : > { %639 = vst.msk [vmem:[%s1082_s17] sm:$0xf] %vm638_vm2, %v606_v33  ;;  %v471_v37 = vadd.f32 %v1073_v24, %v470_v35  ;;  %v491_v38 = vadd.f32 %v1073_v24, %v490_v36  ;;  %v432_v39 = vpop.f32.mrf.mxu0  ;;  %v452_v40 = vpop.f32.mrf.mxu1 }
  0xb2   : > { %647 = vst.msk [vmem:[%s1082_s17 + $0x20] sm:$0xf] %vm638_vm2, %v614_v34  ;;  %v433_v41 = vadd.f32 %v1073_v24, %v432_v39  ;;  %v453_v42 = vadd.f32 %v1073_v24, %v452_v40 }
  0xb3   : > { %vm526_vm3 = vcmp.ge.f32.partialorder %v471_v37, 0.0  ;;  %v558_v43 = vmul.f32 0.2, %v471_v37  ;;  %vm534_vm4 = vcmp.ge.f32.partialorder %v491_v38, 0.0  ;;  %v566_v44 = vmul.f32 0.2, %v491_v38 }
  0xb4   : > { %vm511_vm5 = vcmp.ge.f32.partialorder %v433_v41, 0.0  ;;  %v543_v45 = vmul.f32 0.2, %v433_v41  ;;  %vm519_vm6 = vcmp.ge.f32.partialorder %v453_v42, 0.0  ;;  %v551_v46 = vmul.f32 0.2, %v453_v42 }
  0xb5   : > { %v590_v47 = vsel %vm526_vm3, %v471_v37, %v558_v43  ;;  %v598_v48 = vsel %vm534_vm4, %v491_v38, %v566_v44 }
  0xb6   : > { %v622_v49 = vpack.c.bf16 %v590_v47, %v590_v47  ;;  %v630_v50 = vpack.c.bf16 %v598_v48, %v598_v48  ;;  %v575_v51 = vsel %vm511_vm5, %v433_v41, %v543_v45  ;;  %v583_v52 = vsel %vm519_vm6, %v453_v42, %v551_v46 }
  0xb7   : > { %v607_v53 = vpack.c.bf16 %v575_v51, %v575_v51  ;;  %v615_v54 = vpack.c.bf16 %v583_v52, %v583_v52 }
  0xb8   : > { %655 = vst.msk [vmem:[%s1082_s17 + $0x40] sm:$0xf] %vm638_vm2, %v622_v49  ;;  %v472_v55 = vpop.f32.mrf.mxu2  ;;  %v492_v56 = vpop.f32.mrf.mxu3 }
  0xb9   : > { %663 = vst.msk [vmem:[%s1082_s17 + $0x60] sm:$0xf] %vm638_vm2, %v630_v50  ;;  %v473_v57 = vadd.f32 %v1073_v24, %v472_v55  ;;  %v493_v58 = vadd.f32 %v1073_v24, %v492_v56  ;;  %v435_v59 = vpop.f32.mrf.mxu0  ;;  %v455_v60 = vpop.f32.mrf.mxu1 }
  0xba   : > { %640 = vst.msk [vmem:[%s1082_s17 + $0x4] sm:$0xf] %vm638_vm2, %v607_v53  ;;  %v436_v61 = vadd.f32 %v1073_v24, %v435_v59  ;;  %v456_v62 = vadd.f32 %v1073_v24, %v455_v60 }
  0xbb   : > { %648 = vst.msk [vmem:[%s1082_s17 + $0x24] sm:$0xf] %vm638_vm2, %v615_v54  ;;  %vm527_vm7 = vcmp.ge.f32.partialorder %v473_v57, 0.0  ;;  %v559_v63 = vmul.f32 0.2, %v473_v57  ;;  %vm535_vm8 = vcmp.ge.f32.partialorder %v493_v58, 0.0 }
  0xbc   : > { %v567_v0 = vmul.f32 0.2, %v493_v58  ;;  %vm512_vm9 = vcmp.ge.f32.partialorder %v436_v61, 0.0  ;;  %v544_v1 = vmul.f32 0.2, %v436_v61  ;;  %vm520_vm10 = vcmp.ge.f32.partialorder %v456_v62, 0.0 }
  0xbd   : > { %v591_v2 = vsel %vm527_vm7, %v473_v57, %v559_v63  ;;  %v552_v3 = vmul.f32 0.2, %v456_v62 }
  0xbe   : > { %v623_v4 = vpack.c.bf16 %v591_v2, %v591_v2  ;;  %v599_v5 = vsel %vm535_vm8, %v493_v58, %v567_v0  ;;  %v576_v6 = vsel %vm512_vm9, %v436_v61, %v544_v1 }
  0xbf   : > { %v631_v7 = vpack.c.bf16 %v599_v5, %v599_v5  ;;  %v608_v8 = vpack.c.bf16 %v576_v6, %v576_v6  ;;  %v584_v9 = vsel %vm520_vm10, %v456_v62, %v552_v3 }
  0xc0   : > { %656 = vst.msk [vmem:[%s1082_s17 + $0x44] sm:$0xf] %vm638_vm2, %v623_v4  ;;  %v616_v10 = vpack.c.bf16 %v584_v9, %v584_v9  ;;  %v475_v11 = vpop.f32.mrf.mxu2  ;;  %v495_v12 = vpop.f32.mrf.mxu3 }
  0xc1   : > { %664 = vst.msk [vmem:[%s1082_s17 + $0x64] sm:$0xf] %vm638_vm2, %v631_v7  ;;  %v476_v13 = vadd.f32 %v1073_v24, %v475_v11  ;;  %v496_v14 = vadd.f32 %v1073_v24, %v495_v12  ;;  %v437_v15 = vpop.f32.mrf.mxu0  ;;  %v457_v16 = vpop.f32.mrf.mxu1 }
  0xc2   : > { %641 = vst.msk [vmem:[%s1082_s17 + $0x8] sm:$0xf] %vm638_vm2, %v608_v8  ;;  %v438_v17 = vadd.f32 %v1073_v24, %v437_v15  ;;  %v458_v18 = vadd.f32 %v1073_v24, %v457_v16 }
  0xc3   : > { %649 = vst.msk [vmem:[%s1082_s17 + $0x28] sm:$0xf] %vm638_vm2, %v616_v10  ;;  %vm528_vm11 = vcmp.ge.f32.partialorder %v476_v13, 0.0  ;;  %v560_v19 = vmul.f32 0.2, %v476_v13  ;;  %vm536_vm12 = vcmp.ge.f32.partialorder %v496_v14, 0.0 }
  0xc4   : > { %v568_v20 = vmul.f32 0.2, %v496_v14  ;;  %vm513_vm13 = vcmp.ge.f32.partialorder %v438_v17, 0.0  ;;  %v545_v21 = vmul.f32 0.2, %v438_v17  ;;  %vm521_vm14 = vcmp.ge.f32.partialorder %v458_v18, 0.0 }
  0xc5   : > { %v592_v22 = vsel %vm528_vm11, %v476_v13, %v560_v19  ;;  %v553_v23 = vmul.f32 0.2, %v458_v18 }
  0xc6   : > { %v624_v25 = vpack.c.bf16 %v592_v22, %v592_v22  ;;  %v600_v26 = vsel %vm536_vm12, %v496_v14, %v568_v20  ;;  %v577_v27 = vsel %vm513_vm13, %v438_v17, %v545_v21 }
  0xc7   : > { %v632_v28 = vpack.c.bf16 %v600_v26, %v600_v26  ;;  %v609_v29 = vpack.c.bf16 %v577_v27, %v577_v27  ;;  %v585_v30 = vsel %vm521_vm14, %v458_v18, %v553_v23 }
  0xc8   : > { %657 = vst.msk [vmem:[%s1082_s17 + $0x48] sm:$0xf] %vm638_vm2, %v624_v25  ;;  %v617_v31 = vpack.c.bf16 %v585_v30, %v585_v30  ;;  %v477_v32 = vpop.f32.mrf.mxu2  ;;  %v497_v33 = vpop.f32.mrf.mxu3 }
  0xc9   : > { %665 = vst.msk [vmem:[%s1082_s17 + $0x68] sm:$0xf] %vm638_vm2, %v632_v28  ;;  %v478_v34 = vadd.f32 %v1073_v24, %v477_v32  ;;  %v498_v35 = vadd.f32 %v1073_v24, %v497_v33  ;;  %v440_v36 = vpop.f32.mrf.mxu0  ;;  %v460_v37 = vpop.f32.mrf.mxu1 }
  0xca   : > { %642 = vst.msk [vmem:[%s1082_s17 + $0xc] sm:$0xf] %vm638_vm2, %v609_v29  ;;  %v441_v38 = vadd.f32 %v1073_v24, %v440_v36  ;;  %v461_v39 = vadd.f32 %v1073_v24, %v460_v37 }
  0xcb   : > { %650 = vst.msk [vmem:[%s1082_s17 + $0x2c] sm:$0xf] %vm638_vm2, %v617_v31  ;;  %vm529_vm15 = vcmp.ge.f32.partialorder %v478_v34, 0.0  ;;  %v561_v40 = vmul.f32 0.2, %v478_v34  ;;  %vm537_vm0 = vcmp.ge.f32.partialorder %v498_v35, 0.0 }
  0xcc   : > { %v569_v41 = vmul.f32 0.2, %v498_v35  ;;  %vm514_vm1 = vcmp.ge.f32.partialorder %v441_v38, 0.0  ;;  %v546_v42 = vmul.f32 0.2, %v441_v38  ;;  %vm522_vm3 = vcmp.ge.f32.partialorder %v461_v39, 0.0 }
  0xcd   : > { %v593_v43 = vsel %vm529_vm15, %v478_v34, %v561_v40  ;;  %v554_v44 = vmul.f32 0.2, %v461_v39 }
  0xce   : > { %v625_v45 = vpack.c.bf16 %v593_v43, %v593_v43  ;;  %v601_v46 = vsel %vm537_vm0, %v498_v35, %v569_v41  ;;  %v578_v47 = vsel %vm514_vm1, %v441_v38, %v546_v42 }
  0xcf   : > { %v633_v48 = vpack.c.bf16 %v601_v46, %v601_v46  ;;  %v610_v49 = vpack.c.bf16 %v578_v47, %v578_v47  ;;  %v586_v50 = vsel %vm522_vm3, %v461_v39, %v554_v44 }
  0xd0   : > { %658 = vst.msk [vmem:[%s1082_s17 + $0x4c] sm:$0xf] %vm638_vm2, %v625_v45  ;;  %v618_v51 = vpack.c.bf16 %v586_v50, %v586_v50  ;;  %v480_v52 = vpop.f32.mrf.mxu2  ;;  %v500_v53 = vpop.f32.mrf.mxu3 }
  0xd1   : > { %666 = vst.msk [vmem:[%s1082_s17 + $0x6c] sm:$0xf] %vm638_vm2, %v633_v48  ;;  %v481_v54 = vadd.f32 %v1073_v24, %v480_v52  ;;  %v501_v55 = vadd.f32 %v1073_v24, %v500_v53  ;;  %v442_v56 = vpop.f32.mrf.mxu0  ;;  %v462_v57 = vpop.f32.mrf.mxu1 }
  0xd2   : > { %643 = vst.msk [vmem:[%s1082_s17 + $0x10] sm:$0xf] %vm638_vm2, %v610_v49  ;;  %v443_v58 = vadd.f32 %v1073_v24, %v442_v56  ;;  %v463_v59 = vadd.f32 %v1073_v24, %v462_v57 }
  0xd3   : > { %651 = vst.msk [vmem:[%s1082_s17 + $0x30] sm:$0xf] %vm638_vm2, %v618_v51  ;;  %vm530_vm4 = vcmp.ge.f32.partialorder %v481_v54, 0.0  ;;  %v562_v60 = vmul.f32 0.2, %v481_v54  ;;  %vm538_vm5 = vcmp.ge.f32.partialorder %v501_v55, 0.0 }
  0xd4   : > { %v570_v61 = vmul.f32 0.2, %v501_v55  ;;  %vm515_vm6 = vcmp.ge.f32.partialorder %v443_v58, 0.0  ;;  %v547_v62 = vmul.f32 0.2, %v443_v58  ;;  %vm523_vm7 = vcmp.ge.f32.partialorder %v463_v59, 0.0 }
  0xd5   : > { %v594_v63 = vsel %vm530_vm4, %v481_v54, %v562_v60  ;;  %v555_v0 = vmul.f32 0.2, %v463_v59 }
  0xd6   : > { %v626_v1 = vpack.c.bf16 %v594_v63, %v594_v63  ;;  %v602_v2 = vsel %vm538_vm5, %v501_v55, %v570_v61  ;;  %v579_v3 = vsel %vm515_vm6, %v443_v58, %v547_v62 }
  0xd7   : > { %v634_v4 = vpack.c.bf16 %v602_v2, %v602_v2  ;;  %v611_v5 = vpack.c.bf16 %v579_v3, %v579_v3  ;;  %v587_v6 = vsel %vm523_vm7, %v463_v59, %v555_v0 }
  0xd8   : > { %659 = vst.msk [vmem:[%s1082_s17 + $0x50] sm:$0xf] %vm638_vm2, %v626_v1  ;;  %v619_v7 = vpack.c.bf16 %v587_v6, %v587_v6  ;;  %v482_v8 = vpop.f32.mrf.mxu2  ;;  %v502_v9 = vpop.f32.mrf.mxu3 }
  0xd9   : > { %667 = vst.msk [vmem:[%s1082_s17 + $0x70] sm:$0xf] %vm638_vm2, %v634_v4  ;;  %v483_v10 = vadd.f32 %v1073_v24, %v482_v8  ;;  %v503_v11 = vadd.f32 %v1073_v24, %v502_v9  ;;  %v445_v12 = vpop.f32.mrf.mxu0  ;;  %v465_v13 = vpop.f32.mrf.mxu1 }
  0xda   : > { %644 = vst.msk [vmem:[%s1082_s17 + $0x14] sm:$0xf] %vm638_vm2, %v611_v5  ;;  %v446_v14 = vadd.f32 %v1073_v24, %v445_v12  ;;  %v466_v15 = vadd.f32 %v1073_v24, %v465_v13 }
  0xdb   : > { %652 = vst.msk [vmem:[%s1082_s17 + $0x34] sm:$0xf] %vm638_vm2, %v619_v7  ;;  %vm531_vm8 = vcmp.ge.f32.partialorder %v483_v10, 0.0  ;;  %v563_v16 = vmul.f32 0.2, %v483_v10  ;;  %vm539_vm9 = vcmp.ge.f32.partialorder %v503_v11, 0.0 }
  0xdc   : > { %v571_v17 = vmul.f32 0.2, %v503_v11  ;;  %vm516_vm10 = vcmp.ge.f32.partialorder %v446_v14, 0.0  ;;  %v548_v18 = vmul.f32 0.2, %v446_v14  ;;  %vm524_vm11 = vcmp.ge.f32.partialorder %v466_v15, 0.0 }
  0xdd   : > { %v595_v19 = vsel %vm531_vm8, %v483_v10, %v563_v16  ;;  %v556_v20 = vmul.f32 0.2, %v466_v15 }
  0xde   : > { %v627_v21 = vpack.c.bf16 %v595_v19, %v595_v19  ;;  %v603_v22 = vsel %vm539_vm9, %v503_v11, %v571_v17  ;;  %v580_v23 = vsel %vm516_vm10, %v446_v14, %v548_v18 }
  0xdf   : > { %v635_v25 = vpack.c.bf16 %v603_v22, %v603_v22  ;;  %v612_v26 = vpack.c.bf16 %v580_v23, %v580_v23  ;;  %v588_v27 = vsel %vm524_vm11, %v466_v15, %v556_v20 }
  0xe0   : > { %660 = vst.msk [vmem:[%s1082_s17 + $0x54] sm:$0xf] %vm638_vm2, %v627_v21  ;;  %v620_v28 = vpack.c.bf16 %v588_v27, %v588_v27  ;;  %v485_v29 = vpop.f32.mrf.mxu2  ;;  %v505_v30 = vpop.f32.mrf.mxu3 }
  0xe1   : > { %668 = vst.msk [vmem:[%s1082_s17 + $0x74] sm:$0xf] %vm638_vm2, %v635_v25  ;;  %v486_v31 = vadd.f32 %v1073_v24, %v485_v29  ;;  %v506_v32 = vadd.f32 %v1073_v24, %v505_v30  ;;  %v447_v33 = vpop.f32.mrf.mxu0  ;;  %v467_v34 = vpop.f32.mrf.mxu1 }
  0xe2   : > { %645 = vst.msk [vmem:[%s1082_s17 + $0x18] sm:$0xf] %vm638_vm2, %v612_v26  ;;  %v448_v35 = vadd.f32 %v1073_v24, %v447_v33  ;;  %v468_v36 = vadd.f32 %v1073_v24, %v467_v34 }
  0xe3   : > { %653 = vst.msk [vmem:[%s1082_s17 + $0x38] sm:$0xf] %vm638_vm2, %v620_v28  ;;  %vm532_vm12 = vcmp.ge.f32.partialorder %v486_v31, 0.0  ;;  %v564_v37 = vmul.f32 0.2, %v486_v31  ;;  %vm540_vm13 = vcmp.ge.f32.partialorder %v506_v32, 0.0 }
  0xe4   : > { %v572_v38 = vmul.f32 0.2, %v506_v32  ;;  %vm517_vm14 = vcmp.ge.f32.partialorder %v448_v35, 0.0  ;;  %v549_v39 = vmul.f32 0.2, %v448_v35  ;;  %vm525_vm15 = vcmp.ge.f32.partialorder %v468_v36, 0.0 }
  0xe5   : > { %v596_v40 = vsel %vm532_vm12, %v486_v31, %v564_v37  ;;  %v557_v41 = vmul.f32 0.2, %v468_v36 }
  0xe6   : > { %v628_v42 = vpack.c.bf16 %v596_v40, %v596_v40  ;;  %v604_v43 = vsel %vm540_vm13, %v506_v32, %v572_v38  ;;  %v581_v44 = vsel %vm517_vm14, %v448_v35, %v549_v39 }
  0xe7   : > { %v636_v45 = vpack.c.bf16 %v604_v43, %v604_v43  ;;  %v613_v46 = vpack.c.bf16 %v581_v44, %v581_v44  ;;  %v589_v47 = vsel %vm525_vm15, %v468_v36, %v557_v41 }
  0xe8   : > { %661 = vst.msk [vmem:[%s1082_s17 + $0x58] sm:$0xf] %vm638_vm2, %v628_v42  ;;  %v621_v48 = vpack.c.bf16 %v589_v47, %v589_v47  ;;  %v487_v49 = vpop.f32.mrf.mxu2  ;;  %v507_v50 = vpop.f32.mrf.mxu3 }
  0xe9   : > { %669 = vst.msk [vmem:[%s1082_s17 + $0x78] sm:$0xf] %vm638_vm2, %v636_v45  ;;  %v488_v51 = vadd.f32 %v1073_v24, %v487_v49  ;;  %v508_v52 = vadd.f32 %v1073_v24, %v507_v50 }
  0xea   : > { %646 = vst.msk [vmem:[%s1082_s17 + $0x1c] sm:$0xf] %vm638_vm2, %v613_v46 }
  0xeb   : > { %654 = vst.msk [vmem:[%s1082_s17 + $0x3c] sm:$0xf] %vm638_vm2, %v621_v48  ;;  %vm533_vm0 = vcmp.ge.f32.partialorder %v488_v51, 0.0  ;;  %v565_v53 = vmul.f32 0.2, %v488_v51  ;;  %vm541_vm1 = vcmp.ge.f32.partialorder %v508_v52, 0.0 }
  0xec   : > { %v573_v54 = vmul.f32 0.2, %v508_v52 }
  0xed   : > { %v597_v55 = vsel %vm533_vm0, %v488_v51, %v565_v53 }
  0xee   : > { %v629_v56 = vpack.c.bf16 %v597_v55, %v597_v55  ;;  %v605_v57 = vsel %vm541_vm1, %v508_v52, %v573_v54 }
  0xef   : > { %v637_v58 = vpack.c.bf16 %v605_v57, %v605_v57 }
  0xf0   : > { %662 = vst.msk [vmem:[%s1082_s17 + $0x5c] sm:$0xf] %vm638_vm2, %v629_v56 }
  0xf1   : > { %670 = vst.msk [vmem:[%s1082_s17 + $0x7c] sm:$0xf] %vm638_vm2, %v637_v58 }
  0xf2 PF: > { %s13_s14 = sadd.s32 1, %s977_s14   ;;  %s1191_s12 = smov %s973_s13 }
  0xf3   : > { %p10_p5 = scmp.ge.s32.totalorder %s13_s14, 4   ;;  %s1192_s13 = smov %s1194_s15 }
  0xf5   :  { %12 = sbr.rel (!%p10_p5) target bundleno = 2 (0x2), region = 68 }

// kernel: discriminator_forward.6
= control target key start
LH: loop header
LB: loop body
LE: loop exit
PB: predicated region body
PF: predicated region fallthrough
CT: control target
= control target key end

     0   :  { %s3072_s1 = inlined_call_operand.vmem [shape: bf16[1024,128], index: 1, kind: input, shape index: {}]   ;;  %s3073_s2 = inlined_call_operand.vmem [shape: f32[1,128], index: 2, kind: input, shape index: {}]   ;;  %s3074_s0 = inlined_call_operand.vmem [shape: bf16[128,1024], index: 0, kind: input, shape index: {}]   ;;  %s3075_s3 = inlined_call_operand.vmem [shape: f32[1,128], index: 3, kind: input, shape index: {}]   ;;  %s3076_s4 = inlined_call_operand.vmem [shape: f32[1,128], index: 4, kind: input, shape index: {}]   ;;  %s3077_s5 = inlined_call_operand.vmem [shape: bf16[128,128], index: 5, kind: output, shape index: {}]  }
   0x1   :  { %v2122_v0 = vld [vmem:[%s3072_s1 + $0x38] sm:$0xff]  ;;  %v2121_v4 = vld [vmem:[%s3072_s1 + $0x30] sm:$0xff]  ;;  %v2120_v8 = vld [vmem:[%s3072_s1 + $0x28] sm:$0xff] }
   0x2   :  { %v2130_v1 = vld [vmem:[%s3072_s1 + $0x78] sm:$0xff]  ;;  %920 = vmatpush.bf16.msra.mxu0 %v2122_v0  ;;  %v2129_v5 = vld [vmem:[%s3072_s1 + $0x70] sm:$0xff]  ;;  %v2128_v9 = vld [vmem:[%s3072_s1 + $0x68] sm:$0xff] }
   0x3   :  { %v2138_v2 = vld [vmem:[%s3072_s1 + $0xb8] sm:$0xff]  ;;  %969 = vmatpush.bf16.msra.mxu1 %v2130_v1  ;;  %v2137_v6 = vld [vmem:[%s3072_s1 + $0xb0] sm:$0xff]  ;;  %v2136_v10 = vld [vmem:[%s3072_s1 + $0xa8] sm:$0xff] }
   0x4   :  { %v2146_v3 = vld [vmem:[%s3072_s1 + $0xf8] sm:$0xff]  ;;  %1018 = vmatpush.bf16.msra.mxu2 %v2138_v2  ;;  %v2145_v7 = vld [vmem:[%s3072_s1 + $0xf0] sm:$0xff]  ;;  %v2144_v11 = vld [vmem:[%s3072_s1 + $0xe8] sm:$0xff] }
   0x5   :  { %1067 = vmatpush.bf16.msra.mxu3 %v2146_v3  ;;  %v2119_v12 = vld [vmem:[%s3072_s1 + $0x20] sm:$0xff]  ;;  %v2118_v16 = vld [vmem:[%s3072_s1 + $0x18] sm:$0xff]  ;;  %v2117_v20 = vld [vmem:[%s3072_s1 + $0x10] sm:$0xff] }
   0x6   :  { %921 = vmatpush.bf16.msra.mxu0 %v2121_v4  ;;  %v2127_v13 = vld [vmem:[%s3072_s1 + $0x60] sm:$0xff]  ;;  %v2126_v17 = vld [vmem:[%s3072_s1 + $0x58] sm:$0xff]  ;;  %v2125_v21 = vld [vmem:[%s3072_s1 + $0x50] sm:$0xff] }
   0x7   :  { %970 = vmatpush.bf16.msra.mxu1 %v2129_v5  ;;  %v2135_v14 = vld [vmem:[%s3072_s1 + $0xa0] sm:$0xff]  ;;  %v2134_v18 = vld [vmem:[%s3072_s1 + $0x98] sm:$0xff]  ;;  %v2133_v22 = vld [vmem:[%s3072_s1 + $0x90] sm:$0xff] }
   0x8   :  { %1019 = vmatpush.bf16.msra.mxu2 %v2137_v6  ;;  %v2143_v15 = vld [vmem:[%s3072_s1 + $0xe0] sm:$0xff]  ;;  %v2142_v19 = vld [vmem:[%s3072_s1 + $0xd8] sm:$0xff]  ;;  %v2141_v23 = vld [vmem:[%s3072_s1 + $0xd0] sm:$0xff] }
   0x9   :  { %1068 = vmatpush.bf16.msra.mxu3 %v2145_v7  ;;  %v2116_v24 = vld [vmem:[%s3072_s1 + $0x8] sm:$0xff]  ;;  %v2115_v28 = vld [vmem:[%s3072_s1] sm:$0xff]  ;;  %v2170_v40 = vld [vmem:[%s3072_s1 + $0x1b8] sm:$0xff] }
   0xa   :  { %922 = vmatpush.bf16.msra.mxu0 %v2120_v8  ;;  %v2124_v25 = vld [vmem:[%s3072_s1 + $0x48] sm:$0xff]  ;;  %v2123_v29 = vld [vmem:[%s3072_s1 + $0x40] sm:$0xff]  ;;  %v2154_v41 = vld [vmem:[%s3072_s1 + $0x138] sm:$0xff] }
   0xb   :  { %971 = vmatpush.bf16.msra.mxu1 %v2128_v9  ;;  %v2132_v26 = vld [vmem:[%s3072_s1 + $0x88] sm:$0xff]  ;;  %v2131_v30 = vld [vmem:[%s3072_s1 + $0x80] sm:$0xff]  ;;  %v2178_v46 = vld [vmem:[%s3072_s1 + $0x1f8] sm:$0xff] }
   0xc   :  { %1020 = vmatpush.bf16.msra.mxu2 %v2136_v10  ;;  %v2140_v27 = vld [vmem:[%s3072_s1 + $0xc8] sm:$0xff]  ;;  %v2139_v31 = vld [vmem:[%s3072_s1 + $0xc0] sm:$0xff]  ;;  %v2162_v47 = vld [vmem:[%s3072_s1 + $0x178] sm:$0xff] }
   0xd   :  { %1069 = vmatpush.bf16.msra.mxu3 %v2144_v11  ;;  %v1541_v32 = vld [vmem:[%s3074_s0] sm:$0xf]  ;;  %v2051_v34 = vld [vmem:[%s3074_s0 + $0x4] sm:$0xf]  ;;  %v1549_v36 = vld [vmem:[%s3074_s0 + $0x8] sm:$0xf] }
   0xe   :  { %923 = vmatpush.bf16.msra.mxu0 %v2119_v12  ;;  %v2055_v33 = vld [vmem:[%s3074_s0 + $0x1c] sm:$0xf0]  ;;  %v1543_v35 = vld [vmem:[%s3074_s0 + $0x20] sm:$0xf0]  ;;  %v2056_v37 = vld [vmem:[%s3074_s0 + $0x24] sm:$0xf0] }
   0xf   :  { %972 = vmatpush.bf16.msra.mxu1 %v2127_v13  ;;  %v2052_v38 = vld [vmem:[%s3074_s0 + $0xc] sm:$0xf]  ;;  %v1542_v42 = vor.u32 %v2055_v33, %v1541_v32  ;;  %v1546_v43 = vor.u32 %v2051_v34, %v1543_v35  ;;  %v1550_v44 = vor.u32 %v2056_v37, %v1549_v36  ;;  %v2169_v48 = vld [vmem:[%s3072_s1 + $0x1b0] sm:$0xff]  ;;  %v1573_v56 = vld [vmem:[%s3074_s0 + $0x40] sm:$0xf] }
  0x10   :  { %1021 = vmatpush.bf16.msra.mxu2 %v2135_v14  ;;  %v1551_v39 = vld [vmem:[%s3074_s0 + $0x28] sm:$0xf0]  ;;  %v2153_v49 = vld [vmem:[%s3072_s1 + $0x130] sm:$0xff]  ;;  %v2063_v57 = vld [vmem:[%s3074_s0 + $0x5c] sm:$0xf0] }
  0x11   :  { %1070 = vmatpush.bf16.msra.mxu3 %v2143_v15  ;;  %v1554_v45 = vor.u32 %v2052_v38, %v1551_v39  ;;  %v2177_v50 = vld [vmem:[%s3072_s1 + $0x1f0] sm:$0xff]  ;;  %v2168_v52 = vld [vmem:[%s3072_s1 + $0x1a8] sm:$0xff]  ;;  %v2059_v58 = vld [vmem:[%s3074_s0 + $0x44] sm:$0xf]  ;;  %v1574_v0 = vor.u32 %v2063_v57, %v1573_v56 }
  0x12   :  { %924 = vmatpush.bf16.msra.mxu0 %v2118_v16  ;;  %v2161_v51 = vld [vmem:[%s3072_s1 + $0x170] sm:$0xff]  ;;  %v2152_v53 = vld [vmem:[%s3072_s1 + $0x128] sm:$0xff]  ;;  %v1575_v59 = vld [vmem:[%s3074_s0 + $0x60] sm:$0xf0] }
  0x13   :  { %973 = vmatpush.bf16.msra.mxu1 %v2126_v17  ;;  %v2176_v54 = vld [vmem:[%s3072_s1 + $0x1e8] sm:$0xff]  ;;  %v1578_v1 = vor.u32 %v2059_v58, %v1575_v59  ;;  %v2167_v4 = vld [vmem:[%s3072_s1 + $0x1a0] sm:$0xff]  ;;  %v2165_v36 = vld [vmem:[%s3072_s1 + $0x190] sm:$0xff] }
  0x14   :  { %1022 = vmatpush.bf16.msra.mxu2 %v2134_v18  ;;  %v2160_v55 = vld [vmem:[%s3072_s1 + $0x168] sm:$0xff]  ;;  %v2151_v5 = vld [vmem:[%s3072_s1 + $0x120] sm:$0xff]  ;;  %v2149_v37 = vld [vmem:[%s3072_s1 + $0x110] sm:$0xff] }
  0x15   :  { %1071 = vmatpush.bf16.msra.mxu3 %v2142_v19  ;;  %v1581_v60 = vld [vmem:[%s3074_s0 + $0x48] sm:$0xf]  ;;  %v2060_v62 = vld [vmem:[%s3074_s0 + $0x4c] sm:$0xf]  ;;  %v2175_v6 = vld [vmem:[%s3072_s1 + $0x1e0] sm:$0xff] }
  0x16   :  { %925 = vmatpush.bf16.msra.mxu0 %v2117_v20  ;;  %v2064_v61 = vld [vmem:[%s3074_s0 + $0x64] sm:$0xf0]  ;;  %v1583_v63 = vld [vmem:[%s3074_s0 + $0x68] sm:$0xf0]  ;;  %v2159_v7 = vld [vmem:[%s3072_s1 + $0x160] sm:$0xff] }
  0x17   :  { %974 = vmatpush.bf16.msra.mxu1 %v2125_v21  ;;  %v1582_v2 = vor.u32 %v2064_v61, %v1581_v60  ;;  %v1586_v3 = vor.u32 %v2060_v62, %v1583_v63  ;;  %v1605_v8 = vld [vmem:[%s3074_s0 + $0x80] sm:$0xf]  ;;  %v2067_v10 = vld [vmem:[%s3074_s0 + $0x84] sm:$0xf]  ;;  %v1613_v12 = vld [vmem:[%s3074_s0 + $0x88] sm:$0xf] }
  0x18   :  { %1023 = vmatpush.bf16.msra.mxu2 %v2133_v22  ;;  %v2071_v9 = vld [vmem:[%s3074_s0 + $0x9c] sm:$0xf0]  ;;  %v1607_v11 = vld [vmem:[%s3074_s0 + $0xa0] sm:$0xf0]  ;;  %v2072_v13 = vld [vmem:[%s3074_s0 + $0xa4] sm:$0xf0] }
  0x19   :  { %1072 = vmatpush.bf16.msra.mxu3 %v2141_v23  ;;  %v2068_v14 = vld [vmem:[%s3074_s0 + $0x8c] sm:$0xf]  ;;  %v1606_v16 = vor.u32 %v2071_v9, %v1605_v8  ;;  %v1610_v17 = vor.u32 %v2067_v10, %v1607_v11  ;;  %v1614_v18 = vor.u32 %v2072_v13, %v1613_v12  ;;  %v2166_v20 = vld [vmem:[%s3072_s1 + $0x198] sm:$0xff]  ;;  %v2173_v38 = vld [vmem:[%s3072_s1 + $0x1d0] sm:$0xff] }
  0x1a   :  { %926 = vmatpush.bf16.msra.mxu0 %v2116_v24  ;;  %v1615_v15 = vld [vmem:[%s3074_s0 + $0xa8] sm:$0xf0]  ;;  %v2150_v21 = vld [vmem:[%s3072_s1 + $0x118] sm:$0xff]  ;;  %v1637_v24 = vld [vmem:[%s3074_s0 + $0xc0] sm:$0xf] }
  0x1b   :  { %975 = vmatpush.bf16.msra.mxu1 %v2124_v25  ;;  %v1618_v19 = vor.u32 %v2068_v14, %v1615_v15  ;;  %v2174_v22 = vld [vmem:[%s3072_s1 + $0x1d8] sm:$0xff]  ;;  %v2079_v25 = vld [vmem:[%s3074_s0 + $0xdc] sm:$0xf0]  ;;  %v2157_v39 = vld [vmem:[%s3072_s1 + $0x150] sm:$0xff] }
  0x1c   :  { %1024 = vmatpush.bf16.msra.mxu2 %v2132_v26  ;;  %v2158_v23 = vld [vmem:[%s3072_s1 + $0x158] sm:$0xff]  ;;  %v2075_v26 = vld [vmem:[%s3074_s0 + $0xc4] sm:$0xf]  ;;  %v1638_v32 = vor.u32 %v2079_v25, %v1637_v24  ;;  %v1701_v56 = vld [vmem:[%s3074_s0 + $0x140] sm:$0xf] }
  0x1d   :  { %1073 = vmatpush.bf16.msra.mxu3 %v2140_v27  ;;  %v1639_v27 = vld [vmem:[%s3074_s0 + $0xe0] sm:$0xf0]  ;;  %v2095_v57 = vld [vmem:[%s3074_s0 + $0x15c] sm:$0xf0]  ;;  %v1709_v60 = vld [vmem:[%s3074_s0 + $0x148] sm:$0xf] }
  0x1e   :  { %927 = vmatpush.bf16.msra.mxu0 %v2115_v28  ;;  %v1645_v28 = vld [vmem:[%s3074_s0 + $0xc8] sm:$0xf]  ;;  %v1642_v33 = vor.u32 %v2075_v26, %v1639_v27  ;;  %v2091_v58 = vld [vmem:[%s3074_s0 + $0x144] sm:$0xf]  ;;  %v2092_v62 = vld [vmem:[%s3074_s0 + $0x14c] sm:$0xf] }
  0x1f   :  { %976 = vmatpush.bf16.msra.mxu1 %v2123_v29  ;;  %v2080_v29 = vld [vmem:[%s3074_s0 + $0xe4] sm:$0xf0]  ;;  %v1703_v59 = vld [vmem:[%s3074_s0 + $0x160] sm:$0xf0]  ;;  %v1711_v63 = vld [vmem:[%s3074_s0 + $0x168] sm:$0xf0] }
  0x20   :  { %1025 = vmatpush.bf16.msra.mxu2 %v2131_v30  ;;  %v2076_v30 = vld [vmem:[%s3074_s0 + $0xcc] sm:$0xf]  ;;  %v1646_v34 = vor.u32 %v2080_v29, %v1645_v28  ;;  %v2096_v61 = vld [vmem:[%s3074_s0 + $0x164] sm:$0xf0]  ;;  %v1733_v8 = vld [vmem:[%s3074_s0 + $0x180] sm:$0xf] }
  0x21   :  { %1074 = vmatpush.bf16.msra.mxu3 %v2139_v31  ;;  %928 = vmatmul.bf16.vlgmr.msra.gmra.mxu0 %v1542_v42  ;;  %v1647_v31 = vld [vmem:[%s3074_s0 + $0xe8] sm:$0xf0]  ;;  %v2083_v42 = vld [vmem:[%s3074_s0 + $0x104] sm:$0xf]  ;;  %v2103_v9 = vld [vmem:[%s3074_s0 + $0x19c] sm:$0xf0] }
  0x22   :  { %1116 = vmatpush.bf16.msrb.mxu0 %v2154_v41  ;;  %977 = vmatmul.bf16.vlgmr.msra.gmra.mxu1 %v1546_v43  ;;  %v1650_v35 = vor.u32 %v2076_v30, %v1647_v31  ;;  %v2087_v41 = vld [vmem:[%s3074_s0 + $0x11c] sm:$0xf0]  ;;  %v1671_v43 = vld [vmem:[%s3074_s0 + $0x120] sm:$0xf0]  ;;  %v1741_v12 = vld [vmem:[%s3074_s0 + $0x188] sm:$0xf] }
  0x23   :  { %1026 = vmatmul.bf16.vlgmr.msra.gmra.mxu2 %v1550_v44  ;;  %1165 = vmatpush.bf16.msrb.mxu1 %v2162_v47  ;;  %v1677_v44 = vld [vmem:[%s3074_s0 + $0x108] sm:$0xf]  ;;  %v1679_v47 = vld [vmem:[%s3074_s0 + $0x128] sm:$0xf0]  ;;  %v2099_v10 = vld [vmem:[%s3074_s0 + $0x184] sm:$0xf] }
  0x24   :  { %1214 = vmatpush.bf16.msrb.mxu2 %v2170_v40  ;;  %1075 = vmatmul.bf16.vlgmr.msra.gmra.mxu3 %v1554_v45  ;;  %v1669_v40 = vld [vmem:[%s3074_s0 + $0x100] sm:$0xf]  ;;  %v2088_v45 = vld [vmem:[%s3074_s0 + $0x124] sm:$0xf0]  ;;  %v1735_v11 = vld [vmem:[%s3074_s0 + $0x1a0] sm:$0xf0] }
  0x25   :  { %1263 = vmatpush.bf16.msrb.mxu3 %v2178_v46  ;;  %v2084_v46 = vld [vmem:[%s3074_s0 + $0x10c] sm:$0xf]  ;;  %v2104_v13 = vld [vmem:[%s3074_s0 + $0x1a4] sm:$0xf0] }
  0x26   :  { %1117 = vmatpush.bf16.msrb.mxu0 %v2153_v49  ;;  %v1674_v49 = vor.u32 %v2083_v42, %v1671_v43  ;;  %v2100_v14 = vld [vmem:[%s3074_s0 + $0x18c] sm:$0xf]  ;;  %v1773_v24 = vld [vmem:[%s3074_s0 + $0x1c8] sm:$0xf] }
  0x27   :  { %1166 = vmatpush.bf16.msrb.mxu1 %v2161_v51  ;;  %v1682_v51 = vor.u32 %v2084_v46, %v1679_v47  ;;  %v1743_v15 = vld [vmem:[%s3074_s0 + $0x1a8] sm:$0xf0]  ;;  %v2112_v25 = vld [vmem:[%s3074_s0 + $0x1e4] sm:$0xf0] }
  0x28   :  { %1215 = vmatpush.bf16.msrb.mxu2 %v2169_v48  ;;  %v1670_v48 = vor.u32 %v2087_v41, %v1669_v40  ;;  %v2108_v26 = vld [vmem:[%s3074_s0 + $0x1cc] sm:$0xf]  ;;  %v1774_v30 = vor.u32 %v2112_v25, %v1773_v24  ;;  %v1567_v40 = vld [vmem:[%s3074_s0 + $0x38] sm:$0xf0]  ;;  %v1623_v24 = vld [vmem:[%s3074_s0 + $0xb0] sm:$0xf0] }
  0x29   :  { %1264 = vmatpush.bf16.msrb.mxu3 %v2177_v50  ;;  %v1678_v50 = vor.u32 %v2088_v45, %v1677_v44  ;;  %v1775_v27 = vld [vmem:[%s3074_s0 + $0x1e8] sm:$0xf0]  ;;  %v1629_v25 = vld [vmem:[%s3074_s0 + $0x98] sm:$0xf] }
  0x2a   :  { %1118 = vmatpush.bf16.msrb.mxu0 %v2152_v53  ;;  %v2148_v53 = vld [vmem:[%s3072_s1 + $0x108] sm:$0xff]  ;;  %v1778_v31 = vor.u32 %v2108_v26, %v1775_v27  ;;  %v2074_v26 = vld [vmem:[%s3074_s0 + $0xb4] sm:$0xf0]  ;;  %v2070_v27 = vld [vmem:[%s3074_s0 + $0x9c] sm:$0xf] }
  0x2b   :  { %1167 = vmatpush.bf16.msrb.mxu1 %v2160_v55  ;;  %v2156_v55 = vld [vmem:[%s3072_s1 + $0x148] sm:$0xff] }
  0x2c   :  { %1216 = vmatpush.bf16.msrb.mxu2 %v2168_v52  ;;  %v2164_v52 = vld [vmem:[%s3072_s1 + $0x188] sm:$0xff] }
  0x2d   :  { %1265 = vmatpush.bf16.msrb.mxu3 %v2176_v54  ;;  %v2172_v54 = vld [vmem:[%s3072_s1 + $0x1c8] sm:$0xff] }
  0x2e   :  { %1119 = vmatpush.bf16.msrb.mxu0 %v2151_v5  ;;  %v2147_v5 = vld [vmem:[%s3072_s1 + $0x100] sm:$0xff] }
  0x2f   :  { %1168 = vmatpush.bf16.msrb.mxu1 %v2159_v7  ;;  %v2155_v7 = vld [vmem:[%s3072_s1 + $0x140] sm:$0xff] }
  0x30   :  { %1217 = vmatpush.bf16.msrb.mxu2 %v2167_v4  ;;  %v2163_v4 = vld [vmem:[%s3072_s1 + $0x180] sm:$0xff] }
  0x31   :  { %933 = vmatmul.bf16.gmra.mxu0 %v1574_v0  ;;  %1266 = vmatpush.bf16.msrb.mxu3 %v2175_v6  ;;  %v1702_v0 = vor.u32 %v2095_v57, %v1701_v56  ;;  %v2171_v6 = vld [vmem:[%s3072_s1 + $0x1c0] sm:$0xff]  ;;  %v1589_v57 = vld [vmem:[%s3074_s0 + $0x50] sm:$0xf] }
  0x32   :  { %982 = vmatmul.bf16.gmra.mxu1 %v1578_v1  ;;  %1120 = vmatpush.bf16.msrb.mxu0 %v2150_v21  ;;  %v1706_v1 = vor.u32 %v2091_v58, %v1703_v59  ;;  %v2111_v21 = vld [vmem:[%s3074_s0 + $0x1dc] sm:$0xf0]  ;;  %v2065_v58 = vld [vmem:[%s3074_s0 + $0x6c] sm:$0xf0]  ;;  %v2061_v59 = vld [vmem:[%s3074_s0 + $0x54] sm:$0xf] }
  0x33   :  { %1031 = vmatmul.bf16.gmra.mxu2 %v1582_v2  ;;  %1169 = vmatpush.bf16.msrb.mxu1 %v2158_v23  ;;  %v1710_v2 = vor.u32 %v2096_v61, %v1709_v60  ;;  %v1767_v23 = vld [vmem:[%s3074_s0 + $0x1e0] sm:$0xf0]  ;;  %v1591_v60 = vld [vmem:[%s3074_s0 + $0x70] sm:$0xf0]  ;;  %v1597_v61 = vld [vmem:[%s3074_s0 + $0x58] sm:$0xf] }
  0x34   :  { %1080 = vmatmul.bf16.gmra.mxu3 %v1586_v3  ;;  %1218 = vmatpush.bf16.msrb.mxu2 %v2166_v20  ;;  %v1714_v3 = vor.u32 %v2092_v62, %v1711_v63  ;;  %v1765_v20 = vld [vmem:[%s3074_s0 + $0x1c0] sm:$0xf]  ;;  %v2066_v62 = vld [vmem:[%s3074_s0 + $0x74] sm:$0xf0]  ;;  %v2062_v63 = vld [vmem:[%s3074_s0 + $0x5c] sm:$0xf] }
  0x35   :  { %1267 = vmatpush.bf16.msrb.mxu3 %v2174_v22  ;;  %v2107_v22 = vld [vmem:[%s3074_s0 + $0x1c4] sm:$0xf]  ;;  %v1766_v28 = vor.u32 %v2111_v21, %v1765_v20  ;;  %v1621_v21 = vld [vmem:[%s3074_s0 + $0x90] sm:$0xf] }
  0x36   :  { %1121 = vmatpush.bf16.msrb.mxu0 %v2149_v37  ;;  %v1770_v29 = vor.u32 %v2107_v22, %v1767_v23  ;;  %v1565_v37 = vld [vmem:[%s3074_s0 + $0x18] sm:$0xf]  ;;  %v2073_v22 = vld [vmem:[%s3074_s0 + $0xac] sm:$0xf0]  ;;  %v2069_v23 = vld [vmem:[%s3074_s0 + $0x94] sm:$0xf] }
  0x37   :  { %1170 = vmatpush.bf16.msrb.mxu1 %v2157_v39  ;;  %v2054_v39 = vld [vmem:[%s3074_s0 + $0x1c] sm:$0xf] }
  0x38   :  { %1219 = vmatpush.bf16.msrb.mxu2 %v2165_v36  ;;  %v1559_v36 = vld [vmem:[%s3074_s0 + $0x30] sm:$0xf0]  ;;  %v1570_v46 = vor.u32 %v2054_v39, %v1567_v40 }
  0x39   :  { %1268 = vmatpush.bf16.msrb.mxu3 %v2173_v38  ;;  %v2058_v38 = vld [vmem:[%s3074_s0 + $0x34] sm:$0xf0] }
  0x3a   :  { %1122 = vmatpush.bf16.msrb.mxu0 %v2148_v53  ;;  %v1566_v45 = vor.u32 %v2058_v38, %v1565_v37  ;;  %v1630_v37 = vor.u32 %v2074_v26, %v1629_v25 }
  0x3b   :  { %1171 = vmatpush.bf16.msrb.mxu1 %v2156_v55 }
  0x3c   :  { %1220 = vmatpush.bf16.msrb.mxu2 %v2164_v52 }
  0x3d   :  { %1269 = vmatpush.bf16.msrb.mxu3 %v2172_v54 }
  0x3e   :  { %1123 = vmatpush.bf16.msrb.mxu0 %v2147_v5 }
  0x3f   :  { %1172 = vmatpush.bf16.msrb.mxu1 %v2155_v7 }
  0x40   :  { %1221 = vmatpush.bf16.msrb.mxu2 %v2163_v4  ;;  %v1594_v4 = vor.u32 %v2061_v59, %v1591_v60 }
  0x41   :  { %938 = vmatmul.bf16.gmra.mxu0 %v1606_v16  ;;  %1270 = vmatpush.bf16.msrb.mxu3 %v2171_v6  ;;  %v1734_v16 = vor.u32 %v2103_v9, %v1733_v8  ;;  %v1598_v8 = vor.u32 %v2066_v62, %v1597_v61 }
  0x42   :  { %987 = vmatmul.bf16.gmra.mxu1 %v1610_v17  ;;  %v1738_v17 = vor.u32 %v2099_v10, %v1735_v11 }
  0x43   :  { %1036 = vmatmul.bf16.gmra.mxu2 %v1614_v18  ;;  %v1742_v18 = vor.u32 %v2104_v13, %v1741_v12 }
  0x44   :  { %1085 = vmatmul.bf16.gmra.mxu3 %v1618_v19  ;;  %v1746_v19 = vor.u32 %v2100_v14, %v1743_v15 }
  0x51   :  { %943 = vmatmul.bf16.gmra.mxu0 %v1638_v32  ;;  %v2648_v32 = vld [vmem:[%s3073_s2] ss:$0 sm:$0xff] }
  0x52   :  { %992 = vmatmul.bf16.gmra.mxu1 %v1642_v33  ;;  %v1557_v33 = vld [vmem:[%s3074_s0 + $0x10] sm:$0xf] }
  0x53   :  { %1041 = vmatmul.bf16.gmra.mxu2 %v1646_v34  ;;  %v2057_v34 = vld [vmem:[%s3074_s0 + $0x2c] sm:$0xf0] }
  0x54   :  { %1090 = vmatmul.bf16.gmra.mxu3 %v1650_v35  ;;  %v2053_v35 = vld [vmem:[%s3074_s0 + $0x14] sm:$0xf]  ;;  %v1558_v41 = vor.u32 %v2057_v34, %v1557_v33  ;;  %v1626_v33 = vor.u32 %v2069_v23, %v1623_v24  ;;  %v2086_v23 = vld [vmem:[%s3074_s0 + $0x11c] sm:$0xf] }
  0x55   :  { %v1562_v42 = vor.u32 %v2053_v35, %v1559_v36  ;;  %v1695_v24 = vld [vmem:[%s3074_s0 + $0x138] sm:$0xf0] }
  0x61   :  { %948 = vmatmul.bf16.gmra.mxu0 %v1670_v48 }
  0x62   :  { %997 = vmatmul.bf16.gmra.mxu1 %v1674_v49 }
  0x63   :  { %1046 = vmatmul.bf16.gmra.mxu2 %v1678_v50 }
  0x64   :  { %1095 = vmatmul.bf16.gmra.mxu3 %v1682_v51 }
  0x71   :  { %953 = vmatmul.bf16.gmra.mxu0 %v1702_v0  ;;  %v1599_v0 = vld [vmem:[%s3074_s0 + $0x78] sm:$0xf0] }
  0x72   :  { %1002 = vmatmul.bf16.gmra.mxu1 %v1706_v1  ;;  %v1602_v9 = vor.u32 %v2062_v63, %v1599_v0 }
  0x73   :  { %1051 = vmatmul.bf16.gmra.mxu2 %v1710_v2 }
  0x74   :  { %1100 = vmatmul.bf16.gmra.mxu3 %v1714_v3  ;;  %v1590_v3 = vor.u32 %v2065_v58, %v1589_v57  ;;  %v2078_v57 = vld [vmem:[%s3074_s0 + $0xdc] sm:$0xf] }
  0x75   :  { %v1663_v58 = vld [vmem:[%s3074_s0 + $0xf8] sm:$0xf0] }
  0x81   :  { %958 = vmatmul.bf16.gmra.mxu0 %v1734_v16 }
  0x82   :  { %1007 = vmatmul.bf16.gmra.mxu1 %v1738_v17 }
  0x83   :  { %1056 = vmatmul.bf16.gmra.mxu2 %v1742_v18 }
  0x84   :  { %1105 = vmatmul.bf16.gmra.mxu3 %v1746_v19 }
  0x91   :  { %963 = vmatmul.bf16.gmra.mxu0 %v1766_v28  ;;  %v1631_v28 = vld [vmem:[%s3074_s0 + $0xb8] sm:$0xf0] }
  0x92   :  { %1012 = vmatmul.bf16.gmra.mxu1 %v1770_v29  ;;  %v1634_v38 = vor.u32 %v2070_v27, %v1631_v28 }
  0x93   :  { %1061 = vmatmul.bf16.gmra.mxu2 %v1774_v30 }
  0x94   :  { %1110 = vmatmul.bf16.gmra.mxu3 %v1778_v31  ;;  %v1622_v31 = vor.u32 %v2073_v22, %v1621_v21  ;;  %v1693_v21 = vld [vmem:[%s3074_s0 + $0x118] sm:$0xf] }
  0x95   :  { %v2090_v22 = vld [vmem:[%s3074_s0 + $0x134] sm:$0xf0] }
  0x9e   :  { %v929_v43 = vpop.f32.mrf.mxu0 }
  0x9f   :  { %v978_v44 = vpop.f32.mrf.mxu1  ;;  %v930_v47 = vadd.f32 %v2648_v32, %v929_v43 }
  0xa1   :  { %v979_v48 = vadd.f32 %v978_v44, %v930_v47  ;;  %1124 = vmatmul.bf16.vlgmr.msrb.gmra.mxu0 %v1558_v41 }
  0xa2   :  { %1173 = vmatmul.bf16.vlgmr.msrb.gmra.mxu1 %v1562_v42 }
  0xa3   :  { %1222 = vmatmul.bf16.vlgmr.msrb.gmra.mxu2 %v1566_v45 }
  0xa4   :  { %1271 = vmatmul.bf16.vlgmr.msrb.gmra.mxu3 %v1570_v46 }
  0xa6   :  { %v1027_v49 = vpop.f32.mrf.mxu2  ;;  %v931_v52 = vpop.f32.mrf.mxu0 }
  0xa7   :  { %v1076_v50 = vpop.f32.mrf.mxu3  ;;  %v1028_v51 = vadd.f32 %v1027_v49, %v979_v48  ;;  %v980_v53 = vpop.f32.mrf.mxu1  ;;  %v932_v54 = vadd.f32 %v2648_v32, %v931_v52  ;;  %v2077_v52 = vld [vmem:[%s3074_s0 + $0xd4] sm:$0xf] }
  0xa9   :  { %v2676_v55 = vadd.f32 %v1076_v50, %v1028_v51  ;;  %v981_v56 = vadd.f32 %v980_v53, %v932_v54  ;;  %v1653_v50 = vld [vmem:[%s3074_s0 + $0xd0] sm:$0xf]  ;;  %v1655_v53 = vld [vmem:[%s3074_s0 + $0xf0] sm:$0xf0]  ;;  %v1661_v54 = vld [vmem:[%s3074_s0 + $0xd8] sm:$0xf] }
  0xaa   :  { %v2081_v51 = vld [vmem:[%s3074_s0 + $0xec] sm:$0xf0]  ;;  %v1658_v62 = vor.u32 %v2077_v52, %v1655_v53  ;;  %v1725_v52 = vld [vmem:[%s3074_s0 + $0x158] sm:$0xf] }
  0xab   :  { %v1654_v61 = vor.u32 %v2081_v51, %v1653_v50  ;;  %v2093_v50 = vld [vmem:[%s3074_s0 + $0x154] sm:$0xf]  ;;  %v2098_v53 = vld [vmem:[%s3074_s0 + $0x174] sm:$0xf0] }
  0xac   :  { %v1719_v51 = vld [vmem:[%s3074_s0 + $0x170] sm:$0xf0] }
  0xae   :  { %v1029_v1 = vpop.f32.mrf.mxu2  ;;  %v934_v6 = vpop.f32.mrf.mxu0 }
  0xaf   :  { %v1078_v2 = vpop.f32.mrf.mxu3  ;;  %v1030_v5 = vadd.f32 %v1029_v1, %v981_v56  ;;  %v983_v7 = vpop.f32.mrf.mxu1  ;;  %v935_v10 = vadd.f32 %v2648_v32, %v934_v6  ;;  %v2082_v56 = vld [vmem:[%s3074_s0 + $0xf4] sm:$0xf0] }
  0xb1   :  { %v2703_v11 = vadd.f32 %v1078_v2, %v1030_v5  ;;  %v984_v12 = vadd.f32 %v983_v7, %v935_v10  ;;  %1129 = vmatmul.bf16.gmra.mxu0 %v1590_v3  ;;  %v1662_v2 = vor.u32 %v2082_v56, %v1661_v54  ;;  %v1666_v3 = vor.u32 %v2078_v57, %v1663_v58  ;;  %v2094_v54 = vld [vmem:[%s3074_s0 + $0x15c] sm:$0xf] }
  0xb2   :  { %1178 = vmatmul.bf16.gmra.mxu1 %v1594_v4  ;;  %v1727_v56 = vld [vmem:[%s3074_s0 + $0x178] sm:$0xf0] }
  0xb3   :  { %1227 = vmatmul.bf16.gmra.mxu2 %v1598_v8 }
  0xb4   :  { %1276 = vmatmul.bf16.gmra.mxu3 %v1602_v9 }
  0xb6   :  { %v1032_v13 = vpop.f32.mrf.mxu2  ;;  %v936_v16 = vpop.f32.mrf.mxu0 }
  0xb7   :  { %v1081_v14 = vpop.f32.mrf.mxu3  ;;  %v1033_v15 = vadd.f32 %v1032_v13, %v984_v12  ;;  %v985_v17 = vpop.f32.mrf.mxu1  ;;  %v937_v18 = vadd.f32 %v2648_v32, %v936_v16  ;;  %v1685_v16 = vld [vmem:[%s3074_s0 + $0x110] sm:$0xf] }
  0xb9   :  { %v2706_v19 = vadd.f32 %v1081_v14, %v1033_v15  ;;  %v986_v20 = vadd.f32 %v985_v17, %v937_v18  ;;  %v2089_v17 = vld [vmem:[%s3074_s0 + $0x12c] sm:$0xf0]  ;;  %v2085_v18 = vld [vmem:[%s3074_s0 + $0x114] sm:$0xf] }
  0xba   :  { %v1686_v27 = vor.u32 %v2089_v17, %v1685_v16  ;;  %v1749_v16 = vld [vmem:[%s3074_s0 + $0x190] sm:$0xf] }
  0xbb   :  { %v2105_v17 = vld [vmem:[%s3074_s0 + $0x1ac] sm:$0xf0] }
  0xbe   :  { %v1034_v29 = vpop.f32.mrf.mxu2  ;;  %v939_v35 = vpop.f32.mrf.mxu0 }
  0xbf   :  { %v1083_v30 = vpop.f32.mrf.mxu3  ;;  %v1035_v34 = vadd.f32 %v1034_v29, %v986_v20  ;;  %v988_v36 = vpop.f32.mrf.mxu1  ;;  %v940_v39 = vadd.f32 %v2648_v32, %v939_v35  ;;  %v1687_v20 = vld [vmem:[%s3074_s0 + $0x130] sm:$0xf0] }
  0xc0   :  { %v1690_v28 = vor.u32 %v2085_v18, %v1687_v20  ;;  %v2101_v18 = vld [vmem:[%s3074_s0 + $0x194] sm:$0xf] }
  0xc1   :  { %v2733_v40 = vadd.f32 %v1083_v30, %v1035_v34  ;;  %v989_v41 = vadd.f32 %v988_v36, %v940_v39  ;;  %1134 = vmatmul.bf16.gmra.mxu0 %v1622_v31  ;;  %v1698_v34 = vor.u32 %v2086_v23, %v1695_v24  ;;  %v1751_v20 = vld [vmem:[%s3074_s0 + $0x1b0] sm:$0xf0]  ;;  %v2102_v23 = vld [vmem:[%s3074_s0 + $0x19c] sm:$0xf] }
  0xc2   :  { %1183 = vmatmul.bf16.gmra.mxu1 %v1626_v33  ;;  %v1694_v33 = vor.u32 %v2090_v22, %v1693_v21  ;;  %v1757_v21 = vld [vmem:[%s3074_s0 + $0x198] sm:$0xf]  ;;  %v1759_v24 = vld [vmem:[%s3074_s0 + $0x1b8] sm:$0xf0] }
  0xc3   :  { %1232 = vmatmul.bf16.gmra.mxu2 %v1630_v37  ;;  %v2106_v22 = vld [vmem:[%s3074_s0 + $0x1b4] sm:$0xf0] }
  0xc4   :  { %1281 = vmatmul.bf16.gmra.mxu3 %v1634_v38 }
  0xc6   :  { %v1037_v42 = vpop.f32.mrf.mxu2  ;;  %v941_v45 = vpop.f32.mrf.mxu0 }
  0xc7   :  { %v1086_v43 = vpop.f32.mrf.mxu3  ;;  %v1038_v44 = vadd.f32 %v1037_v42, %v989_v41  ;;  %v990_v46 = vpop.f32.mrf.mxu1  ;;  %v942_v47 = vadd.f32 %v2648_v32, %v941_v45 }
  0xc9   :  { %v2736_v48 = vadd.f32 %v1086_v43, %v1038_v44  ;;  %v991_v49 = vadd.f32 %v990_v46, %v942_v47  ;;  %v1717_v47 = vld [vmem:[%s3074_s0 + $0x150] sm:$0xf] }
  0xce   :  { %v1039_v59 = vpop.f32.mrf.mxu2  ;;  %v944_v0 = vpop.f32.mrf.mxu0 }
  0xcf   :  { %v1088_v60 = vpop.f32.mrf.mxu3  ;;  %v1040_v63 = vadd.f32 %v1039_v59, %v991_v49  ;;  %v993_v1 = vpop.f32.mrf.mxu1  ;;  %v945_v4 = vadd.f32 %v2648_v32, %v944_v0  ;;  %v2097_v49 = vld [vmem:[%s3074_s0 + $0x16c] sm:$0xf0]  ;;  %v1726_v0 = vor.u32 %v2098_v53, %v1725_v52  ;;  %v2109_v52 = vld [vmem:[%s3074_s0 + $0x1d4] sm:$0xf] }
  0xd0   :  { %v1718_v59 = vor.u32 %v2097_v49, %v1717_v47  ;;  %v1783_v53 = vld [vmem:[%s3074_s0 + $0x1f0] sm:$0xf0] }
  0xd1   :  { %v2763_v5 = vadd.f32 %v1088_v60, %v1040_v63  ;;  %v994_v6 = vadd.f32 %v993_v1, %v945_v4  ;;  %1139 = vmatmul.bf16.gmra.mxu0 %v1654_v61  ;;  %v1722_v60 = vor.u32 %v2093_v50, %v1719_v51  ;;  %v1730_v1 = vor.u32 %v2094_v54, %v1727_v56  ;;  %v1781_v50 = vld [vmem:[%s3074_s0 + $0x1d0] sm:$0xf]  ;;  %v1789_v54 = vld [vmem:[%s3074_s0 + $0x1d8] sm:$0xf] }
  0xd2   :  { %1188 = vmatmul.bf16.gmra.mxu1 %v1658_v62  ;;  %v2113_v51 = vld [vmem:[%s3074_s0 + $0x1ec] sm:$0xf0]  ;;  %v2114_v56 = vld [vmem:[%s3074_s0 + $0x1f4] sm:$0xf0] }
  0xd3   :  { %1237 = vmatmul.bf16.gmra.mxu2 %v1662_v2 }
  0xd4   :  { %1286 = vmatmul.bf16.gmra.mxu3 %v1666_v3 }
  0xd6   :  { %v1042_v7 = vpop.f32.mrf.mxu2  ;;  %v946_v10 = vpop.f32.mrf.mxu0 }
  0xd7   :  { %v1091_v8 = vpop.f32.mrf.mxu3  ;;  %v1043_v9 = vadd.f32 %v1042_v7, %v994_v6  ;;  %v995_v12 = vpop.f32.mrf.mxu1  ;;  %v947_v13 = vadd.f32 %v2648_v32, %v946_v10 }
  0xd9   :  { %v2766_v14 = vadd.f32 %v1091_v8, %v1043_v9  ;;  %v996_v15 = vadd.f32 %v995_v12, %v947_v13 }
  0xde   :  { %v1044_v25 = vpop.f32.mrf.mxu2  ;;  %v949_v30 = vpop.f32.mrf.mxu0 }
  0xdf   :  { %v1093_v26 = vpop.f32.mrf.mxu3  ;;  %v1045_v29 = vadd.f32 %v1044_v25, %v996_v15  ;;  %v998_v31 = vpop.f32.mrf.mxu1  ;;  %v950_v35 = vadd.f32 %v2648_v32, %v949_v30 }
  0xe1   :  { %v2793_v36 = vadd.f32 %v1093_v26, %v1045_v29  ;;  %v999_v37 = vadd.f32 %v998_v31, %v950_v35  ;;  %1144 = vmatmul.bf16.gmra.mxu0 %v1686_v27  ;;  %v1750_v27 = vor.u32 %v2105_v17, %v1749_v16 }
  0xe2   :  { %1193 = vmatmul.bf16.gmra.mxu1 %v1690_v28  ;;  %v1754_v28 = vor.u32 %v2101_v18, %v1751_v20 }
  0xe3   :  { %1242 = vmatmul.bf16.gmra.mxu2 %v1694_v33  ;;  %v1758_v33 = vor.u32 %v2106_v22, %v1757_v21 }
  0xe4   :  { %1291 = vmatmul.bf16.gmra.mxu3 %v1698_v34  ;;  %v1762_v34 = vor.u32 %v2102_v23, %v1759_v24 }
  0xe6   :  { %v1047_v38 = vpop.f32.mrf.mxu2  ;;  %v951_v42 = vpop.f32.mrf.mxu0 }
  0xe7   :  { %v1096_v39 = vpop.f32.mrf.mxu3  ;;  %v1048_v41 = vadd.f32 %v1047_v38, %v999_v37  ;;  %v1000_v43 = vpop.f32.mrf.mxu1  ;;  %v952_v44 = vadd.f32 %v2648_v32, %v951_v42 }
  0xe9   :  { %v2796_v45 = vadd.f32 %v1096_v39, %v1048_v41  ;;  %v1001_v46 = vadd.f32 %v1000_v43, %v952_v44 }
  0xee   :  { %v1049_v57 = vpop.f32.mrf.mxu2  ;;  %v954_v62 = vpop.f32.mrf.mxu0 }
  0xef   :  { %v1098_v58 = vpop.f32.mrf.mxu3  ;;  %v1050_v61 = vadd.f32 %v1049_v57, %v1001_v46  ;;  %v1003_v63 = vpop.f32.mrf.mxu1  ;;  %v955_v2 = vadd.f32 %v2648_v32, %v954_v62  ;;  %v2110_v57 = vld [vmem:[%s3074_s0 + $0x1dc] sm:$0xf]  ;;  %v1786_v62 = vor.u32 %v2109_v52, %v1783_v53 }
  0xf1   :  { %v2823_v3 = vadd.f32 %v1098_v58, %v1050_v61  ;;  %v1004_v4 = vadd.f32 %v1003_v63, %v955_v2  ;;  %1149 = vmatmul.bf16.gmra.mxu0 %v1718_v59  ;;  %v1791_v58 = vld [vmem:[%s3074_s0 + $0x1f8] sm:$0xf0]  ;;  %v1782_v61 = vor.u32 %v2113_v51, %v1781_v50  ;;  %v1790_v2 = vor.u32 %v2114_v56, %v1789_v54 }
  0xf2   :  { %1198 = vmatmul.bf16.gmra.mxu1 %v1722_v60 }
  0xf3   :  { %1247 = vmatmul.bf16.gmra.mxu2 %v1726_v0 }
  0xf4   :  { %1296 = vmatmul.bf16.gmra.mxu3 %v1730_v1 }
  0xf6   :  { %v1052_v6 = vpop.f32.mrf.mxu2  ;;  %v956_v9 = vpop.f32.mrf.mxu0 }
  0xf7   :  { %v1101_v7 = vpop.f32.mrf.mxu3  ;;  %v1053_v8 = vadd.f32 %v1052_v6, %v1004_v4  ;;  %v1005_v10 = vpop.f32.mrf.mxu1  ;;  %v957_v12 = vadd.f32 %v2648_v32, %v956_v9  ;;  %v1794_v4 = vor.u32 %v2110_v57, %v1791_v58 }
  0xf9   :  { %v2826_v13 = vadd.f32 %v1101_v7, %v1053_v8  ;;  %v1006_v15 = vadd.f32 %v1005_v10, %v957_v12 }
  0xfe   :  { %v1054_v25 = vpop.f32.mrf.mxu2  ;;  %v959_v30 = vpop.f32.mrf.mxu0 }
  0xff   :  { %v1103_v26 = vpop.f32.mrf.mxu3  ;;  %v1055_v29 = vadd.f32 %v1054_v25, %v1006_v15  ;;  %v1008_v31 = vpop.f32.mrf.mxu1  ;;  %v960_v35 = vadd.f32 %v2648_v32, %v959_v30 }
 0x101   :  { %v2853_v37 = vadd.f32 %v1103_v26, %v1055_v29  ;;  %v1009_v38 = vadd.f32 %v1008_v31, %v960_v35  ;;  %1154 = vmatmul.bf16.gmra.mxu0 %v1750_v27 }
 0x102   :  { %1203 = vmatmul.bf16.gmra.mxu1 %v1754_v28 }
 0x103   :  { %1252 = vmatmul.bf16.gmra.mxu2 %v1758_v33 }
 0x104   :  { %1301 = vmatmul.bf16.gmra.mxu3 %v1762_v34 }
 0x106   :  { %v1057_v39 = vpop.f32.mrf.mxu2  ;;  %v961_v43 = vpop.f32.mrf.mxu0 }
 0x107   :  { %v1106_v41 = vpop.f32.mrf.mxu3  ;;  %v1058_v42 = vadd.f32 %v1057_v39, %v1009_v38  ;;  %v1010_v44 = vpop.f32.mrf.mxu1  ;;  %v962_v46 = vadd.f32 %v2648_v32, %v961_v43 }
 0x109   :  { %v2856_v47 = vadd.f32 %v1106_v41, %v1058_v42  ;;  %v1011_v49 = vadd.f32 %v1010_v44, %v962_v46 }
 0x10e   :  { %v1059_v59 = vpop.f32.mrf.mxu2  ;;  %v964_v0 = vpop.f32.mrf.mxu0 }
 0x10f   :  { %v1108_v60 = vpop.f32.mrf.mxu3  ;;  %v1060_v63 = vadd.f32 %v1059_v59, %v1011_v49  ;;  %v1013_v1 = vpop.f32.mrf.mxu1  ;;  %v965_v6 = vadd.f32 %v2648_v32, %v964_v0 }
 0x111   :  { %v2883_v7 = vadd.f32 %v1108_v60, %v1060_v63  ;;  %v1014_v8 = vadd.f32 %v1013_v1, %v965_v6  ;;  %1159 = vmatmul.bf16.gmra.mxu0 %v1782_v61 }
 0x112   :  { %1208 = vmatmul.bf16.gmra.mxu1 %v1786_v62 }
 0x113   :  { %1257 = vmatmul.bf16.gmra.mxu2 %v1790_v2 }
 0x114   :  { %1306 = vmatmul.bf16.gmra.mxu3 %v1794_v4 }
 0x116   :  { %v1062_v9 = vpop.f32.mrf.mxu2  ;;  %v966_v15 = vpop.f32.mrf.mxu0 }
 0x117   :  { %v1111_v10 = vpop.f32.mrf.mxu3  ;;  %v1063_v12 = vadd.f32 %v1062_v9, %v1014_v8  ;;  %v1015_v16 = vpop.f32.mrf.mxu1  ;;  %v967_v17 = vadd.f32 %v2648_v32, %v966_v15 }
 0x119   :  { %v2886_v18 = vadd.f32 %v1111_v10, %v1063_v12  ;;  %v1016_v20 = vadd.f32 %v1015_v16, %v967_v17 }
 0x11e   :  { %v1064_v21 = vpop.f32.mrf.mxu2  ;;  %v1125_v24 = vpop.f32.mrf.mxu0 }
 0x11f   :  { %v1113_v22 = vpop.f32.mrf.mxu3  ;;  %v1065_v23 = vadd.f32 %v1064_v21, %v1016_v20  ;;  %v1174_v25 = vpop.f32.mrf.mxu1  ;;  %v1126_v26 = vadd.f32 %v1125_v24, %v2676_v55 }
 0x121   :  { %v2889_v27 = vadd.f32 %v1113_v22, %v1065_v23  ;;  %v1175_v28 = vadd.f32 %v1174_v25, %v1126_v26 }
 0x126   :  { %v1223_v29 = vpop.f32.mrf.mxu2  ;;  %v1127_v33 = vpop.f32.mrf.mxu0 }
 0x127   :  { %v1272_v30 = vpop.f32.mrf.mxu3  ;;  %v1224_v31 = vadd.f32 %v1223_v29, %v1175_v28  ;;  %v1176_v34 = vpop.f32.mrf.mxu1  ;;  %v1128_v32 = vadd.f32 %v1127_v33, %v2703_v11 }
 0x129   :  { %v2892_v35 = vadd.f32 %v1272_v30, %v1224_v31  ;;  %v1177_v38 = vadd.f32 %v1176_v34, %v1128_v32 }
 0x12e   :  { %v1225_v39 = vpop.f32.mrf.mxu2  ;;  %v1130_v43 = vpop.f32.mrf.mxu0 }
 0x12f   :  { %v1274_v41 = vpop.f32.mrf.mxu3  ;;  %v1226_v42 = vadd.f32 %v1225_v39, %v1177_v38  ;;  %v1179_v44 = vpop.f32.mrf.mxu1  ;;  %v1131_v55 = vadd.f32 %v1130_v43, %v2706_v19 }
 0x131   :  { %v2895_v46 = vadd.f32 %v1274_v41, %v1226_v42  ;;  %v1180_v49 = vadd.f32 %v1179_v44, %v1131_v55 }
 0x133   :  { %v1312_v50 = vadd.f32 %v2895_v46, %v2892_v35 }
 0x136   :  { %v1228_v51 = vpop.f32.mrf.mxu2  ;;  %v1132_v11 = vpop.f32.mrf.mxu0 }
 0x137   :  { %v1277_v52 = vpop.f32.mrf.mxu3  ;;  %v1229_v53 = vadd.f32 %v1228_v51, %v1180_v49  ;;  %v1181_v54 = vpop.f32.mrf.mxu1  ;;  %v1133_v56 = vadd.f32 %v1132_v11, %v2733_v40 }
 0x139   :  { %v2900_v57 = vadd.f32 %v1277_v52, %v1229_v53  ;;  %v1182_v58 = vadd.f32 %v1181_v54, %v1133_v56 }
 0x13b   :  { %v1313_v59 = vadd.f32 %v1312_v50, %v2900_v57 }
 0x13e   :  { %v1230_v60 = vpop.f32.mrf.mxu2  ;;  %v1135_v62 = vpop.f32.mrf.mxu0 }
 0x13f   :  { %v1279_v19 = vpop.f32.mrf.mxu3  ;;  %v1231_v61 = vadd.f32 %v1230_v60, %v1182_v58  ;;  %v1184_v63 = vpop.f32.mrf.mxu1  ;;  %v1136_v0 = vadd.f32 %v1135_v62, %v2736_v48 }
 0x141   :  { %v2904_v1 = vadd.f32 %v1279_v19, %v1231_v61  ;;  %v1185_v2 = vadd.f32 %v1184_v63, %v1136_v0 }
 0x143   :  { %v1314_v4 = vadd.f32 %v1313_v59, %v2904_v1 }
 0x146   :  { %v1233_v6 = vpop.f32.mrf.mxu2  ;;  %v1137_v9 = vpop.f32.mrf.mxu0 }
 0x147   :  { %v1282_v8 = vpop.f32.mrf.mxu3  ;;  %v1234_v40 = vadd.f32 %v1233_v6, %v1185_v2  ;;  %v1186_v10 = vpop.f32.mrf.mxu1  ;;  %v1138_v15 = vadd.f32 %v1137_v9, %v2763_v5 }
 0x149   :  { %v2907_v12 = vadd.f32 %v1282_v8, %v1234_v40  ;;  %v1187_v17 = vadd.f32 %v1186_v10, %v1138_v15 }
 0x14b   :  { %v1315_v16 = vadd.f32 %v1314_v4, %v2907_v12 }
 0x14e   :  { %v1235_v20 = vpop.f32.mrf.mxu2  ;;  %v1140_v22 = vpop.f32.mrf.mxu0 }
 0x14f   :  { %v1284_v21 = vpop.f32.mrf.mxu3  ;;  %v1236_v48 = vadd.f32 %v1235_v20, %v1187_v17  ;;  %v1189_v23 = vpop.f32.mrf.mxu1  ;;  %v1141_v25 = vadd.f32 %v1140_v22, %v2766_v14 }
 0x151   :  { %v2911_v24 = vadd.f32 %v1284_v21, %v1236_v48  ;;  %v1190_v28 = vadd.f32 %v1189_v23, %v1141_v25 }
 0x153   :  { %v1316_v26 = vadd.f32 %v1315_v16, %v2911_v24 }
 0x156   :  { %v1238_v29 = vpop.f32.mrf.mxu2  ;;  %v1142_v33 = vpop.f32.mrf.mxu0 }
 0x157   :  { %v1287_v30 = vpop.f32.mrf.mxu3  ;;  %v1239_v31 = vadd.f32 %v1238_v29, %v1190_v28  ;;  %v1191_v5 = vpop.f32.mrf.mxu1  ;;  %v1143_v32 = vadd.f32 %v1142_v33, %v2793_v36 }
 0x159   :  { %v2915_v34 = vadd.f32 %v1287_v30, %v1239_v31  ;;  %v1192_v39 = vadd.f32 %v1191_v5, %v1143_v32 }
 0x15b   :  { %v1317_v38 = vadd.f32 %v1316_v26, %v2915_v34 }
 0x15e   :  { %v1240_v41 = vpop.f32.mrf.mxu2  ;;  %v1145_v44 = vpop.f32.mrf.mxu0 }
 0x15f   :  { %v1289_v42 = vpop.f32.mrf.mxu3  ;;  %v1241_v43 = vadd.f32 %v1240_v41, %v1192_v39  ;;  %v1194_v14 = vpop.f32.mrf.mxu1  ;;  %v1146_v49 = vadd.f32 %v1145_v44, %v2796_v45 }
 0x161   :  { %v2919_v55 = vadd.f32 %v1289_v42, %v1241_v43  ;;  %v1195_v51 = vadd.f32 %v1194_v14, %v1146_v49 }
 0x163   :  { %v1318_v50 = vadd.f32 %v1317_v38, %v2919_v55 }
 0x166   :  { %v1243_v52 = vpop.f32.mrf.mxu2  ;;  %v1147_v54 = vpop.f32.mrf.mxu0 }
 0x167   :  { %v1292_v53 = vpop.f32.mrf.mxu3  ;;  %v1244_v11 = vadd.f32 %v1243_v52, %v1195_v51  ;;  %v1196_v36 = vpop.f32.mrf.mxu1  ;;  %v1148_v58 = vadd.f32 %v1147_v54, %v2823_v3 }
 0x169   :  { %v2923_v56 = vadd.f32 %v1292_v53, %v1244_v11  ;;  %v1197_v60 = vadd.f32 %v1196_v36, %v1148_v58 }
 0x16b   :  { %v1319_v59 = vadd.f32 %v1318_v50, %v2923_v56 }
 0x16e   :  { %v1245_v19 = vpop.f32.mrf.mxu2  ;;  %v1150_v63 = vpop.f32.mrf.mxu0 }
 0x16f   :  { %v1294_v61 = vpop.f32.mrf.mxu3  ;;  %v1246_v62 = vadd.f32 %v1245_v19, %v1197_v60  ;;  %v1199_v45 = vpop.f32.mrf.mxu1  ;;  %v1151_v2 = vadd.f32 %v1150_v63, %v2826_v13 }
 0x171   :  { %v2927_v0 = vadd.f32 %v1294_v61, %v1246_v62  ;;  %v1200_v6 = vadd.f32 %v1199_v45, %v1151_v2 }
 0x173   :  { %v1320_v4 = vadd.f32 %v1319_v59, %v2927_v0 }
 0x176   :  { %v1248_v8 = vpop.f32.mrf.mxu2  ;;  %v1152_v10 = vpop.f32.mrf.mxu0 }
 0x177   :  { %v1297_v40 = vpop.f32.mrf.mxu3  ;;  %v1249_v9 = vadd.f32 %v1248_v8, %v1200_v6  ;;  %v1201_v3 = vpop.f32.mrf.mxu1  ;;  %v1153_v16 = vadd.f32 %v1152_v10, %v2853_v37 }
 0x179   :  { %v1298_v15 = vadd.f32 %v1297_v40, %v1249_v9  ;;  %v1202_v20 = vadd.f32 %v1201_v3, %v1153_v16 }
 0x17b   :  { %v1321_v17 = vadd.f32 %v1320_v4, %v1298_v15 }
 0x17e   :  { %v1250_v21 = vpop.f32.mrf.mxu2  ;;  %v1155_v23 = vpop.f32.mrf.mxu0 }
 0x17f   :  { %v1299_v48 = vpop.f32.mrf.mxu3  ;;  %v1251_v22 = vadd.f32 %v1250_v21, %v1202_v20  ;;  %v1204_v25 = vpop.f32.mrf.mxu1  ;;  %v1156_v13 = vadd.f32 %v1155_v23, %v2856_v47 }
 0x181   :  { %v1300_v26 = vadd.f32 %v1299_v48, %v1251_v22  ;;  %v1205_v29 = vadd.f32 %v1204_v25, %v1156_v13 }
 0x183   :  { %v1322_v28 = vadd.f32 %v1321_v17, %v1300_v26 }
 0x186   :  { %v1253_v30 = vpop.f32.mrf.mxu2  ;;  %v1157_v5 = vpop.f32.mrf.mxu0 }
 0x187   :  { %v1302_v31 = vpop.f32.mrf.mxu3  ;;  %v1254_v33 = vadd.f32 %v1253_v30, %v1205_v29  ;;  %v1206_v32 = vpop.f32.mrf.mxu1  ;;  %v1158_v37 = vadd.f32 %v1157_v5, %v2883_v7 }
 0x189   :  { %v1303_v38 = vadd.f32 %v1302_v31, %v1254_v33  ;;  %v1207_v41 = vadd.f32 %v1206_v32, %v1158_v37 }
 0x18b   :  { %v1323_v39 = vadd.f32 %v1322_v28, %v1303_v38 }
 0x18e   :  { %v1255_v42 = vpop.f32.mrf.mxu2  ;;  %v1160_v14 = vpop.f32.mrf.mxu0 }
 0x18f   :  { %v1304_v43 = vpop.f32.mrf.mxu3  ;;  %v1256_v44 = vadd.f32 %v1255_v42, %v1207_v41  ;;  %v1161_v50 = vadd.f32 %v1160_v14, %v2886_v18  ;;  %v1209_v47 = vpop.f32.mrf.mxu1 }
 0x191   :  { %v1305_v49 = vadd.f32 %v1304_v43, %v1256_v44  ;;  %v1210_v52 = vadd.f32 %v1209_v47, %v1161_v50 }
 0x193   :  { %v1324_v51 = vadd.f32 %v1323_v39, %v1305_v49 }
 0x196   :  { %v1258_v53 = vpop.f32.mrf.mxu2  ;;  %v1162_v36 = vpop.f32.mrf.mxu0 }
 0x197   :  { %v1307_v11 = vpop.f32.mrf.mxu3  ;;  %v1259_v54 = vadd.f32 %v1258_v53, %v1210_v52  ;;  %v1163_v59 = vadd.f32 %v1162_v36, %v2889_v27  ;;  %v1211_v60 = vpop.f32.mrf.mxu1 }
 0x199   :  { %v1308_v58 = vadd.f32 %v1307_v11, %v1259_v54  ;;  %v1212_v19 = vadd.f32 %v1211_v60, %v1163_v59 }
 0x19b   :  { %v1325_v7 = vadd.f32 %v1324_v51, %v1308_v58 }
 0x19e   :  { %v1260_v61 = vpop.f32.mrf.mxu2 }
 0x19f   :  { %v1261_v62 = vadd.f32 %v1260_v61, %v1212_v19  ;;  %v1309_v63 = vpop.f32.mrf.mxu3 }
 0x1a1   :  { %v1310_v45 = vadd.f32 %v1309_v63, %v1261_v62 }
 0x1a3   :  { %v1326_v2 = vadd.f32 %v1325_v7, %v1310_v45 }
 0x1a5   :  { %v1327_v4 = vrot.slane %v1326_v2, 4 }
 0x1a7   :  { %v1328_v18 = vadd.f32 %v1327_v4, %v1326_v2 }
 0x1a9   :  { %v1329_v6 = vrot.slane %v1328_v18, 2 }
 0x1ab   :  { %v1330_v8 = vadd.f32 %v1329_v6, %v1328_v18 }
 0x1ad   :  { %v1331_v40 = vrot.slane %v1330_v8, 1 }
 0x1af   :  { %v1332_v9 = vadd.f32 %v1331_v40, %v1330_v8 }
 0x1b1   :  { %v1333_v10 = vmul.f32 0.0078125, %v1332_v9 }
 0x1b3   :  { %v2937_v3 = vsub.f32 %v2892_v35, %v1333_v10  ;;  %v2940_v27 = vsub.f32 %v2895_v46, %v1333_v10  ;;  %v2943_v16 = vsub.f32 %v2900_v57, %v1333_v10  ;;  %v2946_v17 = vsub.f32 %v2904_v1, %v1333_v10 }
 0x1b4   :  { %v2949_v20 = vsub.f32 %v2907_v12, %v1333_v10  ;;  %v2952_v21 = vsub.f32 %v2911_v24, %v1333_v10  ;;  %v2955_v48 = vsub.f32 %v2915_v34, %v1333_v10  ;;  %v2958_v35 = vsub.f32 %v2919_v55, %v1333_v10 }
 0x1b5   :  { %v2961_v46 = vsub.f32 %v2923_v56, %v1333_v10  ;;  %v2964_v57 = vsub.f32 %v2927_v0, %v1333_v10  ;;  %v2966_v1 = vsub.f32 %v1298_v15, %v1333_v10  ;;  %v2968_v22 = vsub.f32 %v1300_v26, %v1333_v10 }
 0x1b6   :  { %v2970_v12 = vsub.f32 %v1303_v38, %v1333_v10  ;;  %v2972_v24 = vsub.f32 %v1305_v49, %v1333_v10  ;;  %v2974_v23 = vsub.f32 %v1308_v58, %v1333_v10  ;;  %v2976_v34 = vsub.f32 %v1310_v45, %v1333_v10 }
 0x1b7   :  { %v1350_v55 = vmul.f32 %v2937_v3, %v2937_v3  ;;  %v1351_v56 = vmul.f32 %v2940_v27, %v2940_v27  ;;  %v1352_v0 = vmul.f32 %v2943_v16, %v2943_v16  ;;  %v1353_v25 = vmul.f32 %v2946_v17, %v2946_v17 }
 0x1b8   :  { %v1354_v13 = vmul.f32 %v2949_v20, %v2949_v20  ;;  %v1355_v29 = vmul.f32 %v2952_v21, %v2952_v21  ;;  %v1356_v31 = vmul.f32 %v2955_v48, %v2955_v48  ;;  %v1357_v5 = vmul.f32 %v2958_v35, %v2958_v35 }
 0x1b9   :  { %v1366_v15 = vadd.f32 %v1351_v56, %v1350_v55  ;;  %v1358_v38 = vmul.f32 %v2961_v46, %v2961_v46  ;;  %v1359_v39 = vmul.f32 %v2964_v57, %v2964_v57  ;;  %v1360_v42 = vmul.f32 %v2966_v1, %v2966_v1 }
 0x1ba   :  { %v1361_v44 = vmul.f32 %v2968_v22, %v2968_v22  ;;  %v1362_v49 = vmul.f32 %v2970_v12, %v2970_v12  ;;  %v1363_v47 = vmul.f32 %v2972_v24, %v2972_v24  ;;  %v1364_v52 = vmul.f32 %v2974_v23, %v2974_v23 }
 0x1bb   :  { %v1367_v26 = vadd.f32 %v1366_v15, %v1352_v0  ;;  %v1365_v11 = vmul.f32 %v2976_v34, %v2976_v34  ;;  %v2227_v0 = vld [vmem:[%s3075_s3] ss:$0 sm:$0xff] }
 0x1bd   :  { %v1368_v28 = vadd.f32 %v1367_v26, %v1353_v25 }
 0x1bf   :  { %v1369_v30 = vadd.f32 %v1368_v28, %v1354_v13 }
 0x1c1   :  { %v1370_v33 = vadd.f32 %v1369_v30, %v1355_v29 }
 0x1c3   :  { %v1371_v32 = vadd.f32 %v1370_v33, %v1356_v31 }
 0x1c5   :  { %v1372_v37 = vadd.f32 %v1371_v32, %v1357_v5 }
 0x1c7   :  { %v1373_v41 = vadd.f32 %v1372_v37, %v1358_v38 }
 0x1c9   :  { %v1374_v43 = vadd.f32 %v1373_v41, %v1359_v39 }
 0x1cb   :  { %v1375_v14 = vadd.f32 %v1374_v43, %v1360_v42 }
 0x1cd   :  { %v1376_v50 = vadd.f32 %v1375_v14, %v1361_v44 }
 0x1cf   :  { %v1377_v51 = vadd.f32 %v1376_v50, %v1362_v49 }
 0x1d1   :  { %v1378_v53 = vadd.f32 %v1377_v51, %v1363_v47 }
 0x1d3   :  { %v1379_v54 = vadd.f32 %v1378_v53, %v1364_v52 }
 0x1d5   :  { %v1380_v36 = vadd.f32 %v1379_v54, %v1365_v11 }
 0x1d7   :  { %v1381_v58 = vrot.slane %v1380_v36, 4 }
 0x1d9   :  { %v1382_v59 = vadd.f32 %v1381_v58, %v1380_v36 }
 0x1db   :  { %v1383_v7 = vrot.slane %v1382_v59, 2 }
 0x1dd   :  { %v1384_v60 = vadd.f32 %v1383_v7, %v1382_v59 }
 0x1df   :  { %v1385_v19 = vrot.slane %v1384_v60, 1 }
 0x1e1   :  { %v1386_v61 = vadd.f32 %v1385_v19, %v1384_v60 }
 0x1e3   :  { %v1387_v62 = vmul.f32 0.0078125, %v1386_v61 }
 0x1e5   :  { %v1388_v63 = vadd.f32 1e-05, %v1387_v62 }
 0x1e7   :  { %2229 = vrsqrt.f32 %v1388_v63  ;;  %vm1395_vm1 = vweird.f32 %v1388_v63 }
 0x1ed   :  { %v2230_v45 = vpop.eup %2229 }
 0x1ee   :  { %v1390_v2 = vmul.f32 %v2230_v45, %v1388_v63  ;;  %vm1396_vm0 = vweird.f32 %v2230_v45 }
 0x1ef   :  { %vm1397_vm2 = vmor %vm1395_vm1, %vm1396_vm0 }
 0x1f0   :  { %v1391_v4 = vmul.f32 %v2230_v45, %v1390_v2 }
 0x1f2   :  { %v1392_v18 = vmul.f32 0.5, %v1391_v4 }
 0x1f4   :  { %v1393_v6 = vsub.f32 1.5, %v1392_v18 }
 0x1f6   :  { %v1394_v8 = vmul.f32 %v2230_v45, %v1393_v6 }
 0x1f8   :  { %v1398_v40 = vsel %vm1397_vm2, %v2230_v45, %v1394_v8 }
 0x1f9   :  { %v1399_v9 = vmul.f32 %v1398_v40, %v2937_v3  ;;  %v1400_v10 = vmul.f32 %v1398_v40, %v2940_v27  ;;  %v1401_v55 = vmul.f32 %v1398_v40, %v2943_v16  ;;  %v1402_v56 = vmul.f32 %v1398_v40, %v2946_v17 }
 0x1fa   :  { %v1403_v15 = vmul.f32 %v1398_v40, %v2949_v20  ;;  %v1404_v25 = vmul.f32 %v1398_v40, %v2952_v21  ;;  %v1405_v26 = vmul.f32 %v1398_v40, %v2955_v48  ;;  %v1406_v13 = vmul.f32 %v1398_v40, %v2958_v35 }
 0x1fb   :  { %v1407_v3 = vmul.f32 %v1398_v40, %v2961_v46  ;;  %v1408_v27 = vmul.f32 %v1398_v40, %v2964_v57  ;;  %v1409_v16 = vmul.f32 %v1398_v40, %v2966_v1  ;;  %v1410_v17 = vmul.f32 %v1398_v40, %v2968_v22  ;;  %v2228_v46 = vld [vmem:[%s3076_s4] ss:$0 sm:$0xff] }
 0x1fc   :  { %v1411_v28 = vmul.f32 %v1398_v40, %v2970_v12  ;;  %v1412_v29 = vmul.f32 %v1398_v40, %v2972_v24  ;;  %v1413_v20 = vmul.f32 %v1398_v40, %v2974_v23  ;;  %v1414_v21 = vmul.f32 %v1398_v40, %v2976_v34 }
 0x1fd   :  { %v1419_v30 = vmul.f32 %v2227_v0, %v1399_v9  ;;  %v1420_v48 = vmul.f32 %v2227_v0, %v1400_v10  ;;  %v1421_v31 = vmul.f32 %v2227_v0, %v1401_v55  ;;  %v1422_v35 = vmul.f32 %v2227_v0, %v1402_v56 }
 0x1fe   :  { %v1423_v57 = vmul.f32 %v2227_v0, %v1403_v15  ;;  %v1424_v1 = vmul.f32 %v2227_v0, %v1404_v25  ;;  %v1425_v33 = vmul.f32 %v2227_v0, %v1405_v26  ;;  %v1426_v22 = vmul.f32 %v2227_v0, %v1406_v13 }
 0x1ff   :  { %v1427_v5 = vmul.f32 %v2227_v0, %v1407_v3  ;;  %v1428_v12 = vmul.f32 %v2227_v0, %v1408_v27  ;;  %v1429_v32 = vmul.f32 %v2227_v0, %v1409_v16  ;;  %v1430_v24 = vmul.f32 %v2227_v0, %v1410_v17 }
 0x200   :  { %v1431_v38 = vmul.f32 %v2227_v0, %v1411_v28  ;;  %v1432_v23 = vmul.f32 %v2227_v0, %v1412_v29  ;;  %v1433_v37 = vmul.f32 %v2227_v0, %v1413_v20  ;;  %v1434_v34 = vmul.f32 %v2227_v0, %v1414_v21 }
 0x201   :  { %v1439_v39 = vadd.f32 %v2228_v46, %v1419_v30  ;;  %v1440_v41 = vadd.f32 %v2228_v46, %v1420_v48  ;;  %v1441_v42 = vadd.f32 %v2228_v46, %v1421_v31  ;;  %v1442_v43 = vadd.f32 %v2228_v46, %v1422_v35 }
 0x202   :  { %v1443_v44 = vadd.f32 %v2228_v46, %v1423_v57  ;;  %v1444_v14 = vadd.f32 %v2228_v46, %v1424_v1  ;;  %v1445_v49 = vadd.f32 %v2228_v46, %v1425_v33  ;;  %v1446_v50 = vadd.f32 %v2228_v46, %v1426_v22 }
 0x203   :  { %v1447_v47 = vadd.f32 %v2228_v46, %v1427_v5  ;;  %v1448_v51 = vadd.f32 %v2228_v46, %v1428_v12  ;;  %v1449_v52 = vadd.f32 %v2228_v46, %v1429_v32  ;;  %v1450_v53 = vadd.f32 %v2228_v46, %v1430_v24 }
 0x204   :  { %v1451_v11 = vadd.f32 %v2228_v46, %v1431_v38  ;;  %v1452_v54 = vadd.f32 %v2228_v46, %v1432_v23  ;;  %v1453_v36 = vadd.f32 %v2228_v46, %v1433_v37  ;;  %v1454_v58 = vadd.f32 %v2228_v46, %v1434_v34 }
 0x205   :  { %vm1455_vm3 = vcmp.ge.f32.partialorder %v1439_v39, 0.0  ;;  %vm1456_vm4 = vcmp.ge.f32.partialorder %v1440_v41, 0.0  ;;  %vm1457_vm5 = vcmp.ge.f32.partialorder %v1441_v42, 0.0  ;;  %vm1458_vm6 = vcmp.ge.f32.partialorder %v1442_v43, 0.0 }
 0x206   :  { %vm1459_vm7 = vcmp.ge.f32.partialorder %v1443_v44, 0.0  ;;  %vm1460_vm8 = vcmp.ge.f32.partialorder %v1444_v14, 0.0  ;;  %vm1461_vm9 = vcmp.ge.f32.partialorder %v1445_v49, 0.0  ;;  %vm1462_vm10 = vcmp.ge.f32.partialorder %v1446_v50, 0.0 }
 0x207   :  { %vm1463_vm11 = vcmp.ge.f32.partialorder %v1447_v47, 0.0  ;;  %vm1464_vm12 = vcmp.ge.f32.partialorder %v1448_v51, 0.0  ;;  %vm1465_vm13 = vcmp.ge.f32.partialorder %v1449_v52, 0.0  ;;  %vm1466_vm14 = vcmp.ge.f32.partialorder %v1450_v53, 0.0 }
 0x208   :  { %vm1467_vm15 = vcmp.ge.f32.partialorder %v1451_v11, 0.0  ;;  %vm1468_vm0 = vcmp.ge.f32.partialorder %v1452_v54, 0.0  ;;  %vm1469_vm1 = vcmp.ge.f32.partialorder %v1453_v36, 0.0  ;;  %vm1470_vm2 = vcmp.ge.f32.partialorder %v1454_v58, 0.0 }
 0x209   :  { %v1471_v59 = vmul.f32 0.2, %v1439_v39  ;;  %v1472_v7 = vmul.f32 0.2, %v1440_v41  ;;  %v1473_v60 = vmul.f32 0.2, %v1441_v42 }
 0x20a   :  { %v1474_v19 = vmul.f32 0.2, %v1442_v43  ;;  %v1475_v61 = vmul.f32 0.2, %v1443_v44  ;;  %v1476_v62 = vmul.f32 0.2, %v1444_v14 }
 0x20b   :  { %v1477_v63 = vmul.f32 0.2, %v1445_v49  ;;  %v1478_v45 = vmul.f32 0.2, %v1446_v50  ;;  %v1479_v2 = vmul.f32 0.2, %v1447_v47  ;;  %v1487_v4 = vsel %vm1455_vm3, %v1439_v39, %v1471_v59 }
 0x20c   :  { %v1480_v18 = vmul.f32 0.2, %v1448_v51  ;;  %v1481_v6 = vmul.f32 0.2, %v1449_v52  ;;  %v1482_v8 = vmul.f32 0.2, %v1450_v53  ;;  %v1488_v40 = vsel %vm1456_vm4, %v1440_v41, %v1472_v7 }
 0x20d   :  { %v1483_v9 = vmul.f32 0.2, %v1451_v11  ;;  %v1484_v10 = vmul.f32 0.2, %v1452_v54  ;;  %v1485_v55 = vmul.f32 0.2, %v1453_v36  ;;  %v1489_v56 = vsel %vm1457_vm5, %v1441_v42, %v1473_v60 }
 0x20e   :  { %v1486_v0 = vmul.f32 0.2, %v1454_v58  ;;  %v1490_v15 = vsel %vm1458_vm6, %v1442_v43, %v1474_v19  ;;  %v1491_v25 = vsel %vm1459_vm7, %v1443_v44, %v1475_v61  ;;  %v1492_v26 = vsel %vm1460_vm8, %v1444_v14, %v1476_v62 }
 0x20f   :  { %v1493_v13 = vsel %vm1461_vm9, %v1445_v49, %v1477_v63  ;;  %v1494_v3 = vsel %vm1462_vm10, %v1446_v50, %v1478_v45  ;;  %v1495_v27 = vsel %vm1463_vm11, %v1447_v47, %v1479_v2  ;;  %v1496_v16 = vsel %vm1464_vm12, %v1448_v51, %v1480_v18 }
 0x210   :  { %v1497_v17 = vsel %vm1465_vm13, %v1449_v52, %v1481_v6  ;;  %v1498_v28 = vsel %vm1466_vm14, %v1450_v53, %v1482_v8  ;;  %v1499_v29 = vsel %vm1467_vm15, %v1451_v11, %v1483_v9  ;;  %v1500_v20 = vsel %vm1468_vm0, %v1452_v54, %v1484_v10 }
 0x211   :  { %v1501_v21 = vsel %vm1469_vm1, %v1453_v36, %v1485_v55  ;;  %v1502_v30 = vsel %vm1470_vm2, %v1454_v58, %v1486_v0  ;;  %v2182_v48 = vpack.c.bf16 %v1488_v40, %v1487_v4  ;;  %v2187_v31 = vpack.c.bf16 %v1490_v15, %v1489_v56 }
 0x212   :  { %v2192_v35 = vpack.c.bf16 %v1492_v26, %v1491_v25  ;;  %v2197_v46 = vpack.c.bf16 %v1494_v3, %v1493_v13  ;;  %v2202_v57 = vpack.c.bf16 %v1496_v16, %v1495_v27  ;;  %v2207_v1 = vpack.c.bf16 %v1498_v28, %v1497_v17 }
 0x213   :  { %2183 = vst [vmem:[%s3077_s5] sm:$0xff] %v2182_v48   ;;  %v2212_v33 = vpack.c.bf16 %v1500_v20, %v1499_v29  ;;  %v2217_v22 = vpack.c.bf16 %v1502_v30, %v1501_v21 }
 0x214   :  { %2219 = vst [vmem:[%s3077_s5 + $0x8] sm:$0xff] %v2187_v31  }
 0x215   :  { %2220 = vst [vmem:[%s3077_s5 + $0x10] sm:$0xff] %v2192_v35  }
 0x216   :  { %2221 = vst [vmem:[%s3077_s5 + $0x18] sm:$0xff] %v2197_v46  }
 0x217   :  { %2222 = vst [vmem:[%s3077_s5 + $0x20] sm:$0xff] %v2202_v57  }
 0x218   :  { %2223 = vst [vmem:[%s3077_s5 + $0x28] sm:$0xff] %v2207_v1  }
 0x219   :  { %2224 = vst [vmem:[%s3077_s5 + $0x30] sm:$0xff] %v2212_v33  }
 0x21a   :  { %2225 = vst [vmem:[%s3077_s5 + $0x38] sm:$0xff] %v2217_v22  }

// kernel: discriminator_forward.7
= control target key start
LH: loop header
LB: loop body
LE: loop exit
PB: predicated region body
PF: predicated region fallthrough
CT: control target
= control target key end

     0   :  { %s5037_s18 = smov 0   ;;  %s5039_s19 = smov 0   ;;  %s5970_s0 = inlined_call_operand.vmem [shape: bf16[32,2048], index: 0, kind: input, shape index: {}]   ;;  %s5971_s1 = inlined_call_operand.vmem [shape: bf16[2048,256], index: 1, kind: input, shape index: {}]   ;;  %s5972_s2 = inlined_call_operand.vmem [shape: f32[1,256], index: 2, kind: input, shape index: {}]   ;;  %s5973_s3 = inlined_call_operand.vmem [shape: f32[1,256], index: 3, kind: input, shape index: {}]   ;;  %s5974_s4 = inlined_call_operand.vmem [shape: f32[1,256], index: 4, kind: input, shape index: {}]   ;;  %s5975_s5 = inlined_call_operand.vmem [shape: bf16[32,256], index: 5, kind: output, shape index: {}]  }
   0x1   :  { %s5041_s20 = smov 0  }
   0x2 LB: > { %s5053_s21 = sadd.s32 4294967295, %s5005_s20   ;;  %s5056_s22 = sadd.s32 1, %s5005_s20   ;;  %s5005_s20 = sphi %s5041_s20, %s5979_s20   ;;  %s5001_s19 = sphi %s5039_s19, %s5978_s19   ;;  %s4997_s18 = sphi %s5037_s18, %s5977_s18  }
   0x3   : > { %s40_s23 = ssub.s32 %s5005_s20, %s5056_s22  ;;  %s43_s24 = sadd.s32 1, %s5001_s19 }
   0x4   : > { %p41_p0 = scmp.eq.s32.totalorder %s40_s23, 0  ;;  %p50_p1 = scmp.ne.s32.totalorder %s5001_s19, %s4997_s18 }
   0x5   : > { %p51_p2 = scmp.eq.s32.totalorder %s5005_s20, 0  ;;  %p158_p3 = scmp.eq.s32.totalorder %s5053_s21, 1 }
   0x6   : > { %s5066_s25 = scalar_select %p41_p0, %s5001_s19, %s43_s24  }
   0x7   : > { %p52_p4 = por %p51_p2, %p50_p1  ;;  %p5068_p5 = por %p158_p3, %p50_p1 }
   0x8   : > { %p4133_p6 = scmp.ge.s32.totalorder %s5005_s20, 2 }
   0xa   : > { %183 = sbr.rel (%p4133_p6) target bundleno = 275 (0x113), region = 20 }
   0xf   : > { %186 = sbr.rel (!%p52_p4) target bundleno = 275 (0x113), region = 24  ;;  %s188_s27 = sand.u32 (%p52_p4), 1, %s5001_s19  }
  0x10   : > { %s4135_s28 = sshll.u32 (%p52_p4), %s5005_s20, 2  ;;  %s4134_s29 = sshll.u32 (%p52_p4), %s188_s27, 10 }
  0x11   : > { %s5078_s7 = scalar_lea.vmem (%p52_p4), %s5971_s1, %s4135_s28  ;;  %s5082_s8 = scalar_lea.vmem (%p52_p4), [#allocation2], %s4134_s29 }
  0x12   : > { %v209_v0 = vld [vmem:[%s5078_s7] sm:$0xf] (%p52_p4)  ;;  %v211_v1 = vld [vmem:[%s5078_s7 + $0x8] sm:$0xf] (%p52_p4)  ;;  %v213_v2 = vld [vmem:[%s5078_s7 + $0x10] sm:$0xf] (%p52_p4) }
  0x13   : > { %210 = vst [vmem:[%s5082_s8] sm:$0xf] (%p52_p4), %v209_v0  ;;  %v215_v3 = vld [vmem:[%s5078_s7 + $0x18] sm:$0xf] (%p52_p4)  ;;  %v217_v4 = vld [vmem:[%s5078_s7 + $0x20] sm:$0xf] (%p52_p4) }
  0x14   : > { %212 = vst [vmem:[%s5082_s8 + $0x4] sm:$0xf] %v211_v1  ;;  %v219_v5 = vld [vmem:[%s5078_s7 + $0x28] sm:$0xf]  ;;  %v221_v6 = vld [vmem:[%s5078_s7 + $0x30] sm:$0xf] }
  0x15   : > { %214 = vst [vmem:[%s5082_s8 + $0x8] sm:$0xf] %v213_v2  ;;  %v223_v7 = vld [vmem:[%s5078_s7 + $0x38] sm:$0xf]  ;;  %v225_v8 = vld [vmem:[%s5078_s7 + $0x40] sm:$0xf] }
  0x16   : > { %216 = vst [vmem:[%s5082_s8 + $0xc] sm:$0xf] %v215_v3  ;;  %v227_v9 = vld [vmem:[%s5078_s7 + $0x48] sm:$0xf]  ;;  %v229_v10 = vld [vmem:[%s5078_s7 + $0x50] sm:$0xf] }
  0x17   : > { %218 = vst [vmem:[%s5082_s8 + $0x10] sm:$0xf] %v217_v4  ;;  %v231_v11 = vld [vmem:[%s5078_s7 + $0x58] sm:$0xf]  ;;  %v233_v12 = vld [vmem:[%s5078_s7 + $0x60] sm:$0xf] }
  0x18   : > { %220 = vst [vmem:[%s5082_s8 + $0x14] sm:$0xf] %v219_v5  ;;  %v235_v13 = vld [vmem:[%s5078_s7 + $0x68] sm:$0xf]  ;;  %v237_v14 = vld [vmem:[%s5078_s7 + $0x70] sm:$0xf] }
  0x19   : > { %222 = vst [vmem:[%s5082_s8 + $0x18] sm:$0xf] %v221_v6  ;;  %v239_v15 = vld [vmem:[%s5078_s7 + $0x78] sm:$0xf]  ;;  %v241_v16 = vld [vmem:[%s5078_s7 + $0x80] sm:$0xf] }
  0x1a   : > { %224 = vst [vmem:[%s5082_s8 + $0x1c] sm:$0xf] %v223_v7  ;;  %v243_v17 = vld [vmem:[%s5078_s7 + $0x88] sm:$0xf]  ;;  %v245_v18 = vld [vmem:[%s5078_s7 + $0x90] sm:$0xf] }
  0x1b   : > { %226 = vst [vmem:[%s5082_s8 + $0x20] sm:$0xf] %v225_v8  ;;  %v247_v19 = vld [vmem:[%s5078_s7 + $0x98] sm:$0xf]  ;;  %v249_v20 = vld [vmem:[%s5078_s7 + $0xa0] sm:$0xf] }
  0x1c   : > { %228 = vst [vmem:[%s5082_s8 + $0x24] sm:$0xf] %v227_v9  ;;  %v251_v21 = vld [vmem:[%s5078_s7 + $0xa8] sm:$0xf]  ;;  %v253_v22 = vld [vmem:[%s5078_s7 + $0xb0] sm:$0xf] }
  0x1d   : > { %230 = vst [vmem:[%s5082_s8 + $0x28] sm:$0xf] %v229_v10  ;;  %v255_v23 = vld [vmem:[%s5078_s7 + $0xb8] sm:$0xf]  ;;  %v257_v24 = vld [vmem:[%s5078_s7 + $0xc0] sm:$0xf] }
  0x1e   : > { %232 = vst [vmem:[%s5082_s8 + $0x2c] sm:$0xf] %v231_v11  ;;  %v259_v25 = vld [vmem:[%s5078_s7 + $0xc8] sm:$0xf]  ;;  %v261_v26 = vld [vmem:[%s5078_s7 + $0xd0] sm:$0xf] }
  0x1f   : > { %234 = vst [vmem:[%s5082_s8 + $0x30] sm:$0xf] %v233_v12  ;;  %v263_v27 = vld [vmem:[%s5078_s7 + $0xd8] sm:$0xf]  ;;  %v265_v28 = vld [vmem:[%s5078_s7 + $0xe0] sm:$0xf] }
  0x20   : > { %236 = vst [vmem:[%s5082_s8 + $0x34] sm:$0xf] %v235_v13  ;;  %v267_v29 = vld [vmem:[%s5078_s7 + $0xe8] sm:$0xf]  ;;  %v269_v30 = vld [vmem:[%s5078_s7 + $0xf0] sm:$0xf] }
  0x21   : > { %238 = vst [vmem:[%s5082_s8 + $0x38] sm:$0xf] %v237_v14  ;;  %v271_v31 = vld [vmem:[%s5078_s7 + $0xf8] sm:$0xf]  ;;  %v273_v32 = vld [vmem:[%s5078_s7 + $0x100] sm:$0xf] }
  0x22   : > { %240 = vst [vmem:[%s5082_s8 + $0x3c] sm:$0xf] %v239_v15  ;;  %v275_v33 = vld [vmem:[%s5078_s7 + $0x108] sm:$0xf]  ;;  %v277_v34 = vld [vmem:[%s5078_s7 + $0x110] sm:$0xf] }
  0x23   : > { %242 = vst [vmem:[%s5082_s8 + $0x40] sm:$0xf] %v241_v16  ;;  %v279_v35 = vld [vmem:[%s5078_s7 + $0x118] sm:$0xf]  ;;  %v281_v36 = vld [vmem:[%s5078_s7 + $0x120] sm:$0xf] }
  0x24   : > { %244 = vst [vmem:[%s5082_s8 + $0x44] sm:$0xf] %v243_v17  ;;  %v283_v37 = vld [vmem:[%s5078_s7 + $0x128] sm:$0xf]  ;;  %v285_v38 = vld [vmem:[%s5078_s7 + $0x130] sm:$0xf] }
  0x25   : > { %246 = vst [vmem:[%s5082_s8 + $0x48] sm:$0xf] %v245_v18  ;;  %v287_v39 = vld [vmem:[%s5078_s7 + $0x138] sm:$0xf]  ;;  %v289_v40 = vld [vmem:[%s5078_s7 + $0x140] sm:$0xf] }
  0x26   : > { %248 = vst [vmem:[%s5082_s8 + $0x4c] sm:$0xf] %v247_v19  ;;  %v291_v41 = vld [vmem:[%s5078_s7 + $0x148] sm:$0xf]  ;;  %v293_v42 = vld [vmem:[%s5078_s7 + $0x150] sm:$0xf] }
  0x27   : > { %250 = vst [vmem:[%s5082_s8 + $0x50] sm:$0xf] %v249_v20  ;;  %v295_v43 = vld [vmem:[%s5078_s7 + $0x158] sm:$0xf]  ;;  %v297_v44 = vld [vmem:[%s5078_s7 + $0x160] sm:$0xf] }
  0x28   : > { %252 = vst [vmem:[%s5082_s8 + $0x54] sm:$0xf] %v251_v21  ;;  %v299_v45 = vld [vmem:[%s5078_s7 + $0x168] sm:$0xf]  ;;  %v301_v46 = vld [vmem:[%s5078_s7 + $0x170] sm:$0xf] }
  0x29   : > { %254 = vst [vmem:[%s5082_s8 + $0x58] sm:$0xf] %v253_v22  ;;  %v303_v47 = vld [vmem:[%s5078_s7 + $0x178] sm:$0xf]  ;;  %v305_v48 = vld [vmem:[%s5078_s7 + $0x180] sm:$0xf] }
  0x2a   : > { %256 = vst [vmem:[%s5082_s8 + $0x5c] sm:$0xf] %v255_v23  ;;  %v307_v49 = vld [vmem:[%s5078_s7 + $0x188] sm:$0xf]  ;;  %v309_v50 = vld [vmem:[%s5078_s7 + $0x190] sm:$0xf] }
  0x2b   : > { %258 = vst [vmem:[%s5082_s8 + $0x60] sm:$0xf] %v257_v24  ;;  %v311_v51 = vld [vmem:[%s5078_s7 + $0x198] sm:$0xf]  ;;  %v313_v52 = vld [vmem:[%s5078_s7 + $0x1a0] sm:$0xf] }
  0x2c   : > { %260 = vst [vmem:[%s5082_s8 + $0x64] sm:$0xf] %v259_v25  ;;  %v315_v53 = vld [vmem:[%s5078_s7 + $0x1a8] sm:$0xf]  ;;  %v317_v54 = vld [vmem:[%s5078_s7 + $0x1b0] sm:$0xf] }
  0x2d   : > { %262 = vst [vmem:[%s5082_s8 + $0x68] sm:$0xf] %v261_v26  ;;  %v319_v55 = vld [vmem:[%s5078_s7 + $0x1b8] sm:$0xf]  ;;  %v321_v56 = vld [vmem:[%s5078_s7 + $0x1c0] sm:$0xf] }
  0x2e   : > { %264 = vst [vmem:[%s5082_s8 + $0x6c] sm:$0xf] %v263_v27  ;;  %v323_v57 = vld [vmem:[%s5078_s7 + $0x1c8] sm:$0xf]  ;;  %v325_v58 = vld [vmem:[%s5078_s7 + $0x1d0] sm:$0xf] }
  0x2f   : > { %266 = vst [vmem:[%s5082_s8 + $0x70] sm:$0xf] %v265_v28  ;;  %v327_v59 = vld [vmem:[%s5078_s7 + $0x1d8] sm:$0xf]  ;;  %v329_v60 = vld [vmem:[%s5078_s7 + $0x1e0] sm:$0xf] }
  0x30   : > { %268 = vst [vmem:[%s5082_s8 + $0x74] sm:$0xf] %v267_v29  ;;  %v331_v61 = vld [vmem:[%s5078_s7 + $0x1e8] sm:$0xf]  ;;  %v333_v62 = vld [vmem:[%s5078_s7 + $0x1f0] sm:$0xf] }
  0x31   : > { %270 = vst [vmem:[%s5082_s8 + $0x78] sm:$0xf] %v269_v30  ;;  %v335_v63 = vld [vmem:[%s5078_s7 + $0x1f8] sm:$0xf]  ;;  %v337_v0 = vld [vmem:[%s5078_s7 + $0x200] sm:$0xf] }
  0x32   : > { %272 = vst [vmem:[%s5082_s8 + $0x7c] sm:$0xf] %v271_v31  ;;  %v339_v1 = vld [vmem:[%s5078_s7 + $0x208] sm:$0xf]  ;;  %v341_v2 = vld [vmem:[%s5078_s7 + $0x210] sm:$0xf] }
  0x33   : > { %274 = vst [vmem:[%s5082_s8 + $0x80] sm:$0xf] %v273_v32  ;;  %v343_v3 = vld [vmem:[%s5078_s7 + $0x218] sm:$0xf]  ;;  %v345_v4 = vld [vmem:[%s5078_s7 + $0x220] sm:$0xf] }
  0x34   : > { %276 = vst [vmem:[%s5082_s8 + $0x84] sm:$0xf] %v275_v33  ;;  %v347_v5 = vld [vmem:[%s5078_s7 + $0x228] sm:$0xf]  ;;  %v349_v6 = vld [vmem:[%s5078_s7 + $0x230] sm:$0xf] }
  0x35   : > { %278 = vst [vmem:[%s5082_s8 + $0x88] sm:$0xf] %v277_v34  ;;  %v351_v7 = vld [vmem:[%s5078_s7 + $0x238] sm:$0xf]  ;;  %v353_v8 = vld [vmem:[%s5078_s7 + $0x240] sm:$0xf] }
  0x36   : > { %280 = vst [vmem:[%s5082_s8 + $0x8c] sm:$0xf] %v279_v35  ;;  %v355_v9 = vld [vmem:[%s5078_s7 + $0x248] sm:$0xf]  ;;  %v357_v10 = vld [vmem:[%s5078_s7 + $0x250] sm:$0xf] }
  0x37   : > { %282 = vst [vmem:[%s5082_s8 + $0x90] sm:$0xf] %v281_v36  ;;  %v359_v11 = vld [vmem:[%s5078_s7 + $0x258] sm:$0xf]  ;;  %v361_v12 = vld [vmem:[%s5078_s7 + $0x260] sm:$0xf] }
  0x38   : > { %284 = vst [vmem:[%s5082_s8 + $0x94] sm:$0xf] %v283_v37  ;;  %v363_v13 = vld [vmem:[%s5078_s7 + $0x268] sm:$0xf]  ;;  %v365_v14 = vld [vmem:[%s5078_s7 + $0x270] sm:$0xf] }
  0x39   : > { %286 = vst [vmem:[%s5082_s8 + $0x98] sm:$0xf] %v285_v38  ;;  %v367_v15 = vld [vmem:[%s5078_s7 + $0x278] sm:$0xf]  ;;  %v369_v16 = vld [vmem:[%s5078_s7 + $0x280] sm:$0xf] }
  0x3a   : > { %288 = vst [vmem:[%s5082_s8 + $0x9c] sm:$0xf] %v287_v39  ;;  %v371_v17 = vld [vmem:[%s5078_s7 + $0x288] sm:$0xf]  ;;  %v373_v18 = vld [vmem:[%s5078_s7 + $0x290] sm:$0xf] }
  0x3b   : > { %290 = vst [vmem:[%s5082_s8 + $0xa0] sm:$0xf] %v289_v40  ;;  %v375_v19 = vld [vmem:[%s5078_s7 + $0x298] sm:$0xf]  ;;  %v377_v20 = vld [vmem:[%s5078_s7 + $0x2a0] sm:$0xf] }
  0x3c   : > { %292 = vst [vmem:[%s5082_s8 + $0xa4] sm:$0xf] %v291_v41  ;;  %v379_v21 = vld [vmem:[%s5078_s7 + $0x2a8] sm:$0xf]  ;;  %v381_v22 = vld [vmem:[%s5078_s7 + $0x2b0] sm:$0xf] }
  0x3d   : > { %294 = vst [vmem:[%s5082_s8 + $0xa8] sm:$0xf] %v293_v42  ;;  %v383_v23 = vld [vmem:[%s5078_s7 + $0x2b8] sm:$0xf]  ;;  %v385_v24 = vld [vmem:[%s5078_s7 + $0x2c0] sm:$0xf] }
  0x3e   : > { %296 = vst [vmem:[%s5082_s8 + $0xac] sm:$0xf] %v295_v43  ;;  %v387_v25 = vld [vmem:[%s5078_s7 + $0x2c8] sm:$0xf]  ;;  %v389_v26 = vld [vmem:[%s5078_s7 + $0x2d0] sm:$0xf] }
  0x3f   : > { %298 = vst [vmem:[%s5082_s8 + $0xb0] sm:$0xf] %v297_v44  ;;  %v391_v27 = vld [vmem:[%s5078_s7 + $0x2d8] sm:$0xf]  ;;  %v393_v28 = vld [vmem:[%s5078_s7 + $0x2e0] sm:$0xf] }
  0x40   : > { %300 = vst [vmem:[%s5082_s8 + $0xb4] sm:$0xf] %v299_v45  ;;  %v395_v29 = vld [vmem:[%s5078_s7 + $0x2e8] sm:$0xf]  ;;  %v397_v30 = vld [vmem:[%s5078_s7 + $0x2f0] sm:$0xf] }
  0x41   : > { %302 = vst [vmem:[%s5082_s8 + $0xb8] sm:$0xf] %v301_v46  ;;  %v399_v31 = vld [vmem:[%s5078_s7 + $0x2f8] sm:$0xf]  ;;  %v401_v32 = vld [vmem:[%s5078_s7 + $0x300] sm:$0xf] }
  0x42   : > { %304 = vst [vmem:[%s5082_s8 + $0xbc] sm:$0xf] %v303_v47  ;;  %v403_v33 = vld [vmem:[%s5078_s7 + $0x308] sm:$0xf]  ;;  %v405_v34 = vld [vmem:[%s5078_s7 + $0x310] sm:$0xf] }
  0x43   : > { %306 = vst [vmem:[%s5082_s8 + $0xc0] sm:$0xf] %v305_v48  ;;  %v407_v35 = vld [vmem:[%s5078_s7 + $0x318] sm:$0xf]  ;;  %v409_v36 = vld [vmem:[%s5078_s7 + $0x320] sm:$0xf] }
  0x44   : > { %308 = vst [vmem:[%s5082_s8 + $0xc4] sm:$0xf] %v307_v49  ;;  %v411_v37 = vld [vmem:[%s5078_s7 + $0x328] sm:$0xf]  ;;  %v413_v38 = vld [vmem:[%s5078_s7 + $0x330] sm:$0xf] }
  0x45   : > { %310 = vst [vmem:[%s5082_s8 + $0xc8] sm:$0xf] %v309_v50  ;;  %v415_v39 = vld [vmem:[%s5078_s7 + $0x338] sm:$0xf]  ;;  %v417_v40 = vld [vmem:[%s5078_s7 + $0x340] sm:$0xf] }
  0x46   : > { %312 = vst [vmem:[%s5082_s8 + $0xcc] sm:$0xf] %v311_v51  ;;  %v419_v41 = vld [vmem:[%s5078_s7 + $0x348] sm:$0xf]  ;;  %v421_v42 = vld [vmem:[%s5078_s7 + $0x350] sm:$0xf] }
  0x47   : > { %314 = vst [vmem:[%s5082_s8 + $0xd0] sm:$0xf] %v313_v52  ;;  %v423_v43 = vld [vmem:[%s5078_s7 + $0x358] sm:$0xf]  ;;  %v425_v44 = vld [vmem:[%s5078_s7 + $0x360] sm:$0xf] }
  0x48   : > { %316 = vst [vmem:[%s5082_s8 + $0xd4] sm:$0xf] %v315_v53  ;;  %v427_v45 = vld [vmem:[%s5078_s7 + $0x368] sm:$0xf]  ;;  %v429_v46 = vld [vmem:[%s5078_s7 + $0x370] sm:$0xf] }
  0x49   : > { %318 = vst [vmem:[%s5082_s8 + $0xd8] sm:$0xf] %v317_v54  ;;  %v431_v47 = vld [vmem:[%s5078_s7 + $0x378] sm:$0xf]  ;;  %v433_v48 = vld [vmem:[%s5078_s7 + $0x380] sm:$0xf] }
  0x4a   : > { %320 = vst [vmem:[%s5082_s8 + $0xdc] sm:$0xf] %v319_v55  ;;  %v435_v49 = vld [vmem:[%s5078_s7 + $0x388] sm:$0xf]  ;;  %v437_v50 = vld [vmem:[%s5078_s7 + $0x390] sm:$0xf] }
  0x4b   : > { %322 = vst [vmem:[%s5082_s8 + $0xe0] sm:$0xf] %v321_v56  ;;  %v439_v51 = vld [vmem:[%s5078_s7 + $0x398] sm:$0xf]  ;;  %v441_v52 = vld [vmem:[%s5078_s7 + $0x3a0] sm:$0xf] }
  0x4c   : > { %324 = vst [vmem:[%s5082_s8 + $0xe4] sm:$0xf] %v323_v57  ;;  %v443_v53 = vld [vmem:[%s5078_s7 + $0x3a8] sm:$0xf]  ;;  %v445_v54 = vld [vmem:[%s5078_s7 + $0x3b0] sm:$0xf] }
  0x4d   : > { %326 = vst [vmem:[%s5082_s8 + $0xe8] sm:$0xf] %v325_v58  ;;  %v447_v55 = vld [vmem:[%s5078_s7 + $0x3b8] sm:$0xf]  ;;  %v449_v56 = vld [vmem:[%s5078_s7 + $0x3c0] sm:$0xf] }
  0x4e   : > { %328 = vst [vmem:[%s5082_s8 + $0xec] sm:$0xf] %v327_v59  ;;  %v451_v57 = vld [vmem:[%s5078_s7 + $0x3c8] sm:$0xf]  ;;  %v453_v58 = vld [vmem:[%s5078_s7 + $0x3d0] sm:$0xf] }
  0x4f   : > { %330 = vst [vmem:[%s5082_s8 + $0xf0] sm:$0xf] %v329_v60  ;;  %v455_v59 = vld [vmem:[%s5078_s7 + $0x3d8] sm:$0xf]  ;;  %v457_v60 = vld [vmem:[%s5078_s7 + $0x3e0] sm:$0xf] }
  0x50   : > { %332 = vst [vmem:[%s5082_s8 + $0xf4] sm:$0xf] %v331_v61  ;;  %v459_v61 = vld [vmem:[%s5078_s7 + $0x3e8] sm:$0xf] }
  0x51   : > { %334 = vst [vmem:[%s5082_s8 + $0xf8] sm:$0xf] %v333_v62  ;;  %v461_v62 = vld [vmem:[%s5078_s7 + $0x3f0] sm:$0xf] }
  0x52   : > { %336 = vst [vmem:[%s5082_s8 + $0xfc] sm:$0xf] %v335_v63  ;;  %v463_v63 = vld [vmem:[%s5078_s7 + $0x3f8] sm:$0xf] }
  0x53   : > { %338 = vst [vmem:[%s5082_s8 + $0x100] sm:$0xf] %v337_v0  ;;  %v465_v0 = vld [vmem:[%s5078_s7 + $0x400] sm:$0xf] }
  0x54   : > { %340 = vst [vmem:[%s5082_s8 + $0x104] sm:$0xf] %v339_v1  ;;  %v467_v1 = vld [vmem:[%s5078_s7 + $0x408] sm:$0xf] }
  0x55   : > { %342 = vst [vmem:[%s5082_s8 + $0x108] sm:$0xf] %v341_v2  ;;  %v469_v2 = vld [vmem:[%s5078_s7 + $0x410] sm:$0xf] }
  0x56   : > { %344 = vst [vmem:[%s5082_s8 + $0x10c] sm:$0xf] %v343_v3  ;;  %v471_v3 = vld [vmem:[%s5078_s7 + $0x418] sm:$0xf] }
  0x57   : > { %346 = vst [vmem:[%s5082_s8 + $0x110] sm:$0xf] %v345_v4  ;;  %v473_v4 = vld [vmem:[%s5078_s7 + $0x420] sm:$0xf] }
  0x58   : > { %348 = vst [vmem:[%s5082_s8 + $0x114] sm:$0xf] %v347_v5  ;;  %v475_v5 = vld [vmem:[%s5078_s7 + $0x428] sm:$0xf] }
  0x59   : > { %350 = vst [vmem:[%s5082_s8 + $0x118] sm:$0xf] %v349_v6  ;;  %v477_v6 = vld [vmem:[%s5078_s7 + $0x430] sm:$0xf] }
  0x5a   : > { %352 = vst [vmem:[%s5082_s8 + $0x11c] sm:$0xf] %v351_v7  ;;  %v479_v7 = vld [vmem:[%s5078_s7 + $0x438] sm:$0xf] }
  0x5b   : > { %354 = vst [vmem:[%s5082_s8 + $0x120] sm:$0xf] %v353_v8  ;;  %v481_v8 = vld [vmem:[%s5078_s7 + $0x440] sm:$0xf] }
  0x5c   : > { %356 = vst [vmem:[%s5082_s8 + $0x124] sm:$0xf] %v355_v9  ;;  %v483_v9 = vld [vmem:[%s5078_s7 + $0x448] sm:$0xf] }
  0x5d   : > { %358 = vst [vmem:[%s5082_s8 + $0x128] sm:$0xf] %v357_v10  ;;  %v485_v10 = vld [vmem:[%s5078_s7 + $0x450] sm:$0xf] }
  0x5e   : > { %360 = vst [vmem:[%s5082_s8 + $0x12c] sm:$0xf] %v359_v11  ;;  %v487_v11 = vld [vmem:[%s5078_s7 + $0x458] sm:$0xf] }
  0x5f   : > { %362 = vst [vmem:[%s5082_s8 + $0x130] sm:$0xf] %v361_v12  ;;  %v489_v12 = vld [vmem:[%s5078_s7 + $0x460] sm:$0xf] }
  0x60   : > { %364 = vst [vmem:[%s5082_s8 + $0x134] sm:$0xf] %v363_v13  ;;  %v491_v13 = vld [vmem:[%s5078_s7 + $0x468] sm:$0xf] }
  0x61   : > { %366 = vst [vmem:[%s5082_s8 + $0x138] sm:$0xf] %v365_v14  ;;  %v493_v14 = vld [vmem:[%s5078_s7 + $0x470] sm:$0xf] }
  0x62   : > { %368 = vst [vmem:[%s5082_s8 + $0x13c] sm:$0xf] %v367_v15  ;;  %v495_v15 = vld [vmem:[%s5078_s7 + $0x478] sm:$0xf] }
  0x63   : > { %370 = vst [vmem:[%s5082_s8 + $0x140] sm:$0xf] %v369_v16  ;;  %v497_v16 = vld [vmem:[%s5078_s7 + $0x480] sm:$0xf] }
  0x64   : > { %372 = vst [vmem:[%s5082_s8 + $0x144] sm:$0xf] %v371_v17  ;;  %v499_v17 = vld [vmem:[%s5078_s7 + $0x488] sm:$0xf] }
  0x65   : > { %374 = vst [vmem:[%s5082_s8 + $0x148] sm:$0xf] %v373_v18  ;;  %v501_v18 = vld [vmem:[%s5078_s7 + $0x490] sm:$0xf] }
  0x66   : > { %376 = vst [vmem:[%s5082_s8 + $0x14c] sm:$0xf] %v375_v19  ;;  %v503_v19 = vld [vmem:[%s5078_s7 + $0x498] sm:$0xf] }
  0x67   : > { %378 = vst [vmem:[%s5082_s8 + $0x150] sm:$0xf] %v377_v20  ;;  %v505_v20 = vld [vmem:[%s5078_s7 + $0x4a0] sm:$0xf] }
  0x68   : > { %380 = vst [vmem:[%s5082_s8 + $0x154] sm:$0xf] %v379_v21  ;;  %v507_v21 = vld [vmem:[%s5078_s7 + $0x4a8] sm:$0xf] }
  0x69   : > { %382 = vst [vmem:[%s5082_s8 + $0x158] sm:$0xf] %v381_v22  ;;  %v509_v22 = vld [vmem:[%s5078_s7 + $0x4b0] sm:$0xf] }
  0x6a   : > { %384 = vst [vmem:[%s5082_s8 + $0x15c] sm:$0xf] %v383_v23  ;;  %v511_v23 = vld [vmem:[%s5078_s7 + $0x4b8] sm:$0xf] }
  0x6b   : > { %386 = vst [vmem:[%s5082_s8 + $0x160] sm:$0xf] %v385_v24  ;;  %v513_v24 = vld [vmem:[%s5078_s7 + $0x4c0] sm:$0xf] }
  0x6c   : > { %388 = vst [vmem:[%s5082_s8 + $0x164] sm:$0xf] %v387_v25  ;;  %v515_v25 = vld [vmem:[%s5078_s7 + $0x4c8] sm:$0xf] }
  0x6d   : > { %390 = vst [vmem:[%s5082_s8 + $0x168] sm:$0xf] %v389_v26  ;;  %v517_v26 = vld [vmem:[%s5078_s7 + $0x4d0] sm:$0xf] }
  0x6e   : > { %392 = vst [vmem:[%s5082_s8 + $0x16c] sm:$0xf] %v391_v27  ;;  %v519_v27 = vld [vmem:[%s5078_s7 + $0x4d8] sm:$0xf] }
  0x6f   : > { %394 = vst [vmem:[%s5082_s8 + $0x170] sm:$0xf] %v393_v28  ;;  %v521_v28 = vld [vmem:[%s5078_s7 + $0x4e0] sm:$0xf] }
  0x70   : > { %396 = vst [vmem:[%s5082_s8 + $0x174] sm:$0xf] %v395_v29  ;;  %v523_v29 = vld [vmem:[%s5078_s7 + $0x4e8] sm:$0xf] }
  0x71   : > { %398 = vst [vmem:[%s5082_s8 + $0x178] sm:$0xf] %v397_v30  ;;  %v525_v30 = vld [vmem:[%s5078_s7 + $0x4f0] sm:$0xf] }
  0x72   : > { %400 = vst [vmem:[%s5082_s8 + $0x17c] sm:$0xf] %v399_v31  ;;  %v527_v31 = vld [vmem:[%s5078_s7 + $0x4f8] sm:$0xf] }
  0x73   : > { %402 = vst [vmem:[%s5082_s8 + $0x180] sm:$0xf] %v401_v32  ;;  %v529_v32 = vld [vmem:[%s5078_s7 + $0x500] sm:$0xf] }
  0x74   : > { %404 = vst [vmem:[%s5082_s8 + $0x184] sm:$0xf] %v403_v33  ;;  %v531_v33 = vld [vmem:[%s5078_s7 + $0x508] sm:$0xf] }
  0x75   : > { %406 = vst [vmem:[%s5082_s8 + $0x188] sm:$0xf] %v405_v34  ;;  %v533_v34 = vld [vmem:[%s5078_s7 + $0x510] sm:$0xf] }
  0x76   : > { %408 = vst [vmem:[%s5082_s8 + $0x18c] sm:$0xf] %v407_v35  ;;  %v535_v35 = vld [vmem:[%s5078_s7 + $0x518] sm:$0xf] }
  0x77   : > { %410 = vst [vmem:[%s5082_s8 + $0x190] sm:$0xf] %v409_v36  ;;  %v537_v36 = vld [vmem:[%s5078_s7 + $0x520] sm:$0xf] }
  0x78   : > { %412 = vst [vmem:[%s5082_s8 + $0x194] sm:$0xf] %v411_v37  ;;  %v539_v37 = vld [vmem:[%s5078_s7 + $0x528] sm:$0xf] }
  0x79   : > { %414 = vst [vmem:[%s5082_s8 + $0x198] sm:$0xf] %v413_v38  ;;  %v541_v38 = vld [vmem:[%s5078_s7 + $0x530] sm:$0xf] }
  0x7a   : > { %416 = vst [vmem:[%s5082_s8 + $0x19c] sm:$0xf] %v415_v39  ;;  %v543_v39 = vld [vmem:[%s5078_s7 + $0x538] sm:$0xf] }
  0x7b   : > { %418 = vst [vmem:[%s5082_s8 + $0x1a0] sm:$0xf] %v417_v40  ;;  %v545_v40 = vld [vmem:[%s5078_s7 + $0x540] sm:$0xf] }
  0x7c   : > { %420 = vst [vmem:[%s5082_s8 + $0x1a4] sm:$0xf] %v419_v41  ;;  %v547_v41 = vld [vmem:[%s5078_s7 + $0x548] sm:$0xf] }
  0x7d   : > { %422 = vst [vmem:[%s5082_s8 + $0x1a8] sm:$0xf] %v421_v42  ;;  %v549_v42 = vld [vmem:[%s5078_s7 + $0x550] sm:$0xf] }
  0x7e   : > { %424 = vst [vmem:[%s5082_s8 + $0x1ac] sm:$0xf] %v423_v43  ;;  %v551_v43 = vld [vmem:[%s5078_s7 + $0x558] sm:$0xf] }
  0x7f   : > { %426 = vst [vmem:[%s5082_s8 + $0x1b0] sm:$0xf] %v425_v44  ;;  %v553_v44 = vld [vmem:[%s5078_s7 + $0x560] sm:$0xf] }
  0x80   : > { %428 = vst [vmem:[%s5082_s8 + $0x1b4] sm:$0xf] %v427_v45  ;;  %v555_v45 = vld [vmem:[%s5078_s7 + $0x568] sm:$0xf] }
  0x81   : > { %430 = vst [vmem:[%s5082_s8 + $0x1b8] sm:$0xf] %v429_v46  ;;  %v557_v46 = vld [vmem:[%s5078_s7 + $0x570] sm:$0xf] }
  0x82   : > { %432 = vst [vmem:[%s5082_s8 + $0x1bc] sm:$0xf] %v431_v47  ;;  %v559_v47 = vld [vmem:[%s5078_s7 + $0x578] sm:$0xf] }
  0x83   : > { %434 = vst [vmem:[%s5082_s8 + $0x1c0] sm:$0xf] %v433_v48  ;;  %v561_v48 = vld [vmem:[%s5078_s7 + $0x580] sm:$0xf] }
  0x84   : > { %436 = vst [vmem:[%s5082_s8 + $0x1c4] sm:$0xf] %v435_v49  ;;  %v563_v49 = vld [vmem:[%s5078_s7 + $0x588] sm:$0xf] }
  0x85   : > { %438 = vst [vmem:[%s5082_s8 + $0x1c8] sm:$0xf] %v437_v50  ;;  %v565_v50 = vld [vmem:[%s5078_s7 + $0x590] sm:$0xf] }
  0x86   : > { %440 = vst [vmem:[%s5082_s8 + $0x1cc] sm:$0xf] %v439_v51  ;;  %v567_v51 = vld [vmem:[%s5078_s7 + $0x598] sm:$0xf] }
  0x87   : > { %442 = vst [vmem:[%s5082_s8 + $0x1d0] sm:$0xf] %v441_v52  ;;  %v569_v52 = vld [vmem:[%s5078_s7 + $0x5a0] sm:$0xf] }
  0x88   : > { %444 = vst [vmem:[%s5082_s8 + $0x1d4] sm:$0xf] %v443_v53  ;;  %v571_v53 = vld [vmem:[%s5078_s7 + $0x5a8] sm:$0xf] }
  0x89   : > { %446 = vst [vmem:[%s5082_s8 + $0x1d8] sm:$0xf] %v445_v54  ;;  %v573_v54 = vld [vmem:[%s5078_s7 + $0x5b0] sm:$0xf] }
  0x8a   : > { %448 = vst [vmem:[%s5082_s8 + $0x1dc] sm:$0xf] %v447_v55  ;;  %v575_v55 = vld [vmem:[%s5078_s7 + $0x5b8] sm:$0xf] }
  0x8b   : > { %450 = vst [vmem:[%s5082_s8 + $0x1e0] sm:$0xf] %v449_v56  ;;  %v577_v56 = vld [vmem:[%s5078_s7 + $0x5c0] sm:$0xf] }
  0x8c   : > { %452 = vst [vmem:[%s5082_s8 + $0x1e4] sm:$0xf] %v451_v57  ;;  %v579_v57 = vld [vmem:[%s5078_s7 + $0x5c8] sm:$0xf] }
  0x8d   : > { %454 = vst [vmem:[%s5082_s8 + $0x1e8] sm:$0xf] %v453_v58  ;;  %v581_v58 = vld [vmem:[%s5078_s7 + $0x5d0] sm:$0xf] }
  0x8e   : > { %456 = vst [vmem:[%s5082_s8 + $0x1ec] sm:$0xf] %v455_v59  ;;  %v583_v59 = vld [vmem:[%s5078_s7 + $0x5d8] sm:$0xf] }
  0x8f   : > { %458 = vst [vmem:[%s5082_s8 + $0x1f0] sm:$0xf] %v457_v60  ;;  %v585_v60 = vld [vmem:[%s5078_s7 + $0x5e0] sm:$0xf] }
  0x90   : > { %460 = vst [vmem:[%s5082_s8 + $0x1f4] sm:$0xf] %v459_v61  ;;  %v587_v61 = vld [vmem:[%s5078_s7 + $0x5e8] sm:$0xf] }
  0x91   : > { %462 = vst [vmem:[%s5082_s8 + $0x1f8] sm:$0xf] %v461_v62  ;;  %v589_v62 = vld [vmem:[%s5078_s7 + $0x5f0] sm:$0xf] }
  0x92   : > { %464 = vst [vmem:[%s5082_s8 + $0x1fc] sm:$0xf] %v463_v63  ;;  %v591_v63 = vld [vmem:[%s5078_s7 + $0x5f8] sm:$0xf] }
  0x93   : > { %466 = vst [vmem:[%s5082_s8 + $0x200] sm:$0xf] %v465_v0  ;;  %v593_v0 = vld [vmem:[%s5078_s7 + $0x600] sm:$0xf] }
  0x94   : > { %468 = vst [vmem:[%s5082_s8 + $0x204] sm:$0xf] %v467_v1  ;;  %v595_v1 = vld [vmem:[%s5078_s7 + $0x608] sm:$0xf] }
  0x95   : > { %470 = vst [vmem:[%s5082_s8 + $0x208] sm:$0xf] %v469_v2  ;;  %v597_v2 = vld [vmem:[%s5078_s7 + $0x610] sm:$0xf] }
  0x96   : > { %472 = vst [vmem:[%s5082_s8 + $0x20c] sm:$0xf] %v471_v3  ;;  %v599_v3 = vld [vmem:[%s5078_s7 + $0x618] sm:$0xf] }
  0x97   : > { %474 = vst [vmem:[%s5082_s8 + $0x210] sm:$0xf] %v473_v4  ;;  %v601_v4 = vld [vmem:[%s5078_s7 + $0x620] sm:$0xf] }
  0x98   : > { %476 = vst [vmem:[%s5082_s8 + $0x214] sm:$0xf] %v475_v5  ;;  %v603_v5 = vld [vmem:[%s5078_s7 + $0x628] sm:$0xf] }
  0x99   : > { %478 = vst [vmem:[%s5082_s8 + $0x218] sm:$0xf] %v477_v6  ;;  %v605_v6 = vld [vmem:[%s5078_s7 + $0x630] sm:$0xf] }
  0x9a   : > { %480 = vst [vmem:[%s5082_s8 + $0x21c] sm:$0xf] %v479_v7  ;;  %v607_v7 = vld [vmem:[%s5078_s7 + $0x638] sm:$0xf] }
  0x9b   : > { %482 = vst [vmem:[%s5082_s8 + $0x220] sm:$0xf] %v481_v8  ;;  %v609_v8 = vld [vmem:[%s5078_s7 + $0x640] sm:$0xf] }
  0x9c   : > { %484 = vst [vmem:[%s5082_s8 + $0x224] sm:$0xf] %v483_v9  ;;  %v611_v9 = vld [vmem:[%s5078_s7 + $0x648] sm:$0xf] }
  0x9d   : > { %486 = vst [vmem:[%s5082_s8 + $0x228] sm:$0xf] %v485_v10  ;;  %v613_v10 = vld [vmem:[%s5078_s7 + $0x650] sm:$0xf] }
  0x9e   : > { %488 = vst [vmem:[%s5082_s8 + $0x22c] sm:$0xf] %v487_v11  ;;  %v615_v11 = vld [vmem:[%s5078_s7 + $0x658] sm:$0xf] }
  0x9f   : > { %490 = vst [vmem:[%s5082_s8 + $0x230] sm:$0xf] %v489_v12  ;;  %v617_v12 = vld [vmem:[%s5078_s7 + $0x660] sm:$0xf] }
  0xa0   : > { %492 = vst [vmem:[%s5082_s8 + $0x234] sm:$0xf] %v491_v13  ;;  %v619_v13 = vld [vmem:[%s5078_s7 + $0x668] sm:$0xf] }
  0xa1   : > { %494 = vst [vmem:[%s5082_s8 + $0x238] sm:$0xf] %v493_v14  ;;  %v621_v14 = vld [vmem:[%s5078_s7 + $0x670] sm:$0xf] }
  0xa2   : > { %496 = vst [vmem:[%s5082_s8 + $0x23c] sm:$0xf] %v495_v15  ;;  %v623_v15 = vld [vmem:[%s5078_s7 + $0x678] sm:$0xf] }
  0xa3   : > { %498 = vst [vmem:[%s5082_s8 + $0x240] sm:$0xf] %v497_v16  ;;  %v625_v16 = vld [vmem:[%s5078_s7 + $0x680] sm:$0xf] }
  0xa4   : > { %500 = vst [vmem:[%s5082_s8 + $0x244] sm:$0xf] %v499_v17  ;;  %v627_v17 = vld [vmem:[%s5078_s7 + $0x688] sm:$0xf] }
  0xa5   : > { %502 = vst [vmem:[%s5082_s8 + $0x248] sm:$0xf] %v501_v18  ;;  %v629_v18 = vld [vmem:[%s5078_s7 + $0x690] sm:$0xf] }
  0xa6   : > { %504 = vst [vmem:[%s5082_s8 + $0x24c] sm:$0xf] %v503_v19  ;;  %v631_v19 = vld [vmem:[%s5078_s7 + $0x698] sm:$0xf] }
  0xa7   : > { %506 = vst [vmem:[%s5082_s8 + $0x250] sm:$0xf] %v505_v20  ;;  %v633_v20 = vld [vmem:[%s5078_s7 + $0x6a0] sm:$0xf] }
  0xa8   : > { %508 = vst [vmem:[%s5082_s8 + $0x254] sm:$0xf] %v507_v21  ;;  %v635_v21 = vld [vmem:[%s5078_s7 + $0x6a8] sm:$0xf] }
  0xa9   : > { %510 = vst [vmem:[%s5082_s8 + $0x258] sm:$0xf] %v509_v22  ;;  %v637_v22 = vld [vmem:[%s5078_s7 + $0x6b0] sm:$0xf] }
  0xaa   : > { %512 = vst [vmem:[%s5082_s8 + $0x25c] sm:$0xf] %v511_v23  ;;  %v639_v23 = vld [vmem:[%s5078_s7 + $0x6b8] sm:$0xf] }
  0xab   : > { %514 = vst [vmem:[%s5082_s8 + $0x260] sm:$0xf] %v513_v24  ;;  %v641_v24 = vld [vmem:[%s5078_s7 + $0x6c0] sm:$0xf] }
  0xac   : > { %516 = vst [vmem:[%s5082_s8 + $0x264] sm:$0xf] %v515_v25  ;;  %v643_v25 = vld [vmem:[%s5078_s7 + $0x6c8] sm:$0xf] }
  0xad   : > { %518 = vst [vmem:[%s5082_s8 + $0x268] sm:$0xf] %v517_v26  ;;  %v645_v26 = vld [vmem:[%s5078_s7 + $0x6d0] sm:$0xf] }
  0xae   : > { %520 = vst [vmem:[%s5082_s8 + $0x26c] sm:$0xf] %v519_v27  ;;  %v647_v27 = vld [vmem:[%s5078_s7 + $0x6d8] sm:$0xf] }
  0xaf   : > { %522 = vst [vmem:[%s5082_s8 + $0x270] sm:$0xf] %v521_v28  ;;  %v649_v28 = vld [vmem:[%s5078_s7 + $0x6e0] sm:$0xf] }
  0xb0   : > { %524 = vst [vmem:[%s5082_s8 + $0x274] sm:$0xf] %v523_v29  ;;  %v651_v29 = vld [vmem:[%s5078_s7 + $0x6e8] sm:$0xf] }
  0xb1   : > { %526 = vst [vmem:[%s5082_s8 + $0x278] sm:$0xf] %v525_v30  ;;  %v653_v30 = vld [vmem:[%s5078_s7 + $0x6f0] sm:$0xf] }
  0xb2   : > { %528 = vst [vmem:[%s5082_s8 + $0x27c] sm:$0xf] %v527_v31  ;;  %v655_v31 = vld [vmem:[%s5078_s7 + $0x6f8] sm:$0xf] }
  0xb3   : > { %530 = vst [vmem:[%s5082_s8 + $0x280] sm:$0xf] %v529_v32  ;;  %v657_v32 = vld [vmem:[%s5078_s7 + $0x700] sm:$0xf] }
  0xb4   : > { %532 = vst [vmem:[%s5082_s8 + $0x284] sm:$0xf] %v531_v33  ;;  %v659_v33 = vld [vmem:[%s5078_s7 + $0x708] sm:$0xf] }
  0xb5   : > { %534 = vst [vmem:[%s5082_s8 + $0x288] sm:$0xf] %v533_v34  ;;  %v661_v34 = vld [vmem:[%s5078_s7 + $0x710] sm:$0xf] }
  0xb6   : > { %536 = vst [vmem:[%s5082_s8 + $0x28c] sm:$0xf] %v535_v35  ;;  %v663_v35 = vld [vmem:[%s5078_s7 + $0x718] sm:$0xf] }
  0xb7   : > { %538 = vst [vmem:[%s5082_s8 + $0x290] sm:$0xf] %v537_v36  ;;  %v665_v36 = vld [vmem:[%s5078_s7 + $0x720] sm:$0xf] }
  0xb8   : > { %540 = vst [vmem:[%s5082_s8 + $0x294] sm:$0xf] %v539_v37  ;;  %v667_v37 = vld [vmem:[%s5078_s7 + $0x728] sm:$0xf] }
  0xb9   : > { %542 = vst [vmem:[%s5082_s8 + $0x298] sm:$0xf] %v541_v38  ;;  %v669_v38 = vld [vmem:[%s5078_s7 + $0x730] sm:$0xf] }
  0xba   : > { %544 = vst [vmem:[%s5082_s8 + $0x29c] sm:$0xf] %v543_v39  ;;  %v671_v39 = vld [vmem:[%s5078_s7 + $0x738] sm:$0xf] }
  0xbb   : > { %546 = vst [vmem:[%s5082_s8 + $0x2a0] sm:$0xf] %v545_v40  ;;  %v673_v40 = vld [vmem:[%s5078_s7 + $0x740] sm:$0xf] }
  0xbc   : > { %548 = vst [vmem:[%s5082_s8 + $0x2a4] sm:$0xf] %v547_v41  ;;  %v675_v41 = vld [vmem:[%s5078_s7 + $0x748] sm:$0xf] }
  0xbd   : > { %550 = vst [vmem:[%s5082_s8 + $0x2a8] sm:$0xf] %v549_v42  ;;  %v677_v42 = vld [vmem:[%s5078_s7 + $0x750] sm:$0xf] }
  0xbe   : > { %552 = vst [vmem:[%s5082_s8 + $0x2ac] sm:$0xf] %v551_v43  ;;  %v679_v43 = vld [vmem:[%s5078_s7 + $0x758] sm:$0xf] }
  0xbf   : > { %554 = vst [vmem:[%s5082_s8 + $0x2b0] sm:$0xf] %v553_v44  ;;  %v681_v44 = vld [vmem:[%s5078_s7 + $0x760] sm:$0xf] }
  0xc0   : > { %556 = vst [vmem:[%s5082_s8 + $0x2b4] sm:$0xf] %v555_v45  ;;  %v683_v45 = vld [vmem:[%s5078_s7 + $0x768] sm:$0xf] }
  0xc1   : > { %558 = vst [vmem:[%s5082_s8 + $0x2b8] sm:$0xf] %v557_v46  ;;  %v685_v46 = vld [vmem:[%s5078_s7 + $0x770] sm:$0xf] }
  0xc2   : > { %560 = vst [vmem:[%s5082_s8 + $0x2bc] sm:$0xf] %v559_v47  ;;  %v687_v47 = vld [vmem:[%s5078_s7 + $0x778] sm:$0xf] }
  0xc3   : > { %562 = vst [vmem:[%s5082_s8 + $0x2c0] sm:$0xf] %v561_v48  ;;  %v689_v48 = vld [vmem:[%s5078_s7 + $0x780] sm:$0xf] }
  0xc4   : > { %564 = vst [vmem:[%s5082_s8 + $0x2c4] sm:$0xf] %v563_v49  ;;  %v691_v49 = vld [vmem:[%s5078_s7 + $0x788] sm:$0xf] }
  0xc5   : > { %566 = vst [vmem:[%s5082_s8 + $0x2c8] sm:$0xf] %v565_v50  ;;  %v693_v50 = vld [vmem:[%s5078_s7 + $0x790] sm:$0xf] }
  0xc6   : > { %568 = vst [vmem:[%s5082_s8 + $0x2cc] sm:$0xf] %v567_v51  ;;  %v695_v51 = vld [vmem:[%s5078_s7 + $0x798] sm:$0xf] }
  0xc7   : > { %570 = vst [vmem:[%s5082_s8 + $0x2d0] sm:$0xf] %v569_v52  ;;  %v697_v52 = vld [vmem:[%s5078_s7 + $0x7a0] sm:$0xf] }
  0xc8   : > { %572 = vst [vmem:[%s5082_s8 + $0x2d4] sm:$0xf] %v571_v53  ;;  %v699_v53 = vld [vmem:[%s5078_s7 + $0x7a8] sm:$0xf] }
  0xc9   : > { %574 = vst [vmem:[%s5082_s8 + $0x2d8] sm:$0xf] %v573_v54  ;;  %v701_v54 = vld [vmem:[%s5078_s7 + $0x7b0] sm:$0xf] }
  0xca   : > { %576 = vst [vmem:[%s5082_s8 + $0x2dc] sm:$0xf] %v575_v55  ;;  %v703_v55 = vld [vmem:[%s5078_s7 + $0x7b8] sm:$0xf] }
  0xcb   : > { %578 = vst [vmem:[%s5082_s8 + $0x2e0] sm:$0xf] %v577_v56  ;;  %v705_v56 = vld [vmem:[%s5078_s7 + $0x7c0] sm:$0xf] }
  0xcc   : > { %580 = vst [vmem:[%s5082_s8 + $0x2e4] sm:$0xf] %v579_v57  ;;  %v707_v57 = vld [vmem:[%s5078_s7 + $0x7c8] sm:$0xf] }
  0xcd   : > { %582 = vst [vmem:[%s5082_s8 + $0x2e8] sm:$0xf] %v581_v58  ;;  %v709_v58 = vld [vmem:[%s5078_s7 + $0x7d0] sm:$0xf] }
  0xce   : > { %584 = vst [vmem:[%s5082_s8 + $0x2ec] sm:$0xf] %v583_v59  ;;  %v711_v59 = vld [vmem:[%s5078_s7 + $0x7d8] sm:$0xf] }
  0xcf   : > { %586 = vst [vmem:[%s5082_s8 + $0x2f0] sm:$0xf] %v585_v60  ;;  %v713_v60 = vld [vmem:[%s5078_s7 + $0x7e0] sm:$0xf] }
  0xd0   : > { %588 = vst [vmem:[%s5082_s8 + $0x2f4] sm:$0xf] %v587_v61  ;;  %v715_v61 = vld [vmem:[%s5078_s7 + $0x7e8] sm:$0xf] }
  0xd1   : > { %590 = vst [vmem:[%s5082_s8 + $0x2f8] sm:$0xf] %v589_v62  ;;  %v717_v62 = vld [vmem:[%s5078_s7 + $0x7f0] sm:$0xf] }
  0xd2   : > { %592 = vst [vmem:[%s5082_s8 + $0x2fc] sm:$0xf] %v591_v63  ;;  %v719_v63 = vld [vmem:[%s5078_s7 + $0x7f8] sm:$0xf] }
  0xd3   : > { %594 = vst [vmem:[%s5082_s8 + $0x300] sm:$0xf] %v593_v0 }
  0xd4   : > { %596 = vst [vmem:[%s5082_s8 + $0x304] sm:$0xf] %v595_v1 }
  0xd5   : > { %598 = vst [vmem:[%s5082_s8 + $0x308] sm:$0xf] %v597_v2 }
  0xd6   : > { %600 = vst [vmem:[%s5082_s8 + $0x30c] sm:$0xf] %v599_v3 }
  0xd7   : > { %602 = vst [vmem:[%s5082_s8 + $0x310] sm:$0xf] %v601_v4 }
  0xd8   : > { %604 = vst [vmem:[%s5082_s8 + $0x314] sm:$0xf] %v603_v5 }
  0xd9   : > { %606 = vst [vmem:[%s5082_s8 + $0x318] sm:$0xf] %v605_v6 }
  0xda   : > { %608 = vst [vmem:[%s5082_s8 + $0x31c] sm:$0xf] %v607_v7 }
  0xdb   : > { %610 = vst [vmem:[%s5082_s8 + $0x320] sm:$0xf] %v609_v8 }
  0xdc   : > { %612 = vst [vmem:[%s5082_s8 + $0x324] sm:$0xf] %v611_v9 }
  0xdd   : > { %614 = vst [vmem:[%s5082_s8 + $0x328] sm:$0xf] %v613_v10 }
  0xde   : > { %616 = vst [vmem:[%s5082_s8 + $0x32c] sm:$0xf] %v615_v11 }
  0xdf   : > { %618 = vst [vmem:[%s5082_s8 + $0x330] sm:$0xf] %v617_v12 }
  0xe0   : > { %620 = vst [vmem:[%s5082_s8 + $0x334] sm:$0xf] %v619_v13 }
  0xe1   : > { %622 = vst [vmem:[%s5082_s8 + $0x338] sm:$0xf] %v621_v14 }
  0xe2   : > { %624 = vst [vmem:[%s5082_s8 + $0x33c] sm:$0xf] %v623_v15 }
  0xe3   : > { %626 = vst [vmem:[%s5082_s8 + $0x340] sm:$0xf] %v625_v16 }
  0xe4   : > { %628 = vst [vmem:[%s5082_s8 + $0x344] sm:$0xf] %v627_v17 }
  0xe5   : > { %630 = vst [vmem:[%s5082_s8 + $0x348] sm:$0xf] %v629_v18 }
  0xe6   : > { %632 = vst [vmem:[%s5082_s8 + $0x34c] sm:$0xf] %v631_v19 }
  0xe7   : > { %634 = vst [vmem:[%s5082_s8 + $0x350] sm:$0xf] %v633_v20 }
  0xe8   : > { %636 = vst [vmem:[%s5082_s8 + $0x354] sm:$0xf] %v635_v21 }
  0xe9   : > { %638 = vst [vmem:[%s5082_s8 + $0x358] sm:$0xf] %v637_v22 }
  0xea   : > { %640 = vst [vmem:[%s5082_s8 + $0x35c] sm:$0xf] %v639_v23 }
  0xeb   : > { %642 = vst [vmem:[%s5082_s8 + $0x360] sm:$0xf] %v641_v24 }
  0xec   : > { %644 = vst [vmem:[%s5082_s8 + $0x364] sm:$0xf] %v643_v25 }
  0xed   : > { %646 = vst [vmem:[%s5082_s8 + $0x368] sm:$0xf] %v645_v26 }
  0xee   : > { %648 = vst [vmem:[%s5082_s8 + $0x36c] sm:$0xf] %v647_v27 }
  0xef   : > { %650 = vst [vmem:[%s5082_s8 + $0x370] sm:$0xf] %v649_v28 }
  0xf0   : > { %652 = vst [vmem:[%s5082_s8 + $0x374] sm:$0xf] %v651_v29 }
  0xf1   : > { %654 = vst [vmem:[%s5082_s8 + $0x378] sm:$0xf] %v653_v30 }
  0xf2   : > { %656 = vst [vmem:[%s5082_s8 + $0x37c] sm:$0xf] %v655_v31 }
  0xf3   : > { %658 = vst [vmem:[%s5082_s8 + $0x380] sm:$0xf] %v657_v32 }
  0xf4   : > { %660 = vst [vmem:[%s5082_s8 + $0x384] sm:$0xf] %v659_v33 }
  0xf5   : > { %662 = vst [vmem:[%s5082_s8 + $0x388] sm:$0xf] %v661_v34 }
  0xf6   : > { %664 = vst [vmem:[%s5082_s8 + $0x38c] sm:$0xf] %v663_v35 }
  0xf7   : > { %666 = vst [vmem:[%s5082_s8 + $0x390] sm:$0xf] %v665_v36 }
  0xf8   : > { %668 = vst [vmem:[%s5082_s8 + $0x394] sm:$0xf] %v667_v37 }
  0xf9   : > { %670 = vst [vmem:[%s5082_s8 + $0x398] sm:$0xf] %v669_v38 }
  0xfa   : > { %672 = vst [vmem:[%s5082_s8 + $0x39c] sm:$0xf] %v671_v39 }
  0xfb   : > { %674 = vst [vmem:[%s5082_s8 + $0x3a0] sm:$0xf] %v673_v40 }
  0xfc   : > { %676 = vst [vmem:[%s5082_s8 + $0x3a4] sm:$0xf] %v675_v41 }
  0xfd   : > { %678 = vst [vmem:[%s5082_s8 + $0x3a8] sm:$0xf] %v677_v42 }
  0xfe   : > { %680 = vst [vmem:[%s5082_s8 + $0x3ac] sm:$0xf] %v679_v43 }
  0xff   : > { %682 = vst [vmem:[%s5082_s8 + $0x3b0] sm:$0xf] %v681_v44 }
 0x100   : > { %684 = vst [vmem:[%s5082_s8 + $0x3b4] sm:$0xf] %v683_v45 }
 0x101   : > { %686 = vst [vmem:[%s5082_s8 + $0x3b8] sm:$0xf] %v685_v46 }
 0x102   : > { %688 = vst [vmem:[%s5082_s8 + $0x3bc] sm:$0xf] %v687_v47 }
 0x103   : > { %690 = vst [vmem:[%s5082_s8 + $0x3c0] sm:$0xf] %v689_v48 }
 0x104   : > { %692 = vst [vmem:[%s5082_s8 + $0x3c4] sm:$0xf] %v691_v49 }
 0x105   : > { %694 = vst [vmem:[%s5082_s8 + $0x3c8] sm:$0xf] %v693_v50 }
 0x106   : > { %696 = vst [vmem:[%s5082_s8 + $0x3cc] sm:$0xf] %v695_v51 }
 0x107   : > { %698 = vst [vmem:[%s5082_s8 + $0x3d0] sm:$0xf] %v697_v52 }
 0x108   : > { %700 = vst [vmem:[%s5082_s8 + $0x3d4] sm:$0xf] %v699_v53 }
 0x109   : > { %702 = vst [vmem:[%s5082_s8 + $0x3d8] sm:$0xf] %v701_v54 }
 0x10a   : > { %704 = vst [vmem:[%s5082_s8 + $0x3dc] sm:$0xf] %v703_v55 }
 0x10b   : > { %706 = vst [vmem:[%s5082_s8 + $0x3e0] sm:$0xf] %v705_v56 }
 0x10c   : > { %708 = vst [vmem:[%s5082_s8 + $0x3e4] sm:$0xf] %v707_v57 }
 0x10d   : > { %710 = vst [vmem:[%s5082_s8 + $0x3e8] sm:$0xf] %v709_v58 }
 0x10e   : > { %712 = vst [vmem:[%s5082_s8 + $0x3ec] sm:$0xf] %v711_v59 }
 0x10f   : > { %714 = vst [vmem:[%s5082_s8 + $0x3f0] sm:$0xf] %v713_v60 }
 0x110   : > { %716 = vst [vmem:[%s5082_s8 + $0x3f4] sm:$0xf] %v715_v61 }
 0x111   : > { %718 = vst [vmem:[%s5082_s8 + $0x3f8] sm:$0xf] %v717_v62 }
 0x112   : > { %720 = vst [vmem:[%s5082_s8 + $0x3fc] sm:$0xf] %v719_v63 }
 0x113 PF: > { %p4136_p7 = scmp.ge.s32.totalorder %s5005_s20, 1  ;;  %p2323_p8 = scmp.lt.s32.totalorder %s5005_s20, 3 }
 0x115   : > { %p2324_p9 = pnand %p4136_p7, %p2323_p8 }
 0x116   : > { %s2330_s9 = sand.u32 (!%p2324_p9), 1, %s4997_s18   ;;  %p2365_p10 = scmp.lt.s32.totalorder (!%p2324_p9), %s5053_s21, 1 }
 0x117   : > { %2327 = sbr.rel (%p2324_p9) target bundleno = 658 (0x292), region = 88  ;;  %s4137_s10 = sshll.u32 (!%p2324_p9), %s2330_s9, 10 }
 0x118   : > { %s5599_s11 = scalar_lea.vmem (!%p2324_p9), [#allocation2], %s4137_s10  ;;  %s4138_s16 = sshll.u32 (!%p2324_p9), %s2330_s9, 4 }
 0x11c   : > { %v4822_v0 = vld [vmem:[%s5599_s11 + $0x38] sm:$0xff]  ;;  %v4821_v4 = vld [vmem:[%s5599_s11 + $0x30] sm:$0xff]  ;;  %v4820_v8 = vld [vmem:[%s5599_s11 + $0x28] sm:$0xff]  ;;  %s5629_s12 = scalar_select %p2365_p10, %s5053_s21, 1 }
 0x11d   : > { %v4830_v1 = vld [vmem:[%s5599_s11 + $0x78] sm:$0xff]  ;;  %3594 = vmatpush.bf16.msra.mxu0 %v4822_v0  ;;  %v4829_v5 = vld [vmem:[%s5599_s11 + $0x70] sm:$0xff]  ;;  %v4828_v9 = vld [vmem:[%s5599_s11 + $0x68] sm:$0xff]  ;;  %s4780_s18 = sshll.u32 (%p5068_p5), %s5053_s21, 2 }
 0x11e   : > { %v4838_v2 = vld [vmem:[%s5599_s11 + $0xb8] sm:$0xff]  ;;  %3613 = vmatpush.bf16.msra.mxu1 %v4830_v1  ;;  %v4837_v6 = vld [vmem:[%s5599_s11 + $0xb0] sm:$0xff]  ;;  %v4836_v10 = vld [vmem:[%s5599_s11 + $0xa8] sm:$0xff]  ;;  %s2367_s23 = scalar_lea.vmem %s5972_s2, %s5629_s12  ;;  %s2370_s7 = scalar_lea.vmem %s5973_s3, %s5629_s12 }
 0x11f   : > { %v4846_v3 = vld [vmem:[%s5599_s11 + $0xf8] sm:$0xff]  ;;  %3632 = vmatpush.bf16.msra.mxu2 %v4838_v2  ;;  %v4845_v7 = vld [vmem:[%s5599_s11 + $0xf0] sm:$0xff]  ;;  %v4844_v11 = vld [vmem:[%s5599_s11 + $0xe8] sm:$0xff]  ;;  %s2373_s13 = scalar_lea.vmem %s5974_s4, %s5629_s12  ;;  %s2364_s12 = scalar_lea.vmem [#allocation3], %s4138_s16 }
 0x120   : > { %3651 = vmatpush.bf16.msra.mxu3 %v4846_v3  ;;  %v4819_v12 = vld [vmem:[%s5599_s11 + $0x20] sm:$0xff]  ;;  %v4818_v16 = vld [vmem:[%s5599_s11 + $0x18] sm:$0xff]  ;;  %v4817_v20 = vld [vmem:[%s5599_s11 + $0x10] sm:$0xff]  ;;  %s3985_s20 = scalar_lea.vmem (%p5068_p5), %s5975_s5, %s4780_s18 }
 0x121   : > { %3595 = vmatpush.bf16.msra.mxu0 %v4821_v4  ;;  %v4827_v13 = vld [vmem:[%s5599_s11 + $0x60] sm:$0xff]  ;;  %v4826_v17 = vld [vmem:[%s5599_s11 + $0x58] sm:$0xff]  ;;  %v4825_v21 = vld [vmem:[%s5599_s11 + $0x50] sm:$0xff] }
 0x122   : > { %3614 = vmatpush.bf16.msra.mxu1 %v4829_v5  ;;  %v4835_v14 = vld [vmem:[%s5599_s11 + $0xa0] sm:$0xff]  ;;  %v4834_v18 = vld [vmem:[%s5599_s11 + $0x98] sm:$0xff]  ;;  %v4833_v22 = vld [vmem:[%s5599_s11 + $0x90] sm:$0xff] }
 0x123   : > { %3633 = vmatpush.bf16.msra.mxu2 %v4837_v6  ;;  %v4843_v15 = vld [vmem:[%s5599_s11 + $0xe0] sm:$0xff]  ;;  %v4842_v19 = vld [vmem:[%s5599_s11 + $0xd8] sm:$0xff]  ;;  %v4841_v23 = vld [vmem:[%s5599_s11 + $0xd0] sm:$0xff] }
 0x124   : > { %3652 = vmatpush.bf16.msra.mxu3 %v4845_v7  ;;  %v4816_v24 = vld [vmem:[%s5599_s11 + $0x8] sm:$0xff]  ;;  %v4815_v28 = vld [vmem:[%s5599_s11] sm:$0xff]  ;;  %v4870_v40 = vld [vmem:[%s5599_s11 + $0x1b8] sm:$0xff] }
 0x125   : > { %3596 = vmatpush.bf16.msra.mxu0 %v4820_v8  ;;  %v4824_v25 = vld [vmem:[%s5599_s11 + $0x48] sm:$0xff]  ;;  %v4823_v29 = vld [vmem:[%s5599_s11 + $0x40] sm:$0xff]  ;;  %v4854_v41 = vld [vmem:[%s5599_s11 + $0x138] sm:$0xff] }
 0x126   : > { %3615 = vmatpush.bf16.msra.mxu1 %v4828_v9  ;;  %v4832_v26 = vld [vmem:[%s5599_s11 + $0x88] sm:$0xff]  ;;  %v4141_v30 = vld [vmem:[%s5970_s0] sm:$0xf]  ;;  %v4783_v34 = vld [vmem:[%s5970_s0 + $0x4] sm:$0xf] }
 0x127   : > { %3634 = vmatpush.bf16.msra.mxu2 %v4836_v10  ;;  %v4840_v27 = vld [vmem:[%s5599_s11 + $0xc8] sm:$0xff]  ;;  %v4791_v31 = vld [vmem:[%s5970_s0 + $0x3c] sm:$0xf0]  ;;  %v4143_v35 = vld [vmem:[%s5970_s0 + $0x40] sm:$0xf0] }
 0x128   : > { %3653 = vmatpush.bf16.msra.mxu3 %v4844_v11  ;;  %v4831_v32 = vld [vmem:[%s5599_s11 + $0x80] sm:$0xff]  ;;  %v4149_v36 = vld [vmem:[%s5970_s0 + $0x8] sm:$0xf]  ;;  %v4784_v38 = vld [vmem:[%s5970_s0 + $0xc] sm:$0xf]  ;;  %v4142_v42 = vor.u32 %v4791_v31, %v4141_v30  ;;  %v4146_v43 = vor.u32 %v4783_v34, %v4143_v35 }
 0x129   : > { %3597 = vmatpush.bf16.msra.mxu0 %v4819_v12  ;;  %v4839_v33 = vld [vmem:[%s5599_s11 + $0xc0] sm:$0xff]  ;;  %v4792_v37 = vld [vmem:[%s5970_s0 + $0x44] sm:$0xf0]  ;;  %v4151_v39 = vld [vmem:[%s5970_s0 + $0x48] sm:$0xf0] }
 0x12a   : > { %3616 = vmatpush.bf16.msra.mxu1 %v4827_v13  ;;  %v4150_v44 = vor.u32 %v4792_v37, %v4149_v36  ;;  %v4154_v45 = vor.u32 %v4784_v38, %v4151_v39  ;;  %v4862_v46 = vld [vmem:[%s5599_s11 + $0x178] sm:$0xff]  ;;  %v4869_v48 = vld [vmem:[%s5599_s11 + $0x1b0] sm:$0xff]  ;;  %v4868_v52 = vld [vmem:[%s5599_s11 + $0x1a8] sm:$0xff] }
 0x12b   : > { %3635 = vmatpush.bf16.msra.mxu2 %v4835_v14  ;;  %v4878_v47 = vld [vmem:[%s5599_s11 + $0x1f8] sm:$0xff]  ;;  %v4853_v49 = vld [vmem:[%s5599_s11 + $0x130] sm:$0xff]  ;;  %v4852_v53 = vld [vmem:[%s5599_s11 + $0x128] sm:$0xff] }
 0x12c   : > { %3654 = vmatpush.bf16.msra.mxu3 %v4843_v15  ;;  %v4861_v50 = vld [vmem:[%s5599_s11 + $0x170] sm:$0xff]  ;;  %v4860_v54 = vld [vmem:[%s5599_s11 + $0x168] sm:$0xff]  ;;  %v4867_v56 = vld [vmem:[%s5599_s11 + $0x1a0] sm:$0xff] }
 0x12d   : > { %3598 = vmatpush.bf16.msra.mxu0 %v4818_v16  ;;  %v4877_v51 = vld [vmem:[%s5599_s11 + $0x1f0] sm:$0xff]  ;;  %v4876_v55 = vld [vmem:[%s5599_s11 + $0x1e8] sm:$0xff]  ;;  %v4851_v57 = vld [vmem:[%s5599_s11 + $0x120] sm:$0xff] }
 0x12e   : > { %3617 = vmatpush.bf16.msra.mxu1 %v4826_v17  ;;  %v4859_v58 = vld [vmem:[%s5599_s11 + $0x160] sm:$0xff]  ;;  %v4213_v0 = vld [vmem:[%s5970_s0 + $0x88] sm:$0xf]  ;;  %v4800_v2 = vld [vmem:[%s5970_s0 + $0x8c] sm:$0xf] }
 0x12f   : > { %3636 = vmatpush.bf16.msra.mxu2 %v4834_v18  ;;  %v4875_v59 = vld [vmem:[%s5599_s11 + $0x1e0] sm:$0xff]  ;;  %v4808_v1 = vld [vmem:[%s5970_s0 + $0xc4] sm:$0xf0]  ;;  %v4215_v3 = vld [vmem:[%s5970_s0 + $0xc8] sm:$0xf0] }
 0x130   : > { %3655 = vmatpush.bf16.msra.mxu3 %v4842_v19  ;;  %v4205_v60 = vld [vmem:[%s5970_s0 + $0x80] sm:$0xf]  ;;  %v4799_v62 = vld [vmem:[%s5970_s0 + $0x84] sm:$0xf]  ;;  %v4866_v4 = vld [vmem:[%s5599_s11 + $0x198] sm:$0xff]  ;;  %v4214_v8 = vor.u32 %v4808_v1, %v4213_v0  ;;  %v4218_v9 = vor.u32 %v4800_v2, %v4215_v3 }
 0x131   : > { %3599 = vmatpush.bf16.msra.mxu0 %v4817_v20  ;;  %v4807_v61 = vld [vmem:[%s5970_s0 + $0xbc] sm:$0xf0]  ;;  %v4207_v63 = vld [vmem:[%s5970_s0 + $0xc0] sm:$0xf0]  ;;  %v4850_v5 = vld [vmem:[%s5599_s11 + $0x118] sm:$0xff] }
 0x132   : > { %3618 = vmatpush.bf16.msra.mxu1 %v4825_v21  ;;  %v4206_v6 = vor.u32 %v4807_v61, %v4205_v60  ;;  %v4210_v7 = vor.u32 %v4799_v62, %v4207_v63  ;;  %v4858_v10 = vld [vmem:[%s5599_s11 + $0x158] sm:$0xff]  ;;  %v4865_v12 = vld [vmem:[%s5599_s11 + $0x190] sm:$0xff]  ;;  %v4864_v16 = vld [vmem:[%s5599_s11 + $0x188] sm:$0xff] }
 0x133   : > { %3637 = vmatpush.bf16.msra.mxu2 %v4833_v22  ;;  %v4874_v11 = vld [vmem:[%s5599_s11 + $0x1d8] sm:$0xff]  ;;  %v4849_v13 = vld [vmem:[%s5599_s11 + $0x110] sm:$0xff]  ;;  %v4848_v17 = vld [vmem:[%s5599_s11 + $0x108] sm:$0xff] }
 0x134   : > { %3656 = vmatpush.bf16.msra.mxu3 %v4841_v23  ;;  %v4857_v14 = vld [vmem:[%s5599_s11 + $0x150] sm:$0xff]  ;;  %v4856_v18 = vld [vmem:[%s5599_s11 + $0x148] sm:$0xff]  ;;  %v4863_v20 = vld [vmem:[%s5599_s11 + $0x180] sm:$0xff] }
 0x135   : > { %3600 = vmatpush.bf16.msra.mxu0 %v4816_v24  ;;  %v4873_v15 = vld [vmem:[%s5599_s11 + $0x1d0] sm:$0xff]  ;;  %v4872_v19 = vld [vmem:[%s5599_s11 + $0x1c8] sm:$0xff]  ;;  %v4847_v21 = vld [vmem:[%s5599_s11 + $0x100] sm:$0xff] }
 0x136   : > { %3619 = vmatpush.bf16.msra.mxu1 %v4824_v25  ;;  %v4855_v22 = vld [vmem:[%s5599_s11 + $0x140] sm:$0xff]  ;;  %v4157_v24 = vld [vmem:[%s5970_s0 + $0x10] sm:$0xf]  ;;  %v4902_v25 = vld [vmem:[%s5599_s11 + $0x2b8] sm:$0xff] }
 0x137   : > { %3638 = vmatpush.bf16.msra.mxu2 %v4832_v26  ;;  %v4871_v23 = vld [vmem:[%s5599_s11 + $0x1c0] sm:$0xff]  ;;  %v4886_v26 = vld [vmem:[%s5599_s11 + $0x238] sm:$0xff]  ;;  %v4901_v37 = vld [vmem:[%s5599_s11 + $0x2b0] sm:$0xff] }
 0x138   : > { %3657 = vmatpush.bf16.msra.mxu3 %v4840_v27  ;;  %v4793_v27 = vld [vmem:[%s5970_s0 + $0x4c] sm:$0xf0]  ;;  %v4165_v30 = vld [vmem:[%s5970_s0 + $0x18] sm:$0xf]  ;;  %v4231_v61 = vld [vmem:[%s5970_s0 + $0xd8] sm:$0xf0] }
 0x139   : > { %3601 = vmatpush.bf16.msra.mxu0 %v4815_v28  ;;  %v4785_v28 = vld [vmem:[%s5970_s0 + $0x14] sm:$0xf]  ;;  %v4794_v31 = vld [vmem:[%s5970_s0 + $0x54] sm:$0xf0]  ;;  %v4158_v36 = vor.u32 %v4793_v27, %v4157_v24  ;;  %v4175_v24 = vld [vmem:[%s5970_s0 + $0x60] sm:$0xf0] }
 0x13a   : > { %3620 = vmatpush.bf16.msra.mxu1 %v4823_v29  ;;  %v4159_v29 = vld [vmem:[%s5970_s0 + $0x50] sm:$0xf0]  ;;  %v4894_v34 = vld [vmem:[%s5599_s11 + $0x278] sm:$0xff]  ;;  %v4166_v39 = vor.u32 %v4794_v31, %v4165_v30  ;;  %v4788_v27 = vld [vmem:[%s5970_s0 + $0x2c] sm:$0xf] }
 0x13b   : > { %3639 = vmatpush.bf16.msra.mxu2 %v4831_v32  ;;  %v4786_v32 = vld [vmem:[%s5970_s0 + $0x1c] sm:$0xf]  ;;  %v4162_v38 = vor.u32 %v4785_v28, %v4159_v29  ;;  %v4897_v1 = vld [vmem:[%s5599_s11 + $0x290] sm:$0xff]  ;;  %v4183_v28 = vld [vmem:[%s5970_s0 + $0x68] sm:$0xf0] }
 0x13c   : > { %3658 = vmatpush.bf16.msra.mxu3 %v4839_v33  ;;  %3602 = vmatmul.bf16.vlgmr.msra.gmra.mxu0 %v4142_v42  ;;  %v4167_v33 = vld [vmem:[%s5970_s0 + $0x58] sm:$0xf0]  ;;  %v4893_v42 = vld [vmem:[%s5599_s11 + $0x270] sm:$0xff] }
 0x13d   : > { %3670 = vmatpush.bf16.msrb.mxu0 %v4854_v41  ;;  %3621 = vmatmul.bf16.vlgmr.msra.gmra.mxu1 %v4146_v43  ;;  %v4910_v35 = vld [vmem:[%s5599_s11 + $0x2f8] sm:$0xff]  ;;  %v4885_v41 = vld [vmem:[%s5599_s11 + $0x230] sm:$0xff] }
 0x13e   : > { %3640 = vmatmul.bf16.vlgmr.msra.gmra.mxu2 %v4150_v44  ;;  %3689 = vmatpush.bf16.msrb.mxu1 %v4862_v46  ;;  %v4909_v43 = vld [vmem:[%s5599_s11 + $0x2f0] sm:$0xff]  ;;  %v4900_v44 = vld [vmem:[%s5599_s11 + $0x2a8] sm:$0xff]  ;;  %v4882_v60 = vld [vmem:[%s5599_s11 + $0x218] sm:$0xff] }
 0x13f   : > { %3708 = vmatpush.bf16.msrb.mxu2 %v4870_v40  ;;  %3659 = vmatmul.bf16.vlgmr.msra.gmra.mxu3 %v4154_v45  ;;  %v4170_v40 = vor.u32 %v4786_v32, %v4167_v33  ;;  %v4884_v45 = vld [vmem:[%s5599_s11 + $0x228] sm:$0xff]  ;;  %v4890_v62 = vld [vmem:[%s5599_s11 + $0x258] sm:$0xff]  ;;  %v4925_v30 = vld [vmem:[%s5599_s11 + $0x370] sm:$0xff]  ;;  %v4186_v33 = vor.u32 %v4788_v27, %v4183_v28 }
 0x140   : > { %3727 = vmatpush.bf16.msrb.mxu3 %v4878_v47  ;;  %v4892_v46 = vld [vmem:[%s5599_s11 + $0x268] sm:$0xff]  ;;  %v4906_v63 = vld [vmem:[%s5599_s11 + $0x2d8] sm:$0xff] }
 0x141   : > { %3671 = vmatpush.bf16.msrb.mxu0 %v4853_v49  ;;  %v4908_v47 = vld [vmem:[%s5599_s11 + $0x2e8] sm:$0xff]  ;;  %v4883_v49 = vld [vmem:[%s5599_s11 + $0x220] sm:$0xff]  ;;  %v4263_v27 = vld [vmem:[%s5970_s0 + $0xf8] sm:$0xf0] }
 0x142   : > { %3690 = vmatpush.bf16.msrb.mxu1 %v4861_v50  ;;  %v4891_v50 = vld [vmem:[%s5599_s11 + $0x260] sm:$0xff] }
 0x143   : > { %3709 = vmatpush.bf16.msrb.mxu2 %v4869_v48  ;;  %v4899_v48 = vld [vmem:[%s5599_s11 + $0x2a0] sm:$0xff] }
 0x144   : > { %3728 = vmatpush.bf16.msrb.mxu3 %v4877_v51  ;;  %v4907_v51 = vld [vmem:[%s5599_s11 + $0x2e0] sm:$0xff] }
 0x145   : > { %3672 = vmatpush.bf16.msrb.mxu0 %v4852_v53  ;;  %v4809_v53 = vld [vmem:[%s5970_s0 + $0xcc] sm:$0xf0] }
 0x146   : > { %3691 = vmatpush.bf16.msrb.mxu1 %v4860_v54  ;;  %v4898_v54 = vld [vmem:[%s5599_s11 + $0x298] sm:$0xff] }
 0x147   : > { %3710 = vmatpush.bf16.msrb.mxu2 %v4868_v52  ;;  %v4221_v52 = vld [vmem:[%s5970_s0 + $0x90] sm:$0xf] }
 0x148   : > { %3729 = vmatpush.bf16.msrb.mxu3 %v4876_v55  ;;  %v4801_v55 = vld [vmem:[%s5970_s0 + $0x94] sm:$0xf]  ;;  %v4222_v0 = vor.u32 %v4809_v53, %v4221_v52  ;;  %v4804_v52 = vld [vmem:[%s5970_s0 + $0xac] sm:$0xf]  ;;  %v4914_v53 = vld [vmem:[%s5599_s11 + $0x318] sm:$0xff] }
 0x149   : > { %3673 = vmatpush.bf16.msrb.mxu0 %v4851_v57  ;;  %v4229_v57 = vld [vmem:[%s5970_s0 + $0x98] sm:$0xf] }
 0x14a   : > { %3692 = vmatpush.bf16.msrb.mxu1 %v4859_v58  ;;  %v4810_v58 = vld [vmem:[%s5970_s0 + $0xd4] sm:$0xf0] }
 0x14b   : > { %3711 = vmatpush.bf16.msrb.mxu2 %v4867_v56  ;;  %v4223_v56 = vld [vmem:[%s5970_s0 + $0xd0] sm:$0xf0]  ;;  %v4230_v3 = vor.u32 %v4810_v58, %v4229_v57 }
 0x14c   : > { %3730 = vmatpush.bf16.msrb.mxu3 %v4875_v59  ;;  %3607 = vmatmul.bf16.gmra.mxu0 %v4206_v6  ;;  %v4802_v59 = vld [vmem:[%s5970_s0 + $0x9c] sm:$0xf]  ;;  %v4226_v2 = vor.u32 %v4801_v55, %v4223_v56  ;;  %v4889_v6 = vld [vmem:[%s5599_s11 + $0x250] sm:$0xff] }
 0x14d   : > { %3674 = vmatpush.bf16.msrb.mxu0 %v4850_v5  ;;  %3626 = vmatmul.bf16.gmra.mxu1 %v4210_v7  ;;  %v4881_v5 = vld [vmem:[%s5599_s11 + $0x210] sm:$0xff]  ;;  %v4938_v55 = vld [vmem:[%s5599_s11 + $0x3d8] sm:$0xff] }
 0x14e   : > { %3645 = vmatmul.bf16.gmra.mxu2 %v4214_v8  ;;  %3693 = vmatpush.bf16.msrb.mxu1 %v4858_v10  ;;  %v4905_v7 = vld [vmem:[%s5599_s11 + $0x2d0] sm:$0xff]  ;;  %v4896_v8 = vld [vmem:[%s5599_s11 + $0x288] sm:$0xff] }
 0x14f   : > { %3712 = vmatpush.bf16.msrb.mxu2 %v4866_v4  ;;  %3664 = vmatmul.bf16.gmra.mxu3 %v4218_v9  ;;  %v4234_v4 = vor.u32 %v4802_v59, %v4231_v61  ;;  %v4880_v9 = vld [vmem:[%s5599_s11 + $0x208] sm:$0xff]  ;;  %v4929_v56 = vld [vmem:[%s5599_s11 + $0x390] sm:$0xff] }
 0x150   : > { %3731 = vmatpush.bf16.msrb.mxu3 %v4874_v11  ;;  %v4888_v10 = vld [vmem:[%s5599_s11 + $0x248] sm:$0xff]  ;;  %v4921_v58 = vld [vmem:[%s5599_s11 + $0x350] sm:$0xff] }
 0x151   : > { %3675 = vmatpush.bf16.msrb.mxu0 %v4849_v13  ;;  %v4904_v11 = vld [vmem:[%s5599_s11 + $0x2c8] sm:$0xff]  ;;  %v4934_v13 = vld [vmem:[%s5599_s11 + $0x3b8] sm:$0xff] }
 0x152   : > { %3694 = vmatpush.bf16.msrb.mxu1 %v4857_v14  ;;  %v4879_v14 = vld [vmem:[%s5599_s11 + $0x200] sm:$0xff] }
 0x153   : > { %3713 = vmatpush.bf16.msrb.mxu2 %v4865_v12  ;;  %v4895_v12 = vld [vmem:[%s5599_s11 + $0x280] sm:$0xff] }
 0x154   : > { %3732 = vmatpush.bf16.msrb.mxu3 %v4873_v15  ;;  %v4887_v15 = vld [vmem:[%s5599_s11 + $0x240] sm:$0xff] }
 0x155   : > { %3676 = vmatpush.bf16.msrb.mxu0 %v4848_v17  ;;  %v4173_v17 = vld [vmem:[%s5970_s0 + $0x20] sm:$0xf] }
 0x156   : > { %3695 = vmatpush.bf16.msrb.mxu1 %v4856_v18  ;;  %v4795_v18 = vld [vmem:[%s5970_s0 + $0x5c] sm:$0xf0] }
 0x157   : > { %3714 = vmatpush.bf16.msrb.mxu2 %v4864_v16  ;;  %v4903_v16 = vld [vmem:[%s5599_s11 + $0x2c0] sm:$0xff]  ;;  %v4174_v29 = vor.u32 %v4795_v18, %v4173_v17 }
 0x158   : > { %3733 = vmatpush.bf16.msrb.mxu3 %v4872_v19  ;;  %v4918_v19 = vld [vmem:[%s5599_s11 + $0x338] sm:$0xff] }
 0x159   : > { %3677 = vmatpush.bf16.msrb.mxu0 %v4847_v21  ;;  %v4787_v21 = vld [vmem:[%s5970_s0 + $0x24] sm:$0xf] }
 0x15a   : > { %3696 = vmatpush.bf16.msrb.mxu1 %v4855_v22  ;;  %v4942_v22 = vld [vmem:[%s5599_s11 + $0x3f8] sm:$0xff]  ;;  %v4178_v31 = vor.u32 %v4787_v21, %v4175_v24  ;;  %v4813_v21 = vld [vmem:[%s5970_s0 + $0xec] sm:$0xf0] }
 0x15b   : > { %3715 = vmatpush.bf16.msrb.mxu2 %v4863_v20  ;;  %v4926_v20 = vld [vmem:[%s5599_s11 + $0x378] sm:$0xff] }
 0x15c   : > { %3734 = vmatpush.bf16.msrb.mxu3 %v4871_v23  ;;  %3678 = vmatmul.bf16.vlgmr.msrb.gmra.mxu0 %v4158_v36  ;;  %v4933_v23 = vld [vmem:[%s5599_s11 + $0x3b0] sm:$0xff]  ;;  %v4932_v36 = vld [vmem:[%s5599_s11 + $0x3a8] sm:$0xff]  ;;  %v4261_v24 = vld [vmem:[%s5970_s0 + $0xb8] sm:$0xf] }
 0x15d   : > { %3746 = vmatpush.bf16.msra.mxu0 %v4886_v26  ;;  %3697 = vmatmul.bf16.vlgmr.msrb.gmra.mxu1 %v4162_v38  ;;  %v4796_v26 = vld [vmem:[%s5970_s0 + $0x64] sm:$0xf0] }
 0x15e   : > { %3765 = vmatpush.bf16.msra.mxu1 %v4894_v34  ;;  %3716 = vmatmul.bf16.vlgmr.msrb.gmra.mxu2 %v4166_v39  ;;  %v4917_v34 = vld [vmem:[%s5599_s11 + $0x330] sm:$0xff]  ;;  %v4916_v38 = vld [vmem:[%s5599_s11 + $0x328] sm:$0xff] }
 0x15f   : > { %3784 = vmatpush.bf16.msra.mxu2 %v4902_v25  ;;  %3735 = vmatmul.bf16.vlgmr.msrb.gmra.mxu3 %v4170_v40  ;;  %v4181_v25 = vld [vmem:[%s5970_s0 + $0x28] sm:$0xf]  ;;  %v4931_v40 = vld [vmem:[%s5599_s11 + $0x3a0] sm:$0xff] }
 0x160   : > { %3803 = vmatpush.bf16.msra.mxu3 %v4910_v35  ;;  %v4182_v32 = vor.u32 %v4796_v26, %v4181_v25  ;;  %v4941_v35 = vld [vmem:[%s5599_s11 + $0x3f0] sm:$0xff]  ;;  %v4940_v39 = vld [vmem:[%s5599_s11 + $0x3e8] sm:$0xff]  ;;  %v4814_v25 = vld [vmem:[%s5970_s0 + $0xf4] sm:$0xf0] }
 0x161   : > { %3747 = vmatpush.bf16.msra.mxu0 %v4885_v41  ;;  %v4923_v41 = vld [vmem:[%s5599_s11 + $0x360] sm:$0xff]  ;;  %v4806_v26 = vld [vmem:[%s5970_s0 + $0xbc] sm:$0xf] }
 0x162   : > { %3766 = vmatpush.bf16.msra.mxu1 %v4893_v42  ;;  %v4915_v42 = vld [vmem:[%s5599_s11 + $0x320] sm:$0xff] }
 0x163   : > { %3785 = vmatpush.bf16.msra.mxu2 %v4901_v37  ;;  %v4924_v37 = vld [vmem:[%s5599_s11 + $0x368] sm:$0xff] }
 0x164   : > { %3804 = vmatpush.bf16.msra.mxu3 %v4909_v43  ;;  %v4939_v43 = vld [vmem:[%s5599_s11 + $0x3e0] sm:$0xff] }
 0x165   : > { %3748 = vmatpush.bf16.msra.mxu0 %v4884_v45  ;;  %v4237_v45 = vld [vmem:[%s5970_s0 + $0xa0] sm:$0xf] }
 0x166   : > { %3767 = vmatpush.bf16.msra.mxu1 %v4892_v46  ;;  %v4811_v46 = vld [vmem:[%s5970_s0 + $0xdc] sm:$0xf0] }
 0x167   : > { %3786 = vmatpush.bf16.msra.mxu2 %v4900_v44  ;;  %v4930_v44 = vld [vmem:[%s5599_s11 + $0x398] sm:$0xff]  ;;  %v4238_v57 = vor.u32 %v4811_v46, %v4237_v45 }
 0x168   : > { %3805 = vmatpush.bf16.msra.mxu3 %v4908_v47  ;;  %v4922_v47 = vld [vmem:[%s5599_s11 + $0x358] sm:$0xff] }
 0x169   : > { %3749 = vmatpush.bf16.msra.mxu0 %v4883_v49  ;;  %v4239_v49 = vld [vmem:[%s5970_s0 + $0xe0] sm:$0xf0] }
 0x16a   : > { %3768 = vmatpush.bf16.msra.mxu1 %v4891_v50  ;;  %v4245_v50 = vld [vmem:[%s5970_s0 + $0xa8] sm:$0xf] }
 0x16b   : > { %3787 = vmatpush.bf16.msra.mxu2 %v4899_v48  ;;  %v4803_v48 = vld [vmem:[%s5970_s0 + $0xa4] sm:$0xf] }
 0x16c   : > { %3806 = vmatpush.bf16.msra.mxu3 %v4907_v51  ;;  %3683 = vmatmul.bf16.gmra.mxu0 %v4222_v0  ;;  %v4812_v51 = vld [vmem:[%s5970_s0 + $0xe4] sm:$0xf0]  ;;  %v4242_v59 = vor.u32 %v4803_v48, %v4239_v49 }
 0x16d   : > { %3750 = vmatpush.bf16.msra.mxu0 %v4882_v60  ;;  %3702 = vmatmul.bf16.gmra.mxu1 %v4226_v2  ;;  %v4246_v60 = vor.u32 %v4812_v51, %v4245_v50  ;;  %v4928_v0 = vld [vmem:[%s5599_s11 + $0x388] sm:$0xff] }
 0x16e   : > { %3769 = vmatpush.bf16.msra.mxu1 %v4890_v62  ;;  %3721 = vmatmul.bf16.gmra.mxu2 %v4230_v3  ;;  %v4913_v62 = vld [vmem:[%s5599_s11 + $0x310] sm:$0xff]  ;;  %v4912_v2 = vld [vmem:[%s5599_s11 + $0x308] sm:$0xff] }
 0x16f   : > { %3788 = vmatpush.bf16.msra.mxu2 %v4898_v54  ;;  %3740 = vmatmul.bf16.gmra.mxu3 %v4234_v4  ;;  %v4247_v54 = vld [vmem:[%s5970_s0 + $0xe8] sm:$0xf0]  ;;  %v4927_v4 = vld [vmem:[%s5599_s11 + $0x380] sm:$0xff] }
 0x170   : > { %3807 = vmatpush.bf16.msra.mxu3 %v4906_v63  ;;  %v4250_v61 = vor.u32 %v4804_v52, %v4247_v54  ;;  %v4937_v63 = vld [vmem:[%s5599_s11 + $0x3d0] sm:$0xff]  ;;  %v4936_v3 = vld [vmem:[%s5599_s11 + $0x3c8] sm:$0xff] }
 0x171   : > { %3751 = vmatpush.bf16.msra.mxu0 %v4881_v5  ;;  %v4919_v5 = vld [vmem:[%s5599_s11 + $0x340] sm:$0xff] }
 0x172   : > { %3770 = vmatpush.bf16.msra.mxu1 %v4889_v6  ;;  %v4911_v6 = vld [vmem:[%s5599_s11 + $0x300] sm:$0xff] }
 0x173   : > { %3789 = vmatpush.bf16.msra.mxu2 %v4897_v1  ;;  %v4920_v1 = vld [vmem:[%s5599_s11 + $0x348] sm:$0xff] }
 0x174   : > { %3808 = vmatpush.bf16.msra.mxu3 %v4905_v7  ;;  %v4935_v7 = vld [vmem:[%s5599_s11 + $0x3c0] sm:$0xff] }
 0x175   : > { %3752 = vmatpush.bf16.msra.mxu0 %v4880_v9  ;;  %v4797_v9 = vld [vmem:[%s5970_s0 + $0x6c] sm:$0xf0] }
 0x176   : > { %3771 = vmatpush.bf16.msra.mxu1 %v4888_v10  ;;  %v4789_v10 = vld [vmem:[%s5970_s0 + $0x34] sm:$0xf] }
 0x177   : > { %3790 = vmatpush.bf16.msra.mxu2 %v4896_v8  ;;  %v4189_v8 = vld [vmem:[%s5970_s0 + $0x30] sm:$0xf] }
 0x178   : > { %3809 = vmatpush.bf16.msra.mxu3 %v4904_v11  ;;  %v4191_v11 = vld [vmem:[%s5970_s0 + $0x70] sm:$0xf0] }
 0x179   : > { %3753 = vmatpush.bf16.msra.mxu0 %v4879_v14  ;;  %v4790_v14 = vld [vmem:[%s5970_s0 + $0x3c] sm:$0xf]  ;;  %v4194_v17 = vor.u32 %v4789_v10, %v4191_v11 }
 0x17a   : > { %3772 = vmatpush.bf16.msra.mxu1 %v4887_v15  ;;  %v4199_v15 = vld [vmem:[%s5970_s0 + $0x78] sm:$0xf0] }
 0x17b   : > { %3791 = vmatpush.bf16.msra.mxu2 %v4895_v12  ;;  %v4197_v12 = vld [vmem:[%s5970_s0 + $0x38] sm:$0xf] }
 0x17c   : > { %3810 = vmatpush.bf16.msra.mxu3 %v4903_v16  ;;  %3754 = vmatmul.bf16.vlgmr.msra.gmra.mxu0 %v4174_v29  ;;  %v4190_v16 = vor.u32 %v4797_v9, %v4189_v8 }
 0x17d   : > { %3822 = vmatpush.bf16.msrb.mxu0 %v4918_v19  ;;  %3773 = vmatmul.bf16.vlgmr.msra.gmra.mxu1 %v4178_v31  ;;  %v4202_v19 = vor.u32 %v4790_v14, %v4199_v15  ;;  %v4266_v31 = vor.u32 %v4806_v26, %v4263_v27 }
 0x17e   : > { %3841 = vmatpush.bf16.msrb.mxu1 %v4926_v20  ;;  %3792 = vmatmul.bf16.vlgmr.msra.gmra.mxu2 %v4182_v32  ;;  %v4253_v20 = vld [vmem:[%s5970_s0 + $0xb0] sm:$0xf]  ;;  %v4978_v32 = vld [vmem:[%s2367_s23] ss:$0 sm:$0xff] }
 0x17f   : > { %3860 = vmatpush.bf16.msrb.mxu2 %v4934_v13  ;;  %3811 = vmatmul.bf16.vlgmr.msra.gmra.mxu3 %v4186_v33  ;;  %v4798_v13 = vld [vmem:[%s5970_s0 + $0x74] sm:$0xf0]  ;;  %v4254_v28 = vor.u32 %v4813_v21, %v4253_v20 }
 0x180   : > { %3879 = vmatpush.bf16.msrb.mxu3 %v4942_v22  ;;  %v4198_v18 = vor.u32 %v4798_v13, %v4197_v12  ;;  %v4805_v22 = vld [vmem:[%s5970_s0 + $0xb4] sm:$0xf] }
 0x181   : > { %3823 = vmatpush.bf16.msrb.mxu0 %v4917_v34 }
 0x182   : > { %3842 = vmatpush.bf16.msrb.mxu1 %v4925_v30  ;;  %v4262_v30 = vor.u32 %v4814_v25, %v4261_v24 }
 0x183   : > { %3861 = vmatpush.bf16.msrb.mxu2 %v4933_v23  ;;  %v4255_v23 = vld [vmem:[%s5970_s0 + $0xf0] sm:$0xf0] }
 0x184   : > { %3880 = vmatpush.bf16.msrb.mxu3 %v4941_v35  ;;  %v4258_v29 = vor.u32 %v4805_v22, %v4255_v23 }
 0x185   : > { %3824 = vmatpush.bf16.msrb.mxu0 %v4916_v38 }
 0x186   : > { %3843 = vmatpush.bf16.msrb.mxu1 %v4924_v37 }
 0x187   : > { %3862 = vmatpush.bf16.msrb.mxu2 %v4932_v36 }
 0x188   : > { %3881 = vmatpush.bf16.msrb.mxu3 %v4940_v39 }
 0x189   : > { %3825 = vmatpush.bf16.msrb.mxu0 %v4915_v42 }
 0x18a   : > { %3844 = vmatpush.bf16.msrb.mxu1 %v4923_v41 }
 0x18b   : > { %3863 = vmatpush.bf16.msrb.mxu2 %v4931_v40 }
 0x18c   : > { %3882 = vmatpush.bf16.msrb.mxu3 %v4939_v43  ;;  %3759 = vmatmul.bf16.gmra.mxu0 %v4238_v57 }
 0x18d   : > { %3826 = vmatpush.bf16.msrb.mxu0 %v4914_v53  ;;  %3778 = vmatmul.bf16.gmra.mxu1 %v4242_v59 }
 0x18e   : > { %3845 = vmatpush.bf16.msrb.mxu1 %v4922_v47  ;;  %3797 = vmatmul.bf16.gmra.mxu2 %v4246_v60 }
 0x18f   : > { %3864 = vmatpush.bf16.msrb.mxu2 %v4930_v44  ;;  %3816 = vmatmul.bf16.gmra.mxu3 %v4250_v61 }
 0x190   : > { %3883 = vmatpush.bf16.msrb.mxu3 %v4938_v55 }
 0x191   : > { %3827 = vmatpush.bf16.msrb.mxu0 %v4913_v62 }
 0x192   : > { %3846 = vmatpush.bf16.msrb.mxu1 %v4921_v58 }
 0x193   : > { %3865 = vmatpush.bf16.msrb.mxu2 %v4929_v56 }
 0x194   : > { %3884 = vmatpush.bf16.msrb.mxu3 %v4937_v63 }
 0x195   : > { %3828 = vmatpush.bf16.msrb.mxu0 %v4912_v2 }
 0x196   : > { %3847 = vmatpush.bf16.msrb.mxu1 %v4920_v1 }
 0x197   : > { %3866 = vmatpush.bf16.msrb.mxu2 %v4928_v0 }
 0x198   : > { %3885 = vmatpush.bf16.msrb.mxu3 %v4936_v3 }
 0x199   : > { %3829 = vmatpush.bf16.msrb.mxu0 %v4911_v6 }
 0x19a   : > { %3848 = vmatpush.bf16.msrb.mxu1 %v4919_v5 }
 0x19b   : > { %3867 = vmatpush.bf16.msrb.mxu2 %v4927_v4 }
 0x19c   : > { %3886 = vmatpush.bf16.msrb.mxu3 %v4935_v7  ;;  %3830 = vmatmul.bf16.vlgmr.msrb.gmra.mxu0 %v4190_v16 }
 0x19d   : > { %3849 = vmatmul.bf16.vlgmr.msrb.gmra.mxu1 %v4194_v17 }
 0x19e   : > { %3868 = vmatmul.bf16.vlgmr.msrb.gmra.mxu2 %v4198_v18 }
 0x19f   : > { %3887 = vmatmul.bf16.vlgmr.msrb.gmra.mxu3 %v4202_v19 }
 0x1ac   : > { %3835 = vmatmul.bf16.gmra.mxu0 %v4254_v28 }
 0x1ad   : > { %3854 = vmatmul.bf16.gmra.mxu1 %v4258_v29 }
 0x1ae   : > { %3873 = vmatmul.bf16.gmra.mxu2 %v4262_v30 }
 0x1af   : > { %3892 = vmatmul.bf16.gmra.mxu3 %v4266_v31 }
 0x1b9   : > { %v3603_v33 = vpop.f32.mrf.mxu0 }
 0x1ba   : > { %v3622_v34 = vpop.f32.mrf.mxu1  ;;  %v3604_v35 = vadd.f32 %v4978_v32, %v3603_v33 }
 0x1bc   : > { %v3623_v36 = vadd.f32 %v3622_v34, %v3604_v35 }
 0x1c1   : > { %v3641_v37 = vpop.f32.mrf.mxu2  ;;  %v3605_v40 = vpop.f32.mrf.mxu0 }
 0x1c2   : > { %v3660_v38 = vpop.f32.mrf.mxu3  ;;  %v3642_v39 = vadd.f32 %v3641_v37, %v3623_v36  ;;  %v3624_v41 = vpop.f32.mrf.mxu1  ;;  %v3606_v42 = vadd.f32 %v4978_v32, %v3605_v40 }
 0x1c4   : > { %v3661_v43 = vadd.f32 %v3660_v38, %v3642_v39  ;;  %v3625_v44 = vadd.f32 %v3624_v41, %v3606_v42 }
 0x1c9   : > { %v3643_v45 = vpop.f32.mrf.mxu2  ;;  %v3608_v48 = vpop.f32.mrf.mxu0 }
 0x1ca   : > { %v3662_v46 = vpop.f32.mrf.mxu3  ;;  %v3644_v47 = vadd.f32 %v3643_v45, %v3625_v44  ;;  %v3627_v49 = vpop.f32.mrf.mxu1  ;;  %v3609_v50 = vadd.f32 %v4978_v32, %v3608_v48 }
 0x1cc   : > { %v3663_v51 = vadd.f32 %v3662_v46, %v3644_v47  ;;  %v3628_v52 = vadd.f32 %v3627_v49, %v3609_v50 }
 0x1d1   : > { %v3646_v53 = vpop.f32.mrf.mxu2  ;;  %v3610_v56 = vpop.f32.mrf.mxu0 }
 0x1d2   : > { %v3665_v54 = vpop.f32.mrf.mxu3  ;;  %v3647_v55 = vadd.f32 %v3646_v53, %v3628_v52  ;;  %v3629_v57 = vpop.f32.mrf.mxu1  ;;  %v3611_v58 = vadd.f32 %v4978_v32, %v3610_v56 }
 0x1d4   : > { %v3666_v59 = vadd.f32 %v3665_v54, %v3647_v55  ;;  %v3630_v60 = vadd.f32 %v3629_v57, %v3611_v58 }
 0x1d9   : > { %v3648_v61 = vpop.f32.mrf.mxu2  ;;  %v3679_v0 = vpop.f32.mrf.mxu0 }
 0x1da   : > { %v3667_v62 = vpop.f32.mrf.mxu3  ;;  %v3649_v63 = vadd.f32 %v3648_v61, %v3630_v60  ;;  %v3680_v1 = vadd.f32 %v3679_v0, %v3661_v43  ;;  %v3698_v2 = vpop.f32.mrf.mxu1 }
 0x1dc   : > { %v3668_v3 = vadd.f32 %v3667_v62, %v3649_v63  ;;  %v3699_v4 = vadd.f32 %v3698_v2, %v3680_v1 }
 0x1e1   : > { %v3717_v5 = vpop.f32.mrf.mxu2  ;;  %v3681_v8 = vpop.f32.mrf.mxu0 }
 0x1e2   : > { %v3718_v6 = vadd.f32 %v3717_v5, %v3699_v4  ;;  %v3736_v7 = vpop.f32.mrf.mxu3  ;;  %v3700_v9 = vpop.f32.mrf.mxu1  ;;  %v3682_v31 = vadd.f32 %v3681_v8, %v3663_v51 }
 0x1e4   : > { %v3737_v10 = vadd.f32 %v3736_v7, %v3718_v6  ;;  %v3701_v32 = vadd.f32 %v3700_v9, %v3682_v31 }
 0x1e9   : > { %v3719_v11 = vpop.f32.mrf.mxu2  ;;  %v3684_v13 = vpop.f32.mrf.mxu0 }
 0x1ea   : > { %v3738_v12 = vpop.f32.mrf.mxu3  ;;  %v3703_v14 = vpop.f32.mrf.mxu1  ;;  %v3720_v34 = vadd.f32 %v3719_v11, %v3701_v32  ;;  %v3685_v38 = vadd.f32 %v3684_v13, %v3666_v59 }
 0x1ec   : > { %v3739_v39 = vadd.f32 %v3738_v12, %v3720_v34  ;;  %v3704_v41 = vadd.f32 %v3703_v14, %v3685_v38 }
 0x1f1   : > { %v3722_v15 = vpop.f32.mrf.mxu2  ;;  %v3686_v17 = vpop.f32.mrf.mxu0 }
 0x1f2   : > { %v3741_v16 = vpop.f32.mrf.mxu3  ;;  %v3705_v18 = vpop.f32.mrf.mxu1  ;;  %v3723_v44 = vadd.f32 %v3722_v15, %v3704_v41  ;;  %v3687_v49 = vadd.f32 %v3686_v17, %v3668_v3 }
 0x1f4   : > { %v3742_v52 = vadd.f32 %v3741_v16, %v3723_v44  ;;  %v3706_v54 = vadd.f32 %v3705_v18, %v3687_v49 }
 0x1f9   : > { %v3724_v19 = vpop.f32.mrf.mxu2  ;;  %v3755_v21 = vpop.f32.mrf.mxu0 }
 0x1fa   : > { %v3743_v20 = vpop.f32.mrf.mxu3  ;;  %v3774_v22 = vpop.f32.mrf.mxu1  ;;  %v3756_v40 = vadd.f32 %v3755_v21, %v3737_v10  ;;  %v3725_v58 = vadd.f32 %v3724_v19, %v3706_v54 }
 0x1fc   : > { %v3775_v45 = vadd.f32 %v3774_v22, %v3756_v40  ;;  %v3744_v2 = vadd.f32 %v3743_v20, %v3725_v58 }
 0x201   : > { %v3793_v23 = vpop.f32.mrf.mxu2  ;;  %v3757_v25 = vpop.f32.mrf.mxu0 }
 0x202   : > { %v3812_v24 = vpop.f32.mrf.mxu3  ;;  %v3776_v26 = vpop.f32.mrf.mxu1  ;;  %v3758_v42 = vadd.f32 %v3757_v25, %v3739_v39  ;;  %v3794_v50 = vadd.f32 %v3793_v23, %v3775_v45 }
 0x204   : > { %v3777_v51 = vadd.f32 %v3776_v26, %v3758_v42  ;;  %v3813_v55 = vadd.f32 %v3812_v24, %v3794_v50 }
 0x209   : > { %v3795_v27 = vpop.f32.mrf.mxu2  ;;  %v3760_v29 = vpop.f32.mrf.mxu0 }
 0x20a   : > { %v3814_v28 = vpop.f32.mrf.mxu3  ;;  %v3779_v30 = vpop.f32.mrf.mxu1  ;;  %v3796_v53 = vadd.f32 %v3795_v27, %v3777_v51  ;;  %v3761_v56 = vadd.f32 %v3760_v29, %v3742_v52 }
 0x20c   : > { %v3815_v59 = vadd.f32 %v3814_v28, %v3796_v53  ;;  %v3780_v0 = vadd.f32 %v3779_v30, %v3761_v56 }
 0x211   : > { %v3798_v33 = vpop.f32.mrf.mxu2  ;;  %v3762_v36 = vpop.f32.mrf.mxu0 }
 0x212   : > { %v3817_v35 = vpop.f32.mrf.mxu3  ;;  %v3781_v37 = vpop.f32.mrf.mxu1  ;;  %v3799_v4 = vadd.f32 %v3798_v33, %v3780_v0  ;;  %v3763_v3 = vadd.f32 %v3762_v36, %v3744_v2 }
 0x214   : > { %v3818_v9 = vadd.f32 %v3817_v35, %v3799_v4  ;;  %v3782_v13 = vadd.f32 %v3781_v37, %v3763_v3 }
 0x219   : > { %v3800_v43 = vpop.f32.mrf.mxu2  ;;  %v3831_v47 = vpop.f32.mrf.mxu0 }
 0x21a   : > { %v3819_v46 = vpop.f32.mrf.mxu3  ;;  %v3850_v48 = vpop.f32.mrf.mxu1  ;;  %v3832_v60 = vadd.f32 %v3831_v47, %v3813_v55  ;;  %v3801_v18 = vadd.f32 %v3800_v43, %v3782_v13 }
 0x21c   : > { %v3851_v5 = vadd.f32 %v3850_v48, %v3832_v60  ;;  %v3820_v20 = vadd.f32 %v3819_v46, %v3801_v18 }
 0x221   : > { %v3869_v57 = vpop.f32.mrf.mxu2  ;;  %v3833_v62 = vpop.f32.mrf.mxu0 }
 0x222   : > { %v3888_v61 = vpop.f32.mrf.mxu3  ;;  %v3852_v63 = vpop.f32.mrf.mxu1  ;;  %v3834_v1 = vadd.f32 %v3833_v62, %v3815_v59  ;;  %v3870_v6 = vadd.f32 %v3869_v57, %v3851_v5  ;;  %v4979_v5 = vld [vmem:[%s2370_s7] ss:$0 sm:$0xff] }
 0x224   : > { %v3853_v7 = vadd.f32 %v3852_v63, %v3834_v1  ;;  %v3889_v14 = vadd.f32 %v3888_v61, %v3870_v6 }
 0x229   : > { %v3871_v8 = vpop.f32.mrf.mxu2  ;;  %v3836_v12 = vpop.f32.mrf.mxu0 }
 0x22a   : > { %v3872_v10 = vadd.f32 %v3871_v8, %v3853_v7  ;;  %v3890_v11 = vpop.f32.mrf.mxu3  ;;  %v3837_v16 = vadd.f32 %v3836_v12, %v3818_v9  ;;  %v3855_v17 = vpop.f32.mrf.mxu1 }
 0x22c   : > { %v3891_v15 = vadd.f32 %v3890_v11, %v3872_v10  ;;  %v3856_v21 = vadd.f32 %v3855_v17, %v3837_v16  ;;  %v4980_v10 = vld [vmem:[%s2373_s13] ss:$0 sm:$0xff] }
 0x22e   : > { %v3898_v19 = vadd.f32 %v3891_v15, %v3889_v14 }
 0x231   : > { %v3874_v22 = vpop.f32.mrf.mxu2  ;;  %v3838_v25 = vpop.f32.mrf.mxu0 }
 0x232   : > { %v3875_v23 = vadd.f32 %v3874_v22, %v3856_v21  ;;  %v3893_v24 = vpop.f32.mrf.mxu3  ;;  %v3839_v27 = vadd.f32 %v3838_v25, %v3820_v20  ;;  %v3857_v29 = vpop.f32.mrf.mxu1 }
 0x234   : > { %v3894_v26 = vadd.f32 %v3893_v24, %v3875_v23  ;;  %v3858_v30 = vadd.f32 %v3857_v29, %v3839_v27 }
 0x236   : > { %v3899_v28 = vadd.f32 %v3898_v19, %v3894_v26 }
 0x239   : > { %v3876_v31 = vpop.f32.mrf.mxu2 }
 0x23a   : > { %v3877_v32 = vadd.f32 %v3876_v31, %v3858_v30  ;;  %v3895_v33 = vpop.f32.mrf.mxu3 }
 0x23c   : > { %v3896_v34 = vadd.f32 %v3895_v33, %v3877_v32 }
 0x23e   : > { %v3900_v35 = vadd.f32 %v3899_v28, %v3896_v34 }
 0x240   : > { %v3901_v36 = vrot.slane %v3900_v35, 4 }
 0x242   : > { %v3902_v37 = vadd.f32 %v3901_v36, %v3900_v35 }
 0x244   : > { %v3903_v38 = vrot.slane %v3902_v37, 2 }
 0x246   : > { %v3904_v39 = vadd.f32 %v3903_v38, %v3902_v37 }
 0x248   : > { %v3905_v40 = vrot.slane %v3904_v39, 1 }
 0x24a   : > { %v3906_v41 = vadd.f32 %v3905_v40, %v3904_v39 }
 0x24c   : > { %v3907_v42 = vmul.f32 0.03125, %v3906_v41 }
 0x24e   : > { %v3908_v43 = vsub.f32 %v3889_v14, %v3907_v42  ;;  %v3909_v44 = vsub.f32 %v3891_v15, %v3907_v42  ;;  %v3910_v45 = vsub.f32 %v3894_v26, %v3907_v42  ;;  %v3911_v46 = vsub.f32 %v3896_v34, %v3907_v42 }
 0x250   : > { %v3912_v47 = vmul.f32 %v3908_v43, %v3908_v43  ;;  %v3913_v48 = vmul.f32 %v3909_v44, %v3909_v44  ;;  %v3914_v49 = vmul.f32 %v3910_v45, %v3910_v45  ;;  %v3915_v51 = vmul.f32 %v3911_v46, %v3911_v46 }
 0x252   : > { %v3916_v50 = vadd.f32 %v3913_v48, %v3912_v47 }
 0x254   : > { %v3917_v52 = vadd.f32 %v3916_v50, %v3914_v49 }
 0x256   : > { %v3918_v53 = vadd.f32 %v3917_v52, %v3915_v51 }
 0x258   : > { %v3919_v54 = vrot.slane %v3918_v53, 4 }
 0x25a   : > { %v3920_v55 = vadd.f32 %v3919_v54, %v3918_v53 }
 0x25c   : > { %v3921_v56 = vrot.slane %v3920_v55, 2 }
 0x25e   : > { %v3922_v57 = vadd.f32 %v3921_v56, %v3920_v55 }
 0x260   : > { %v3923_v58 = vrot.slane %v3922_v57, 1 }
 0x262   : > { %v3924_v59 = vadd.f32 %v3923_v58, %v3922_v57 }
 0x264   : > { %v3925_v60 = vmul.f32 0.03125, %v3924_v59 }
 0x266   : > { %v3926_v61 = vadd.f32 1e-05, %v3925_v60 }
 0x268   : > { %4981 = vrsqrt.f32 %v3926_v61  ;;  %vm3933_vm1 = vweird.f32 %v3926_v61 }
 0x26e   : > { %v4982_v62 = vpop.eup %4981 }
 0x26f   : > { %v3928_v63 = vmul.f32 %v4982_v62, %v3926_v61  ;;  %vm3934_vm0 = vweird.f32 %v4982_v62 }
 0x270   : > { %vm3935_vm2 = vmor %vm3933_vm1, %vm3934_vm0 }
 0x271   : > { %v3929_v0 = vmul.f32 %v4982_v62, %v3928_v63 }
 0x273   : > { %v3930_v1 = vmul.f32 0.5, %v3929_v0 }
 0x275   : > { %v3931_v2 = vsub.f32 1.5, %v3930_v1 }
 0x277   : > { %v3932_v4 = vmul.f32 %v4982_v62, %v3931_v2 }
 0x279   : > { %v3936_v3 = vsel %vm3935_vm2, %v4982_v62, %v3932_v4 }
 0x27a   : > { %v3937_v6 = vmul.f32 %v3936_v3, %v3908_v43  ;;  %v3938_v7 = vmul.f32 %v3936_v3, %v3909_v44  ;;  %v3939_v8 = vmul.f32 %v3936_v3, %v3910_v45  ;;  %v3940_v9 = vmul.f32 %v3936_v3, %v3911_v46 }
 0x27c   : > { %v3945_v11 = vmul.f32 %v4979_v5, %v3937_v6  ;;  %v3946_v12 = vmul.f32 %v4979_v5, %v3938_v7  ;;  %v3947_v13 = vmul.f32 %v4979_v5, %v3939_v8  ;;  %v3948_v14 = vmul.f32 %v4979_v5, %v3940_v9 }
 0x27e   : > { %v3953_v15 = vadd.f32 %v4980_v10, %v3945_v11  ;;  %v3954_v16 = vadd.f32 %v4980_v10, %v3946_v12  ;;  %v3955_v17 = vadd.f32 %v4980_v10, %v3947_v13  ;;  %v3956_v18 = vadd.f32 %v4980_v10, %v3948_v14 }
 0x280   : > { %vm3957_vm3 = vcmp.ge.f32.partialorder %v3953_v15, 0.0  ;;  %vm3958_vm4 = vcmp.ge.f32.partialorder %v3954_v16, 0.0  ;;  %vm3959_vm5 = vcmp.ge.f32.partialorder %v3955_v17, 0.0  ;;  %vm3960_vm6 = vcmp.ge.f32.partialorder %v3956_v18, 0.0 }
 0x281   : > { %v3961_v19 = vmul.f32 0.2, %v3953_v15  ;;  %v3962_v21 = vmul.f32 0.2, %v3954_v16  ;;  %v3963_v22 = vmul.f32 0.2, %v3955_v17 }
 0x282   : > { %v3964_v20 = vmul.f32 0.2, %v3956_v18 }
 0x283   : > { %v3965_v23 = vsel %vm3957_vm3, %v3953_v15, %v3961_v19  ;;  %v3966_v24 = vsel %vm3958_vm4, %v3954_v16, %v3962_v21  ;;  %v3967_v25 = vsel %vm3959_vm5, %v3955_v17, %v3963_v22  ;;  %3983 = sbr.rel (!%p5068_p5) target bundleno = 658 (0x292), region = 96 }
 0x284   : > { %v3968_v26 = vsel %vm3960_vm6, %v3956_v18, %v3964_v20  ;;  %v4946_v27 = vpack.c.bf16 %v3966_v24, %v3965_v23 }
 0x285   : > { %v4951_v28 = vpack.c.bf16 %v3968_v26, %v3967_v25 }
 0x286   : > { %4947 = vst [vmem:[%s2364_s12] sm:$0xff] %v4946_v27  }
 0x287   : > { %4953 = vst [vmem:[%s2364_s12 + $0x8] sm:$0xff] %v4951_v28  }
 0x28d   : > { %v4002_v29 = vld [vmem:[%s2364_s12] sm:$0xf]  ;;  %v4004_v30 = vld [vmem:[%s2364_s12 + $0x4] sm:$0xf] }
 0x28e   : > { %v4006_v31 = vld [vmem:[%s2364_s12 + $0x8] sm:$0xf]  ;;  %4003 = vst [vmem:[%s3985_s20] sm:$0xf] %v4002_v29  ;;  %v4008_v32 = vld [vmem:[%s2364_s12 + $0xc] sm:$0xf] }
 0x28f   : > { %4005 = vst [vmem:[%s3985_s20 + $0x8] sm:$0xf] %v4004_v30 }
 0x290   : > { %4007 = vst [vmem:[%s3985_s20 + $0x10] sm:$0xf] %v4006_v31 }
 0x291   : > { %4009 = vst [vmem:[%s3985_s20 + $0x18] sm:$0xf] %v4008_v32 }
 0x292 PF: > { %p12_p11 = scmp.ge.s32.totalorder %s5056_s22, 4   ;;  %s5977_s18 = smov %s5001_s19 }
 0x293   : > { %s5978_s19 = smov %s5066_s25  ;;  %s5979_s20 = smov %s5056_s22 }
 0x294   :  { %14 = sbr.rel (!%p12_p11) target bundleno = 2 (0x2), region = 181 }

// kernel: discriminator_forward.8
= control target key start
LH: loop header
LB: loop body
LE: loop exit
PB: predicated region body
PF: predicated region fallthrough
CT: control target
= control target key end

     0   :  { %s9430_s18 = smov 0   ;;  %s9432_s19 = smov 0   ;;  %s11230_s0 = inlined_call_operand.vmem [shape: bf16[32,4096], index: 0, kind: input, shape index: {}]   ;;  %s11231_s1 = inlined_call_operand.vmem [shape: bf16[4096,512], index: 1, kind: input, shape index: {}]   ;;  %s11232_s2 = inlined_call_operand.vmem [shape: f32[1,512], index: 2, kind: input, shape index: {}]   ;;  %s11233_s3 = inlined_call_operand.vmem [shape: f32[1,512], index: 3, kind: input, shape index: {}]   ;;  %s11234_s4 = inlined_call_operand.vmem [shape: f32[1,512], index: 4, kind: input, shape index: {}]   ;;  %s11235_s5 = inlined_call_operand.vmem [shape: bf16[32,512], index: 5, kind: output, shape index: {}]  }
   0x1   :  { %s9434_s20 = smov 0  }
   0x2 LB: > { %s9446_s21 = sadd.s32 4294967295, %s9398_s20   ;;  %s9449_s22 = sadd.s32 1, %s9398_s20   ;;  %s9398_s20 = sphi %s9434_s20, %s11239_s20   ;;  %s9394_s19 = sphi %s9432_s19, %s11238_s19   ;;  %s9390_s18 = sphi %s9430_s18, %s11237_s18  }
   0x3   : > { %s40_s23 = ssub.s32 %s9398_s20, %s9449_s22  ;;  %s43_s24 = sadd.s32 1, %s9394_s19 }
   0x4   : > { %p41_p0 = scmp.eq.s32.totalorder %s40_s23, 0  ;;  %p50_p1 = scmp.ne.s32.totalorder %s9394_s19, %s9390_s18 }
   0x5   : > { %p51_p2 = scmp.eq.s32.totalorder %s9398_s20, 0  ;;  %p158_p3 = scmp.eq.s32.totalorder %s9446_s21, 3 }
   0x6   : > { %s9459_s25 = scalar_select %p41_p0, %s9394_s19, %s43_s24  }
   0x7   : > { %p52_p4 = por %p51_p2, %p50_p1  ;;  %p9461_p5 = por %p158_p3, %p50_p1 }
   0x8   : > { %p7726_p6 = scmp.ge.s32.totalorder %s9398_s20, 4 }
   0xa   : > { %183 = sbr.rel (%p7726_p6) target bundleno = 531 (0x213), region = 20 }
   0xf   : > { %186 = sbr.rel (!%p52_p4) target bundleno = 531 (0x213), region = 24  ;;  %s188_s27 = sand.u32 (%p52_p4), 1, %s9394_s19  }
  0x10   : > { %s7728_s28 = sshll.u32 (%p52_p4), %s9398_s20, 2  ;;  %s7727_s29 = sshll.u32 (%p52_p4), %s188_s27, 11 }
  0x11   : > { %s9471_s7 = scalar_lea.vmem (%p52_p4), %s11231_s1, %s7728_s28  ;;  %s9475_s8 = scalar_lea.vmem (%p52_p4), [#allocation2], %s7727_s29 }
  0x12   : > { %v209_v0 = vld [vmem:[%s9471_s7] sm:$0xf] (%p52_p4)  ;;  %v211_v1 = vld [vmem:[%s9471_s7 + $0x10] sm:$0xf] (%p52_p4) }
  0x13   : > { %210 = vst [vmem:[%s9475_s8] sm:$0xf] (%p52_p4), %v209_v0  ;;  %v213_v2 = vld [vmem:[%s9471_s7 + $0x20] sm:$0xf] (%p52_p4)  ;;  %v215_v3 = vld [vmem:[%s9471_s7 + $0x30] sm:$0xf] (%p52_p4) }
  0x14   : > { %212 = vst [vmem:[%s9475_s8 + $0x4] sm:$0xf] %v211_v1  ;;  %v217_v4 = vld [vmem:[%s9471_s7 + $0x40] sm:$0xf]  ;;  %v219_v5 = vld [vmem:[%s9471_s7 + $0x50] sm:$0xf] }
  0x15   : > { %214 = vst [vmem:[%s9475_s8 + $0x8] sm:$0xf] %v213_v2  ;;  %v221_v6 = vld [vmem:[%s9471_s7 + $0x60] sm:$0xf]  ;;  %v223_v7 = vld [vmem:[%s9471_s7 + $0x70] sm:$0xf] }
  0x16   : > { %216 = vst [vmem:[%s9475_s8 + $0xc] sm:$0xf] %v215_v3  ;;  %v225_v8 = vld [vmem:[%s9471_s7 + $0x80] sm:$0xf]  ;;  %v227_v9 = vld [vmem:[%s9471_s7 + $0x90] sm:$0xf] }
  0x17   : > { %218 = vst [vmem:[%s9475_s8 + $0x10] sm:$0xf] %v217_v4  ;;  %v229_v10 = vld [vmem:[%s9471_s7 + $0xa0] sm:$0xf]  ;;  %v231_v11 = vld [vmem:[%s9471_s7 + $0xb0] sm:$0xf] }
  0x18   : > { %220 = vst [vmem:[%s9475_s8 + $0x14] sm:$0xf] %v219_v5  ;;  %v233_v12 = vld [vmem:[%s9471_s7 + $0xc0] sm:$0xf]  ;;  %v235_v13 = vld [vmem:[%s9471_s7 + $0xd0] sm:$0xf] }
  0x19   : > { %222 = vst [vmem:[%s9475_s8 + $0x18] sm:$0xf] %v221_v6  ;;  %v237_v14 = vld [vmem:[%s9471_s7 + $0xe0] sm:$0xf]  ;;  %v239_v15 = vld [vmem:[%s9471_s7 + $0xf0] sm:$0xf] }
  0x1a   : > { %224 = vst [vmem:[%s9475_s8 + $0x1c] sm:$0xf] %v223_v7  ;;  %v241_v16 = vld [vmem:[%s9471_s7 + $0x100] sm:$0xf]  ;;  %v243_v17 = vld [vmem:[%s9471_s7 + $0x110] sm:$0xf] }
  0x1b   : > { %226 = vst [vmem:[%s9475_s8 + $0x20] sm:$0xf] %v225_v8  ;;  %v245_v18 = vld [vmem:[%s9471_s7 + $0x120] sm:$0xf]  ;;  %v247_v19 = vld [vmem:[%s9471_s7 + $0x130] sm:$0xf] }
  0x1c   : > { %228 = vst [vmem:[%s9475_s8 + $0x24] sm:$0xf] %v227_v9  ;;  %v249_v20 = vld [vmem:[%s9471_s7 + $0x140] sm:$0xf]  ;;  %v251_v21 = vld [vmem:[%s9471_s7 + $0x150] sm:$0xf] }
  0x1d   : > { %230 = vst [vmem:[%s9475_s8 + $0x28] sm:$0xf] %v229_v10  ;;  %v253_v22 = vld [vmem:[%s9471_s7 + $0x160] sm:$0xf]  ;;  %v255_v23 = vld [vmem:[%s9471_s7 + $0x170] sm:$0xf] }
  0x1e   : > { %232 = vst [vmem:[%s9475_s8 + $0x2c] sm:$0xf] %v231_v11  ;;  %v257_v24 = vld [vmem:[%s9471_s7 + $0x180] sm:$0xf]  ;;  %v259_v25 = vld [vmem:[%s9471_s7 + $0x190] sm:$0xf] }
  0x1f   : > { %234 = vst [vmem:[%s9475_s8 + $0x30] sm:$0xf] %v233_v12  ;;  %v261_v26 = vld [vmem:[%s9471_s7 + $0x1a0] sm:$0xf]  ;;  %v263_v27 = vld [vmem:[%s9471_s7 + $0x1b0] sm:$0xf] }
  0x20   : > { %236 = vst [vmem:[%s9475_s8 + $0x34] sm:$0xf] %v235_v13  ;;  %v265_v28 = vld [vmem:[%s9471_s7 + $0x1c0] sm:$0xf]  ;;  %v267_v29 = vld [vmem:[%s9471_s7 + $0x1d0] sm:$0xf] }
  0x21   : > { %238 = vst [vmem:[%s9475_s8 + $0x38] sm:$0xf] %v237_v14  ;;  %v269_v30 = vld [vmem:[%s9471_s7 + $0x1e0] sm:$0xf]  ;;  %v271_v31 = vld [vmem:[%s9471_s7 + $0x1f0] sm:$0xf] }
  0x22   : > { %240 = vst [vmem:[%s9475_s8 + $0x3c] sm:$0xf] %v239_v15  ;;  %v273_v32 = vld [vmem:[%s9471_s7 + $0x200] sm:$0xf]  ;;  %v275_v33 = vld [vmem:[%s9471_s7 + $0x210] sm:$0xf] }
  0x23   : > { %242 = vst [vmem:[%s9475_s8 + $0x40] sm:$0xf] %v241_v16  ;;  %v277_v34 = vld [vmem:[%s9471_s7 + $0x220] sm:$0xf]  ;;  %v279_v35 = vld [vmem:[%s9471_s7 + $0x230] sm:$0xf] }
  0x24   : > { %244 = vst [vmem:[%s9475_s8 + $0x44] sm:$0xf] %v243_v17  ;;  %v281_v36 = vld [vmem:[%s9471_s7 + $0x240] sm:$0xf]  ;;  %v283_v37 = vld [vmem:[%s9471_s7 + $0x250] sm:$0xf] }
  0x25   : > { %246 = vst [vmem:[%s9475_s8 + $0x48] sm:$0xf] %v245_v18  ;;  %v285_v38 = vld [vmem:[%s9471_s7 + $0x260] sm:$0xf]  ;;  %v287_v39 = vld [vmem:[%s9471_s7 + $0x270] sm:$0xf] }
  0x26   : > { %248 = vst [vmem:[%s9475_s8 + $0x4c] sm:$0xf] %v247_v19  ;;  %v289_v40 = vld [vmem:[%s9471_s7 + $0x280] sm:$0xf]  ;;  %v291_v41 = vld [vmem:[%s9471_s7 + $0x290] sm:$0xf] }
  0x27   : > { %250 = vst [vmem:[%s9475_s8 + $0x50] sm:$0xf] %v249_v20  ;;  %v293_v42 = vld [vmem:[%s9471_s7 + $0x2a0] sm:$0xf]  ;;  %v295_v43 = vld [vmem:[%s9471_s7 + $0x2b0] sm:$0xf] }
  0x28   : > { %252 = vst [vmem:[%s9475_s8 + $0x54] sm:$0xf] %v251_v21  ;;  %v297_v44 = vld [vmem:[%s9471_s7 + $0x2c0] sm:$0xf]  ;;  %v299_v45 = vld [vmem:[%s9471_s7 + $0x2d0] sm:$0xf] }
  0x29   : > { %254 = vst [vmem:[%s9475_s8 + $0x58] sm:$0xf] %v253_v22  ;;  %v301_v46 = vld [vmem:[%s9471_s7 + $0x2e0] sm:$0xf]  ;;  %v303_v47 = vld [vmem:[%s9471_s7 + $0x2f0] sm:$0xf] }
  0x2a   : > { %256 = vst [vmem:[%s9475_s8 + $0x5c] sm:$0xf] %v255_v23  ;;  %v305_v48 = vld [vmem:[%s9471_s7 + $0x300] sm:$0xf]  ;;  %v307_v49 = vld [vmem:[%s9471_s7 + $0x310] sm:$0xf] }
  0x2b   : > { %258 = vst [vmem:[%s9475_s8 + $0x60] sm:$0xf] %v257_v24  ;;  %v309_v50 = vld [vmem:[%s9471_s7 + $0x320] sm:$0xf]  ;;  %v311_v51 = vld [vmem:[%s9471_s7 + $0x330] sm:$0xf] }
  0x2c   : > { %260 = vst [vmem:[%s9475_s8 + $0x64] sm:$0xf] %v259_v25  ;;  %v313_v52 = vld [vmem:[%s9471_s7 + $0x340] sm:$0xf]  ;;  %v315_v53 = vld [vmem:[%s9471_s7 + $0x350] sm:$0xf] }
  0x2d   : > { %262 = vst [vmem:[%s9475_s8 + $0x68] sm:$0xf] %v261_v26  ;;  %v317_v54 = vld [vmem:[%s9471_s7 + $0x360] sm:$0xf]  ;;  %v319_v55 = vld [vmem:[%s9471_s7 + $0x370] sm:$0xf] }
  0x2e   : > { %264 = vst [vmem:[%s9475_s8 + $0x6c] sm:$0xf] %v263_v27  ;;  %v321_v56 = vld [vmem:[%s9471_s7 + $0x380] sm:$0xf]  ;;  %v323_v57 = vld [vmem:[%s9471_s7 + $0x390] sm:$0xf] }
  0x2f   : > { %266 = vst [vmem:[%s9475_s8 + $0x70] sm:$0xf] %v265_v28  ;;  %v325_v58 = vld [vmem:[%s9471_s7 + $0x3a0] sm:$0xf]  ;;  %v327_v59 = vld [vmem:[%s9471_s7 + $0x3b0] sm:$0xf] }
  0x30   : > { %268 = vst [vmem:[%s9475_s8 + $0x74] sm:$0xf] %v267_v29  ;;  %v329_v60 = vld [vmem:[%s9471_s7 + $0x3c0] sm:$0xf]  ;;  %v331_v61 = vld [vmem:[%s9471_s7 + $0x3d0] sm:$0xf] }
  0x31   : > { %270 = vst [vmem:[%s9475_s8 + $0x78] sm:$0xf] %v269_v30  ;;  %v333_v62 = vld [vmem:[%s9471_s7 + $0x3e0] sm:$0xf]  ;;  %v335_v63 = vld [vmem:[%s9471_s7 + $0x3f0] sm:$0xf] }
  0x32   : > { %272 = vst [vmem:[%s9475_s8 + $0x7c] sm:$0xf] %v271_v31  ;;  %v337_v0 = vld [vmem:[%s9471_s7 + $0x400] sm:$0xf]  ;;  %v339_v1 = vld [vmem:[%s9471_s7 + $0x410] sm:$0xf] }
  0x33   : > { %274 = vst [vmem:[%s9475_s8 + $0x80] sm:$0xf] %v273_v32  ;;  %v341_v2 = vld [vmem:[%s9471_s7 + $0x420] sm:$0xf]  ;;  %v343_v3 = vld [vmem:[%s9471_s7 + $0x430] sm:$0xf] }
  0x34   : > { %276 = vst [vmem:[%s9475_s8 + $0x84] sm:$0xf] %v275_v33  ;;  %v345_v4 = vld [vmem:[%s9471_s7 + $0x440] sm:$0xf]  ;;  %v347_v5 = vld [vmem:[%s9471_s7 + $0x450] sm:$0xf] }
  0x35   : > { %278 = vst [vmem:[%s9475_s8 + $0x88] sm:$0xf] %v277_v34  ;;  %v349_v6 = vld [vmem:[%s9471_s7 + $0x460] sm:$0xf]  ;;  %v351_v7 = vld [vmem:[%s9471_s7 + $0x470] sm:$0xf] }
  0x36   : > { %280 = vst [vmem:[%s9475_s8 + $0x8c] sm:$0xf] %v279_v35  ;;  %v353_v8 = vld [vmem:[%s9471_s7 + $0x480] sm:$0xf]  ;;  %v355_v9 = vld [vmem:[%s9471_s7 + $0x490] sm:$0xf] }
  0x37   : > { %282 = vst [vmem:[%s9475_s8 + $0x90] sm:$0xf] %v281_v36  ;;  %v357_v10 = vld [vmem:[%s9471_s7 + $0x4a0] sm:$0xf]  ;;  %v359_v11 = vld [vmem:[%s9471_s7 + $0x4b0] sm:$0xf] }
  0x38   : > { %284 = vst [vmem:[%s9475_s8 + $0x94] sm:$0xf] %v283_v37  ;;  %v361_v12 = vld [vmem:[%s9471_s7 + $0x4c0] sm:$0xf]  ;;  %v363_v13 = vld [vmem:[%s9471_s7 + $0x4d0] sm:$0xf] }
  0x39   : > { %286 = vst [vmem:[%s9475_s8 + $0x98] sm:$0xf] %v285_v38  ;;  %v365_v14 = vld [vmem:[%s9471_s7 + $0x4e0] sm:$0xf]  ;;  %v367_v15 = vld [vmem:[%s9471_s7 + $0x4f0] sm:$0xf] }
  0x3a   : > { %288 = vst [vmem:[%s9475_s8 + $0x9c] sm:$0xf] %v287_v39  ;;  %v369_v16 = vld [vmem:[%s9471_s7 + $0x500] sm:$0xf]  ;;  %v371_v17 = vld [vmem:[%s9471_s7 + $0x510] sm:$0xf] }
  0x3b   : > { %290 = vst [vmem:[%s9475_s8 + $0xa0] sm:$0xf] %v289_v40  ;;  %v373_v18 = vld [vmem:[%s9471_s7 + $0x520] sm:$0xf]  ;;  %v375_v19 = vld [vmem:[%s9471_s7 + $0x530] sm:$0xf] }
  0x3c   : > { %292 = vst [vmem:[%s9475_s8 + $0xa4] sm:$0xf] %v291_v41  ;;  %v377_v20 = vld [vmem:[%s9471_s7 + $0x540] sm:$0xf]  ;;  %v379_v21 = vld [vmem:[%s9471_s7 + $0x550] sm:$0xf] }
  0x3d   : > { %294 = vst [vmem:[%s9475_s8 + $0xa8] sm:$0xf] %v293_v42  ;;  %v381_v22 = vld [vmem:[%s9471_s7 + $0x560] sm:$0xf]  ;;  %v383_v23 = vld [vmem:[%s9471_s7 + $0x570] sm:$0xf] }
  0x3e   : > { %296 = vst [vmem:[%s9475_s8 + $0xac] sm:$0xf] %v295_v43  ;;  %v385_v24 = vld [vmem:[%s9471_s7 + $0x580] sm:$0xf]  ;;  %v387_v25 = vld [vmem:[%s9471_s7 + $0x590] sm:$0xf] }
  0x3f   : > { %298 = vst [vmem:[%s9475_s8 + $0xb0] sm:$0xf] %v297_v44  ;;  %v389_v26 = vld [vmem:[%s9471_s7 + $0x5a0] sm:$0xf]  ;;  %v391_v27 = vld [vmem:[%s9471_s7 + $0x5b0] sm:$0xf] }
  0x40   : > { %300 = vst [vmem:[%s9475_s8 + $0xb4] sm:$0xf] %v299_v45  ;;  %v393_v28 = vld [vmem:[%s9471_s7 + $0x5c0] sm:$0xf]  ;;  %v395_v29 = vld [vmem:[%s9471_s7 + $0x5d0] sm:$0xf] }
  0x41   : > { %302 = vst [vmem:[%s9475_s8 + $0xb8] sm:$0xf] %v301_v46  ;;  %v397_v30 = vld [vmem:[%s9471_s7 + $0x5e0] sm:$0xf]  ;;  %v399_v31 = vld [vmem:[%s9471_s7 + $0x5f0] sm:$0xf] }
  0x42   : > { %304 = vst [vmem:[%s9475_s8 + $0xbc] sm:$0xf] %v303_v47  ;;  %v401_v32 = vld [vmem:[%s9471_s7 + $0x600] sm:$0xf]  ;;  %v403_v33 = vld [vmem:[%s9471_s7 + $0x610] sm:$0xf] }
  0x43   : > { %306 = vst [vmem:[%s9475_s8 + $0xc0] sm:$0xf] %v305_v48  ;;  %v405_v34 = vld [vmem:[%s9471_s7 + $0x620] sm:$0xf]  ;;  %v407_v35 = vld [vmem:[%s9471_s7 + $0x630] sm:$0xf] }
  0x44   : > { %308 = vst [vmem:[%s9475_s8 + $0xc4] sm:$0xf] %v307_v49  ;;  %v409_v36 = vld [vmem:[%s9471_s7 + $0x640] sm:$0xf]  ;;  %v411_v37 = vld [vmem:[%s9471_s7 + $0x650] sm:$0xf] }
  0x45   : > { %310 = vst [vmem:[%s9475_s8 + $0xc8] sm:$0xf] %v309_v50  ;;  %v413_v38 = vld [vmem:[%s9471_s7 + $0x660] sm:$0xf]  ;;  %v415_v39 = vld [vmem:[%s9471_s7 + $0x670] sm:$0xf] }
  0x46   : > { %312 = vst [vmem:[%s9475_s8 + $0xcc] sm:$0xf] %v311_v51  ;;  %v417_v40 = vld [vmem:[%s9471_s7 + $0x680] sm:$0xf]  ;;  %v419_v41 = vld [vmem:[%s9471_s7 + $0x690] sm:$0xf] }
  0x47   : > { %314 = vst [vmem:[%s9475_s8 + $0xd0] sm:$0xf] %v313_v52  ;;  %v421_v42 = vld [vmem:[%s9471_s7 + $0x6a0] sm:$0xf]  ;;  %v423_v43 = vld [vmem:[%s9471_s7 + $0x6b0] sm:$0xf] }
  0x48   : > { %316 = vst [vmem:[%s9475_s8 + $0xd4] sm:$0xf] %v315_v53  ;;  %v425_v44 = vld [vmem:[%s9471_s7 + $0x6c0] sm:$0xf]  ;;  %v427_v45 = vld [vmem:[%s9471_s7 + $0x6d0] sm:$0xf] }
  0x49   : > { %318 = vst [vmem:[%s9475_s8 + $0xd8] sm:$0xf] %v317_v54  ;;  %v429_v46 = vld [vmem:[%s9471_s7 + $0x6e0] sm:$0xf]  ;;  %v431_v47 = vld [vmem:[%s9471_s7 + $0x6f0] sm:$0xf] }
  0x4a   : > { %320 = vst [vmem:[%s9475_s8 + $0xdc] sm:$0xf] %v319_v55  ;;  %v433_v48 = vld [vmem:[%s9471_s7 + $0x700] sm:$0xf]  ;;  %v435_v49 = vld [vmem:[%s9471_s7 + $0x710] sm:$0xf] }
  0x4b   : > { %322 = vst [vmem:[%s9475_s8 + $0xe0] sm:$0xf] %v321_v56  ;;  %v437_v50 = vld [vmem:[%s9471_s7 + $0x720] sm:$0xf]  ;;  %v439_v51 = vld [vmem:[%s9471_s7 + $0x730] sm:$0xf] }
  0x4c   : > { %324 = vst [vmem:[%s9475_s8 + $0xe4] sm:$0xf] %v323_v57  ;;  %v441_v52 = vld [vmem:[%s9471_s7 + $0x740] sm:$0xf]  ;;  %v443_v53 = vld [vmem:[%s9471_s7 + $0x750] sm:$0xf] }
  0x4d   : > { %326 = vst [vmem:[%s9475_s8 + $0xe8] sm:$0xf] %v325_v58  ;;  %v445_v54 = vld [vmem:[%s9471_s7 + $0x760] sm:$0xf]  ;;  %v447_v55 = vld [vmem:[%s9471_s7 + $0x770] sm:$0xf] }
  0x4e   : > { %328 = vst [vmem:[%s9475_s8 + $0xec] sm:$0xf] %v327_v59  ;;  %v449_v56 = vld [vmem:[%s9471_s7 + $0x780] sm:$0xf]  ;;  %v451_v57 = vld [vmem:[%s9471_s7 + $0x790] sm:$0xf] }
  0x4f   : > { %330 = vst [vmem:[%s9475_s8 + $0xf0] sm:$0xf] %v329_v60  ;;  %v453_v58 = vld [vmem:[%s9471_s7 + $0x7a0] sm:$0xf]  ;;  %v455_v59 = vld [vmem:[%s9471_s7 + $0x7b0] sm:$0xf] }
  0x50   : > { %332 = vst [vmem:[%s9475_s8 + $0xf4] sm:$0xf] %v331_v61  ;;  %v457_v60 = vld [vmem:[%s9471_s7 + $0x7c0] sm:$0xf]  ;;  %v459_v61 = vld [vmem:[%s9471_s7 + $0x7d0] sm:$0xf] }
  0x51   : > { %334 = vst [vmem:[%s9475_s8 + $0xf8] sm:$0xf] %v333_v62  ;;  %v461_v62 = vld [vmem:[%s9471_s7 + $0x7e0] sm:$0xf] }
  0x52   : > { %336 = vst [vmem:[%s9475_s8 + $0xfc] sm:$0xf] %v335_v63  ;;  %v463_v63 = vld [vmem:[%s9471_s7 + $0x7f0] sm:$0xf] }
  0x53   : > { %338 = vst [vmem:[%s9475_s8 + $0x100] sm:$0xf] %v337_v0  ;;  %v465_v0 = vld [vmem:[%s9471_s7 + $0x800] sm:$0xf] }
  0x54   : > { %340 = vst [vmem:[%s9475_s8 + $0x104] sm:$0xf] %v339_v1  ;;  %v467_v1 = vld [vmem:[%s9471_s7 + $0x810] sm:$0xf] }
  0x55   : > { %342 = vst [vmem:[%s9475_s8 + $0x108] sm:$0xf] %v341_v2  ;;  %v469_v2 = vld [vmem:[%s9471_s7 + $0x820] sm:$0xf] }
  0x56   : > { %344 = vst [vmem:[%s9475_s8 + $0x10c] sm:$0xf] %v343_v3  ;;  %v471_v3 = vld [vmem:[%s9471_s7 + $0x830] sm:$0xf] }
  0x57   : > { %346 = vst [vmem:[%s9475_s8 + $0x110] sm:$0xf] %v345_v4  ;;  %v473_v4 = vld [vmem:[%s9471_s7 + $0x840] sm:$0xf] }
  0x58   : > { %348 = vst [vmem:[%s9475_s8 + $0x114] sm:$0xf] %v347_v5  ;;  %v475_v5 = vld [vmem:[%s9471_s7 + $0x850] sm:$0xf] }
  0x59   : > { %350 = vst [vmem:[%s9475_s8 + $0x118] sm:$0xf] %v349_v6  ;;  %v477_v6 = vld [vmem:[%s9471_s7 + $0x860] sm:$0xf] }
  0x5a   : > { %352 = vst [vmem:[%s9475_s8 + $0x11c] sm:$0xf] %v351_v7  ;;  %v479_v7 = vld [vmem:[%s9471_s7 + $0x870] sm:$0xf] }
  0x5b   : > { %354 = vst [vmem:[%s9475_s8 + $0x120] sm:$0xf] %v353_v8  ;;  %v481_v8 = vld [vmem:[%s9471_s7 + $0x880] sm:$0xf] }
  0x5c   : > { %356 = vst [vmem:[%s9475_s8 + $0x124] sm:$0xf] %v355_v9  ;;  %v483_v9 = vld [vmem:[%s9471_s7 + $0x890] sm:$0xf] }
  0x5d   : > { %358 = vst [vmem:[%s9475_s8 + $0x128] sm:$0xf] %v357_v10  ;;  %v485_v10 = vld [vmem:[%s9471_s7 + $0x8a0] sm:$0xf] }
  0x5e   : > { %360 = vst [vmem:[%s9475_s8 + $0x12c] sm:$0xf] %v359_v11  ;;  %v487_v11 = vld [vmem:[%s9471_s7 + $0x8b0] sm:$0xf] }
  0x5f   : > { %362 = vst [vmem:[%s9475_s8 + $0x130] sm:$0xf] %v361_v12  ;;  %v489_v12 = vld [vmem:[%s9471_s7 + $0x8c0] sm:$0xf] }
  0x60   : > { %364 = vst [vmem:[%s9475_s8 + $0x134] sm:$0xf] %v363_v13  ;;  %v491_v13 = vld [vmem:[%s9471_s7 + $0x8d0] sm:$0xf] }
  0x61   : > { %366 = vst [vmem:[%s9475_s8 + $0x138] sm:$0xf] %v365_v14  ;;  %v493_v14 = vld [vmem:[%s9471_s7 + $0x8e0] sm:$0xf] }
  0x62   : > { %368 = vst [vmem:[%s9475_s8 + $0x13c] sm:$0xf] %v367_v15  ;;  %v495_v15 = vld [vmem:[%s9471_s7 + $0x8f0] sm:$0xf] }
  0x63   : > { %370 = vst [vmem:[%s9475_s8 + $0x140] sm:$0xf] %v369_v16  ;;  %v497_v16 = vld [vmem:[%s9471_s7 + $0x900] sm:$0xf] }
  0x64   : > { %372 = vst [vmem:[%s9475_s8 + $0x144] sm:$0xf] %v371_v17  ;;  %v499_v17 = vld [vmem:[%s9471_s7 + $0x910] sm:$0xf] }
  0x65   : > { %374 = vst [vmem:[%s9475_s8 + $0x148] sm:$0xf] %v373_v18  ;;  %v501_v18 = vld [vmem:[%s9471_s7 + $0x920] sm:$0xf] }
  0x66   : > { %376 = vst [vmem:[%s9475_s8 + $0x14c] sm:$0xf] %v375_v19  ;;  %v503_v19 = vld [vmem:[%s9471_s7 + $0x930] sm:$0xf] }
  0x67   : > { %378 = vst [vmem:[%s9475_s8 + $0x150] sm:$0xf] %v377_v20  ;;  %v505_v20 = vld [vmem:[%s9471_s7 + $0x940] sm:$0xf] }
  0x68   : > { %380 = vst [vmem:[%s9475_s8 + $0x154] sm:$0xf] %v379_v21  ;;  %v507_v21 = vld [vmem:[%s9471_s7 + $0x950] sm:$0xf] }
  0x69   : > { %382 = vst [vmem:[%s9475_s8 + $0x158] sm:$0xf] %v381_v22  ;;  %v509_v22 = vld [vmem:[%s9471_s7 + $0x960] sm:$0xf] }
  0x6a   : > { %384 = vst [vmem:[%s9475_s8 + $0x15c] sm:$0xf] %v383_v23  ;;  %v511_v23 = vld [vmem:[%s9471_s7 + $0x970] sm:$0xf] }
  0x6b   : > { %386 = vst [vmem:[%s9475_s8 + $0x160] sm:$0xf] %v385_v24  ;;  %v513_v24 = vld [vmem:[%s9471_s7 + $0x980] sm:$0xf] }
  0x6c   : > { %388 = vst [vmem:[%s9475_s8 + $0x164] sm:$0xf] %v387_v25  ;;  %v515_v25 = vld [vmem:[%s9471_s7 + $0x990] sm:$0xf] }
  0x6d   : > { %390 = vst [vmem:[%s9475_s8 + $0x168] sm:$0xf] %v389_v26  ;;  %v517_v26 = vld [vmem:[%s9471_s7 + $0x9a0] sm:$0xf] }
  0x6e   : > { %392 = vst [vmem:[%s9475_s8 + $0x16c] sm:$0xf] %v391_v27  ;;  %v519_v27 = vld [vmem:[%s9471_s7 + $0x9b0] sm:$0xf] }
  0x6f   : > { %394 = vst [vmem:[%s9475_s8 + $0x170] sm:$0xf] %v393_v28  ;;  %v521_v28 = vld [vmem:[%s9471_s7 + $0x9c0] sm:$0xf] }
  0x70   : > { %396 = vst [vmem:[%s9475_s8 + $0x174] sm:$0xf] %v395_v29  ;;  %v523_v29 = vld [vmem:[%s9471_s7 + $0x9d0] sm:$0xf] }
  0x71   : > { %398 = vst [vmem:[%s9475_s8 + $0x178] sm:$0xf] %v397_v30  ;;  %v525_v30 = vld [vmem:[%s9471_s7 + $0x9e0] sm:$0xf] }
  0x72   : > { %400 = vst [vmem:[%s9475_s8 + $0x17c] sm:$0xf] %v399_v31  ;;  %v527_v31 = vld [vmem:[%s9471_s7 + $0x9f0] sm:$0xf] }
  0x73   : > { %402 = vst [vmem:[%s9475_s8 + $0x180] sm:$0xf] %v401_v32  ;;  %v529_v32 = vld [vmem:[%s9471_s7 + $0xa00] sm:$0xf] }
  0x74   : > { %404 = vst [vmem:[%s9475_s8 + $0x184] sm:$0xf] %v403_v33  ;;  %v531_v33 = vld [vmem:[%s9471_s7 + $0xa10] sm:$0xf] }
  0x75   : > { %406 = vst [vmem:[%s9475_s8 + $0x188] sm:$0xf] %v405_v34  ;;  %v533_v34 = vld [vmem:[%s9471_s7 + $0xa20] sm:$0xf] }
  0x76   : > { %408 = vst [vmem:[%s9475_s8 + $0x18c] sm:$0xf] %v407_v35  ;;  %v535_v35 = vld [vmem:[%s9471_s7 + $0xa30] sm:$0xf] }
  0x77   : > { %410 = vst [vmem:[%s9475_s8 + $0x190] sm:$0xf] %v409_v36  ;;  %v537_v36 = vld [vmem:[%s9471_s7 + $0xa40] sm:$0xf] }
  0x78   : > { %412 = vst [vmem:[%s9475_s8 + $0x194] sm:$0xf] %v411_v37  ;;  %v539_v37 = vld [vmem:[%s9471_s7 + $0xa50] sm:$0xf] }
  0x79   : > { %414 = vst [vmem:[%s9475_s8 + $0x198] sm:$0xf] %v413_v38  ;;  %v541_v38 = vld [vmem:[%s9471_s7 + $0xa60] sm:$0xf] }
  0x7a   : > { %416 = vst [vmem:[%s9475_s8 + $0x19c] sm:$0xf] %v415_v39  ;;  %v543_v39 = vld [vmem:[%s9471_s7 + $0xa70] sm:$0xf] }
  0x7b   : > { %418 = vst [vmem:[%s9475_s8 + $0x1a0] sm:$0xf] %v417_v40  ;;  %v545_v40 = vld [vmem:[%s9471_s7 + $0xa80] sm:$0xf] }
  0x7c   : > { %420 = vst [vmem:[%s9475_s8 + $0x1a4] sm:$0xf] %v419_v41  ;;  %v547_v41 = vld [vmem:[%s9471_s7 + $0xa90] sm:$0xf] }
  0x7d   : > { %422 = vst [vmem:[%s9475_s8 + $0x1a8] sm:$0xf] %v421_v42  ;;  %v549_v42 = vld [vmem:[%s9471_s7 + $0xaa0] sm:$0xf] }
  0x7e   : > { %424 = vst [vmem:[%s9475_s8 + $0x1ac] sm:$0xf] %v423_v43  ;;  %v551_v43 = vld [vmem:[%s9471_s7 + $0xab0] sm:$0xf] }
  0x7f   : > { %426 = vst [vmem:[%s9475_s8 + $0x1b0] sm:$0xf] %v425_v44  ;;  %v553_v44 = vld [vmem:[%s9471_s7 + $0xac0] sm:$0xf] }
  0x80   : > { %428 = vst [vmem:[%s9475_s8 + $0x1b4] sm:$0xf] %v427_v45  ;;  %v555_v45 = vld [vmem:[%s9471_s7 + $0xad0] sm:$0xf] }
  0x81   : > { %430 = vst [vmem:[%s9475_s8 + $0x1b8] sm:$0xf] %v429_v46  ;;  %v557_v46 = vld [vmem:[%s9471_s7 + $0xae0] sm:$0xf] }
  0x82   : > { %432 = vst [vmem:[%s9475_s8 + $0x1bc] sm:$0xf] %v431_v47  ;;  %v559_v47 = vld [vmem:[%s9471_s7 + $0xaf0] sm:$0xf] }
  0x83   : > { %434 = vst [vmem:[%s9475_s8 + $0x1c0] sm:$0xf] %v433_v48  ;;  %v561_v48 = vld [vmem:[%s9471_s7 + $0xb00] sm:$0xf] }
  0x84   : > { %436 = vst [vmem:[%s9475_s8 + $0x1c4] sm:$0xf] %v435_v49  ;;  %v563_v49 = vld [vmem:[%s9471_s7 + $0xb10] sm:$0xf] }
  0x85   : > { %438 = vst [vmem:[%s9475_s8 + $0x1c8] sm:$0xf] %v437_v50  ;;  %v565_v50 = vld [vmem:[%s9471_s7 + $0xb20] sm:$0xf] }
  0x86   : > { %440 = vst [vmem:[%s9475_s8 + $0x1cc] sm:$0xf] %v439_v51  ;;  %v567_v51 = vld [vmem:[%s9471_s7 + $0xb30] sm:$0xf] }
  0x87   : > { %442 = vst [vmem:[%s9475_s8 + $0x1d0] sm:$0xf] %v441_v52  ;;  %v569_v52 = vld [vmem:[%s9471_s7 + $0xb40] sm:$0xf] }
  0x88   : > { %444 = vst [vmem:[%s9475_s8 + $0x1d4] sm:$0xf] %v443_v53  ;;  %v571_v53 = vld [vmem:[%s9471_s7 + $0xb50] sm:$0xf] }
  0x89   : > { %446 = vst [vmem:[%s9475_s8 + $0x1d8] sm:$0xf] %v445_v54  ;;  %v573_v54 = vld [vmem:[%s9471_s7 + $0xb60] sm:$0xf] }
  0x8a   : > { %448 = vst [vmem:[%s9475_s8 + $0x1dc] sm:$0xf] %v447_v55  ;;  %v575_v55 = vld [vmem:[%s9471_s7 + $0xb70] sm:$0xf] }
  0x8b   : > { %450 = vst [vmem:[%s9475_s8 + $0x1e0] sm:$0xf] %v449_v56  ;;  %v577_v56 = vld [vmem:[%s9471_s7 + $0xb80] sm:$0xf] }
  0x8c   : > { %452 = vst [vmem:[%s9475_s8 + $0x1e4] sm:$0xf] %v451_v57  ;;  %v579_v57 = vld [vmem:[%s9471_s7 + $0xb90] sm:$0xf] }
  0x8d   : > { %454 = vst [vmem:[%s9475_s8 + $0x1e8] sm:$0xf] %v453_v58  ;;  %v581_v58 = vld [vmem:[%s9471_s7 + $0xba0] sm:$0xf] }
  0x8e   : > { %456 = vst [vmem:[%s9475_s8 + $0x1ec] sm:$0xf] %v455_v59  ;;  %v583_v59 = vld [vmem:[%s9471_s7 + $0xbb0] sm:$0xf] }
  0x8f   : > { %458 = vst [vmem:[%s9475_s8 + $0x1f0] sm:$0xf] %v457_v60  ;;  %v585_v60 = vld [vmem:[%s9471_s7 + $0xbc0] sm:$0xf] }
  0x90   : > { %460 = vst [vmem:[%s9475_s8 + $0x1f4] sm:$0xf] %v459_v61  ;;  %v587_v61 = vld [vmem:[%s9471_s7 + $0xbd0] sm:$0xf] }
  0x91   : > { %462 = vst [vmem:[%s9475_s8 + $0x1f8] sm:$0xf] %v461_v62  ;;  %v589_v62 = vld [vmem:[%s9471_s7 + $0xbe0] sm:$0xf] }
  0x92   : > { %464 = vst [vmem:[%s9475_s8 + $0x1fc] sm:$0xf] %v463_v63  ;;  %v591_v63 = vld [vmem:[%s9471_s7 + $0xbf0] sm:$0xf] }
  0x93   : > { %466 = vst [vmem:[%s9475_s8 + $0x200] sm:$0xf] %v465_v0  ;;  %v593_v0 = vld [vmem:[%s9471_s7 + $0xc00] sm:$0xf] }
  0x94   : > { %468 = vst [vmem:[%s9475_s8 + $0x204] sm:$0xf] %v467_v1  ;;  %v595_v1 = vld [vmem:[%s9471_s7 + $0xc10] sm:$0xf] }
  0x95   : > { %470 = vst [vmem:[%s9475_s8 + $0x208] sm:$0xf] %v469_v2  ;;  %v597_v2 = vld [vmem:[%s9471_s7 + $0xc20] sm:$0xf] }
  0x96   : > { %472 = vst [vmem:[%s9475_s8 + $0x20c] sm:$0xf] %v471_v3  ;;  %v599_v3 = vld [vmem:[%s9471_s7 + $0xc30] sm:$0xf] }
  0x97   : > { %474 = vst [vmem:[%s9475_s8 + $0x210] sm:$0xf] %v473_v4  ;;  %v601_v4 = vld [vmem:[%s9471_s7 + $0xc40] sm:$0xf] }
  0x98   : > { %476 = vst [vmem:[%s9475_s8 + $0x214] sm:$0xf] %v475_v5  ;;  %v603_v5 = vld [vmem:[%s9471_s7 + $0xc50] sm:$0xf] }
  0x99   : > { %478 = vst [vmem:[%s9475_s8 + $0x218] sm:$0xf] %v477_v6  ;;  %v605_v6 = vld [vmem:[%s9471_s7 + $0xc60] sm:$0xf] }
  0x9a   : > { %480 = vst [vmem:[%s9475_s8 + $0x21c] sm:$0xf] %v479_v7  ;;  %v607_v7 = vld [vmem:[%s9471_s7 + $0xc70] sm:$0xf] }
  0x9b   : > { %482 = vst [vmem:[%s9475_s8 + $0x220] sm:$0xf] %v481_v8  ;;  %v609_v8 = vld [vmem:[%s9471_s7 + $0xc80] sm:$0xf] }
  0x9c   : > { %484 = vst [vmem:[%s9475_s8 + $0x224] sm:$0xf] %v483_v9  ;;  %v611_v9 = vld [vmem:[%s9471_s7 + $0xc90] sm:$0xf] }
  0x9d   : > { %486 = vst [vmem:[%s9475_s8 + $0x228] sm:$0xf] %v485_v10  ;;  %v613_v10 = vld [vmem:[%s9471_s7 + $0xca0] sm:$0xf] }
  0x9e   : > { %488 = vst [vmem:[%s9475_s8 + $0x22c] sm:$0xf] %v487_v11  ;;  %v615_v11 = vld [vmem:[%s9471_s7 + $0xcb0] sm:$0xf] }
  0x9f   : > { %490 = vst [vmem:[%s9475_s8 + $0x230] sm:$0xf] %v489_v12  ;;  %v617_v12 = vld [vmem:[%s9471_s7 + $0xcc0] sm:$0xf] }
  0xa0   : > { %492 = vst [vmem:[%s9475_s8 + $0x234] sm:$0xf] %v491_v13  ;;  %v619_v13 = vld [vmem:[%s9471_s7 + $0xcd0] sm:$0xf] }
  0xa1   : > { %494 = vst [vmem:[%s9475_s8 + $0x238] sm:$0xf] %v493_v14  ;;  %v621_v14 = vld [vmem:[%s9471_s7 + $0xce0] sm:$0xf] }
  0xa2   : > { %496 = vst [vmem:[%s9475_s8 + $0x23c] sm:$0xf] %v495_v15  ;;  %v623_v15 = vld [vmem:[%s9471_s7 + $0xcf0] sm:$0xf] }
  0xa3   : > { %498 = vst [vmem:[%s9475_s8 + $0x240] sm:$0xf] %v497_v16  ;;  %v625_v16 = vld [vmem:[%s9471_s7 + $0xd00] sm:$0xf] }
  0xa4   : > { %500 = vst [vmem:[%s9475_s8 + $0x244] sm:$0xf] %v499_v17  ;;  %v627_v17 = vld [vmem:[%s9471_s7 + $0xd10] sm:$0xf] }
  0xa5   : > { %502 = vst [vmem:[%s9475_s8 + $0x248] sm:$0xf] %v501_v18  ;;  %v629_v18 = vld [vmem:[%s9471_s7 + $0xd20] sm:$0xf] }
  0xa6   : > { %504 = vst [vmem:[%s9475_s8 + $0x24c] sm:$0xf] %v503_v19  ;;  %v631_v19 = vld [vmem:[%s9471_s7 + $0xd30] sm:$0xf] }
  0xa7   : > { %506 = vst [vmem:[%s9475_s8 + $0x250] sm:$0xf] %v505_v20  ;;  %v633_v20 = vld [vmem:[%s9471_s7 + $0xd40] sm:$0xf] }
  0xa8   : > { %508 = vst [vmem:[%s9475_s8 + $0x254] sm:$0xf] %v507_v21  ;;  %v635_v21 = vld [vmem:[%s9471_s7 + $0xd50] sm:$0xf] }
  0xa9   : > { %510 = vst [vmem:[%s9475_s8 + $0x258] sm:$0xf] %v509_v22  ;;  %v637_v22 = vld [vmem:[%s9471_s7 + $0xd60] sm:$0xf] }
  0xaa   : > { %512 = vst [vmem:[%s9475_s8 + $0x25c] sm:$0xf] %v511_v23  ;;  %v639_v23 = vld [vmem:[%s9471_s7 + $0xd70] sm:$0xf] }
  0xab   : > { %514 = vst [vmem:[%s9475_s8 + $0x260] sm:$0xf] %v513_v24  ;;  %v641_v24 = vld [vmem:[%s9471_s7 + $0xd80] sm:$0xf] }
  0xac   : > { %516 = vst [vmem:[%s9475_s8 + $0x264] sm:$0xf] %v515_v25  ;;  %v643_v25 = vld [vmem:[%s9471_s7 + $0xd90] sm:$0xf] }
  0xad   : > { %518 = vst [vmem:[%s9475_s8 + $0x268] sm:$0xf] %v517_v26  ;;  %v645_v26 = vld [vmem:[%s9471_s7 + $0xda0] sm:$0xf] }
  0xae   : > { %520 = vst [vmem:[%s9475_s8 + $0x26c] sm:$0xf] %v519_v27  ;;  %v647_v27 = vld [vmem:[%s9471_s7 + $0xdb0] sm:$0xf] }
  0xaf   : > { %522 = vst [vmem:[%s9475_s8 + $0x270] sm:$0xf] %v521_v28  ;;  %v649_v28 = vld [vmem:[%s9471_s7 + $0xdc0] sm:$0xf] }
  0xb0   : > { %524 = vst [vmem:[%s9475_s8 + $0x274] sm:$0xf] %v523_v29  ;;  %v651_v29 = vld [vmem:[%s9471_s7 + $0xdd0] sm:$0xf] }
  0xb1   : > { %526 = vst [vmem:[%s9475_s8 + $0x278] sm:$0xf] %v525_v30  ;;  %v653_v30 = vld [vmem:[%s9471_s7 + $0xde0] sm:$0xf] }
  0xb2   : > { %528 = vst [vmem:[%s9475_s8 + $0x27c] sm:$0xf] %v527_v31  ;;  %v655_v31 = vld [vmem:[%s9471_s7 + $0xdf0] sm:$0xf] }
  0xb3   : > { %530 = vst [vmem:[%s9475_s8 + $0x280] sm:$0xf] %v529_v32  ;;  %v657_v32 = vld [vmem:[%s9471_s7 + $0xe00] sm:$0xf] }
  0xb4   : > { %532 = vst [vmem:[%s9475_s8 + $0x284] sm:$0xf] %v531_v33  ;;  %v659_v33 = vld [vmem:[%s9471_s7 + $0xe10] sm:$0xf] }
  0xb5   : > { %534 = vst [vmem:[%s9475_s8 + $0x288] sm:$0xf] %v533_v34  ;;  %v661_v34 = vld [vmem:[%s9471_s7 + $0xe20] sm:$0xf] }
  0xb6   : > { %536 = vst [vmem:[%s9475_s8 + $0x28c] sm:$0xf] %v535_v35  ;;  %v663_v35 = vld [vmem:[%s9471_s7 + $0xe30] sm:$0xf] }
  0xb7   : > { %538 = vst [vmem:[%s9475_s8 + $0x290] sm:$0xf] %v537_v36  ;;  %v665_v36 = vld [vmem:[%s9471_s7 + $0xe40] sm:$0xf] }
  0xb8   : > { %540 = vst [vmem:[%s9475_s8 + $0x294] sm:$0xf] %v539_v37  ;;  %v667_v37 = vld [vmem:[%s9471_s7 + $0xe50] sm:$0xf] }
  0xb9   : > { %542 = vst [vmem:[%s9475_s8 + $0x298] sm:$0xf] %v541_v38  ;;  %v669_v38 = vld [vmem:[%s9471_s7 + $0xe60] sm:$0xf] }
  0xba   : > { %544 = vst [vmem:[%s9475_s8 + $0x29c] sm:$0xf] %v543_v39  ;;  %v671_v39 = vld [vmem:[%s9471_s7 + $0xe70] sm:$0xf] }
  0xbb   : > { %546 = vst [vmem:[%s9475_s8 + $0x2a0] sm:$0xf] %v545_v40  ;;  %v673_v40 = vld [vmem:[%s9471_s7 + $0xe80] sm:$0xf] }
  0xbc   : > { %548 = vst [vmem:[%s9475_s8 + $0x2a4] sm:$0xf] %v547_v41  ;;  %v675_v41 = vld [vmem:[%s9471_s7 + $0xe90] sm:$0xf] }
  0xbd   : > { %550 = vst [vmem:[%s9475_s8 + $0x2a8] sm:$0xf] %v549_v42  ;;  %v677_v42 = vld [vmem:[%s9471_s7 + $0xea0] sm:$0xf] }
  0xbe   : > { %552 = vst [vmem:[%s9475_s8 + $0x2ac] sm:$0xf] %v551_v43  ;;  %v679_v43 = vld [vmem:[%s9471_s7 + $0xeb0] sm:$0xf] }
  0xbf   : > { %554 = vst [vmem:[%s9475_s8 + $0x2b0] sm:$0xf] %v553_v44  ;;  %v681_v44 = vld [vmem:[%s9471_s7 + $0xec0] sm:$0xf] }
  0xc0   : > { %556 = vst [vmem:[%s9475_s8 + $0x2b4] sm:$0xf] %v555_v45  ;;  %v683_v45 = vld [vmem:[%s9471_s7 + $0xed0] sm:$0xf] }
  0xc1   : > { %558 = vst [vmem:[%s9475_s8 + $0x2b8] sm:$0xf] %v557_v46  ;;  %v685_v46 = vld [vmem:[%s9471_s7 + $0xee0] sm:$0xf] }
  0xc2   : > { %560 = vst [vmem:[%s9475_s8 + $0x2bc] sm:$0xf] %v559_v47  ;;  %v687_v47 = vld [vmem:[%s9471_s7 + $0xef0] sm:$0xf] }
  0xc3   : > { %562 = vst [vmem:[%s9475_s8 + $0x2c0] sm:$0xf] %v561_v48  ;;  %v689_v48 = vld [vmem:[%s9471_s7 + $0xf00] sm:$0xf] }
  0xc4   : > { %564 = vst [vmem:[%s9475_s8 + $0x2c4] sm:$0xf] %v563_v49  ;;  %v691_v49 = vld [vmem:[%s9471_s7 + $0xf10] sm:$0xf] }
  0xc5   : > { %566 = vst [vmem:[%s9475_s8 + $0x2c8] sm:$0xf] %v565_v50  ;;  %v693_v50 = vld [vmem:[%s9471_s7 + $0xf20] sm:$0xf] }
  0xc6   : > { %568 = vst [vmem:[%s9475_s8 + $0x2cc] sm:$0xf] %v567_v51  ;;  %v695_v51 = vld [vmem:[%s9471_s7 + $0xf30] sm:$0xf] }
  0xc7   : > { %570 = vst [vmem:[%s9475_s8 + $0x2d0] sm:$0xf] %v569_v52  ;;  %v697_v52 = vld [vmem:[%s9471_s7 + $0xf40] sm:$0xf] }
  0xc8   : > { %572 = vst [vmem:[%s9475_s8 + $0x2d4] sm:$0xf] %v571_v53  ;;  %v699_v53 = vld [vmem:[%s9471_s7 + $0xf50] sm:$0xf] }
  0xc9   : > { %574 = vst [vmem:[%s9475_s8 + $0x2d8] sm:$0xf] %v573_v54  ;;  %v701_v54 = vld [vmem:[%s9471_s7 + $0xf60] sm:$0xf] }
  0xca   : > { %576 = vst [vmem:[%s9475_s8 + $0x2dc] sm:$0xf] %v575_v55  ;;  %v703_v55 = vld [vmem:[%s9471_s7 + $0xf70] sm:$0xf] }
  0xcb   : > { %578 = vst [vmem:[%s9475_s8 + $0x2e0] sm:$0xf] %v577_v56  ;;  %v705_v56 = vld [vmem:[%s9471_s7 + $0xf80] sm:$0xf] }
  0xcc   : > { %580 = vst [vmem:[%s9475_s8 + $0x2e4] sm:$0xf] %v579_v57  ;;  %v707_v57 = vld [vmem:[%s9471_s7 + $0xf90] sm:$0xf] }
  0xcd   : > { %582 = vst [vmem:[%s9475_s8 + $0x2e8] sm:$0xf] %v581_v58  ;;  %v709_v58 = vld [vmem:[%s9471_s7 + $0xfa0] sm:$0xf] }
  0xce   : > { %584 = vst [vmem:[%s9475_s8 + $0x2ec] sm:$0xf] %v583_v59  ;;  %v711_v59 = vld [vmem:[%s9471_s7 + $0xfb0] sm:$0xf] }
  0xcf   : > { %586 = vst [vmem:[%s9475_s8 + $0x2f0] sm:$0xf] %v585_v60  ;;  %v713_v60 = vld [vmem:[%s9471_s7 + $0xfc0] sm:$0xf] }
  0xd0   : > { %588 = vst [vmem:[%s9475_s8 + $0x2f4] sm:$0xf] %v587_v61  ;;  %v715_v61 = vld [vmem:[%s9471_s7 + $0xfd0] sm:$0xf] }
  0xd1   : > { %590 = vst [vmem:[%s9475_s8 + $0x2f8] sm:$0xf] %v589_v62  ;;  %v717_v62 = vld [vmem:[%s9471_s7 + $0xfe0] sm:$0xf] }
  0xd2   : > { %592 = vst [vmem:[%s9475_s8 + $0x2fc] sm:$0xf] %v591_v63  ;;  %v719_v63 = vld [vmem:[%s9471_s7 + $0xff0] sm:$0xf] }
  0xd3   : > { %594 = vst [vmem:[%s9475_s8 + $0x300] sm:$0xf] %v593_v0  ;;  %v721_v0 = vld [vmem:[%s9471_s7 + $0x1000] sm:$0xf] }
  0xd4   : > { %596 = vst [vmem:[%s9475_s8 + $0x304] sm:$0xf] %v595_v1  ;;  %v723_v1 = vld [vmem:[%s9471_s7 + $0x1010] sm:$0xf] }
  0xd5   : > { %598 = vst [vmem:[%s9475_s8 + $0x308] sm:$0xf] %v597_v2  ;;  %v725_v2 = vld [vmem:[%s9471_s7 + $0x1020] sm:$0xf] }
  0xd6   : > { %600 = vst [vmem:[%s9475_s8 + $0x30c] sm:$0xf] %v599_v3  ;;  %v727_v3 = vld [vmem:[%s9471_s7 + $0x1030] sm:$0xf] }
  0xd7   : > { %602 = vst [vmem:[%s9475_s8 + $0x310] sm:$0xf] %v601_v4  ;;  %v729_v4 = vld [vmem:[%s9471_s7 + $0x1040] sm:$0xf] }
  0xd8   : > { %604 = vst [vmem:[%s9475_s8 + $0x314] sm:$0xf] %v603_v5  ;;  %v731_v5 = vld [vmem:[%s9471_s7 + $0x1050] sm:$0xf] }
  0xd9   : > { %606 = vst [vmem:[%s9475_s8 + $0x318] sm:$0xf] %v605_v6  ;;  %v733_v6 = vld [vmem:[%s9471_s7 + $0x1060] sm:$0xf] }
  0xda   : > { %608 = vst [vmem:[%s9475_s8 + $0x31c] sm:$0xf] %v607_v7  ;;  %v735_v7 = vld [vmem:[%s9471_s7 + $0x1070] sm:$0xf] }
  0xdb   : > { %610 = vst [vmem:[%s9475_s8 + $0x320] sm:$0xf] %v609_v8  ;;  %v737_v8 = vld [vmem:[%s9471_s7 + $0x1080] sm:$0xf] }
  0xdc   : > { %612 = vst [vmem:[%s9475_s8 + $0x324] sm:$0xf] %v611_v9  ;;  %v739_v9 = vld [vmem:[%s9471_s7 + $0x1090] sm:$0xf] }
  0xdd   : > { %614 = vst [vmem:[%s9475_s8 + $0x328] sm:$0xf] %v613_v10  ;;  %v741_v10 = vld [vmem:[%s9471_s7 + $0x10a0] sm:$0xf] }
  0xde   : > { %616 = vst [vmem:[%s9475_s8 + $0x32c] sm:$0xf] %v615_v11  ;;  %v743_v11 = vld [vmem:[%s9471_s7 + $0x10b0] sm:$0xf] }
  0xdf   : > { %618 = vst [vmem:[%s9475_s8 + $0x330] sm:$0xf] %v617_v12  ;;  %v745_v12 = vld [vmem:[%s9471_s7 + $0x10c0] sm:$0xf] }
  0xe0   : > { %620 = vst [vmem:[%s9475_s8 + $0x334] sm:$0xf] %v619_v13  ;;  %v747_v13 = vld [vmem:[%s9471_s7 + $0x10d0] sm:$0xf] }
  0xe1   : > { %622 = vst [vmem:[%s9475_s8 + $0x338] sm:$0xf] %v621_v14  ;;  %v749_v14 = vld [vmem:[%s9471_s7 + $0x10e0] sm:$0xf] }
  0xe2   : > { %624 = vst [vmem:[%s9475_s8 + $0x33c] sm:$0xf] %v623_v15  ;;  %v751_v15 = vld [vmem:[%s9471_s7 + $0x10f0] sm:$0xf] }
  0xe3   : > { %626 = vst [vmem:[%s9475_s8 + $0x340] sm:$0xf] %v625_v16  ;;  %v753_v16 = vld [vmem:[%s9471_s7 + $0x1100] sm:$0xf] }
  0xe4   : > { %628 = vst [vmem:[%s9475_s8 + $0x344] sm:$0xf] %v627_v17  ;;  %v755_v17 = vld [vmem:[%s9471_s7 + $0x1110] sm:$0xf] }
  0xe5   : > { %630 = vst [vmem:[%s9475_s8 + $0x348] sm:$0xf] %v629_v18  ;;  %v757_v18 = vld [vmem:[%s9471_s7 + $0x1120] sm:$0xf] }
  0xe6   : > { %632 = vst [vmem:[%s9475_s8 + $0x34c] sm:$0xf] %v631_v19  ;;  %v759_v19 = vld [vmem:[%s9471_s7 + $0x1130] sm:$0xf] }
  0xe7   : > { %634 = vst [vmem:[%s9475_s8 + $0x350] sm:$0xf] %v633_v20  ;;  %v761_v20 = vld [vmem:[%s9471_s7 + $0x1140] sm:$0xf] }
  0xe8   : > { %636 = vst [vmem:[%s9475_s8 + $0x354] sm:$0xf] %v635_v21  ;;  %v763_v21 = vld [vmem:[%s9471_s7 + $0x1150] sm:$0xf] }
  0xe9   : > { %638 = vst [vmem:[%s9475_s8 + $0x358] sm:$0xf] %v637_v22  ;;  %v765_v22 = vld [vmem:[%s9471_s7 + $0x1160] sm:$0xf] }
  0xea   : > { %640 = vst [vmem:[%s9475_s8 + $0x35c] sm:$0xf] %v639_v23  ;;  %v767_v23 = vld [vmem:[%s9471_s7 + $0x1170] sm:$0xf] }
  0xeb   : > { %642 = vst [vmem:[%s9475_s8 + $0x360] sm:$0xf] %v641_v24  ;;  %v769_v24 = vld [vmem:[%s9471_s7 + $0x1180] sm:$0xf] }
  0xec   : > { %644 = vst [vmem:[%s9475_s8 + $0x364] sm:$0xf] %v643_v25  ;;  %v771_v25 = vld [vmem:[%s9471_s7 + $0x1190] sm:$0xf] }
  0xed   : > { %646 = vst [vmem:[%s9475_s8 + $0x368] sm:$0xf] %v645_v26  ;;  %v773_v26 = vld [vmem:[%s9471_s7 + $0x11a0] sm:$0xf] }
  0xee   : > { %648 = vst [vmem:[%s9475_s8 + $0x36c] sm:$0xf] %v647_v27  ;;  %v775_v27 = vld [vmem:[%s9471_s7 + $0x11b0] sm:$0xf] }
  0xef   : > { %650 = vst [vmem:[%s9475_s8 + $0x370] sm:$0xf] %v649_v28  ;;  %v777_v28 = vld [vmem:[%s9471_s7 + $0x11c0] sm:$0xf] }
  0xf0   : > { %652 = vst [vmem:[%s9475_s8 + $0x374] sm:$0xf] %v651_v29  ;;  %v779_v29 = vld [vmem:[%s9471_s7 + $0x11d0] sm:$0xf] }
  0xf1   : > { %654 = vst [vmem:[%s9475_s8 + $0x378] sm:$0xf] %v653_v30  ;;  %v781_v30 = vld [vmem:[%s9471_s7 + $0x11e0] sm:$0xf] }
  0xf2   : > { %656 = vst [vmem:[%s9475_s8 + $0x37c] sm:$0xf] %v655_v31  ;;  %v783_v31 = vld [vmem:[%s9471_s7 + $0x11f0] sm:$0xf] }
  0xf3   : > { %658 = vst [vmem:[%s9475_s8 + $0x380] sm:$0xf] %v657_v32  ;;  %v785_v32 = vld [vmem:[%s9471_s7 + $0x1200] sm:$0xf] }
  0xf4   : > { %660 = vst [vmem:[%s9475_s8 + $0x384] sm:$0xf] %v659_v33  ;;  %v787_v33 = vld [vmem:[%s9471_s7 + $0x1210] sm:$0xf] }
  0xf5   : > { %662 = vst [vmem:[%s9475_s8 + $0x388] sm:$0xf] %v661_v34  ;;  %v789_v34 = vld [vmem:[%s9471_s7 + $0x1220] sm:$0xf] }
  0xf6   : > { %664 = vst [vmem:[%s9475_s8 + $0x38c] sm:$0xf] %v663_v35  ;;  %v791_v35 = vld [vmem:[%s9471_s7 + $0x1230] sm:$0xf] }
  0xf7   : > { %666 = vst [vmem:[%s9475_s8 + $0x390] sm:$0xf] %v665_v36  ;;  %v793_v36 = vld [vmem:[%s9471_s7 + $0x1240] sm:$0xf] }
  0xf8   : > { %668 = vst [vmem:[%s9475_s8 + $0x394] sm:$0xf] %v667_v37  ;;  %v795_v37 = vld [vmem:[%s9471_s7 + $0x1250] sm:$0xf] }
  0xf9   : > { %670 = vst [vmem:[%s9475_s8 + $0x398] sm:$0xf] %v669_v38  ;;  %v797_v38 = vld [vmem:[%s9471_s7 + $0x1260] sm:$0xf] }
  0xfa   : > { %672 = vst [vmem:[%s9475_s8 + $0x39c] sm:$0xf] %v671_v39  ;;  %v799_v39 = vld [vmem:[%s9471_s7 + $0x1270] sm:$0xf] }
  0xfb   : > { %674 = vst [vmem:[%s9475_s8 + $0x3a0] sm:$0xf] %v673_v40  ;;  %v801_v40 = vld [vmem:[%s9471_s7 + $0x1280] sm:$0xf] }
  0xfc   : > { %676 = vst [vmem:[%s9475_s8 + $0x3a4] sm:$0xf] %v675_v41  ;;  %v803_v41 = vld [vmem:[%s9471_s7 + $0x1290] sm:$0xf] }
  0xfd   : > { %678 = vst [vmem:[%s9475_s8 + $0x3a8] sm:$0xf] %v677_v42  ;;  %v805_v42 = vld [vmem:[%s9471_s7 + $0x12a0] sm:$0xf] }
  0xfe   : > { %680 = vst [vmem:[%s9475_s8 + $0x3ac] sm:$0xf] %v679_v43  ;;  %v807_v43 = vld [vmem:[%s9471_s7 + $0x12b0] sm:$0xf] }
  0xff   : > { %682 = vst [vmem:[%s9475_s8 + $0x3b0] sm:$0xf] %v681_v44  ;;  %v809_v44 = vld [vmem:[%s9471_s7 + $0x12c0] sm:$0xf] }
 0x100   : > { %684 = vst [vmem:[%s9475_s8 + $0x3b4] sm:$0xf] %v683_v45  ;;  %v811_v45 = vld [vmem:[%s9471_s7 + $0x12d0] sm:$0xf] }
 0x101   : > { %686 = vst [vmem:[%s9475_s8 + $0x3b8] sm:$0xf] %v685_v46  ;;  %v813_v46 = vld [vmem:[%s9471_s7 + $0x12e0] sm:$0xf] }
 0x102   : > { %688 = vst [vmem:[%s9475_s8 + $0x3bc] sm:$0xf] %v687_v47  ;;  %v815_v47 = vld [vmem:[%s9471_s7 + $0x12f0] sm:$0xf] }
 0x103   : > { %690 = vst [vmem:[%s9475_s8 + $0x3c0] sm:$0xf] %v689_v48  ;;  %v817_v48 = vld [vmem:[%s9471_s7 + $0x1300] sm:$0xf] }
 0x104   : > { %692 = vst [vmem:[%s9475_s8 + $0x3c4] sm:$0xf] %v691_v49  ;;  %v819_v49 = vld [vmem:[%s9471_s7 + $0x1310] sm:$0xf] }
 0x105   : > { %694 = vst [vmem:[%s9475_s8 + $0x3c8] sm:$0xf] %v693_v50  ;;  %v821_v50 = vld [vmem:[%s9471_s7 + $0x1320] sm:$0xf] }
 0x106   : > { %696 = vst [vmem:[%s9475_s8 + $0x3cc] sm:$0xf] %v695_v51  ;;  %v823_v51 = vld [vmem:[%s9471_s7 + $0x1330] sm:$0xf] }
 0x107   : > { %698 = vst [vmem:[%s9475_s8 + $0x3d0] sm:$0xf] %v697_v52  ;;  %v825_v52 = vld [vmem:[%s9471_s7 + $0x1340] sm:$0xf] }
 0x108   : > { %700 = vst [vmem:[%s9475_s8 + $0x3d4] sm:$0xf] %v699_v53  ;;  %v827_v53 = vld [vmem:[%s9471_s7 + $0x1350] sm:$0xf] }
 0x109   : > { %702 = vst [vmem:[%s9475_s8 + $0x3d8] sm:$0xf] %v701_v54  ;;  %v829_v54 = vld [vmem:[%s9471_s7 + $0x1360] sm:$0xf] }
 0x10a   : > { %704 = vst [vmem:[%s9475_s8 + $0x3dc] sm:$0xf] %v703_v55  ;;  %v831_v55 = vld [vmem:[%s9471_s7 + $0x1370] sm:$0xf] }
 0x10b   : > { %706 = vst [vmem:[%s9475_s8 + $0x3e0] sm:$0xf] %v705_v56  ;;  %v833_v56 = vld [vmem:[%s9471_s7 + $0x1380] sm:$0xf] }
 0x10c   : > { %708 = vst [vmem:[%s9475_s8 + $0x3e4] sm:$0xf] %v707_v57  ;;  %v835_v57 = vld [vmem:[%s9471_s7 + $0x1390] sm:$0xf] }
 0x10d   : > { %710 = vst [vmem:[%s9475_s8 + $0x3e8] sm:$0xf] %v709_v58  ;;  %v837_v58 = vld [vmem:[%s9471_s7 + $0x13a0] sm:$0xf] }
 0x10e   : > { %712 = vst [vmem:[%s9475_s8 + $0x3ec] sm:$0xf] %v711_v59  ;;  %v839_v59 = vld [vmem:[%s9471_s7 + $0x13b0] sm:$0xf] }
 0x10f   : > { %714 = vst [vmem:[%s9475_s8 + $0x3f0] sm:$0xf] %v713_v60  ;;  %v841_v60 = vld [vmem:[%s9471_s7 + $0x13c0] sm:$0xf] }
 0x110   : > { %716 = vst [vmem:[%s9475_s8 + $0x3f4] sm:$0xf] %v715_v61  ;;  %v843_v61 = vld [vmem:[%s9471_s7 + $0x13d0] sm:$0xf] }
 0x111   : > { %718 = vst [vmem:[%s9475_s8 + $0x3f8] sm:$0xf] %v717_v62  ;;  %v845_v62 = vld [vmem:[%s9471_s7 + $0x13e0] sm:$0xf] }
 0x112   : > { %720 = vst [vmem:[%s9475_s8 + $0x3fc] sm:$0xf] %v719_v63  ;;  %v847_v63 = vld [vmem:[%s9471_s7 + $0x13f0] sm:$0xf] }
 0x113   : > { %722 = vst [vmem:[%s9475_s8 + $0x400] sm:$0xf] %v721_v0  ;;  %v849_v0 = vld [vmem:[%s9471_s7 + $0x1400] sm:$0xf] }
 0x114   : > { %724 = vst [vmem:[%s9475_s8 + $0x404] sm:$0xf] %v723_v1  ;;  %v851_v1 = vld [vmem:[%s9471_s7 + $0x1410] sm:$0xf] }
 0x115   : > { %726 = vst [vmem:[%s9475_s8 + $0x408] sm:$0xf] %v725_v2  ;;  %v853_v2 = vld [vmem:[%s9471_s7 + $0x1420] sm:$0xf] }
 0x116   : > { %728 = vst [vmem:[%s9475_s8 + $0x40c] sm:$0xf] %v727_v3  ;;  %v855_v3 = vld [vmem:[%s9471_s7 + $0x1430] sm:$0xf] }
 0x117   : > { %730 = vst [vmem:[%s9475_s8 + $0x410] sm:$0xf] %v729_v4  ;;  %v857_v4 = vld [vmem:[%s9471_s7 + $0x1440] sm:$0xf] }
 0x118   : > { %732 = vst [vmem:[%s9475_s8 + $0x414] sm:$0xf] %v731_v5  ;;  %v859_v5 = vld [vmem:[%s9471_s7 + $0x1450] sm:$0xf] }
 0x119   : > { %734 = vst [vmem:[%s9475_s8 + $0x418] sm:$0xf] %v733_v6  ;;  %v861_v6 = vld [vmem:[%s9471_s7 + $0x1460] sm:$0xf] }
 0x11a   : > { %736 = vst [vmem:[%s9475_s8 + $0x41c] sm:$0xf] %v735_v7  ;;  %v863_v7 = vld [vmem:[%s9471_s7 + $0x1470] sm:$0xf] }
 0x11b   : > { %738 = vst [vmem:[%s9475_s8 + $0x420] sm:$0xf] %v737_v8  ;;  %v865_v8 = vld [vmem:[%s9471_s7 + $0x1480] sm:$0xf] }
 0x11c   : > { %740 = vst [vmem:[%s9475_s8 + $0x424] sm:$0xf] %v739_v9  ;;  %v867_v9 = vld [vmem:[%s9471_s7 + $0x1490] sm:$0xf] }
 0x11d   : > { %742 = vst [vmem:[%s9475_s8 + $0x428] sm:$0xf] %v741_v10  ;;  %v869_v10 = vld [vmem:[%s9471_s7 + $0x14a0] sm:$0xf] }
 0x11e   : > { %744 = vst [vmem:[%s9475_s8 + $0x42c] sm:$0xf] %v743_v11  ;;  %v871_v11 = vld [vmem:[%s9471_s7 + $0x14b0] sm:$0xf] }
 0x11f   : > { %746 = vst [vmem:[%s9475_s8 + $0x430] sm:$0xf] %v745_v12  ;;  %v873_v12 = vld [vmem:[%s9471_s7 + $0x14c0] sm:$0xf] }
 0x120   : > { %748 = vst [vmem:[%s9475_s8 + $0x434] sm:$0xf] %v747_v13  ;;  %v875_v13 = vld [vmem:[%s9471_s7 + $0x14d0] sm:$0xf] }
 0x121   : > { %750 = vst [vmem:[%s9475_s8 + $0x438] sm:$0xf] %v749_v14  ;;  %v877_v14 = vld [vmem:[%s9471_s7 + $0x14e0] sm:$0xf] }
 0x122   : > { %752 = vst [vmem:[%s9475_s8 + $0x43c] sm:$0xf] %v751_v15  ;;  %v879_v15 = vld [vmem:[%s9471_s7 + $0x14f0] sm:$0xf] }
 0x123   : > { %754 = vst [vmem:[%s9475_s8 + $0x440] sm:$0xf] %v753_v16  ;;  %v881_v16 = vld [vmem:[%s9471_s7 + $0x1500] sm:$0xf] }
 0x124   : > { %756 = vst [vmem:[%s9475_s8 + $0x444] sm:$0xf] %v755_v17  ;;  %v883_v17 = vld [vmem:[%s9471_s7 + $0x1510] sm:$0xf] }
 0x125   : > { %758 = vst [vmem:[%s9475_s8 + $0x448] sm:$0xf] %v757_v18  ;;  %v885_v18 = vld [vmem:[%s9471_s7 + $0x1520] sm:$0xf] }
 0x126   : > { %760 = vst [vmem:[%s9475_s8 + $0x44c] sm:$0xf] %v759_v19  ;;  %v887_v19 = vld [vmem:[%s9471_s7 + $0x1530] sm:$0xf] }
 0x127   : > { %762 = vst [vmem:[%s9475_s8 + $0x450] sm:$0xf] %v761_v20  ;;  %v889_v20 = vld [vmem:[%s9471_s7 + $0x1540] sm:$0xf] }
 0x128   : > { %764 = vst [vmem:[%s9475_s8 + $0x454] sm:$0xf] %v763_v21  ;;  %v891_v21 = vld [vmem:[%s9471_s7 + $0x1550] sm:$0xf] }
 0x129   : > { %766 = vst [vmem:[%s9475_s8 + $0x458] sm:$0xf] %v765_v22  ;;  %v893_v22 = vld [vmem:[%s9471_s7 + $0x1560] sm:$0xf] }
 0x12a   : > { %768 = vst [vmem:[%s9475_s8 + $0x45c] sm:$0xf] %v767_v23  ;;  %v895_v23 = vld [vmem:[%s9471_s7 + $0x1570] sm:$0xf] }
 0x12b   : > { %770 = vst [vmem:[%s9475_s8 + $0x460] sm:$0xf] %v769_v24  ;;  %v897_v24 = vld [vmem:[%s9471_s7 + $0x1580] sm:$0xf] }
 0x12c   : > { %772 = vst [vmem:[%s9475_s8 + $0x464] sm:$0xf] %v771_v25  ;;  %v899_v25 = vld [vmem:[%s9471_s7 + $0x1590] sm:$0xf] }
 0x12d   : > { %774 = vst [vmem:[%s9475_s8 + $0x468] sm:$0xf] %v773_v26  ;;  %v901_v26 = vld [vmem:[%s9471_s7 + $0x15a0] sm:$0xf] }
 0x12e   : > { %776 = vst [vmem:[%s9475_s8 + $0x46c] sm:$0xf] %v775_v27  ;;  %v903_v27 = vld [vmem:[%s9471_s7 + $0x15b0] sm:$0xf] }
 0x12f   : > { %778 = vst [vmem:[%s9475_s8 + $0x470] sm:$0xf] %v777_v28  ;;  %v905_v28 = vld [vmem:[%s9471_s7 + $0x15c0] sm:$0xf] }
 0x130   : > { %780 = vst [vmem:[%s9475_s8 + $0x474] sm:$0xf] %v779_v29  ;;  %v907_v29 = vld [vmem:[%s9471_s7 + $0x15d0] sm:$0xf] }
 0x131   : > { %782 = vst [vmem:[%s9475_s8 + $0x478] sm:$0xf] %v781_v30  ;;  %v909_v30 = vld [vmem:[%s9471_s7 + $0x15e0] sm:$0xf] }
 0x132   : > { %784 = vst [vmem:[%s9475_s8 + $0x47c] sm:$0xf] %v783_v31  ;;  %v911_v31 = vld [vmem:[%s9471_s7 + $0x15f0] sm:$0xf] }
 0x133   : > { %786 = vst [vmem:[%s9475_s8 + $0x480] sm:$0xf] %v785_v32  ;;  %v913_v32 = vld [vmem:[%s9471_s7 + $0x1600] sm:$0xf] }
 0x134   : > { %788 = vst [vmem:[%s9475_s8 + $0x484] sm:$0xf] %v787_v33  ;;  %v915_v33 = vld [vmem:[%s9471_s7 + $0x1610] sm:$0xf] }
 0x135   : > { %790 = vst [vmem:[%s9475_s8 + $0x488] sm:$0xf] %v789_v34  ;;  %v917_v34 = vld [vmem:[%s9471_s7 + $0x1620] sm:$0xf] }
 0x136   : > { %792 = vst [vmem:[%s9475_s8 + $0x48c] sm:$0xf] %v791_v35  ;;  %v919_v35 = vld [vmem:[%s9471_s7 + $0x1630] sm:$0xf] }
 0x137   : > { %794 = vst [vmem:[%s9475_s8 + $0x490] sm:$0xf] %v793_v36  ;;  %v921_v36 = vld [vmem:[%s9471_s7 + $0x1640] sm:$0xf] }
 0x138   : > { %796 = vst [vmem:[%s9475_s8 + $0x494] sm:$0xf] %v795_v37  ;;  %v923_v37 = vld [vmem:[%s9471_s7 + $0x1650] sm:$0xf] }
 0x139   : > { %798 = vst [vmem:[%s9475_s8 + $0x498] sm:$0xf] %v797_v38  ;;  %v925_v38 = vld [vmem:[%s9471_s7 + $0x1660] sm:$0xf] }
 0x13a   : > { %800 = vst [vmem:[%s9475_s8 + $0x49c] sm:$0xf] %v799_v39  ;;  %v927_v39 = vld [vmem:[%s9471_s7 + $0x1670] sm:$0xf] }
 0x13b   : > { %802 = vst [vmem:[%s9475_s8 + $0x4a0] sm:$0xf] %v801_v40  ;;  %v929_v40 = vld [vmem:[%s9471_s7 + $0x1680] sm:$0xf] }
 0x13c   : > { %804 = vst [vmem:[%s9475_s8 + $0x4a4] sm:$0xf] %v803_v41  ;;  %v931_v41 = vld [vmem:[%s9471_s7 + $0x1690] sm:$0xf] }
 0x13d   : > { %806 = vst [vmem:[%s9475_s8 + $0x4a8] sm:$0xf] %v805_v42  ;;  %v933_v42 = vld [vmem:[%s9471_s7 + $0x16a0] sm:$0xf] }
 0x13e   : > { %808 = vst [vmem:[%s9475_s8 + $0x4ac] sm:$0xf] %v807_v43  ;;  %v935_v43 = vld [vmem:[%s9471_s7 + $0x16b0] sm:$0xf] }
 0x13f   : > { %810 = vst [vmem:[%s9475_s8 + $0x4b0] sm:$0xf] %v809_v44  ;;  %v937_v44 = vld [vmem:[%s9471_s7 + $0x16c0] sm:$0xf] }
 0x140   : > { %812 = vst [vmem:[%s9475_s8 + $0x4b4] sm:$0xf] %v811_v45  ;;  %v939_v45 = vld [vmem:[%s9471_s7 + $0x16d0] sm:$0xf] }
 0x141   : > { %814 = vst [vmem:[%s9475_s8 + $0x4b8] sm:$0xf] %v813_v46  ;;  %v941_v46 = vld [vmem:[%s9471_s7 + $0x16e0] sm:$0xf] }
 0x142   : > { %816 = vst [vmem:[%s9475_s8 + $0x4bc] sm:$0xf] %v815_v47  ;;  %v943_v47 = vld [vmem:[%s9471_s7 + $0x16f0] sm:$0xf] }
 0x143   : > { %818 = vst [vmem:[%s9475_s8 + $0x4c0] sm:$0xf] %v817_v48  ;;  %v945_v48 = vld [vmem:[%s9471_s7 + $0x1700] sm:$0xf] }
 0x144   : > { %820 = vst [vmem:[%s9475_s8 + $0x4c4] sm:$0xf] %v819_v49  ;;  %v947_v49 = vld [vmem:[%s9471_s7 + $0x1710] sm:$0xf] }
 0x145   : > { %822 = vst [vmem:[%s9475_s8 + $0x4c8] sm:$0xf] %v821_v50  ;;  %v949_v50 = vld [vmem:[%s9471_s7 + $0x1720] sm:$0xf] }
 0x146   : > { %824 = vst [vmem:[%s9475_s8 + $0x4cc] sm:$0xf] %v823_v51  ;;  %v951_v51 = vld [vmem:[%s9471_s7 + $0x1730] sm:$0xf] }
 0x147   : > { %826 = vst [vmem:[%s9475_s8 + $0x4d0] sm:$0xf] %v825_v52  ;;  %v953_v52 = vld [vmem:[%s9471_s7 + $0x1740] sm:$0xf] }
 0x148   : > { %828 = vst [vmem:[%s9475_s8 + $0x4d4] sm:$0xf] %v827_v53  ;;  %v955_v53 = vld [vmem:[%s9471_s7 + $0x1750] sm:$0xf] }
 0x149   : > { %830 = vst [vmem:[%s9475_s8 + $0x4d8] sm:$0xf] %v829_v54  ;;  %v957_v54 = vld [vmem:[%s9471_s7 + $0x1760] sm:$0xf] }
 0x14a   : > { %832 = vst [vmem:[%s9475_s8 + $0x4dc] sm:$0xf] %v831_v55  ;;  %v959_v55 = vld [vmem:[%s9471_s7 + $0x1770] sm:$0xf] }
 0x14b   : > { %834 = vst [vmem:[%s9475_s8 + $0x4e0] sm:$0xf] %v833_v56  ;;  %v961_v56 = vld [vmem:[%s9471_s7 + $0x1780] sm:$0xf] }
 0x14c   : > { %836 = vst [vmem:[%s9475_s8 + $0x4e4] sm:$0xf] %v835_v57  ;;  %v963_v57 = vld [vmem:[%s9471_s7 + $0x1790] sm:$0xf] }
 0x14d   : > { %838 = vst [vmem:[%s9475_s8 + $0x4e8] sm:$0xf] %v837_v58  ;;  %v965_v58 = vld [vmem:[%s9471_s7 + $0x17a0] sm:$0xf] }
 0x14e   : > { %840 = vst [vmem:[%s9475_s8 + $0x4ec] sm:$0xf] %v839_v59  ;;  %v967_v59 = vld [vmem:[%s9471_s7 + $0x17b0] sm:$0xf] }
 0x14f   : > { %842 = vst [vmem:[%s9475_s8 + $0x4f0] sm:$0xf] %v841_v60  ;;  %v969_v60 = vld [vmem:[%s9471_s7 + $0x17c0] sm:$0xf] }
 0x150   : > { %844 = vst [vmem:[%s9475_s8 + $0x4f4] sm:$0xf] %v843_v61  ;;  %v971_v61 = vld [vmem:[%s9471_s7 + $0x17d0] sm:$0xf] }
 0x151   : > { %846 = vst [vmem:[%s9475_s8 + $0x4f8] sm:$0xf] %v845_v62  ;;  %v973_v62 = vld [vmem:[%s9471_s7 + $0x17e0] sm:$0xf] }
 0x152   : > { %848 = vst [vmem:[%s9475_s8 + $0x4fc] sm:$0xf] %v847_v63  ;;  %v975_v63 = vld [vmem:[%s9471_s7 + $0x17f0] sm:$0xf] }
 0x153   : > { %850 = vst [vmem:[%s9475_s8 + $0x500] sm:$0xf] %v849_v0  ;;  %v977_v0 = vld [vmem:[%s9471_s7 + $0x1800] sm:$0xf] }
 0x154   : > { %852 = vst [vmem:[%s9475_s8 + $0x504] sm:$0xf] %v851_v1  ;;  %v979_v1 = vld [vmem:[%s9471_s7 + $0x1810] sm:$0xf] }
 0x155   : > { %854 = vst [vmem:[%s9475_s8 + $0x508] sm:$0xf] %v853_v2  ;;  %v981_v2 = vld [vmem:[%s9471_s7 + $0x1820] sm:$0xf] }
 0x156   : > { %856 = vst [vmem:[%s9475_s8 + $0x50c] sm:$0xf] %v855_v3  ;;  %v983_v3 = vld [vmem:[%s9471_s7 + $0x1830] sm:$0xf] }
 0x157   : > { %858 = vst [vmem:[%s9475_s8 + $0x510] sm:$0xf] %v857_v4  ;;  %v985_v4 = vld [vmem:[%s9471_s7 + $0x1840] sm:$0xf] }
 0x158   : > { %860 = vst [vmem:[%s9475_s8 + $0x514] sm:$0xf] %v859_v5  ;;  %v987_v5 = vld [vmem:[%s9471_s7 + $0x1850] sm:$0xf] }
 0x159   : > { %862 = vst [vmem:[%s9475_s8 + $0x518] sm:$0xf] %v861_v6  ;;  %v989_v6 = vld [vmem:[%s9471_s7 + $0x1860] sm:$0xf] }
 0x15a   : > { %864 = vst [vmem:[%s9475_s8 + $0x51c] sm:$0xf] %v863_v7  ;;  %v991_v7 = vld [vmem:[%s9471_s7 + $0x1870] sm:$0xf] }
 0x15b   : > { %866 = vst [vmem:[%s9475_s8 + $0x520] sm:$0xf] %v865_v8  ;;  %v993_v8 = vld [vmem:[%s9471_s7 + $0x1880] sm:$0xf] }
 0x15c   : > { %868 = vst [vmem:[%s9475_s8 + $0x524] sm:$0xf] %v867_v9  ;;  %v995_v9 = vld [vmem:[%s9471_s7 + $0x1890] sm:$0xf] }
 0x15d   : > { %870 = vst [vmem:[%s9475_s8 + $0x528] sm:$0xf] %v869_v10  ;;  %v997_v10 = vld [vmem:[%s9471_s7 + $0x18a0] sm:$0xf] }
 0x15e   : > { %872 = vst [vmem:[%s9475_s8 + $0x52c] sm:$0xf] %v871_v11  ;;  %v999_v11 = vld [vmem:[%s9471_s7 + $0x18b0] sm:$0xf] }
 0x15f   : > { %874 = vst [vmem:[%s9475_s8 + $0x530] sm:$0xf] %v873_v12  ;;  %v1001_v12 = vld [vmem:[%s9471_s7 + $0x18c0] sm:$0xf] }
 0x160   : > { %876 = vst [vmem:[%s9475_s8 + $0x534] sm:$0xf] %v875_v13  ;;  %v1003_v13 = vld [vmem:[%s9471_s7 + $0x18d0] sm:$0xf] }
 0x161   : > { %878 = vst [vmem:[%s9475_s8 + $0x538] sm:$0xf] %v877_v14  ;;  %v1005_v14 = vld [vmem:[%s9471_s7 + $0x18e0] sm:$0xf] }
 0x162   : > { %880 = vst [vmem:[%s9475_s8 + $0x53c] sm:$0xf] %v879_v15  ;;  %v1007_v15 = vld [vmem:[%s9471_s7 + $0x18f0] sm:$0xf] }
 0x163   : > { %882 = vst [vmem:[%s9475_s8 + $0x540] sm:$0xf] %v881_v16  ;;  %v1009_v16 = vld [vmem:[%s9471_s7 + $0x1900] sm:$0xf] }
 0x164   : > { %884 = vst [vmem:[%s9475_s8 + $0x544] sm:$0xf] %v883_v17  ;;  %v1011_v17 = vld [vmem:[%s9471_s7 + $0x1910] sm:$0xf] }
 0x165   : > { %886 = vst [vmem:[%s9475_s8 + $0x548] sm:$0xf] %v885_v18  ;;  %v1013_v18 = vld [vmem:[%s9471_s7 + $0x1920] sm:$0xf] }
 0x166   : > { %888 = vst [vmem:[%s9475_s8 + $0x54c] sm:$0xf] %v887_v19  ;;  %v1015_v19 = vld [vmem:[%s9471_s7 + $0x1930] sm:$0xf] }
 0x167   : > { %890 = vst [vmem:[%s9475_s8 + $0x550] sm:$0xf] %v889_v20  ;;  %v1017_v20 = vld [vmem:[%s9471_s7 + $0x1940] sm:$0xf] }
 0x168   : > { %892 = vst [vmem:[%s9475_s8 + $0x554] sm:$0xf] %v891_v21  ;;  %v1019_v21 = vld [vmem:[%s9471_s7 + $0x1950] sm:$0xf] }
 0x169   : > { %894 = vst [vmem:[%s9475_s8 + $0x558] sm:$0xf] %v893_v22  ;;  %v1021_v22 = vld [vmem:[%s9471_s7 + $0x1960] sm:$0xf] }
 0x16a   : > { %896 = vst [vmem:[%s9475_s8 + $0x55c] sm:$0xf] %v895_v23  ;;  %v1023_v23 = vld [vmem:[%s9471_s7 + $0x1970] sm:$0xf] }
 0x16b   : > { %898 = vst [vmem:[%s9475_s8 + $0x560] sm:$0xf] %v897_v24  ;;  %v1025_v24 = vld [vmem:[%s9471_s7 + $0x1980] sm:$0xf] }
 0x16c   : > { %900 = vst [vmem:[%s9475_s8 + $0x564] sm:$0xf] %v899_v25  ;;  %v1027_v25 = vld [vmem:[%s9471_s7 + $0x1990] sm:$0xf] }
 0x16d   : > { %902 = vst [vmem:[%s9475_s8 + $0x568] sm:$0xf] %v901_v26  ;;  %v1029_v26 = vld [vmem:[%s9471_s7 + $0x19a0] sm:$0xf] }
 0x16e   : > { %904 = vst [vmem:[%s9475_s8 + $0x56c] sm:$0xf] %v903_v27  ;;  %v1031_v27 = vld [vmem:[%s9471_s7 + $0x19b0] sm:$0xf] }
 0x16f   : > { %906 = vst [vmem:[%s9475_s8 + $0x570] sm:$0xf] %v905_v28  ;;  %v1033_v28 = vld [vmem:[%s9471_s7 + $0x19c0] sm:$0xf] }
 0x170   : > { %908 = vst [vmem:[%s9475_s8 + $0x574] sm:$0xf] %v907_v29  ;;  %v1035_v29 = vld [vmem:[%s9471_s7 + $0x19d0] sm:$0xf] }
 0x171   : > { %910 = vst [vmem:[%s9475_s8 + $0x578] sm:$0xf] %v909_v30  ;;  %v1037_v30 = vld [vmem:[%s9471_s7 + $0x19e0] sm:$0xf] }
 0x172   : > { %912 = vst [vmem:[%s9475_s8 + $0x57c] sm:$0xf] %v911_v31  ;;  %v1039_v31 = vld [vmem:[%s9471_s7 + $0x19f0] sm:$0xf] }
 0x173   : > { %914 = vst [vmem:[%s9475_s8 + $0x580] sm:$0xf] %v913_v32  ;;  %v1041_v32 = vld [vmem:[%s9471_s7 + $0x1a00] sm:$0xf] }
 0x174   : > { %916 = vst [vmem:[%s9475_s8 + $0x584] sm:$0xf] %v915_v33  ;;  %v1043_v33 = vld [vmem:[%s9471_s7 + $0x1a10] sm:$0xf] }
 0x175   : > { %918 = vst [vmem:[%s9475_s8 + $0x588] sm:$0xf] %v917_v34  ;;  %v1045_v34 = vld [vmem:[%s9471_s7 + $0x1a20] sm:$0xf] }
 0x176   : > { %920 = vst [vmem:[%s9475_s8 + $0x58c] sm:$0xf] %v919_v35  ;;  %v1047_v35 = vld [vmem:[%s9471_s7 + $0x1a30] sm:$0xf] }
 0x177   : > { %922 = vst [vmem:[%s9475_s8 + $0x590] sm:$0xf] %v921_v36  ;;  %v1049_v36 = vld [vmem:[%s9471_s7 + $0x1a40] sm:$0xf] }
 0x178   : > { %924 = vst [vmem:[%s9475_s8 + $0x594] sm:$0xf] %v923_v37  ;;  %v1051_v37 = vld [vmem:[%s9471_s7 + $0x1a50] sm:$0xf] }
 0x179   : > { %926 = vst [vmem:[%s9475_s8 + $0x598] sm:$0xf] %v925_v38  ;;  %v1053_v38 = vld [vmem:[%s9471_s7 + $0x1a60] sm:$0xf] }
 0x17a   : > { %928 = vst [vmem:[%s9475_s8 + $0x59c] sm:$0xf] %v927_v39  ;;  %v1055_v39 = vld [vmem:[%s9471_s7 + $0x1a70] sm:$0xf] }
 0x17b   : > { %930 = vst [vmem:[%s9475_s8 + $0x5a0] sm:$0xf] %v929_v40  ;;  %v1057_v40 = vld [vmem:[%s9471_s7 + $0x1a80] sm:$0xf] }
 0x17c   : > { %932 = vst [vmem:[%s9475_s8 + $0x5a4] sm:$0xf] %v931_v41  ;;  %v1059_v41 = vld [vmem:[%s9471_s7 + $0x1a90] sm:$0xf] }
 0x17d   : > { %934 = vst [vmem:[%s9475_s8 + $0x5a8] sm:$0xf] %v933_v42  ;;  %v1061_v42 = vld [vmem:[%s9471_s7 + $0x1aa0] sm:$0xf] }
 0x17e   : > { %936 = vst [vmem:[%s9475_s8 + $0x5ac] sm:$0xf] %v935_v43  ;;  %v1063_v43 = vld [vmem:[%s9471_s7 + $0x1ab0] sm:$0xf] }
 0x17f   : > { %938 = vst [vmem:[%s9475_s8 + $0x5b0] sm:$0xf] %v937_v44  ;;  %v1065_v44 = vld [vmem:[%s9471_s7 + $0x1ac0] sm:$0xf] }
 0x180   : > { %940 = vst [vmem:[%s9475_s8 + $0x5b4] sm:$0xf] %v939_v45  ;;  %v1067_v45 = vld [vmem:[%s9471_s7 + $0x1ad0] sm:$0xf] }
 0x181   : > { %942 = vst [vmem:[%s9475_s8 + $0x5b8] sm:$0xf] %v941_v46  ;;  %v1069_v46 = vld [vmem:[%s9471_s7 + $0x1ae0] sm:$0xf] }
 0x182   : > { %944 = vst [vmem:[%s9475_s8 + $0x5bc] sm:$0xf] %v943_v47  ;;  %v1071_v47 = vld [vmem:[%s9471_s7 + $0x1af0] sm:$0xf] }
 0x183   : > { %946 = vst [vmem:[%s9475_s8 + $0x5c0] sm:$0xf] %v945_v48  ;;  %v1073_v48 = vld [vmem:[%s9471_s7 + $0x1b00] sm:$0xf] }
 0x184   : > { %948 = vst [vmem:[%s9475_s8 + $0x5c4] sm:$0xf] %v947_v49  ;;  %v1075_v49 = vld [vmem:[%s9471_s7 + $0x1b10] sm:$0xf] }
 0x185   : > { %950 = vst [vmem:[%s9475_s8 + $0x5c8] sm:$0xf] %v949_v50  ;;  %v1077_v50 = vld [vmem:[%s9471_s7 + $0x1b20] sm:$0xf] }
 0x186   : > { %952 = vst [vmem:[%s9475_s8 + $0x5cc] sm:$0xf] %v951_v51  ;;  %v1079_v51 = vld [vmem:[%s9471_s7 + $0x1b30] sm:$0xf] }
 0x187   : > { %954 = vst [vmem:[%s9475_s8 + $0x5d0] sm:$0xf] %v953_v52  ;;  %v1081_v52 = vld [vmem:[%s9471_s7 + $0x1b40] sm:$0xf] }
 0x188   : > { %956 = vst [vmem:[%s9475_s8 + $0x5d4] sm:$0xf] %v955_v53  ;;  %v1083_v53 = vld [vmem:[%s9471_s7 + $0x1b50] sm:$0xf] }
 0x189   : > { %958 = vst [vmem:[%s9475_s8 + $0x5d8] sm:$0xf] %v957_v54  ;;  %v1085_v54 = vld [vmem:[%s9471_s7 + $0x1b60] sm:$0xf] }
 0x18a   : > { %960 = vst [vmem:[%s9475_s8 + $0x5dc] sm:$0xf] %v959_v55  ;;  %v1087_v55 = vld [vmem:[%s9471_s7 + $0x1b70] sm:$0xf] }
 0x18b   : > { %962 = vst [vmem:[%s9475_s8 + $0x5e0] sm:$0xf] %v961_v56  ;;  %v1089_v56 = vld [vmem:[%s9471_s7 + $0x1b80] sm:$0xf] }
 0x18c   : > { %964 = vst [vmem:[%s9475_s8 + $0x5e4] sm:$0xf] %v963_v57  ;;  %v1091_v57 = vld [vmem:[%s9471_s7 + $0x1b90] sm:$0xf] }
 0x18d   : > { %966 = vst [vmem:[%s9475_s8 + $0x5e8] sm:$0xf] %v965_v58  ;;  %v1093_v58 = vld [vmem:[%s9471_s7 + $0x1ba0] sm:$0xf] }
 0x18e   : > { %968 = vst [vmem:[%s9475_s8 + $0x5ec] sm:$0xf] %v967_v59  ;;  %v1095_v59 = vld [vmem:[%s9471_s7 + $0x1bb0] sm:$0xf] }
 0x18f   : > { %970 = vst [vmem:[%s9475_s8 + $0x5f0] sm:$0xf] %v969_v60  ;;  %v1097_v60 = vld [vmem:[%s9471_s7 + $0x1bc0] sm:$0xf] }
 0x190   : > { %972 = vst [vmem:[%s9475_s8 + $0x5f4] sm:$0xf] %v971_v61  ;;  %v1099_v61 = vld [vmem:[%s9471_s7 + $0x1bd0] sm:$0xf] }
 0x191   : > { %974 = vst [vmem:[%s9475_s8 + $0x5f8] sm:$0xf] %v973_v62  ;;  %v1101_v62 = vld [vmem:[%s9471_s7 + $0x1be0] sm:$0xf] }
 0x192   : > { %976 = vst [vmem:[%s9475_s8 + $0x5fc] sm:$0xf] %v975_v63  ;;  %v1103_v63 = vld [vmem:[%s9471_s7 + $0x1bf0] sm:$0xf] }
 0x193   : > { %978 = vst [vmem:[%s9475_s8 + $0x600] sm:$0xf] %v977_v0  ;;  %v1105_v0 = vld [vmem:[%s9471_s7 + $0x1c00] sm:$0xf] }
 0x194   : > { %980 = vst [vmem:[%s9475_s8 + $0x604] sm:$0xf] %v979_v1  ;;  %v1107_v1 = vld [vmem:[%s9471_s7 + $0x1c10] sm:$0xf] }
 0x195   : > { %982 = vst [vmem:[%s9475_s8 + $0x608] sm:$0xf] %v981_v2  ;;  %v1109_v2 = vld [vmem:[%s9471_s7 + $0x1c20] sm:$0xf] }
 0x196   : > { %984 = vst [vmem:[%s9475_s8 + $0x60c] sm:$0xf] %v983_v3  ;;  %v1111_v3 = vld [vmem:[%s9471_s7 + $0x1c30] sm:$0xf] }
 0x197   : > { %986 = vst [vmem:[%s9475_s8 + $0x610] sm:$0xf] %v985_v4  ;;  %v1113_v4 = vld [vmem:[%s9471_s7 + $0x1c40] sm:$0xf] }
 0x198   : > { %988 = vst [vmem:[%s9475_s8 + $0x614] sm:$0xf] %v987_v5  ;;  %v1115_v5 = vld [vmem:[%s9471_s7 + $0x1c50] sm:$0xf] }
 0x199   : > { %990 = vst [vmem:[%s9475_s8 + $0x618] sm:$0xf] %v989_v6  ;;  %v1117_v6 = vld [vmem:[%s9471_s7 + $0x1c60] sm:$0xf] }
 0x19a   : > { %992 = vst [vmem:[%s9475_s8 + $0x61c] sm:$0xf] %v991_v7  ;;  %v1119_v7 = vld [vmem:[%s9471_s7 + $0x1c70] sm:$0xf] }
 0x19b   : > { %994 = vst [vmem:[%s9475_s8 + $0x620] sm:$0xf] %v993_v8  ;;  %v1121_v8 = vld [vmem:[%s9471_s7 + $0x1c80] sm:$0xf] }
 0x19c   : > { %996 = vst [vmem:[%s9475_s8 + $0x624] sm:$0xf] %v995_v9  ;;  %v1123_v9 = vld [vmem:[%s9471_s7 + $0x1c90] sm:$0xf] }
 0x19d   : > { %998 = vst [vmem:[%s9475_s8 + $0x628] sm:$0xf] %v997_v10  ;;  %v1125_v10 = vld [vmem:[%s9471_s7 + $0x1ca0] sm:$0xf] }
 0x19e   : > { %1000 = vst [vmem:[%s9475_s8 + $0x62c] sm:$0xf] %v999_v11  ;;  %v1127_v11 = vld [vmem:[%s9471_s7 + $0x1cb0] sm:$0xf] }
 0x19f   : > { %1002 = vst [vmem:[%s9475_s8 + $0x630] sm:$0xf] %v1001_v12  ;;  %v1129_v12 = vld [vmem:[%s9471_s7 + $0x1cc0] sm:$0xf] }
 0x1a0   : > { %1004 = vst [vmem:[%s9475_s8 + $0x634] sm:$0xf] %v1003_v13  ;;  %v1131_v13 = vld [vmem:[%s9471_s7 + $0x1cd0] sm:$0xf] }
 0x1a1   : > { %1006 = vst [vmem:[%s9475_s8 + $0x638] sm:$0xf] %v1005_v14  ;;  %v1133_v14 = vld [vmem:[%s9471_s7 + $0x1ce0] sm:$0xf] }
 0x1a2   : > { %1008 = vst [vmem:[%s9475_s8 + $0x63c] sm:$0xf] %v1007_v15  ;;  %v1135_v15 = vld [vmem:[%s9471_s7 + $0x1cf0] sm:$0xf] }
 0x1a3   : > { %1010 = vst [vmem:[%s9475_s8 + $0x640] sm:$0xf] %v1009_v16  ;;  %v1137_v16 = vld [vmem:[%s9471_s7 + $0x1d00] sm:$0xf] }
 0x1a4   : > { %1012 = vst [vmem:[%s9475_s8 + $0x644] sm:$0xf] %v1011_v17  ;;  %v1139_v17 = vld [vmem:[%s9471_s7 + $0x1d10] sm:$0xf] }
 0x1a5   : > { %1014 = vst [vmem:[%s9475_s8 + $0x648] sm:$0xf] %v1013_v18  ;;  %v1141_v18 = vld [vmem:[%s9471_s7 + $0x1d20] sm:$0xf] }
 0x1a6   : > { %1016 = vst [vmem:[%s9475_s8 + $0x64c] sm:$0xf] %v1015_v19  ;;  %v1143_v19 = vld [vmem:[%s9471_s7 + $0x1d30] sm:$0xf] }
 0x1a7   : > { %1018 = vst [vmem:[%s9475_s8 + $0x650] sm:$0xf] %v1017_v20  ;;  %v1145_v20 = vld [vmem:[%s9471_s7 + $0x1d40] sm:$0xf] }
 0x1a8   : > { %1020 = vst [vmem:[%s9475_s8 + $0x654] sm:$0xf] %v1019_v21  ;;  %v1147_v21 = vld [vmem:[%s9471_s7 + $0x1d50] sm:$0xf] }
 0x1a9   : > { %1022 = vst [vmem:[%s9475_s8 + $0x658] sm:$0xf] %v1021_v22  ;;  %v1149_v22 = vld [vmem:[%s9471_s7 + $0x1d60] sm:$0xf] }
 0x1aa   : > { %1024 = vst [vmem:[%s9475_s8 + $0x65c] sm:$0xf] %v1023_v23  ;;  %v1151_v23 = vld [vmem:[%s9471_s7 + $0x1d70] sm:$0xf] }
 0x1ab   : > { %1026 = vst [vmem:[%s9475_s8 + $0x660] sm:$0xf] %v1025_v24  ;;  %v1153_v24 = vld [vmem:[%s9471_s7 + $0x1d80] sm:$0xf] }
 0x1ac   : > { %1028 = vst [vmem:[%s9475_s8 + $0x664] sm:$0xf] %v1027_v25  ;;  %v1155_v25 = vld [vmem:[%s9471_s7 + $0x1d90] sm:$0xf] }
 0x1ad   : > { %1030 = vst [vmem:[%s9475_s8 + $0x668] sm:$0xf] %v1029_v26  ;;  %v1157_v26 = vld [vmem:[%s9471_s7 + $0x1da0] sm:$0xf] }
 0x1ae   : > { %1032 = vst [vmem:[%s9475_s8 + $0x66c] sm:$0xf] %v1031_v27  ;;  %v1159_v27 = vld [vmem:[%s9471_s7 + $0x1db0] sm:$0xf] }
 0x1af   : > { %1034 = vst [vmem:[%s9475_s8 + $0x670] sm:$0xf] %v1033_v28  ;;  %v1161_v28 = vld [vmem:[%s9471_s7 + $0x1dc0] sm:$0xf] }
 0x1b0   : > { %1036 = vst [vmem:[%s9475_s8 + $0x674] sm:$0xf] %v1035_v29  ;;  %v1163_v29 = vld [vmem:[%s9471_s7 + $0x1dd0] sm:$0xf] }
 0x1b1   : > { %1038 = vst [vmem:[%s9475_s8 + $0x678] sm:$0xf] %v1037_v30  ;;  %v1165_v30 = vld [vmem:[%s9471_s7 + $0x1de0] sm:$0xf] }
 0x1b2   : > { %1040 = vst [vmem:[%s9475_s8 + $0x67c] sm:$0xf] %v1039_v31  ;;  %v1167_v31 = vld [vmem:[%s9471_s7 + $0x1df0] sm:$0xf] }
 0x1b3   : > { %1042 = vst [vmem:[%s9475_s8 + $0x680] sm:$0xf] %v1041_v32  ;;  %v1169_v32 = vld [vmem:[%s9471_s7 + $0x1e00] sm:$0xf] }
 0x1b4   : > { %1044 = vst [vmem:[%s9475_s8 + $0x684] sm:$0xf] %v1043_v33  ;;  %v1171_v33 = vld [vmem:[%s9471_s7 + $0x1e10] sm:$0xf] }
 0x1b5   : > { %1046 = vst [vmem:[%s9475_s8 + $0x688] sm:$0xf] %v1045_v34  ;;  %v1173_v34 = vld [vmem:[%s9471_s7 + $0x1e20] sm:$0xf] }
 0x1b6   : > { %1048 = vst [vmem:[%s9475_s8 + $0x68c] sm:$0xf] %v1047_v35  ;;  %v1175_v35 = vld [vmem:[%s9471_s7 + $0x1e30] sm:$0xf] }
 0x1b7   : > { %1050 = vst [vmem:[%s9475_s8 + $0x690] sm:$0xf] %v1049_v36  ;;  %v1177_v36 = vld [vmem:[%s9471_s7 + $0x1e40] sm:$0xf] }
 0x1b8   : > { %1052 = vst [vmem:[%s9475_s8 + $0x694] sm:$0xf] %v1051_v37  ;;  %v1179_v37 = vld [vmem:[%s9471_s7 + $0x1e50] sm:$0xf] }
 0x1b9   : > { %1054 = vst [vmem:[%s9475_s8 + $0x698] sm:$0xf] %v1053_v38  ;;  %v1181_v38 = vld [vmem:[%s9471_s7 + $0x1e60] sm:$0xf] }
 0x1ba   : > { %1056 = vst [vmem:[%s9475_s8 + $0x69c] sm:$0xf] %v1055_v39  ;;  %v1183_v39 = vld [vmem:[%s9471_s7 + $0x1e70] sm:$0xf] }
 0x1bb   : > { %1058 = vst [vmem:[%s9475_s8 + $0x6a0] sm:$0xf] %v1057_v40  ;;  %v1185_v40 = vld [vmem:[%s9471_s7 + $0x1e80] sm:$0xf] }
 0x1bc   : > { %1060 = vst [vmem:[%s9475_s8 + $0x6a4] sm:$0xf] %v1059_v41  ;;  %v1187_v41 = vld [vmem:[%s9471_s7 + $0x1e90] sm:$0xf] }
 0x1bd   : > { %1062 = vst [vmem:[%s9475_s8 + $0x6a8] sm:$0xf] %v1061_v42  ;;  %v1189_v42 = vld [vmem:[%s9471_s7 + $0x1ea0] sm:$0xf] }
 0x1be   : > { %1064 = vst [vmem:[%s9475_s8 + $0x6ac] sm:$0xf] %v1063_v43  ;;  %v1191_v43 = vld [vmem:[%s9471_s7 + $0x1eb0] sm:$0xf] }
 0x1bf   : > { %1066 = vst [vmem:[%s9475_s8 + $0x6b0] sm:$0xf] %v1065_v44  ;;  %v1193_v44 = vld [vmem:[%s9471_s7 + $0x1ec0] sm:$0xf] }
 0x1c0   : > { %1068 = vst [vmem:[%s9475_s8 + $0x6b4] sm:$0xf] %v1067_v45  ;;  %v1195_v45 = vld [vmem:[%s9471_s7 + $0x1ed0] sm:$0xf] }
 0x1c1   : > { %1070 = vst [vmem:[%s9475_s8 + $0x6b8] sm:$0xf] %v1069_v46  ;;  %v1197_v46 = vld [vmem:[%s9471_s7 + $0x1ee0] sm:$0xf] }
 0x1c2   : > { %1072 = vst [vmem:[%s9475_s8 + $0x6bc] sm:$0xf] %v1071_v47  ;;  %v1199_v47 = vld [vmem:[%s9471_s7 + $0x1ef0] sm:$0xf] }
 0x1c3   : > { %1074 = vst [vmem:[%s9475_s8 + $0x6c0] sm:$0xf] %v1073_v48  ;;  %v1201_v48 = vld [vmem:[%s9471_s7 + $0x1f00] sm:$0xf] }
 0x1c4   : > { %1076 = vst [vmem:[%s9475_s8 + $0x6c4] sm:$0xf] %v1075_v49  ;;  %v1203_v49 = vld [vmem:[%s9471_s7 + $0x1f10] sm:$0xf] }
 0x1c5   : > { %1078 = vst [vmem:[%s9475_s8 + $0x6c8] sm:$0xf] %v1077_v50  ;;  %v1205_v50 = vld [vmem:[%s9471_s7 + $0x1f20] sm:$0xf] }
 0x1c6   : > { %1080 = vst [vmem:[%s9475_s8 + $0x6cc] sm:$0xf] %v1079_v51  ;;  %v1207_v51 = vld [vmem:[%s9471_s7 + $0x1f30] sm:$0xf] }
 0x1c7   : > { %1082 = vst [vmem:[%s9475_s8 + $0x6d0] sm:$0xf] %v1081_v52  ;;  %v1209_v52 = vld [vmem:[%s9471_s7 + $0x1f40] sm:$0xf] }
 0x1c8   : > { %1084 = vst [vmem:[%s9475_s8 + $0x6d4] sm:$0xf] %v1083_v53  ;;  %v1211_v53 = vld [vmem:[%s9471_s7 + $0x1f50] sm:$0xf] }
 0x1c9   : > { %1086 = vst [vmem:[%s9475_s8 + $0x6d8] sm:$0xf] %v1085_v54  ;;  %v1213_v54 = vld [vmem:[%s9471_s7 + $0x1f60] sm:$0xf] }
 0x1ca   : > { %1088 = vst [vmem:[%s9475_s8 + $0x6dc] sm:$0xf] %v1087_v55  ;;  %v1215_v55 = vld [vmem:[%s9471_s7 + $0x1f70] sm:$0xf] }
 0x1cb   : > { %1090 = vst [vmem:[%s9475_s8 + $0x6e0] sm:$0xf] %v1089_v56  ;;  %v1217_v56 = vld [vmem:[%s9471_s7 + $0x1f80] sm:$0xf] }
 0x1cc   : > { %1092 = vst [vmem:[%s9475_s8 + $0x6e4] sm:$0xf] %v1091_v57  ;;  %v1219_v57 = vld [vmem:[%s9471_s7 + $0x1f90] sm:$0xf] }
 0x1cd   : > { %1094 = vst [vmem:[%s9475_s8 + $0x6e8] sm:$0xf] %v1093_v58  ;;  %v1221_v58 = vld [vmem:[%s9471_s7 + $0x1fa0] sm:$0xf] }
 0x1ce   : > { %1096 = vst [vmem:[%s9475_s8 + $0x6ec] sm:$0xf] %v1095_v59  ;;  %v1223_v59 = vld [vmem:[%s9471_s7 + $0x1fb0] sm:$0xf] }
 0x1cf   : > { %1098 = vst [vmem:[%s9475_s8 + $0x6f0] sm:$0xf] %v1097_v60  ;;  %v1225_v60 = vld [vmem:[%s9471_s7 + $0x1fc0] sm:$0xf] }
 0x1d0   : > { %1100 = vst [vmem:[%s9475_s8 + $0x6f4] sm:$0xf] %v1099_v61  ;;  %v1227_v61 = vld [vmem:[%s9471_s7 + $0x1fd0] sm:$0xf] }
 0x1d1   : > { %1102 = vst [vmem:[%s9475_s8 + $0x6f8] sm:$0xf] %v1101_v62  ;;  %v1229_v62 = vld [vmem:[%s9471_s7 + $0x1fe0] sm:$0xf] }
 0x1d2   : > { %1104 = vst [vmem:[%s9475_s8 + $0x6fc] sm:$0xf] %v1103_v63  ;;  %v1231_v63 = vld [vmem:[%s9471_s7 + $0x1ff0] sm:$0xf] }
 0x1d3   : > { %1106 = vst [vmem:[%s9475_s8 + $0x700] sm:$0xf] %v1105_v0 }
 0x1d4   : > { %1108 = vst [vmem:[%s9475_s8 + $0x704] sm:$0xf] %v1107_v1 }
 0x1d5   : > { %1110 = vst [vmem:[%s9475_s8 + $0x708] sm:$0xf] %v1109_v2 }
 0x1d6   : > { %1112 = vst [vmem:[%s9475_s8 + $0x70c] sm:$0xf] %v1111_v3 }
 0x1d7   : > { %1114 = vst [vmem:[%s9475_s8 + $0x710] sm:$0xf] %v1113_v4 }
 0x1d8   : > { %1116 = vst [vmem:[%s9475_s8 + $0x714] sm:$0xf] %v1115_v5 }
 0x1d9   : > { %1118 = vst [vmem:[%s9475_s8 + $0x718] sm:$0xf] %v1117_v6 }
 0x1da   : > { %1120 = vst [vmem:[%s9475_s8 + $0x71c] sm:$0xf] %v1119_v7 }
 0x1db   : > { %1122 = vst [vmem:[%s9475_s8 + $0x720] sm:$0xf] %v1121_v8 }
 0x1dc   : > { %1124 = vst [vmem:[%s9475_s8 + $0x724] sm:$0xf] %v1123_v9 }
 0x1dd   : > { %1126 = vst [vmem:[%s9475_s8 + $0x728] sm:$0xf] %v1125_v10 }
 0x1de   : > { %1128 = vst [vmem:[%s9475_s8 + $0x72c] sm:$0xf] %v1127_v11 }
 0x1df   : > { %1130 = vst [vmem:[%s9475_s8 + $0x730] sm:$0xf] %v1129_v12 }
 0x1e0   : > { %1132 = vst [vmem:[%s9475_s8 + $0x734] sm:$0xf] %v1131_v13 }
 0x1e1   : > { %1134 = vst [vmem:[%s9475_s8 + $0x738] sm:$0xf] %v1133_v14 }
 0x1e2   : > { %1136 = vst [vmem:[%s9475_s8 + $0x73c] sm:$0xf] %v1135_v15 }
 0x1e3   : > { %1138 = vst [vmem:[%s9475_s8 + $0x740] sm:$0xf] %v1137_v16 }
 0x1e4   : > { %1140 = vst [vmem:[%s9475_s8 + $0x744] sm:$0xf] %v1139_v17 }
 0x1e5   : > { %1142 = vst [vmem:[%s9475_s8 + $0x748] sm:$0xf] %v1141_v18 }
 0x1e6   : > { %1144 = vst [vmem:[%s9475_s8 + $0x74c] sm:$0xf] %v1143_v19 }
 0x1e7   : > { %1146 = vst [vmem:[%s9475_s8 + $0x750] sm:$0xf] %v1145_v20 }
 0x1e8   : > { %1148 = vst [vmem:[%s9475_s8 + $0x754] sm:$0xf] %v1147_v21 }
 0x1e9   : > { %1150 = vst [vmem:[%s9475_s8 + $0x758] sm:$0xf] %v1149_v22 }
 0x1ea   : > { %1152 = vst [vmem:[%s9475_s8 + $0x75c] sm:$0xf] %v1151_v23 }
 0x1eb   : > { %1154 = vst [vmem:[%s9475_s8 + $0x760] sm:$0xf] %v1153_v24 }
 0x1ec   : > { %1156 = vst [vmem:[%s9475_s8 + $0x764] sm:$0xf] %v1155_v25 }
 0x1ed   : > { %1158 = vst [vmem:[%s9475_s8 + $0x768] sm:$0xf] %v1157_v26 }
 0x1ee   : > { %1160 = vst [vmem:[%s9475_s8 + $0x76c] sm:$0xf] %v1159_v27 }
 0x1ef   : > { %1162 = vst [vmem:[%s9475_s8 + $0x770] sm:$0xf] %v1161_v28 }
 0x1f0   : > { %1164 = vst [vmem:[%s9475_s8 + $0x774] sm:$0xf] %v1163_v29 }
 0x1f1   : > { %1166 = vst [vmem:[%s9475_s8 + $0x778] sm:$0xf] %v1165_v30 }
 0x1f2   : > { %1168 = vst [vmem:[%s9475_s8 + $0x77c] sm:$0xf] %v1167_v31 }
 0x1f3   : > { %1170 = vst [vmem:[%s9475_s8 + $0x780] sm:$0xf] %v1169_v32 }
 0x1f4   : > { %1172 = vst [vmem:[%s9475_s8 + $0x784] sm:$0xf] %v1171_v33 }
 0x1f5   : > { %1174 = vst [vmem:[%s9475_s8 + $0x788] sm:$0xf] %v1173_v34 }
 0x1f6   : > { %1176 = vst [vmem:[%s9475_s8 + $0x78c] sm:$0xf] %v1175_v35 }
 0x1f7   : > { %1178 = vst [vmem:[%s9475_s8 + $0x790] sm:$0xf] %v1177_v36 }
 0x1f8   : > { %1180 = vst [vmem:[%s9475_s8 + $0x794] sm:$0xf] %v1179_v37 }
 0x1f9   : > { %1182 = vst [vmem:[%s9475_s8 + $0x798] sm:$0xf] %v1181_v38 }
 0x1fa   : > { %1184 = vst [vmem:[%s9475_s8 + $0x79c] sm:$0xf] %v1183_v39 }
 0x1fb   : > { %1186 = vst [vmem:[%s9475_s8 + $0x7a0] sm:$0xf] %v1185_v40 }
 0x1fc   : > { %1188 = vst [vmem:[%s9475_s8 + $0x7a4] sm:$0xf] %v1187_v41 }
 0x1fd   : > { %1190 = vst [vmem:[%s9475_s8 + $0x7a8] sm:$0xf] %v1189_v42 }
 0x1fe   : > { %1192 = vst [vmem:[%s9475_s8 + $0x7ac] sm:$0xf] %v1191_v43 }
 0x1ff   : > { %1194 = vst [vmem:[%s9475_s8 + $0x7b0] sm:$0xf] %v1193_v44 }
 0x200   : > { %1196 = vst [vmem:[%s9475_s8 + $0x7b4] sm:$0xf] %v1195_v45 }
 0x201   : > { %1198 = vst [vmem:[%s9475_s8 + $0x7b8] sm:$0xf] %v1197_v46 }
 0x202   : > { %1200 = vst [vmem:[%s9475_s8 + $0x7bc] sm:$0xf] %v1199_v47 }
 0x203   : > { %1202 = vst [vmem:[%s9475_s8 + $0x7c0] sm:$0xf] %v1201_v48 }
 0x204   : > { %1204 = vst [vmem:[%s9475_s8 + $0x7c4] sm:$0xf] %v1203_v49 }
 0x205   : > { %1206 = vst [vmem:[%s9475_s8 + $0x7c8] sm:$0xf] %v1205_v50 }
 0x206   : > { %1208 = vst [vmem:[%s9475_s8 + $0x7cc] sm:$0xf] %v1207_v51 }
 0x207   : > { %1210 = vst [vmem:[%s9475_s8 + $0x7d0] sm:$0xf] %v1209_v52 }
 0x208   : > { %1212 = vst [vmem:[%s9475_s8 + $0x7d4] sm:$0xf] %v1211_v53 }
 0x209   : > { %1214 = vst [vmem:[%s9475_s8 + $0x7d8] sm:$0xf] %v1213_v54 }
 0x20a   : > { %1216 = vst [vmem:[%s9475_s8 + $0x7dc] sm:$0xf] %v1215_v55 }
 0x20b   : > { %1218 = vst [vmem:[%s9475_s8 + $0x7e0] sm:$0xf] %v1217_v56 }
 0x20c   : > { %1220 = vst [vmem:[%s9475_s8 + $0x7e4] sm:$0xf] %v1219_v57 }
 0x20d   : > { %1222 = vst [vmem:[%s9475_s8 + $0x7e8] sm:$0xf] %v1221_v58 }
 0x20e   : > { %1224 = vst [vmem:[%s9475_s8 + $0x7ec] sm:$0xf] %v1223_v59 }
 0x20f   : > { %1226 = vst [vmem:[%s9475_s8 + $0x7f0] sm:$0xf] %v1225_v60 }
 0x210   : > { %1228 = vst [vmem:[%s9475_s8 + $0x7f4] sm:$0xf] %v1227_v61 }
 0x211   : > { %1230 = vst [vmem:[%s9475_s8 + $0x7f8] sm:$0xf] %v1229_v62 }
 0x212   : > { %1232 = vst [vmem:[%s9475_s8 + $0x7fc] sm:$0xf] %v1231_v63 }
 0x213 PF: > { %p7729_p7 = scmp.ge.s32.totalorder %s9398_s20, 1  ;;  %p4371_p8 = scmp.lt.s32.totalorder %s9398_s20, 5 }
 0x215   : > { %p4372_p9 = pnand %p7729_p7, %p4371_p8 }
 0x216   : > { %s4378_s9 = sand.u32 (!%p4372_p9), 1, %s9390_s18   ;;  %p4413_p10 = scmp.lt.s32.totalorder (!%p4372_p9), %s9446_s21, 3 }
 0x217   : > { %4375 = sbr.rel (%p4372_p9) target bundleno = 1033 (0x409), region = 88  ;;  %s7730_s10 = sshll.u32 (!%p4372_p9), %s4378_s9, 11 }
 0x218   : > { %s10504_s11 = scalar_lea.vmem (!%p4372_p9), [#allocation2], %s7730_s10  ;;  %s7731_s17 = sshll.u32 (!%p4372_p9), %s4378_s9, 4 }
 0x21c   : > { %v9087_v0 = vld [vmem:[%s10504_s11 + $0x38] sm:$0xff]  ;;  %v9086_v4 = vld [vmem:[%s10504_s11 + $0x30] sm:$0xff]  ;;  %v9085_v8 = vld [vmem:[%s10504_s11 + $0x28] sm:$0xff]  ;;  %s10546_s16 = scalar_select %p4413_p10, %s9446_s21, 3 }
 0x21d   : > { %v9095_v1 = vld [vmem:[%s10504_s11 + $0x78] sm:$0xff]  ;;  %6858 = vmatpush.bf16.msra.mxu0 %v9087_v0  ;;  %v9094_v5 = vld [vmem:[%s10504_s11 + $0x70] sm:$0xff]  ;;  %v9093_v9 = vld [vmem:[%s10504_s11 + $0x68] sm:$0xff] }
 0x21e   : > { %v9103_v2 = vld [vmem:[%s10504_s11 + $0xb8] sm:$0xff]  ;;  %6877 = vmatpush.bf16.msra.mxu1 %v9095_v1  ;;  %v9102_v6 = vld [vmem:[%s10504_s11 + $0xb0] sm:$0xff]  ;;  %v9101_v10 = vld [vmem:[%s10504_s11 + $0xa8] sm:$0xff]  ;;  %s4415_s14 = scalar_lea.vmem %s11232_s2, %s10546_s16  ;;  %s4418_s6 = scalar_lea.vmem %s11233_s3, %s10546_s16 }
 0x21f   : > { %v9111_v3 = vld [vmem:[%s10504_s11 + $0xf8] sm:$0xff]  ;;  %6896 = vmatpush.bf16.msra.mxu2 %v9103_v2  ;;  %v9110_v7 = vld [vmem:[%s10504_s11 + $0xf0] sm:$0xff]  ;;  %v9109_v11 = vld [vmem:[%s10504_s11 + $0xe8] sm:$0xff]  ;;  %s4421_s8 = scalar_lea.vmem %s11234_s4, %s10546_s16  ;;  %s4412_s16 = scalar_lea.vmem [#allocation3], %s7731_s17 }
 0x220   : > { %6915 = vmatpush.bf16.msra.mxu3 %v9111_v3  ;;  %v9084_v12 = vld [vmem:[%s10504_s11 + $0x20] sm:$0xff]  ;;  %v9083_v16 = vld [vmem:[%s10504_s11 + $0x18] sm:$0xff]  ;;  %v9082_v20 = vld [vmem:[%s10504_s11 + $0x10] sm:$0xff] }
 0x221   : > { %6859 = vmatpush.bf16.msra.mxu0 %v9086_v4  ;;  %v9092_v13 = vld [vmem:[%s10504_s11 + $0x60] sm:$0xff]  ;;  %v9091_v17 = vld [vmem:[%s10504_s11 + $0x58] sm:$0xff]  ;;  %v9090_v21 = vld [vmem:[%s10504_s11 + $0x50] sm:$0xff] }
 0x222   : > { %6878 = vmatpush.bf16.msra.mxu1 %v9094_v5  ;;  %v9100_v14 = vld [vmem:[%s10504_s11 + $0xa0] sm:$0xff]  ;;  %v9099_v18 = vld [vmem:[%s10504_s11 + $0x98] sm:$0xff]  ;;  %v9098_v22 = vld [vmem:[%s10504_s11 + $0x90] sm:$0xff] }
 0x223   : > { %6897 = vmatpush.bf16.msra.mxu2 %v9102_v6  ;;  %v9108_v15 = vld [vmem:[%s10504_s11 + $0xe0] sm:$0xff]  ;;  %v9107_v19 = vld [vmem:[%s10504_s11 + $0xd8] sm:$0xff]  ;;  %v9106_v23 = vld [vmem:[%s10504_s11 + $0xd0] sm:$0xff] }
 0x224   : > { %6916 = vmatpush.bf16.msra.mxu3 %v9110_v7  ;;  %v9081_v24 = vld [vmem:[%s10504_s11 + $0x8] sm:$0xff]  ;;  %v9080_v28 = vld [vmem:[%s10504_s11] sm:$0xff]  ;;  %v9135_v40 = vld [vmem:[%s10504_s11 + $0x1b8] sm:$0xff] }
 0x225   : > { %6860 = vmatpush.bf16.msra.mxu0 %v9085_v8  ;;  %v9089_v25 = vld [vmem:[%s10504_s11 + $0x48] sm:$0xff]  ;;  %v7734_v29 = vld [vmem:[%s11230_s0] sm:$0xf]  ;;  %v9016_v34 = vld [vmem:[%s11230_s0 + $0x4] sm:$0xf] }
 0x226   : > { %6879 = vmatpush.bf16.msra.mxu1 %v9093_v9  ;;  %v9097_v26 = vld [vmem:[%s10504_s11 + $0x88] sm:$0xff]  ;;  %v9032_v30 = vld [vmem:[%s11230_s0 + $0x7c] sm:$0xf0]  ;;  %v7736_v35 = vld [vmem:[%s11230_s0 + $0x80] sm:$0xf0] }
 0x227   : > { %6898 = vmatpush.bf16.msra.mxu2 %v9101_v10  ;;  %v9105_v27 = vld [vmem:[%s10504_s11 + $0xc8] sm:$0xff]  ;;  %v9088_v31 = vld [vmem:[%s10504_s11 + $0x40] sm:$0xff]  ;;  %v9119_v41 = vld [vmem:[%s10504_s11 + $0x138] sm:$0xff]  ;;  %v7735_v42 = vor.u32 %v9032_v30, %v7734_v29  ;;  %v7739_v43 = vor.u32 %v9016_v34, %v7736_v35 }
 0x228   : > { %6917 = vmatpush.bf16.msra.mxu3 %v9109_v11  ;;  %v9096_v32 = vld [vmem:[%s10504_s11 + $0x80] sm:$0xff]  ;;  %v7742_v36 = vld [vmem:[%s11230_s0 + $0x8] sm:$0xf]  ;;  %v9017_v38 = vld [vmem:[%s11230_s0 + $0xc] sm:$0xf] }
 0x229   : > { %6861 = vmatpush.bf16.msra.mxu0 %v9084_v12  ;;  %v9104_v33 = vld [vmem:[%s10504_s11 + $0xc0] sm:$0xff]  ;;  %v9033_v37 = vld [vmem:[%s11230_s0 + $0x84] sm:$0xf0]  ;;  %v7744_v39 = vld [vmem:[%s11230_s0 + $0x88] sm:$0xf0] }
 0x22a   : > { %6880 = vmatpush.bf16.msra.mxu1 %v9092_v13  ;;  %v7743_v44 = vor.u32 %v9033_v37, %v7742_v36  ;;  %v7747_v45 = vor.u32 %v9017_v38, %v7744_v39  ;;  %v9127_v46 = vld [vmem:[%s10504_s11 + $0x178] sm:$0xff]  ;;  %v9134_v48 = vld [vmem:[%s10504_s11 + $0x1b0] sm:$0xff]  ;;  %v9133_v52 = vld [vmem:[%s10504_s11 + $0x1a8] sm:$0xff] }
 0x22b   : > { %6899 = vmatpush.bf16.msra.mxu2 %v9100_v14  ;;  %v9143_v47 = vld [vmem:[%s10504_s11 + $0x1f8] sm:$0xff]  ;;  %v9118_v49 = vld [vmem:[%s10504_s11 + $0x130] sm:$0xff]  ;;  %v9117_v53 = vld [vmem:[%s10504_s11 + $0x128] sm:$0xff] }
 0x22c   : > { %6918 = vmatpush.bf16.msra.mxu3 %v9108_v15  ;;  %v9126_v50 = vld [vmem:[%s10504_s11 + $0x170] sm:$0xff]  ;;  %v9125_v54 = vld [vmem:[%s10504_s11 + $0x168] sm:$0xff]  ;;  %v9132_v56 = vld [vmem:[%s10504_s11 + $0x1a0] sm:$0xff] }
 0x22d   : > { %6862 = vmatpush.bf16.msra.mxu0 %v9083_v16  ;;  %v9142_v51 = vld [vmem:[%s10504_s11 + $0x1f0] sm:$0xff]  ;;  %v9141_v55 = vld [vmem:[%s10504_s11 + $0x1e8] sm:$0xff]  ;;  %v9116_v57 = vld [vmem:[%s10504_s11 + $0x120] sm:$0xff] }
 0x22e   : > { %6881 = vmatpush.bf16.msra.mxu1 %v9091_v17  ;;  %v9124_v58 = vld [vmem:[%s10504_s11 + $0x160] sm:$0xff]  ;;  %v7870_v0 = vld [vmem:[%s11230_s0 + $0x108] sm:$0xf]  ;;  %v9049_v2 = vld [vmem:[%s11230_s0 + $0x10c] sm:$0xf] }
 0x22f   : > { %6900 = vmatpush.bf16.msra.mxu2 %v9099_v18  ;;  %v9140_v59 = vld [vmem:[%s10504_s11 + $0x1e0] sm:$0xff]  ;;  %v9065_v1 = vld [vmem:[%s11230_s0 + $0x184] sm:$0xf0]  ;;  %v7872_v3 = vld [vmem:[%s11230_s0 + $0x188] sm:$0xf0] }
 0x230   : > { %6919 = vmatpush.bf16.msra.mxu3 %v9107_v19  ;;  %v7862_v60 = vld [vmem:[%s11230_s0 + $0x100] sm:$0xf]  ;;  %v9048_v62 = vld [vmem:[%s11230_s0 + $0x104] sm:$0xf]  ;;  %v9131_v4 = vld [vmem:[%s10504_s11 + $0x198] sm:$0xff]  ;;  %v7871_v8 = vor.u32 %v9065_v1, %v7870_v0  ;;  %v7875_v9 = vor.u32 %v9049_v2, %v7872_v3 }
 0x231   : > { %6863 = vmatpush.bf16.msra.mxu0 %v9082_v20  ;;  %v9064_v61 = vld [vmem:[%s11230_s0 + $0x17c] sm:$0xf0]  ;;  %v7864_v63 = vld [vmem:[%s11230_s0 + $0x180] sm:$0xf0]  ;;  %v9115_v5 = vld [vmem:[%s10504_s11 + $0x118] sm:$0xff] }
 0x232   : > { %6882 = vmatpush.bf16.msra.mxu1 %v9090_v21  ;;  %v7863_v6 = vor.u32 %v9064_v61, %v7862_v60  ;;  %v7867_v7 = vor.u32 %v9048_v62, %v7864_v63  ;;  %v9123_v10 = vld [vmem:[%s10504_s11 + $0x158] sm:$0xff]  ;;  %v9130_v12 = vld [vmem:[%s10504_s11 + $0x190] sm:$0xff]  ;;  %v9129_v16 = vld [vmem:[%s10504_s11 + $0x188] sm:$0xff] }
 0x233   : > { %6901 = vmatpush.bf16.msra.mxu2 %v9098_v22  ;;  %v9139_v11 = vld [vmem:[%s10504_s11 + $0x1d8] sm:$0xff]  ;;  %v9114_v13 = vld [vmem:[%s10504_s11 + $0x110] sm:$0xff]  ;;  %v9113_v17 = vld [vmem:[%s10504_s11 + $0x108] sm:$0xff] }
 0x234   : > { %6920 = vmatpush.bf16.msra.mxu3 %v9106_v23  ;;  %v9122_v14 = vld [vmem:[%s10504_s11 + $0x150] sm:$0xff]  ;;  %v9121_v18 = vld [vmem:[%s10504_s11 + $0x148] sm:$0xff]  ;;  %v9128_v20 = vld [vmem:[%s10504_s11 + $0x180] sm:$0xff] }
 0x235   : > { %6864 = vmatpush.bf16.msra.mxu0 %v9081_v24  ;;  %v9138_v15 = vld [vmem:[%s10504_s11 + $0x1d0] sm:$0xff]  ;;  %v9137_v19 = vld [vmem:[%s10504_s11 + $0x1c8] sm:$0xff]  ;;  %v9112_v21 = vld [vmem:[%s10504_s11 + $0x100] sm:$0xff] }
 0x236   : > { %6883 = vmatpush.bf16.msra.mxu1 %v9089_v25  ;;  %v9120_v22 = vld [vmem:[%s10504_s11 + $0x140] sm:$0xff]  ;;  %v7750_v24 = vld [vmem:[%s11230_s0 + $0x10] sm:$0xf]  ;;  %v9167_v25 = vld [vmem:[%s10504_s11 + $0x2b8] sm:$0xff] }
 0x237   : > { %6902 = vmatpush.bf16.msra.mxu2 %v9097_v26  ;;  %v9136_v23 = vld [vmem:[%s10504_s11 + $0x1c0] sm:$0xff]  ;;  %v9151_v26 = vld [vmem:[%s10504_s11 + $0x238] sm:$0xff]  ;;  %v7752_v29 = vld [vmem:[%s11230_s0 + $0x90] sm:$0xf0] }
 0x238   : > { %6921 = vmatpush.bf16.msra.mxu3 %v9105_v27  ;;  %v9034_v27 = vld [vmem:[%s11230_s0 + $0x8c] sm:$0xf0]  ;;  %v7758_v30 = vld [vmem:[%s11230_s0 + $0x18] sm:$0xf]  ;;  %v7888_v61 = vld [vmem:[%s11230_s0 + $0x198] sm:$0xf0] }
 0x239   : > { %6865 = vmatpush.bf16.msra.mxu0 %v9080_v28  ;;  %v9018_v28 = vld [vmem:[%s11230_s0 + $0x14] sm:$0xf]  ;;  %v9159_v34 = vld [vmem:[%s10504_s11 + $0x278] sm:$0xff]  ;;  %v7751_v36 = vor.u32 %v9034_v27, %v7750_v24  ;;  %v7768_v24 = vld [vmem:[%s11230_s0 + $0xa0] sm:$0xf0] }
 0x23a   : > { %6884 = vmatpush.bf16.msra.mxu1 %v9088_v31  ;;  %v9035_v31 = vld [vmem:[%s11230_s0 + $0x94] sm:$0xf0]  ;;  %v9166_v37 = vld [vmem:[%s10504_s11 + $0x2b0] sm:$0xff]  ;;  %v7755_v38 = vor.u32 %v9018_v28, %v7752_v29  ;;  %v9021_v27 = vld [vmem:[%s11230_s0 + $0x2c] sm:$0xf] }
 0x23b   : > { %6903 = vmatpush.bf16.msra.mxu2 %v9096_v32  ;;  %v9019_v32 = vld [vmem:[%s11230_s0 + $0x1c] sm:$0xf]  ;;  %v7759_v39 = vor.u32 %v9035_v31, %v7758_v30  ;;  %v9162_v1 = vld [vmem:[%s10504_s11 + $0x290] sm:$0xff]  ;;  %v7776_v28 = vld [vmem:[%s11230_s0 + $0xa8] sm:$0xf0] }
 0x23c   : > { %6922 = vmatpush.bf16.msra.mxu3 %v9104_v33  ;;  %6866 = vmatmul.bf16.vlgmr.msra.gmra.mxu0 %v7735_v42  ;;  %v7760_v33 = vld [vmem:[%s11230_s0 + $0x98] sm:$0xf0]  ;;  %v9158_v42 = vld [vmem:[%s10504_s11 + $0x270] sm:$0xff] }
 0x23d   : > { %6934 = vmatpush.bf16.msrb.mxu0 %v9119_v41  ;;  %6885 = vmatmul.bf16.vlgmr.msra.gmra.mxu1 %v7739_v43  ;;  %v9175_v35 = vld [vmem:[%s10504_s11 + $0x2f8] sm:$0xff]  ;;  %v9150_v41 = vld [vmem:[%s10504_s11 + $0x230] sm:$0xff] }
 0x23e   : > { %6904 = vmatmul.bf16.vlgmr.msra.gmra.mxu2 %v7743_v44  ;;  %6953 = vmatpush.bf16.msrb.mxu1 %v9127_v46  ;;  %v9174_v43 = vld [vmem:[%s10504_s11 + $0x2f0] sm:$0xff]  ;;  %v9165_v44 = vld [vmem:[%s10504_s11 + $0x2a8] sm:$0xff]  ;;  %v9147_v60 = vld [vmem:[%s10504_s11 + $0x218] sm:$0xff] }
 0x23f   : > { %6972 = vmatpush.bf16.msrb.mxu2 %v9135_v40  ;;  %6923 = vmatmul.bf16.vlgmr.msra.gmra.mxu3 %v7747_v45  ;;  %v7763_v40 = vor.u32 %v9019_v32, %v7760_v33  ;;  %v9149_v45 = vld [vmem:[%s10504_s11 + $0x228] sm:$0xff]  ;;  %v9155_v62 = vld [vmem:[%s10504_s11 + $0x258] sm:$0xff]  ;;  %v9190_v30 = vld [vmem:[%s10504_s11 + $0x370] sm:$0xff]  ;;  %v7779_v33 = vor.u32 %v9021_v27, %v7776_v28 }
 0x240   : > { %6991 = vmatpush.bf16.msrb.mxu3 %v9143_v47  ;;  %v9157_v46 = vld [vmem:[%s10504_s11 + $0x268] sm:$0xff]  ;;  %v9171_v63 = vld [vmem:[%s10504_s11 + $0x2d8] sm:$0xff] }
 0x241   : > { %6935 = vmatpush.bf16.msrb.mxu0 %v9118_v49  ;;  %v9173_v47 = vld [vmem:[%s10504_s11 + $0x2e8] sm:$0xff]  ;;  %v9148_v49 = vld [vmem:[%s10504_s11 + $0x220] sm:$0xff] }
 0x242   : > { %6954 = vmatpush.bf16.msrb.mxu1 %v9126_v50  ;;  %v9156_v50 = vld [vmem:[%s10504_s11 + $0x260] sm:$0xff]  ;;  %v9229_v28 = vld [vmem:[%s10504_s11 + $0x4a8] sm:$0xff] }
 0x243   : > { %6973 = vmatpush.bf16.msrb.mxu2 %v9134_v48  ;;  %v9164_v48 = vld [vmem:[%s10504_s11 + $0x2a0] sm:$0xff] }
 0x244   : > { %6992 = vmatpush.bf16.msrb.mxu3 %v9142_v51  ;;  %v9172_v51 = vld [vmem:[%s10504_s11 + $0x2e0] sm:$0xff] }
 0x245   : > { %6936 = vmatpush.bf16.msrb.mxu0 %v9117_v53  ;;  %v9066_v53 = vld [vmem:[%s11230_s0 + $0x18c] sm:$0xf0] }
 0x246   : > { %6955 = vmatpush.bf16.msrb.mxu1 %v9125_v54  ;;  %v9163_v54 = vld [vmem:[%s10504_s11 + $0x298] sm:$0xff] }
 0x247   : > { %6974 = vmatpush.bf16.msrb.mxu2 %v9133_v52  ;;  %v7878_v52 = vld [vmem:[%s11230_s0 + $0x110] sm:$0xf] }
 0x248   : > { %6993 = vmatpush.bf16.msrb.mxu3 %v9141_v55  ;;  %v9050_v55 = vld [vmem:[%s11230_s0 + $0x114] sm:$0xf]  ;;  %v7879_v0 = vor.u32 %v9066_v53, %v7878_v52  ;;  %v9053_v52 = vld [vmem:[%s11230_s0 + $0x12c] sm:$0xf]  ;;  %v9179_v53 = vld [vmem:[%s10504_s11 + $0x318] sm:$0xff] }
 0x249   : > { %6937 = vmatpush.bf16.msrb.mxu0 %v9116_v57  ;;  %v7886_v57 = vld [vmem:[%s11230_s0 + $0x118] sm:$0xf] }
 0x24a   : > { %6956 = vmatpush.bf16.msrb.mxu1 %v9124_v58  ;;  %v9067_v58 = vld [vmem:[%s11230_s0 + $0x194] sm:$0xf0] }
 0x24b   : > { %6975 = vmatpush.bf16.msrb.mxu2 %v9132_v56  ;;  %v7880_v56 = vld [vmem:[%s11230_s0 + $0x190] sm:$0xf0]  ;;  %v7887_v3 = vor.u32 %v9067_v58, %v7886_v57 }
 0x24c   : > { %6994 = vmatpush.bf16.msrb.mxu3 %v9140_v59  ;;  %6871 = vmatmul.bf16.gmra.mxu0 %v7863_v6  ;;  %v9051_v59 = vld [vmem:[%s11230_s0 + $0x11c] sm:$0xf]  ;;  %v7883_v2 = vor.u32 %v9050_v55, %v7880_v56  ;;  %v9154_v6 = vld [vmem:[%s10504_s11 + $0x250] sm:$0xff] }
 0x24d   : > { %6938 = vmatpush.bf16.msrb.mxu0 %v9115_v5  ;;  %6890 = vmatmul.bf16.gmra.mxu1 %v7867_v7  ;;  %v9146_v5 = vld [vmem:[%s10504_s11 + $0x210] sm:$0xff]  ;;  %v9203_v55 = vld [vmem:[%s10504_s11 + $0x3d8] sm:$0xff] }
 0x24e   : > { %6909 = vmatmul.bf16.gmra.mxu2 %v7871_v8  ;;  %6957 = vmatpush.bf16.msrb.mxu1 %v9123_v10  ;;  %v9170_v7 = vld [vmem:[%s10504_s11 + $0x2d0] sm:$0xff]  ;;  %v9161_v8 = vld [vmem:[%s10504_s11 + $0x288] sm:$0xff] }
 0x24f   : > { %6976 = vmatpush.bf16.msrb.mxu2 %v9131_v4  ;;  %6928 = vmatmul.bf16.gmra.mxu3 %v7875_v9  ;;  %v7891_v4 = vor.u32 %v9051_v59, %v7888_v61  ;;  %v9145_v9 = vld [vmem:[%s10504_s11 + $0x208] sm:$0xff]  ;;  %v9194_v56 = vld [vmem:[%s10504_s11 + $0x390] sm:$0xff] }
 0x250   : > { %6995 = vmatpush.bf16.msrb.mxu3 %v9139_v11  ;;  %v9153_v10 = vld [vmem:[%s10504_s11 + $0x248] sm:$0xff]  ;;  %v9186_v58 = vld [vmem:[%s10504_s11 + $0x350] sm:$0xff] }
 0x251   : > { %6939 = vmatpush.bf16.msrb.mxu0 %v9114_v13  ;;  %v9169_v11 = vld [vmem:[%s10504_s11 + $0x2c8] sm:$0xff]  ;;  %v9199_v13 = vld [vmem:[%s10504_s11 + $0x3b8] sm:$0xff] }
 0x252   : > { %6958 = vmatpush.bf16.msrb.mxu1 %v9122_v14  ;;  %v9144_v14 = vld [vmem:[%s10504_s11 + $0x200] sm:$0xff] }
 0x253   : > { %6977 = vmatpush.bf16.msrb.mxu2 %v9130_v12  ;;  %v9160_v12 = vld [vmem:[%s10504_s11 + $0x280] sm:$0xff] }
 0x254   : > { %6996 = vmatpush.bf16.msrb.mxu3 %v9138_v15  ;;  %v9152_v15 = vld [vmem:[%s10504_s11 + $0x240] sm:$0xff] }
 0x255   : > { %6940 = vmatpush.bf16.msrb.mxu0 %v9113_v17  ;;  %v7766_v17 = vld [vmem:[%s11230_s0 + $0x20] sm:$0xf] }
 0x256   : > { %6959 = vmatpush.bf16.msrb.mxu1 %v9121_v18  ;;  %v9036_v18 = vld [vmem:[%s11230_s0 + $0x9c] sm:$0xf0] }
 0x257   : > { %6978 = vmatpush.bf16.msrb.mxu2 %v9129_v16  ;;  %v9168_v16 = vld [vmem:[%s10504_s11 + $0x2c0] sm:$0xff]  ;;  %v7767_v29 = vor.u32 %v9036_v18, %v7766_v17  ;;  %v7784_v17 = vld [vmem:[%s11230_s0 + $0xb0] sm:$0xf0]  ;;  %v7790_v18 = vld [vmem:[%s11230_s0 + $0x38] sm:$0xf] }
 0x258   : > { %6997 = vmatpush.bf16.msrb.mxu3 %v9137_v19  ;;  %v9183_v19 = vld [vmem:[%s10504_s11 + $0x338] sm:$0xff] }
 0x259   : > { %6941 = vmatpush.bf16.msrb.mxu0 %v9112_v21  ;;  %v9020_v21 = vld [vmem:[%s11230_s0 + $0x24] sm:$0xf] }
 0x25a   : > { %6960 = vmatpush.bf16.msrb.mxu1 %v9120_v22  ;;  %v9207_v22 = vld [vmem:[%s10504_s11 + $0x3f8] sm:$0xff]  ;;  %v7771_v31 = vor.u32 %v9020_v21, %v7768_v24  ;;  %v9238_v24 = vld [vmem:[%s10504_s11 + $0x4f0] sm:$0xff] }
 0x25b   : > { %6979 = vmatpush.bf16.msrb.mxu2 %v9128_v20  ;;  %v9191_v20 = vld [vmem:[%s10504_s11 + $0x378] sm:$0xff] }
 0x25c   : > { %6998 = vmatpush.bf16.msrb.mxu3 %v9136_v23  ;;  %6942 = vmatmul.bf16.vlgmr.msrb.gmra.mxu0 %v7751_v36  ;;  %v9198_v23 = vld [vmem:[%s10504_s11 + $0x3b0] sm:$0xff]  ;;  %v9197_v36 = vld [vmem:[%s10504_s11 + $0x3a8] sm:$0xff]  ;;  %v7792_v21 = vld [vmem:[%s11230_s0 + $0xb8] sm:$0xf0] }
 0x25d   : > { %7010 = vmatpush.bf16.msra.mxu0 %v9151_v26  ;;  %6961 = vmatmul.bf16.vlgmr.msrb.gmra.mxu1 %v7755_v38  ;;  %v9037_v26 = vld [vmem:[%s11230_s0 + $0xa4] sm:$0xf0] }
 0x25e   : > { %7029 = vmatpush.bf16.msra.mxu1 %v9159_v34  ;;  %6980 = vmatmul.bf16.vlgmr.msrb.gmra.mxu2 %v7759_v39  ;;  %v9182_v34 = vld [vmem:[%s10504_s11 + $0x330] sm:$0xff]  ;;  %v9181_v38 = vld [vmem:[%s10504_s11 + $0x328] sm:$0xff] }
 0x25f   : > { %7048 = vmatpush.bf16.msra.mxu2 %v9167_v25  ;;  %6999 = vmatmul.bf16.vlgmr.msrb.gmra.mxu3 %v7763_v40  ;;  %v7774_v25 = vld [vmem:[%s11230_s0 + $0x28] sm:$0xf]  ;;  %v9196_v40 = vld [vmem:[%s10504_s11 + $0x3a0] sm:$0xff] }
 0x260   : > { %7067 = vmatpush.bf16.msra.mxu3 %v9175_v35  ;;  %v7775_v32 = vor.u32 %v9037_v26, %v7774_v25  ;;  %v9206_v35 = vld [vmem:[%s10504_s11 + $0x3f0] sm:$0xff]  ;;  %v9205_v39 = vld [vmem:[%s10504_s11 + $0x3e8] sm:$0xff] }
 0x261   : > { %7011 = vmatpush.bf16.msra.mxu0 %v9150_v41  ;;  %v9188_v41 = vld [vmem:[%s10504_s11 + $0x360] sm:$0xff] }
 0x262   : > { %7030 = vmatpush.bf16.msra.mxu1 %v9158_v42  ;;  %v9180_v42 = vld [vmem:[%s10504_s11 + $0x320] sm:$0xff] }
 0x263   : > { %7049 = vmatpush.bf16.msra.mxu2 %v9166_v37  ;;  %v9189_v37 = vld [vmem:[%s10504_s11 + $0x368] sm:$0xff] }
 0x264   : > { %7068 = vmatpush.bf16.msra.mxu3 %v9174_v43  ;;  %v9204_v43 = vld [vmem:[%s10504_s11 + $0x3e0] sm:$0xff] }
 0x265   : > { %7012 = vmatpush.bf16.msra.mxu0 %v9149_v45  ;;  %v7894_v45 = vld [vmem:[%s11230_s0 + $0x120] sm:$0xf] }
 0x266   : > { %7031 = vmatpush.bf16.msra.mxu1 %v9157_v46  ;;  %v9068_v46 = vld [vmem:[%s11230_s0 + $0x19c] sm:$0xf0] }
 0x267   : > { %7050 = vmatpush.bf16.msra.mxu2 %v9165_v44  ;;  %v9195_v44 = vld [vmem:[%s10504_s11 + $0x398] sm:$0xff]  ;;  %v7895_v57 = vor.u32 %v9068_v46, %v7894_v45 }
 0x268   : > { %7069 = vmatpush.bf16.msra.mxu3 %v9173_v47  ;;  %v9187_v47 = vld [vmem:[%s10504_s11 + $0x358] sm:$0xff] }
 0x269   : > { %7013 = vmatpush.bf16.msra.mxu0 %v9148_v49  ;;  %v7896_v49 = vld [vmem:[%s11230_s0 + $0x1a0] sm:$0xf0]  ;;  %v9071_v45 = vld [vmem:[%s11230_s0 + $0x1b4] sm:$0xf0]  ;;  %v9055_v46 = vld [vmem:[%s11230_s0 + $0x13c] sm:$0xf] }
 0x26a   : > { %7032 = vmatpush.bf16.msra.mxu1 %v9156_v50  ;;  %v7902_v50 = vld [vmem:[%s11230_s0 + $0x128] sm:$0xf] }
 0x26b   : > { %7051 = vmatpush.bf16.msra.mxu2 %v9164_v48  ;;  %v9052_v48 = vld [vmem:[%s11230_s0 + $0x124] sm:$0xf] }
 0x26c   : > { %7070 = vmatpush.bf16.msra.mxu3 %v9172_v51  ;;  %6947 = vmatmul.bf16.gmra.mxu0 %v7879_v0  ;;  %v9069_v51 = vld [vmem:[%s11230_s0 + $0x1a4] sm:$0xf0]  ;;  %v7899_v59 = vor.u32 %v9052_v48, %v7896_v49  ;;  %v7920_v48 = vld [vmem:[%s11230_s0 + $0x1b8] sm:$0xf0]  ;;  %v9210_v49 = vld [vmem:[%s10504_s11 + $0x410] sm:$0xff] }
 0x26d   : > { %7014 = vmatpush.bf16.msra.mxu0 %v9147_v60  ;;  %6966 = vmatmul.bf16.gmra.mxu1 %v7883_v2  ;;  %v7903_v60 = vor.u32 %v9069_v51, %v7902_v50  ;;  %v9193_v0 = vld [vmem:[%s10504_s11 + $0x388] sm:$0xff]  ;;  %v9218_v50 = vld [vmem:[%s10504_s11 + $0x450] sm:$0xff] }
 0x26e   : > { %7033 = vmatpush.bf16.msra.mxu1 %v9155_v62  ;;  %6985 = vmatmul.bf16.gmra.mxu2 %v7887_v3  ;;  %v9178_v62 = vld [vmem:[%s10504_s11 + $0x310] sm:$0xff]  ;;  %v9177_v2 = vld [vmem:[%s10504_s11 + $0x308] sm:$0xff] }
 0x26f   : > { %7052 = vmatpush.bf16.msra.mxu2 %v9163_v54  ;;  %7004 = vmatmul.bf16.gmra.mxu3 %v7891_v4  ;;  %v7904_v54 = vld [vmem:[%s11230_s0 + $0x1a8] sm:$0xf0]  ;;  %v9192_v4 = vld [vmem:[%s10504_s11 + $0x380] sm:$0xff] }
 0x270   : > { %7071 = vmatpush.bf16.msra.mxu3 %v9171_v63  ;;  %v7907_v61 = vor.u32 %v9053_v52, %v7904_v54  ;;  %v9202_v63 = vld [vmem:[%s10504_s11 + $0x3d0] sm:$0xff]  ;;  %v9201_v3 = vld [vmem:[%s10504_s11 + $0x3c8] sm:$0xff] }
 0x271   : > { %7015 = vmatpush.bf16.msra.mxu0 %v9146_v5  ;;  %v9184_v5 = vld [vmem:[%s10504_s11 + $0x340] sm:$0xff]  ;;  %v9234_v52 = vld [vmem:[%s10504_s11 + $0x4d0] sm:$0xff] }
 0x272   : > { %7034 = vmatpush.bf16.msra.mxu1 %v9154_v6  ;;  %v9231_v6 = vld [vmem:[%s10504_s11 + $0x4b8] sm:$0xff] }
 0x273   : > { %7053 = vmatpush.bf16.msra.mxu2 %v9162_v1  ;;  %v9185_v1 = vld [vmem:[%s10504_s11 + $0x348] sm:$0xff] }
 0x274   : > { %7072 = vmatpush.bf16.msra.mxu3 %v9170_v7  ;;  %v9223_v7 = vld [vmem:[%s10504_s11 + $0x478] sm:$0xff] }
 0x275   : > { %7016 = vmatpush.bf16.msra.mxu0 %v9145_v9  ;;  %v9200_v9 = vld [vmem:[%s10504_s11 + $0x3c0] sm:$0xff] }
 0x276   : > { %7035 = vmatpush.bf16.msra.mxu1 %v9153_v10  ;;  %v9215_v10 = vld [vmem:[%s10504_s11 + $0x438] sm:$0xff] }
 0x277   : > { %7054 = vmatpush.bf16.msra.mxu2 %v9161_v8  ;;  %v9176_v8 = vld [vmem:[%s10504_s11 + $0x300] sm:$0xff] }
 0x278   : > { %7073 = vmatpush.bf16.msra.mxu3 %v9169_v11  ;;  %v7782_v11 = vld [vmem:[%s11230_s0 + $0x30] sm:$0xf] }
 0x279   : > { %7017 = vmatpush.bf16.msra.mxu0 %v9144_v14  ;;  %v9038_v14 = vld [vmem:[%s11230_s0 + $0xac] sm:$0xf0] }
 0x27a   : > { %7036 = vmatpush.bf16.msra.mxu1 %v9152_v15  ;;  %v9022_v15 = vld [vmem:[%s11230_s0 + $0x34] sm:$0xf] }
 0x27b   : > { %7055 = vmatpush.bf16.msra.mxu2 %v9160_v12  ;;  %v9239_v12 = vld [vmem:[%s10504_s11 + $0x4f8] sm:$0xff]  ;;  %v7787_v25 = vor.u32 %v9022_v15, %v7784_v17  ;;  %v9025_v15 = vld [vmem:[%s11230_s0 + $0x4c] sm:$0xf] }
 0x27c   : > { %7074 = vmatpush.bf16.msra.mxu3 %v9168_v16  ;;  %7018 = vmatmul.bf16.vlgmr.msra.gmra.mxu0 %v7767_v29  ;;  %v9222_v16 = vld [vmem:[%s10504_s11 + $0x470] sm:$0xff]  ;;  %v9213_v29 = vld [vmem:[%s10504_s11 + $0x428] sm:$0xff] }
 0x27d   : > { %7086 = vmatpush.bf16.msrb.mxu0 %v9183_v19  ;;  %7037 = vmatmul.bf16.vlgmr.msra.gmra.mxu1 %v7771_v31  ;;  %v9039_v19 = vld [vmem:[%s11230_s0 + $0xb4] sm:$0xf0]  ;;  %v9237_v31 = vld [vmem:[%s10504_s11 + $0x4e8] sm:$0xff] }
 0x27e   : > { %7105 = vmatpush.bf16.msrb.mxu1 %v9191_v20  ;;  %7056 = vmatmul.bf16.vlgmr.msra.gmra.mxu2 %v7775_v32  ;;  %v9023_v20 = vld [vmem:[%s11230_s0 + $0x3c] sm:$0xf]  ;;  %v7791_v26 = vor.u32 %v9039_v19, %v7790_v18  ;;  %v9228_v32 = vld [vmem:[%s10504_s11 + $0x4a0] sm:$0xff]  ;;  %v9261_v18 = vld [vmem:[%s10504_s11 + $0x5a8] sm:$0xff] }
 0x27f   : > { %7124 = vmatpush.bf16.msrb.mxu2 %v9199_v13  ;;  %7075 = vmatmul.bf16.vlgmr.msra.gmra.mxu3 %v7779_v33  ;;  %v9230_v13 = vld [vmem:[%s10504_s11 + $0x4b0] sm:$0xff]  ;;  %v7795_v27 = vor.u32 %v9023_v20, %v7792_v21  ;;  %v9212_v33 = vld [vmem:[%s10504_s11 + $0x420] sm:$0xff] }
 0x280   : > { %7143 = vmatpush.bf16.msrb.mxu3 %v9207_v22  ;;  %v9214_v22 = vld [vmem:[%s10504_s11 + $0x430] sm:$0xff] }
 0x281   : > { %7087 = vmatpush.bf16.msrb.mxu0 %v9182_v34  ;;  %v9220_v34 = vld [vmem:[%s10504_s11 + $0x460] sm:$0xff] }
 0x282   : > { %7106 = vmatpush.bf16.msrb.mxu1 %v9190_v30  ;;  %v9221_v30 = vld [vmem:[%s10504_s11 + $0x468] sm:$0xff] }
 0x283   : > { %7125 = vmatpush.bf16.msrb.mxu2 %v9198_v23  ;;  %v7783_v23 = vor.u32 %v9038_v14, %v7782_v11  ;;  %v9254_v11 = vld [vmem:[%s10504_s11 + $0x570] sm:$0xff] }
 0x284   : > { %7144 = vmatpush.bf16.msrb.mxu3 %v9206_v35  ;;  %v9236_v35 = vld [vmem:[%s10504_s11 + $0x4e0] sm:$0xff]  ;;  %v9270_v14 = vld [vmem:[%s10504_s11 + $0x5f0] sm:$0xff] }
 0x285   : > { %7088 = vmatpush.bf16.msrb.mxu0 %v9181_v38  ;;  %v9219_v38 = vld [vmem:[%s10504_s11 + $0x458] sm:$0xff] }
 0x286   : > { %7107 = vmatpush.bf16.msrb.mxu1 %v9189_v37  ;;  %v9211_v37 = vld [vmem:[%s10504_s11 + $0x418] sm:$0xff] }
 0x287   : > { %7126 = vmatpush.bf16.msrb.mxu2 %v9197_v36  ;;  %v9227_v36 = vld [vmem:[%s10504_s11 + $0x498] sm:$0xff] }
 0x288   : > { %7145 = vmatpush.bf16.msrb.mxu3 %v9205_v39  ;;  %v7910_v39 = vld [vmem:[%s11230_s0 + $0x130] sm:$0xf] }
 0x289   : > { %7089 = vmatpush.bf16.msrb.mxu0 %v9180_v42  ;;  %v9054_v42 = vld [vmem:[%s11230_s0 + $0x134] sm:$0xf] }
 0x28a   : > { %7108 = vmatpush.bf16.msrb.mxu1 %v9188_v41  ;;  %v9235_v41 = vld [vmem:[%s10504_s11 + $0x4d8] sm:$0xff] }
 0x28b   : > { %7127 = vmatpush.bf16.msrb.mxu2 %v9196_v40  ;;  %v9070_v40 = vld [vmem:[%s11230_s0 + $0x1ac] sm:$0xf0] }
 0x28c   : > { %7146 = vmatpush.bf16.msrb.mxu3 %v9204_v43  ;;  %7023 = vmatmul.bf16.gmra.mxu0 %v7895_v57  ;;  %v7912_v43 = vld [vmem:[%s11230_s0 + $0x1b0] sm:$0xf0]  ;;  %v7911_v51 = vor.u32 %v9070_v40, %v7910_v39  ;;  %v9209_v57 = vld [vmem:[%s10504_s11 + $0x408] sm:$0xff]  ;;  %v9243_v40 = vld [vmem:[%s10504_s11 + $0x518] sm:$0xff] }
 0x28d   : > { %7090 = vmatpush.bf16.msrb.mxu0 %v9179_v53  ;;  %7042 = vmatmul.bf16.gmra.mxu1 %v7899_v59  ;;  %v7915_v53 = vor.u32 %v9054_v42, %v7912_v43  ;;  %v9233_v59 = vld [vmem:[%s10504_s11 + $0x4c8] sm:$0xff]  ;;  %v9251_v42 = vld [vmem:[%s10504_s11 + $0x558] sm:$0xff] }
 0x28e   : > { %7109 = vmatpush.bf16.msrb.mxu1 %v9187_v47  ;;  %7061 = vmatmul.bf16.gmra.mxu2 %v7903_v60  ;;  %v9226_v47 = vld [vmem:[%s10504_s11 + $0x490] sm:$0xff]  ;;  %v9224_v60 = vld [vmem:[%s10504_s11 + $0x480] sm:$0xff]  ;;  %v9267_v43 = vld [vmem:[%s10504_s11 + $0x5d8] sm:$0xff] }
 0x28f   : > { %7128 = vmatpush.bf16.msrb.mxu2 %v9195_v44  ;;  %7080 = vmatmul.bf16.gmra.mxu3 %v7907_v61  ;;  %v7918_v44 = vld [vmem:[%s11230_s0 + $0x138] sm:$0xf]  ;;  %v9208_v61 = vld [vmem:[%s10504_s11 + $0x400] sm:$0xff] }
 0x290   : > { %7147 = vmatpush.bf16.msrb.mxu3 %v9203_v55  ;;  %v7919_v54 = vor.u32 %v9071_v45, %v7918_v44  ;;  %v7923_v55 = vor.u32 %v9055_v46, %v7920_v48  ;;  %v7926_v45 = vld [vmem:[%s11230_s0 + $0x140] sm:$0xf]  ;;  %v9056_v48 = vld [vmem:[%s11230_s0 + $0x144] sm:$0xf] }
 0x291   : > { %7091 = vmatpush.bf16.msrb.mxu0 %v9178_v62  ;;  %v9216_v62 = vld [vmem:[%s10504_s11 + $0x440] sm:$0xff] }
 0x292   : > { %7110 = vmatpush.bf16.msrb.mxu1 %v9186_v58  ;;  %v9217_v58 = vld [vmem:[%s10504_s11 + $0x448] sm:$0xff]  ;;  %v9072_v46 = vld [vmem:[%s11230_s0 + $0x1bc] sm:$0xf0] }
 0x293   : > { %7129 = vmatpush.bf16.msrb.mxu2 %v9194_v56  ;;  %v9225_v56 = vld [vmem:[%s10504_s11 + $0x488] sm:$0xff] }
 0x294   : > { %7148 = vmatpush.bf16.msrb.mxu3 %v9202_v63  ;;  %v9232_v63 = vld [vmem:[%s10504_s11 + $0x4c0] sm:$0xff] }
 0x295   : > { %7092 = vmatpush.bf16.msrb.mxu0 %v9177_v2  ;;  %v9255_v2 = vld [vmem:[%s10504_s11 + $0x578] sm:$0xff] }
 0x296   : > { %7111 = vmatpush.bf16.msrb.mxu1 %v9185_v1  ;;  %v9247_v1 = vld [vmem:[%s10504_s11 + $0x538] sm:$0xff] }
 0x297   : > { %7130 = vmatpush.bf16.msrb.mxu2 %v9193_v0  ;;  %v9263_v0 = vld [vmem:[%s10504_s11 + $0x5b8] sm:$0xff] }
 0x298   : > { %7149 = vmatpush.bf16.msrb.mxu3 %v9201_v3  ;;  %v9271_v3 = vld [vmem:[%s10504_s11 + $0x5f8] sm:$0xff] }
 0x299   : > { %7093 = vmatpush.bf16.msrb.mxu0 %v9176_v8  ;;  %v9262_v8 = vld [vmem:[%s10504_s11 + $0x5b0] sm:$0xff] }
 0x29a   : > { %7112 = vmatpush.bf16.msrb.mxu1 %v9184_v5  ;;  %v10878_v5 = vld [vmem:[%s4415_s14] ss:$0 sm:$0xff]  ;;  %s9013_s14 = sshll.u32 (%p9461_p5), %s9446_s21, 2 }
 0x29b   : > { %7131 = vmatpush.bf16.msrb.mxu2 %v9192_v4  ;;  %v7798_v4 = vld [vmem:[%s11230_s0 + $0x40] sm:$0xf]  ;;  %s7578_s20 = scalar_lea.vmem (%p9461_p5), %s11235_s5, %s9013_s14 }
 0x29c   : > { %7150 = vmatpush.bf16.msrb.mxu3 %v9200_v9  ;;  %7094 = vmatmul.bf16.vlgmr.msrb.gmra.mxu0 %v7783_v23  ;;  %v7800_v9 = vld [vmem:[%s11230_s0 + $0xc0] sm:$0xf0] }
 0x29d   : > { %7162 = vmatpush.bf16.msra.mxu0 %v9215_v10  ;;  %7113 = vmatmul.bf16.vlgmr.msrb.gmra.mxu1 %v7787_v25  ;;  %v9246_v10 = vld [vmem:[%s10504_s11 + $0x530] sm:$0xff]  ;;  %v9245_v25 = vld [vmem:[%s10504_s11 + $0x528] sm:$0xff] }
 0x29e   : > { %7181 = vmatpush.bf16.msra.mxu1 %v9223_v7  ;;  %7132 = vmatmul.bf16.vlgmr.msrb.gmra.mxu2 %v7791_v26  ;;  %v9024_v7 = vld [vmem:[%s11230_s0 + $0x44] sm:$0xf]  ;;  %v9253_v26 = vld [vmem:[%s10504_s11 + $0x568] sm:$0xff] }
 0x29f   : > { %7200 = vmatpush.bf16.msra.mxu2 %v9231_v6  ;;  %7151 = vmatmul.bf16.vlgmr.msrb.gmra.mxu3 %v7795_v27  ;;  %v9040_v6 = vld [vmem:[%s11230_s0 + $0xbc] sm:$0xf0]  ;;  %v7803_v21 = vor.u32 %v9024_v7, %v7800_v9  ;;  %v9269_v27 = vld [vmem:[%s10504_s11 + $0x5e8] sm:$0xff] }
 0x2a0   : > { %7219 = vmatpush.bf16.msra.mxu3 %v9239_v12  ;;  %v7806_v12 = vld [vmem:[%s11230_s0 + $0x48] sm:$0xf]  ;;  %v7799_v17 = vor.u32 %v9040_v6, %v7798_v4 }
 0x2a1   : > { %7163 = vmatpush.bf16.msra.mxu0 %v9214_v22  ;;  %v9241_v4 = vld [vmem:[%s10504_s11 + $0x508] sm:$0xff] }
 0x2a2   : > { %7182 = vmatpush.bf16.msra.mxu1 %v9222_v16  ;;  %v7808_v16 = vld [vmem:[%s11230_s0 + $0xc8] sm:$0xf0] }
 0x2a3   : > { %7201 = vmatpush.bf16.msra.mxu2 %v9230_v13  ;;  %v9041_v13 = vld [vmem:[%s11230_s0 + $0xc4] sm:$0xf0] }
 0x2a4   : > { %7220 = vmatpush.bf16.msra.mxu3 %v9238_v24  ;;  %v7807_v22 = vor.u32 %v9041_v13, %v7806_v12  ;;  %v7811_v24 = vor.u32 %v9025_v15, %v7808_v16  ;;  %v9249_v7 = vld [vmem:[%s10504_s11 + $0x548] sm:$0xff]  ;;  %v9240_v12 = vld [vmem:[%s10504_s11 + $0x500] sm:$0xff] }
 0x2a5   : > { %7164 = vmatpush.bf16.msra.mxu0 %v9213_v29  ;;  %v9260_v29 = vld [vmem:[%s10504_s11 + $0x5a0] sm:$0xff] }
 0x2a6   : > { %7183 = vmatpush.bf16.msra.mxu1 %v9221_v30  ;;  %v9244_v30 = vld [vmem:[%s10504_s11 + $0x520] sm:$0xff] }
 0x2a7   : > { %7202 = vmatpush.bf16.msra.mxu2 %v9229_v28  ;;  %v9248_v13 = vld [vmem:[%s10504_s11 + $0x540] sm:$0xff] }
 0x2a8   : > { %7221 = vmatpush.bf16.msra.mxu3 %v9237_v31  ;;  %v9252_v31 = vld [vmem:[%s10504_s11 + $0x560] sm:$0xff] }
 0x2a9   : > { %7165 = vmatpush.bf16.msra.mxu0 %v9212_v33 }
 0x2aa   : > { %7184 = vmatpush.bf16.msra.mxu1 %v9220_v34 }
 0x2ab   : > { %7203 = vmatpush.bf16.msra.mxu2 %v9228_v32  ;;  %v9268_v32 = vld [vmem:[%s10504_s11 + $0x5e0] sm:$0xff] }
 0x2ac   : > { %7222 = vmatpush.bf16.msra.mxu3 %v9236_v35  ;;  %7099 = vmatmul.bf16.gmra.mxu0 %v7911_v51  ;;  %v9259_v35 = vld [vmem:[%s10504_s11 + $0x598] sm:$0xff]  ;;  %v9073_v51 = vld [vmem:[%s11230_s0 + $0x1c4] sm:$0xf0] }
 0x2ad   : > { %7166 = vmatpush.bf16.msra.mxu0 %v9211_v37  ;;  %7118 = vmatmul.bf16.gmra.mxu1 %v7915_v53  ;;  %v9242_v53 = vld [vmem:[%s10504_s11 + $0x510] sm:$0xff] }
 0x2ae   : > { %7185 = vmatpush.bf16.msra.mxu1 %v9219_v38  ;;  %7137 = vmatmul.bf16.gmra.mxu2 %v7919_v54  ;;  %v7936_v54 = vld [vmem:[%s11230_s0 + $0x1c8] sm:$0xf0] }
 0x2af   : > { %7204 = vmatpush.bf16.msra.mxu2 %v9227_v36  ;;  %7156 = vmatmul.bf16.gmra.mxu3 %v7923_v55  ;;  %v9250_v55 = vld [vmem:[%s10504_s11 + $0x550] sm:$0xff] }
 0x2b0   : > { %7223 = vmatpush.bf16.msra.mxu3 %v9235_v41 }
 0x2b1   : > { %7167 = vmatpush.bf16.msra.mxu0 %v9210_v49  ;;  %v7928_v49 = vld [vmem:[%s11230_s0 + $0x1c0] sm:$0xf0] }
 0x2b2   : > { %7186 = vmatpush.bf16.msra.mxu1 %v9218_v50  ;;  %v7934_v50 = vld [vmem:[%s11230_s0 + $0x148] sm:$0xf] }
 0x2b3   : > { %7205 = vmatpush.bf16.msra.mxu2 %v9226_v47  ;;  %v9258_v47 = vld [vmem:[%s10504_s11 + $0x590] sm:$0xff] }
 0x2b4   : > { %7224 = vmatpush.bf16.msra.mxu3 %v9234_v52  ;;  %v9057_v52 = vld [vmem:[%s11230_s0 + $0x14c] sm:$0xf] }
 0x2b5   : > { %7168 = vmatpush.bf16.msra.mxu0 %v9209_v57 }
 0x2b6   : > { %7187 = vmatpush.bf16.msra.mxu1 %v9217_v58 }
 0x2b7   : > { %7206 = vmatpush.bf16.msra.mxu2 %v9225_v56  ;;  %v9266_v56 = vld [vmem:[%s10504_s11 + $0x5d0] sm:$0xff] }
 0x2b8   : > { %7225 = vmatpush.bf16.msra.mxu3 %v9233_v59  ;;  %v7927_v59 = vor.u32 %v9072_v46, %v7926_v45 }
 0x2b9   : > { %7169 = vmatpush.bf16.msra.mxu0 %v9208_v61  ;;  %v6867_v19 = vpop.f32.mrf.mxu0 }
 0x2ba   : > { %7188 = vmatpush.bf16.msra.mxu1 %v9216_v62  ;;  %v6886_v20 = vpop.f32.mrf.mxu1  ;;  %v6868_v23 = vadd.f32 %v10878_v5, %v6867_v19 }
 0x2bb   : > { %7207 = vmatpush.bf16.msra.mxu2 %v9224_v60  ;;  %v9257_v60 = vld [vmem:[%s10504_s11 + $0x588] sm:$0xff] }
 0x2bc   : > { %7226 = vmatpush.bf16.msra.mxu3 %v9232_v63  ;;  %v6887_v28 = vadd.f32 %v6886_v20, %v6868_v23  ;;  %7170 = vmatmul.bf16.vlgmr.msra.gmra.mxu0 %v7799_v17  ;;  %v9279_v17 = vld [vmem:[%s10504_s11 + $0x638] sm:$0xff]  ;;  %v9294_v23 = vld [vmem:[%s10504_s11 + $0x6b0] sm:$0xff] }
 0x2bd   : > { %7238 = vmatpush.bf16.msrb.mxu0 %v9247_v1  ;;  %7189 = vmatmul.bf16.vlgmr.msra.gmra.mxu1 %v7803_v21  ;;  %v7935_v1 = vor.u32 %v9073_v51, %v7934_v50  ;;  %v9277_v50 = vld [vmem:[%s10504_s11 + $0x628] sm:$0xff] }
 0x2be   : > { %7257 = vmatpush.bf16.msrb.mxu1 %v9255_v2  ;;  %7208 = vmatmul.bf16.vlgmr.msra.gmra.mxu2 %v7807_v22  ;;  %v9303_v22 = vld [vmem:[%s10504_s11 + $0x6f8] sm:$0xff] }
 0x2bf   : > { %7276 = vmatpush.bf16.msrb.mxu2 %v9263_v0  ;;  %7227 = vmatmul.bf16.vlgmr.msra.gmra.mxu3 %v7811_v24  ;;  %v7931_v0 = vor.u32 %v9056_v48, %v7928_v49 }
 0x2c0   : > { %7295 = vmatpush.bf16.msrb.mxu3 %v9271_v3  ;;  %v7939_v3 = vor.u32 %v9057_v52, %v7936_v54  ;;  %v9301_v52 = vld [vmem:[%s10504_s11 + $0x6e8] sm:$0xff] }
 0x2c1   : > { %7239 = vmatpush.bf16.msrb.mxu0 %v9246_v10  ;;  %v6905_v33 = vpop.f32.mrf.mxu2  ;;  %v6869_v37 = vpop.f32.mrf.mxu0  ;;  %v9256_v10 = vld [vmem:[%s10504_s11 + $0x580] sm:$0xff] }
 0x2c2   : > { %7258 = vmatpush.bf16.msrb.mxu1 %v9254_v11  ;;  %v6924_v34 = vpop.f32.mrf.mxu3  ;;  %v6906_v36 = vadd.f32 %v6905_v33, %v6887_v28  ;;  %v6888_v38 = vpop.f32.mrf.mxu1  ;;  %v6870_v39 = vadd.f32 %v10878_v5, %v6869_v37  ;;  %v9295_v11 = vld [vmem:[%s10504_s11 + $0x6b8] sm:$0xff]  ;;  %v9042_v28 = vld [vmem:[%s11230_s0 + $0xcc] sm:$0xf0]  ;;  %v7816_v33 = vld [vmem:[%s11230_s0 + $0xd0] sm:$0xf0] }
 0x2c3   : > { %7277 = vmatpush.bf16.msrb.mxu2 %v9262_v8  ;;  %v9265_v8 = vld [vmem:[%s10504_s11 + $0x5c8] sm:$0xff]  ;;  %v7824_v37 = vld [vmem:[%s11230_s0 + $0xd8] sm:$0xf0] }
 0x2c4   : > { %7296 = vmatpush.bf16.msrb.mxu3 %v9270_v14  ;;  %v10917_v41 = vadd.f32 %v6924_v34, %v6906_v36  ;;  %v6889_v44 = vadd.f32 %v6888_v38, %v6870_v39  ;;  %v9264_v14 = vld [vmem:[%s10504_s11 + $0x5c0] sm:$0xff]  ;;  %v7822_v34 = vld [vmem:[%s11230_s0 + $0x58] sm:$0xf]  ;;  %v9027_v36 = vld [vmem:[%s11230_s0 + $0x5c] sm:$0xf] }
 0x2c5   : > { %7240 = vmatpush.bf16.msrb.mxu0 %v9245_v25  ;;  %v7827_v49 = vor.u32 %v9027_v36, %v7824_v37  ;;  %v9319_v36 = vld [vmem:[%s10504_s11 + $0x778] sm:$0xff]  ;;  %v9272_v37 = vld [vmem:[%s10504_s11 + $0x600] sm:$0xff] }
 0x2c6   : > { %7259 = vmatpush.bf16.msrb.mxu1 %v9253_v26  ;;  %v7814_v26 = vld [vmem:[%s11230_s0 + $0x50] sm:$0xf] }
 0x2c7   : > { %7278 = vmatpush.bf16.msrb.mxu2 %v9261_v18  ;;  %v9287_v18 = vld [vmem:[%s10504_s11 + $0x678] sm:$0xff] }
 0x2c8   : > { %7297 = vmatpush.bf16.msrb.mxu3 %v9269_v27 }
 0x2c9   : > { %7241 = vmatpush.bf16.msrb.mxu0 %v9244_v30  ;;  %v6907_v57 = vpop.f32.mrf.mxu2  ;;  %v6872_v62 = vpop.f32.mrf.mxu0  ;;  %v9286_v30 = vld [vmem:[%s10504_s11 + $0x670] sm:$0xff] }
 0x2ca   : > { %7260 = vmatpush.bf16.msrb.mxu1 %v9252_v31  ;;  %v6926_v58 = vpop.f32.mrf.mxu3  ;;  %v6908_v61 = vadd.f32 %v6907_v57, %v6889_v44  ;;  %v6891_v63 = vpop.f32.mrf.mxu1  ;;  %v6873_v2 = vadd.f32 %v10878_v5, %v6872_v62  ;;  %v9302_v31 = vld [vmem:[%s10504_s11 + $0x6f0] sm:$0xff]  ;;  %v9291_v57 = vld [vmem:[%s10504_s11 + $0x698] sm:$0xff] }
 0x2cb   : > { %7279 = vmatpush.bf16.msrb.mxu2 %v9260_v29  ;;  %v9278_v29 = vld [vmem:[%s10504_s11 + $0x630] sm:$0xff] }
 0x2cc   : > { %7298 = vmatpush.bf16.msrb.mxu3 %v9268_v32  ;;  %v10952_v6 = vadd.f32 %v6926_v58, %v6908_v61  ;;  %v6892_v9 = vadd.f32 %v6891_v63, %v6873_v2  ;;  %7175 = vmatmul.bf16.gmra.mxu0 %v7927_v59  ;;  %v9293_v32 = vld [vmem:[%s10504_s11 + $0x6a8] sm:$0xff]  ;;  %v9283_v59 = vld [vmem:[%s10504_s11 + $0x658] sm:$0xff] }
 0x2cd   : > { %7242 = vmatpush.bf16.msrb.mxu0 %v9243_v40  ;;  %7194 = vmatmul.bf16.gmra.mxu1 %v7931_v0  ;;  %v7815_v40 = vor.u32 %v9042_v28, %v7814_v26 }
 0x2ce   : > { %7261 = vmatpush.bf16.msrb.mxu1 %v9251_v42  ;;  %7213 = vmatmul.bf16.gmra.mxu2 %v7935_v1  ;;  %v9285_v42 = vld [vmem:[%s10504_s11 + $0x668] sm:$0xff]  ;;  %v9275_v1 = vld [vmem:[%s10504_s11 + $0x618] sm:$0xff] }
 0x2cf   : > { %7280 = vmatpush.bf16.msrb.mxu2 %v9259_v35  ;;  %7232 = vmatmul.bf16.gmra.mxu3 %v7939_v3  ;;  %v9043_v35 = vld [vmem:[%s11230_s0 + $0xd4] sm:$0xf0] }
 0x2d0   : > { %7299 = vmatpush.bf16.msrb.mxu3 %v9267_v43  ;;  %v7823_v46 = vor.u32 %v9043_v35, %v7822_v34  ;;  %v9299_v3 = vld [vmem:[%s10504_s11 + $0x6d8] sm:$0xff]  ;;  %v9280_v35 = vld [vmem:[%s10504_s11 + $0x640] sm:$0xff] }
 0x2d1   : > { %7243 = vmatpush.bf16.msrb.mxu0 %v9242_v53  ;;  %v6910_v15 = vpop.f32.mrf.mxu2  ;;  %v6874_v20 = vpop.f32.mrf.mxu0  ;;  %v9292_v53 = vld [vmem:[%s10504_s11 + $0x6a0] sm:$0xff] }
 0x2d2   : > { %7262 = vmatpush.bf16.msrb.mxu1 %v9250_v55  ;;  %v6929_v16 = vpop.f32.mrf.mxu3  ;;  %v6911_v19 = vadd.f32 %v6910_v15, %v6892_v9  ;;  %v6893_v21 = vpop.f32.mrf.mxu1  ;;  %v6875_v24 = vadd.f32 %v10878_v5, %v6874_v20  ;;  %v9026_v5 = vld [vmem:[%s11230_s0 + $0x54] sm:$0xf]  ;;  %v9284_v55 = vld [vmem:[%s10504_s11 + $0x660] sm:$0xff] }
 0x2d3   : > { %7281 = vmatpush.bf16.msrb.mxu2 %v9258_v47  ;;  %v7819_v45 = vor.u32 %v9026_v5, %v7816_v33  ;;  %v9282_v9 = vld [vmem:[%s10504_s11 + $0x650] sm:$0xff]  ;;  %v9273_v5 = vld [vmem:[%s10504_s11 + $0x608] sm:$0xff]  ;;  %v9288_v33 = vld [vmem:[%s10504_s11 + $0x680] sm:$0xff] }
 0x2d4   : > { %7300 = vmatpush.bf16.msrb.mxu3 %v9266_v56  ;;  %v10966_v25 = vadd.f32 %v6929_v16, %v6911_v19  ;;  %v6894_v27 = vadd.f32 %v6893_v21, %v6875_v24  ;;  %v9300_v56 = vld [vmem:[%s10504_s11 + $0x6e0] sm:$0xff]  ;;  %v9274_v15 = vld [vmem:[%s10504_s11 + $0x610] sm:$0xff]  ;;  %v7952_v16 = vld [vmem:[%s11230_s0 + $0x1d8] sm:$0xf0] }
 0x2d5   : > { %7244 = vmatpush.bf16.msrb.mxu0 %v9241_v4  ;;  %v9290_v4 = vld [vmem:[%s10504_s11 + $0x690] sm:$0xff]  ;;  %v9281_v21 = vld [vmem:[%s10504_s11 + $0x648] sm:$0xff] }
 0x2d6   : > { %7263 = vmatpush.bf16.msrb.mxu1 %v9249_v7 }
 0x2d7   : > { %7282 = vmatpush.bf16.msrb.mxu2 %v9257_v60 }
 0x2d8   : > { %7301 = vmatpush.bf16.msrb.mxu3 %v9265_v8  ;;  %v7942_v8 = vld [vmem:[%s11230_s0 + $0x150] sm:$0xf] }
 0x2d9   : > { %7245 = vmatpush.bf16.msrb.mxu0 %v9240_v12  ;;  %v6912_v38 = vpop.f32.mrf.mxu2  ;;  %v6943_v44 = vpop.f32.mrf.mxu0  ;;  %v7950_v12 = vld [vmem:[%s11230_s0 + $0x158] sm:$0xf] }
 0x2da   : > { %7264 = vmatpush.bf16.msrb.mxu1 %v9248_v13  ;;  %v6931_v39 = vpop.f32.mrf.mxu3  ;;  %v6913_v43 = vadd.f32 %v6912_v38, %v6894_v27  ;;  %v6944_v47 = vadd.f32 %v6943_v44, %v10917_v41  ;;  %v6962_v48 = vpop.f32.mrf.mxu1  ;;  %v9276_v41 = vld [vmem:[%s10504_s11 + $0x620] sm:$0xff]  ;;  %v9075_v13 = vld [vmem:[%s11230_s0 + $0x1d4] sm:$0xf0] }
 0x2db   : > { %7283 = vmatpush.bf16.msrb.mxu2 %v9256_v10  ;;  %v9058_v10 = vld [vmem:[%s11230_s0 + $0x154] sm:$0xf]  ;;  %v7951_v27 = vor.u32 %v9075_v13, %v7950_v12  ;;  %v9296_v38 = vld [vmem:[%s10504_s11 + $0x6c0] sm:$0xff] }
 0x2dc   : > { %7302 = vmatpush.bf16.msrb.mxu3 %v9264_v14  ;;  %v10999_v51 = vadd.f32 %v6931_v39, %v6913_v43  ;;  %v6963_v54 = vadd.f32 %v6962_v48, %v6944_v47  ;;  %7246 = vmatmul.bf16.vlgmr.msrb.gmra.mxu0 %v7815_v40  ;;  %v9059_v14 = vld [vmem:[%s11230_s0 + $0x15c] sm:$0xf]  ;;  %v9326_v43 = vld [vmem:[%s10504_s11 + $0x7b0] sm:$0xff]  ;;  %v9324_v13 = vld [vmem:[%s10504_s11 + $0x7a0] sm:$0xff] }
 0x2dd   : > { %7314 = vmatpush.bf16.msra.mxu0 %v9279_v17  ;;  %7265 = vmatmul.bf16.vlgmr.msrb.gmra.mxu1 %v7819_v45  ;;  %v9298_v17 = vld [vmem:[%s10504_s11 + $0x6d0] sm:$0xff]  ;;  %v9311_v39 = vld [vmem:[%s10504_s11 + $0x738] sm:$0xff] }
 0x2de   : > { %7333 = vmatpush.bf16.msra.mxu1 %v9287_v18  ;;  %7284 = vmatmul.bf16.vlgmr.msrb.gmra.mxu2 %v7823_v46  ;;  %v9289_v18 = vld [vmem:[%s10504_s11 + $0x688] sm:$0xff]  ;;  %v9318_v47 = vld [vmem:[%s10504_s11 + $0x770] sm:$0xff] }
 0x2df   : > { %7352 = vmatpush.bf16.msra.mxu2 %v9295_v11  ;;  %7303 = vmatmul.bf16.vlgmr.msrb.gmra.mxu3 %v7827_v49  ;;  %v7944_v11 = vld [vmem:[%s11230_s0 + $0x1d0] sm:$0xf0] }
 0x2e0   : > { %7371 = vmatpush.bf16.msra.mxu3 %v9303_v22  ;;  %v7947_v26 = vor.u32 %v9058_v10, %v7944_v11 }
 0x2e1   : > { %7315 = vmatpush.bf16.msra.mxu0 %v9278_v29  ;;  %v6981_v58 = vpop.f32.mrf.mxu2  ;;  %v6945_v62 = vpop.f32.mrf.mxu0 }
 0x2e2   : > { %7334 = vmatpush.bf16.msra.mxu1 %v9286_v30  ;;  %v6982_v60 = vadd.f32 %v6981_v58, %v6963_v54  ;;  %v7000_v61 = vpop.f32.mrf.mxu3  ;;  %v6946_v63 = vadd.f32 %v6945_v62, %v10952_v6  ;;  %v6964_v0 = vpop.f32.mrf.mxu1  ;;  %v9074_v6 = vld [vmem:[%s11230_s0 + $0x1cc] sm:$0xf0]  ;;  %v7955_v30 = vor.u32 %v9059_v14, %v7952_v16  ;;  %v7830_v54 = vld [vmem:[%s11230_s0 + $0x60] sm:$0xf]  ;;  %v7832_v58 = vld [vmem:[%s11230_s0 + $0xe0] sm:$0xf0] }
 0x2e3   : > { %7353 = vmatpush.bf16.msra.mxu2 %v9294_v23  ;;  %v7943_v20 = vor.u32 %v9074_v6, %v7942_v8  ;;  %v7840_v62 = vld [vmem:[%s11230_s0 + $0xe8] sm:$0xf0]  ;;  %v9316_v16 = vld [vmem:[%s10504_s11 + $0x760] sm:$0xff] }
 0x2e4   : > { %7372 = vmatpush.bf16.msra.mxu3 %v9302_v31  ;;  %v11010_v2 = vadd.f32 %v7000_v61, %v6982_v60  ;;  %v6965_v7 = vadd.f32 %v6964_v0, %v6946_v63  ;;  %v9045_v60 = vld [vmem:[%s11230_s0 + $0xe4] sm:$0xf0]  ;;  %v9029_v61 = vld [vmem:[%s11230_s0 + $0x6c] sm:$0xf] }
 0x2e5   : > { %7316 = vmatpush.bf16.msra.mxu0 %v9277_v50  ;;  %v9309_v63 = vld [vmem:[%s10504_s11 + $0x728] sm:$0xff]  ;;  %v7843_v12 = vor.u32 %v9029_v61, %v7840_v62  ;;  %v9328_v61 = vld [vmem:[%s10504_s11 + $0x7c0] sm:$0xff] }
 0x2e6   : > { %7335 = vmatpush.bf16.msra.mxu1 %v9285_v42  ;;  %v9335_v42 = vld [vmem:[%s10504_s11 + $0x7f8] sm:$0xff] }
 0x2e7   : > { %7354 = vmatpush.bf16.msra.mxu2 %v9293_v32  ;;  %v9297_v32 = vld [vmem:[%s10504_s11 + $0x6c8] sm:$0xff] }
 0x2e8   : > { %7373 = vmatpush.bf16.msra.mxu3 %v9301_v52  ;;  %v9310_v52 = vld [vmem:[%s10504_s11 + $0x730] sm:$0xff] }
 0x2e9   : > { %7317 = vmatpush.bf16.msra.mxu0 %v9276_v41  ;;  %v6983_v19 = vpop.f32.mrf.mxu2  ;;  %v6948_v24 = vpop.f32.mrf.mxu0  ;;  %v9325_v41 = vld [vmem:[%s10504_s11 + $0x7a8] sm:$0xff] }
 0x2ea   : > { %7336 = vmatpush.bf16.msra.mxu1 %v9284_v55  ;;  %v6984_v22 = vadd.f32 %v6983_v19, %v6965_v7  ;;  %v7002_v23 = vpop.f32.mrf.mxu3  ;;  %v6949_v28 = vadd.f32 %v6948_v24, %v10966_v25  ;;  %v6967_v29 = vpop.f32.mrf.mxu1  ;;  %v9327_v25 = vld [vmem:[%s10504_s11 + $0x7b8] sm:$0xff]  ;;  %v9334_v55 = vld [vmem:[%s10504_s11 + $0x7f0] sm:$0xff] }
 0x2eb   : > { %7355 = vmatpush.bf16.msra.mxu2 %v9292_v53  ;;  %v9307_v19 = vld [vmem:[%s10504_s11 + $0x718] sm:$0xff] }
 0x2ec   : > { %7374 = vmatpush.bf16.msra.mxu3 %v9300_v56  ;;  %v11045_v31 = vadd.f32 %v7002_v23, %v6984_v22  ;;  %v6968_v34 = vadd.f32 %v6967_v29, %v6949_v28  ;;  %7251 = vmatmul.bf16.gmra.mxu0 %v7943_v20  ;;  %v9028_v56 = vld [vmem:[%s11230_s0 + $0x64] sm:$0xf]  ;;  %v9315_v20 = vld [vmem:[%s10504_s11 + $0x758] sm:$0xff]  ;;  %v9322_v29 = vld [vmem:[%s10504_s11 + $0x790] sm:$0xff] }
 0x2ed   : > { %7318 = vmatpush.bf16.msra.mxu0 %v9275_v1  ;;  %7270 = vmatmul.bf16.gmra.mxu1 %v7947_v26  ;;  %v7835_v6 = vor.u32 %v9028_v56, %v7832_v58  ;;  %v9331_v22 = vld [vmem:[%s10504_s11 + $0x7d8] sm:$0xff]  ;;  %v9320_v56 = vld [vmem:[%s10504_s11 + $0x780] sm:$0xff] }
 0x2ee   : > { %7337 = vmatpush.bf16.msra.mxu1 %v9283_v59  ;;  %7289 = vmatmul.bf16.gmra.mxu2 %v7951_v27  ;;  %v7838_v59 = vld [vmem:[%s11230_s0 + $0x68] sm:$0xf]  ;;  %v9304_v58 = vld [vmem:[%s10504_s11 + $0x700] sm:$0xff] }
 0x2ef   : > { %7356 = vmatpush.bf16.msra.mxu2 %v9291_v57  ;;  %7308 = vmatmul.bf16.gmra.mxu3 %v7955_v30  ;;  %v9317_v57 = vld [vmem:[%s10504_s11 + $0x768] sm:$0xff] }
 0x2f0   : > { %7375 = vmatpush.bf16.msra.mxu3 %v9299_v3  ;;  %v9333_v3 = vld [vmem:[%s10504_s11 + $0x7e8] sm:$0xff] }
 0x2f1   : > { %7319 = vmatpush.bf16.msra.mxu0 %v9274_v15  ;;  %v6986_v40 = vpop.f32.mrf.mxu2  ;;  %v6950_v46 = vpop.f32.mrf.mxu0  ;;  %v9308_v15 = vld [vmem:[%s10504_s11 + $0x720] sm:$0xff] }
 0x2f2   : > { %7338 = vmatpush.bf16.msra.mxu1 %v9282_v9  ;;  %v6987_v44 = vadd.f32 %v6986_v40, %v6968_v34  ;;  %v7005_v45 = vpop.f32.mrf.mxu3  ;;  %v6951_v48 = vadd.f32 %v6950_v46, %v10999_v51  ;;  %v6969_v49 = vpop.f32.mrf.mxu1  ;;  %v9044_v51 = vld [vmem:[%s11230_s0 + $0xdc] sm:$0xf0]  ;;  %v7839_v9 = vor.u32 %v9045_v60, %v7838_v59  ;;  %v9321_v40 = vld [vmem:[%s10504_s11 + $0x788] sm:$0xff] }
 0x2f3   : > { %7357 = vmatpush.bf16.msra.mxu2 %v9290_v4  ;;  %v7831_v1 = vor.u32 %v9044_v51, %v7830_v54  ;;  %v7958_v34 = vld [vmem:[%s11230_s0 + $0x160] sm:$0xf] }
 0x2f4   : > { %7376 = vmatpush.bf16.msra.mxu3 %v9298_v17  ;;  %v11059_v50 = vadd.f32 %v7005_v45, %v6987_v44  ;;  %v6970_v53 = vadd.f32 %v6969_v49, %v6951_v48  ;;  %v9313_v44 = vld [vmem:[%s10504_s11 + $0x748] sm:$0xff]  ;;  %v9312_v59 = vld [vmem:[%s10504_s11 + $0x740] sm:$0xff] }
 0x2f5   : > { %7320 = vmatpush.bf16.msra.mxu0 %v9273_v5  ;;  %v9306_v5 = vld [vmem:[%s10504_s11 + $0x710] sm:$0xff] }
 0x2f6   : > { %7339 = vmatpush.bf16.msra.mxu1 %v9281_v21 }
 0x2f7   : > { %7358 = vmatpush.bf16.msra.mxu2 %v9289_v18  ;;  %v9332_v18 = vld [vmem:[%s10504_s11 + $0x7e0] sm:$0xff] }
 0x2f8   : > { %7377 = vmatpush.bf16.msra.mxu3 %v9297_v32  ;;  %v9314_v32 = vld [vmem:[%s10504_s11 + $0x750] sm:$0xff] }
 0x2f9   : > { %7321 = vmatpush.bf16.msra.mxu0 %v9272_v37  ;;  %v6988_v0 = vpop.f32.mrf.mxu2  ;;  %v7019_v8 = vpop.f32.mrf.mxu0  ;;  %v7966_v37 = vld [vmem:[%s11230_s0 + $0x168] sm:$0xf] }
 0x2fa   : > { %7340 = vmatpush.bf16.msra.mxu1 %v9280_v35  ;;  %v6989_v4 = vadd.f32 %v6988_v0, %v6970_v53  ;;  %v7007_v7 = vpop.f32.mrf.mxu3  ;;  %v7020_v10 = vadd.f32 %v7019_v8, %v11010_v2  ;;  %v7038_v11 = vpop.f32.mrf.mxu1  ;;  %v9323_v2 = vld [vmem:[%s10504_s11 + $0x798] sm:$0xff]  ;;  %v9330_v35 = vld [vmem:[%s10504_s11 + $0x7d0] sm:$0xff] }
 0x2fb   : > { %7359 = vmatpush.bf16.msra.mxu2 %v9288_v33  ;;  %v7846_v8 = vld [vmem:[%s11230_s0 + $0x70] sm:$0xf] }
 0x2fc   : > { %7378 = vmatpush.bf16.msra.mxu3 %v9296_v38  ;;  %v11093_v14 = vadd.f32 %v7007_v7, %v6989_v4  ;;  %v7039_v17 = vadd.f32 %v7038_v11, %v7020_v10  ;;  %7322 = vmatmul.bf16.vlgmr.msra.gmra.mxu0 %v7831_v1  ;;  %v9077_v38 = vld [vmem:[%s11230_s0 + $0x1e4] sm:$0xf0]  ;;  %v7848_v10 = vld [vmem:[%s11230_s0 + $0xf0] sm:$0xf0]  ;;  %v7854_v11 = vld [vmem:[%s11230_s0 + $0x78] sm:$0xf] }
 0x2fd   : > { %7390 = vmatpush.bf16.msrb.mxu0 %v9311_v39  ;;  %7341 = vmatmul.bf16.vlgmr.msra.gmra.mxu1 %v7835_v6  ;;  %v9061_v39 = vld [vmem:[%s11230_s0 + $0x16c] sm:$0xf]  ;;  %v7967_v54 = vor.u32 %v9077_v38, %v7966_v37  ;;  %v9046_v6 = vld [vmem:[%s11230_s0 + $0xec] sm:$0xf0]  ;;  %v7982_v37 = vld [vmem:[%s11230_s0 + $0x178] sm:$0xf] }
 0x2fe   : > { %7409 = vmatpush.bf16.msrb.mxu1 %v9319_v36  ;;  %7360 = vmatmul.bf16.vlgmr.msra.gmra.mxu2 %v7839_v9  ;;  %v7960_v36 = vld [vmem:[%s11230_s0 + $0x1e0] sm:$0xf0]  ;;  %v9030_v9 = vld [vmem:[%s11230_s0 + $0x74] sm:$0xf]  ;;  %v9079_v38 = vld [vmem:[%s11230_s0 + $0x1f4] sm:$0xf0] }
 0x2ff   : > { %7428 = vmatpush.bf16.msrb.mxu2 %v9327_v25  ;;  %7379 = vmatmul.bf16.vlgmr.msra.gmra.mxu3 %v7843_v12  ;;  %v9060_v25 = vld [vmem:[%s11230_s0 + $0x164] sm:$0xf]  ;;  %v9047_v12 = vld [vmem:[%s11230_s0 + $0xf4] sm:$0xf0] }
 0x300   : > { %7447 = vmatpush.bf16.msrb.mxu3 %v9335_v42  ;;  %v7968_v42 = vld [vmem:[%s11230_s0 + $0x1e8] sm:$0xf0]  ;;  %v7963_v53 = vor.u32 %v9060_v25, %v7960_v36  ;;  %v9062_v25 = vld [vmem:[%s11230_s0 + $0x174] sm:$0xf] }
 0x301   : > { %7391 = vmatpush.bf16.msrb.mxu0 %v9310_v52  ;;  %v7057_v21 = vpop.f32.mrf.mxu2  ;;  %v7021_v26 = vpop.f32.mrf.mxu0  ;;  %v7971_v51 = vor.u32 %v9061_v39, %v7968_v42  ;;  %v7976_v36 = vld [vmem:[%s11230_s0 + $0x1f0] sm:$0xf0]  ;;  %v9063_v39 = vld [vmem:[%s11230_s0 + $0x17c] sm:$0xf] }
 0x302   : > { %7410 = vmatpush.bf16.msrb.mxu1 %v9318_v47  ;;  %v7058_v23 = vadd.f32 %v7057_v21, %v7039_v17  ;;  %v7076_v24 = vpop.f32.mrf.mxu3  ;;  %v7022_v27 = vadd.f32 %v7021_v26, %v11045_v31  ;;  %v7040_v28 = vpop.f32.mrf.mxu1  ;;  %v9076_v31 = vld [vmem:[%s11230_s0 + $0x1dc] sm:$0xf0]  ;;  %v9329_v47 = vld [vmem:[%s10504_s11 + $0x7c8] sm:$0xff] }
 0x303   : > { %7429 = vmatpush.bf16.msrb.mxu2 %v9326_v43  ;;  %v9305_v43 = vld [vmem:[%s10504_s11 + $0x708] sm:$0xff]  ;;  %v7959_v46 = vor.u32 %v9076_v31, %v7958_v34 }
 0x304   : > { %7448 = vmatpush.bf16.msrb.mxu3 %v9334_v55  ;;  %v11104_v30 = vadd.f32 %v7076_v24, %v7058_v23  ;;  %v7041_v33 = vadd.f32 %v7040_v28, %v7022_v27 }
 0x305   : > { %7392 = vmatpush.bf16.msrb.mxu0 %v9309_v63 }
 0x306   : > { %7411 = vmatpush.bf16.msrb.mxu1 %v9317_v57 }
 0x307   : > { %7430 = vmatpush.bf16.msrb.mxu2 %v9325_v41 }
 0x308   : > { %7449 = vmatpush.bf16.msrb.mxu3 %v9333_v3 }
 0x309   : > { %7393 = vmatpush.bf16.msrb.mxu0 %v9308_v15  ;;  %v7059_v45 = vpop.f32.mrf.mxu2  ;;  %v7024_v52 = vpop.f32.mrf.mxu0 }
 0x30a   : > { %7412 = vmatpush.bf16.msrb.mxu1 %v9316_v16  ;;  %v7060_v48 = vadd.f32 %v7059_v45, %v7041_v33  ;;  %v7078_v49 = vpop.f32.mrf.mxu3  ;;  %v7025_v55 = vadd.f32 %v7024_v52, %v11059_v50  ;;  %v7043_v41 = vpop.f32.mrf.mxu1  ;;  %v7847_v16 = vor.u32 %v9046_v6, %v7846_v8 }
 0x30b   : > { %7431 = vmatpush.bf16.msrb.mxu2 %v9324_v13  ;;  %v9031_v13 = vld [vmem:[%s11230_s0 + $0x7c] sm:$0xf] }
 0x30c   : > { %7450 = vmatpush.bf16.msrb.mxu3 %v9332_v18  ;;  %v7079_v57 = vadd.f32 %v7078_v49, %v7060_v48  ;;  %v7044_v60 = vadd.f32 %v7043_v41, %v7025_v55  ;;  %7327 = vmatmul.bf16.gmra.mxu0 %v7959_v46  ;;  %v7983_v48 = vor.u32 %v9079_v38, %v7982_v37 }
 0x30d   : > { %7394 = vmatpush.bf16.msrb.mxu0 %v9307_v19  ;;  %7346 = vmatmul.bf16.gmra.mxu1 %v7963_v53  ;;  %v7851_v19 = vor.u32 %v9030_v9, %v7848_v10 }
 0x30e   : > { %7413 = vmatpush.bf16.msrb.mxu1 %v9315_v20  ;;  %7365 = vmatmul.bf16.gmra.mxu2 %v7967_v54  ;;  %v7855_v20 = vor.u32 %v9047_v12, %v7854_v11 }
 0x30f   : > { %7432 = vmatpush.bf16.msrb.mxu2 %v9323_v2  ;;  %7384 = vmatmul.bf16.gmra.mxu3 %v7971_v51 }
 0x310   : > { %7451 = vmatpush.bf16.msrb.mxu3 %v9331_v22 }
 0x311   : > { %7395 = vmatpush.bf16.msrb.mxu0 %v9306_v5  ;;  %v7062_v50 = vpop.f32.mrf.mxu2  ;;  %v7026_v0 = vpop.f32.mrf.mxu0 }
 0x312   : > { %7414 = vmatpush.bf16.msrb.mxu1 %v9314_v32  ;;  %v7063_v62 = vadd.f32 %v7062_v50, %v7044_v60  ;;  %v7081_v63 = vpop.f32.mrf.mxu3  ;;  %v7027_v1 = vadd.f32 %v7026_v0, %v11093_v14  ;;  %v7045_v3 = vpop.f32.mrf.mxu1  ;;  %v7856_v14 = vld [vmem:[%s11230_s0 + $0xf8] sm:$0xf0] }
 0x313   : > { %7433 = vmatpush.bf16.msrb.mxu2 %v9322_v29  ;;  %v7859_v23 = vor.u32 %v9031_v13, %v7856_v14 }
 0x314   : > { %7452 = vmatpush.bf16.msrb.mxu3 %v9330_v35  ;;  %v7082_v4 = vadd.f32 %v7081_v63, %v7063_v62  ;;  %v7046_v7 = vadd.f32 %v7045_v3, %v7027_v1  ;;  %v9078_v35 = vld [vmem:[%s11230_s0 + $0x1ec] sm:$0xf0] }
 0x315   : > { %7396 = vmatpush.bf16.msrb.mxu0 %v9305_v43 }
 0x316   : > { %7415 = vmatpush.bf16.msrb.mxu1 %v9313_v44 }
 0x317   : > { %7434 = vmatpush.bf16.msrb.mxu2 %v9321_v40  ;;  %v7984_v40 = vld [vmem:[%s11230_s0 + $0x1f8] sm:$0xf0] }
 0x318   : > { %7453 = vmatpush.bf16.msrb.mxu3 %v9329_v47  ;;  %v7979_v47 = vor.u32 %v9062_v25, %v7976_v36  ;;  %v7987_v53 = vor.u32 %v9063_v39, %v7984_v40 }
 0x319   : > { %7397 = vmatpush.bf16.msrb.mxu0 %v9304_v58  ;;  %v7064_v15 = vpop.f32.mrf.mxu2  ;;  %v7095_v2 = vpop.f32.mrf.mxu0 }
 0x31a   : > { %7416 = vmatpush.bf16.msrb.mxu1 %v9312_v59  ;;  %v7065_v17 = vadd.f32 %v7064_v15, %v7046_v7  ;;  %v7083_v18 = vpop.f32.mrf.mxu3  ;;  %v7096_v21 = vadd.f32 %v7095_v2, %v11104_v30  ;;  %v7114_v22 = vpop.f32.mrf.mxu1  ;;  %v7974_v30 = vld [vmem:[%s11230_s0 + $0x170] sm:$0xf] }
 0x31b   : > { %7435 = vmatpush.bf16.msrb.mxu2 %v9320_v56  ;;  %v7975_v43 = vor.u32 %v9078_v35, %v7974_v30 }
 0x31c   : > { %7454 = vmatpush.bf16.msrb.mxu3 %v9328_v61  ;;  %v7084_v24 = vadd.f32 %v7083_v18, %v7065_v17  ;;  %v7115_v26 = vadd.f32 %v7114_v22, %v7096_v21  ;;  %7398 = vmatmul.bf16.vlgmr.msrb.gmra.mxu0 %v7847_v16 }
 0x31d   : > { %7417 = vmatmul.bf16.vlgmr.msrb.gmra.mxu1 %v7851_v19 }
 0x31e   : > { %7436 = vmatmul.bf16.vlgmr.msrb.gmra.mxu2 %v7855_v20 }
 0x31f   : > { %7455 = vmatmul.bf16.vlgmr.msrb.gmra.mxu3 %v7859_v23 }
 0x321   : > { %v7133_v27 = vpop.f32.mrf.mxu2  ;;  %v7097_v5 = vpop.f32.mrf.mxu0 }
 0x322   : > { %v7134_v28 = vadd.f32 %v7133_v27, %v7115_v26  ;;  %v7152_v29 = vpop.f32.mrf.mxu3  ;;  %v7098_v32 = vadd.f32 %v7097_v5, %v7079_v57  ;;  %v7116_v33 = vpop.f32.mrf.mxu1 }
 0x324   : > { %v7153_v34 = vadd.f32 %v7152_v29, %v7134_v28  ;;  %v7117_v31 = vadd.f32 %v7116_v33, %v7098_v32 }
 0x329   : > { %v7135_v42 = vpop.f32.mrf.mxu2  ;;  %v7100_v46 = vpop.f32.mrf.mxu0 }
 0x32a   : > { %v7136_v44 = vadd.f32 %v7135_v42, %v7117_v31  ;;  %v7154_v45 = vpop.f32.mrf.mxu3  ;;  %v7101_v49 = vadd.f32 %v7100_v46, %v7082_v4  ;;  %v7119_v52 = vpop.f32.mrf.mxu1 }
 0x32c   : > { %v7155_v54 = vadd.f32 %v7154_v45, %v7136_v44  ;;  %v7120_v55 = vadd.f32 %v7119_v52, %v7101_v49  ;;  %7403 = vmatmul.bf16.gmra.mxu0 %v7975_v43 }
 0x32d   : > { %7422 = vmatmul.bf16.gmra.mxu1 %v7979_v47 }
 0x32e   : > { %7441 = vmatmul.bf16.gmra.mxu2 %v7983_v48 }
 0x32f   : > { %7460 = vmatmul.bf16.gmra.mxu3 %v7987_v53 }
 0x331   : > { %v7138_v41 = vpop.f32.mrf.mxu2  ;;  %v7102_v57 = vpop.f32.mrf.mxu0 }
 0x332   : > { %v7139_v51 = vadd.f32 %v7138_v41, %v7120_v55  ;;  %v7157_v56 = vpop.f32.mrf.mxu3  ;;  %v7103_v58 = vadd.f32 %v7102_v57, %v7084_v24  ;;  %v7121_v59 = vpop.f32.mrf.mxu1 }
 0x334   : > { %v7158_v60 = vadd.f32 %v7157_v56, %v7139_v51  ;;  %v7122_v61 = vadd.f32 %v7121_v59, %v7103_v58 }
 0x339   : > { %v7140_v50 = vpop.f32.mrf.mxu2  ;;  %v7171_v0 = vpop.f32.mrf.mxu0 }
 0x33a   : > { %v7141_v62 = vadd.f32 %v7140_v50, %v7122_v61  ;;  %v7159_v63 = vpop.f32.mrf.mxu3  ;;  %v7172_v1 = vadd.f32 %v7171_v0, %v7153_v34  ;;  %v7190_v3 = vpop.f32.mrf.mxu1 }
 0x33c   : > { %v7160_v4 = vadd.f32 %v7159_v63, %v7141_v62  ;;  %v7191_v7 = vadd.f32 %v7190_v3, %v7172_v1 }
 0x341   : > { %v7209_v8 = vpop.f32.mrf.mxu2  ;;  %v7173_v10 = vpop.f32.mrf.mxu0 }
 0x342   : > { %v7210_v6 = vadd.f32 %v7209_v8, %v7191_v7  ;;  %v7228_v9 = vpop.f32.mrf.mxu3  ;;  %v7174_v11 = vadd.f32 %v7173_v10, %v7155_v54  ;;  %v7192_v12 = vpop.f32.mrf.mxu1 }
 0x344   : > { %v7229_v13 = vadd.f32 %v7228_v9, %v7210_v6  ;;  %v7193_v14 = vadd.f32 %v7192_v12, %v7174_v11 }
 0x349   : > { %v7211_v15 = vpop.f32.mrf.mxu2  ;;  %v7176_v18 = vpop.f32.mrf.mxu0 }
 0x34a   : > { %v7212_v16 = vadd.f32 %v7211_v15, %v7193_v14  ;;  %v7230_v17 = vpop.f32.mrf.mxu3  ;;  %v7177_v2 = vadd.f32 %v7176_v18, %v7158_v60  ;;  %v7195_v19 = vpop.f32.mrf.mxu1 }
 0x34c   : > { %v7231_v20 = vadd.f32 %v7230_v17, %v7212_v16  ;;  %v7196_v21 = vadd.f32 %v7195_v19, %v7177_v2 }
 0x351   : > { %v7214_v22 = vpop.f32.mrf.mxu2  ;;  %v7178_v26 = vpop.f32.mrf.mxu0 }
 0x352   : > { %v7215_v23 = vadd.f32 %v7214_v22, %v7196_v21  ;;  %v7233_v24 = vpop.f32.mrf.mxu3  ;;  %v7179_v27 = vadd.f32 %v7178_v26, %v7160_v4  ;;  %v7197_v28 = vpop.f32.mrf.mxu1 }
 0x354   : > { %v7234_v29 = vadd.f32 %v7233_v24, %v7215_v23  ;;  %v7198_v5 = vadd.f32 %v7197_v28, %v7179_v27 }
 0x359   : > { %v7216_v32 = vpop.f32.mrf.mxu2  ;;  %v7247_v31 = vpop.f32.mrf.mxu0 }
 0x35a   : > { %v7217_v33 = vadd.f32 %v7216_v32, %v7198_v5  ;;  %v7235_v34 = vpop.f32.mrf.mxu3  ;;  %v7266_v30 = vpop.f32.mrf.mxu1  ;;  %v7248_v61 = vadd.f32 %v7247_v31, %v7229_v13 }
 0x35c   : > { %v7236_v35 = vadd.f32 %v7235_v34, %v7217_v33  ;;  %v7267_v1 = vadd.f32 %v7266_v30, %v7248_v61 }
 0x361   : > { %v7285_v25 = vpop.f32.mrf.mxu2  ;;  %v7249_v37 = vpop.f32.mrf.mxu0 }
 0x362   : > { %v7304_v36 = vpop.f32.mrf.mxu3  ;;  %v7268_v38 = vpop.f32.mrf.mxu1  ;;  %v7250_v0 = vadd.f32 %v7249_v37, %v7231_v20  ;;  %v7286_v3 = vadd.f32 %v7285_v25, %v7267_v1 }
 0x364   : > { %v7269_v4 = vadd.f32 %v7268_v38, %v7250_v0  ;;  %v7305_v12 = vadd.f32 %v7304_v36, %v7286_v3 }
 0x369   : > { %v7287_v39 = vpop.f32.mrf.mxu2  ;;  %v7252_v42 = vpop.f32.mrf.mxu0 }
 0x36a   : > { %v7306_v40 = vpop.f32.mrf.mxu3  ;;  %v7271_v43 = vpop.f32.mrf.mxu1  ;;  %v7288_v8 = vadd.f32 %v7287_v39, %v7269_v4  ;;  %v7253_v14 = vadd.f32 %v7252_v42, %v7234_v29  ;;  %v7466_v42 = vlaneseq }
 0x36c   : > { %v7307_v16 = vadd.f32 %v7306_v40, %v7288_v8  ;;  %v7272_v18 = vadd.f32 %v7271_v43, %v7253_v14 }
 0x371   : > { %v7290_v44 = vpop.f32.mrf.mxu2  ;;  %v7254_v46 = vpop.f32.mrf.mxu0 }
 0x372   : > { %v7309_v45 = vpop.f32.mrf.mxu3  ;;  %v7255_v47 = vadd.f32 %v7254_v46, %v7236_v35  ;;  %v7273_v48 = vpop.f32.mrf.mxu1  ;;  %v7291_v19 = vadd.f32 %v7290_v44, %v7272_v18 }
 0x374   : > { %v7274_v49 = vadd.f32 %v7273_v48, %v7255_v47  ;;  %v7310_v5 = vadd.f32 %v7309_v45, %v7291_v19 }
 0x379   : > { %v7292_v52 = vpop.f32.mrf.mxu2  ;;  %v7323_v55 = vpop.f32.mrf.mxu0 }
 0x37a   : > { %v7293_v53 = vadd.f32 %v7292_v52, %v7274_v49  ;;  %v7311_v54 = vpop.f32.mrf.mxu3  ;;  %v7342_v41 = vpop.f32.mrf.mxu1  ;;  %v7324_v17 = vadd.f32 %v7323_v55, %v7305_v12  ;;  %v7467_v52 = vshrl.u32 %v7466_v42, 7 }
 0x37c   : > { %v7312_v51 = vadd.f32 %v7311_v54, %v7293_v53  ;;  %v7343_v21 = vadd.f32 %v7342_v41, %v7324_v17 }
 0x381   : > { %v7361_v56 = vpop.f32.mrf.mxu2  ;;  %v7325_v58 = vpop.f32.mrf.mxu0 }
 0x382   : > { %v7380_v57 = vpop.f32.mrf.mxu3  ;;  %v7344_v59 = vpop.f32.mrf.mxu1  ;;  %v7326_v13 = vadd.f32 %v7325_v58, %v7307_v16  ;;  %v7362_v26 = vadd.f32 %v7361_v56, %v7343_v21  ;;  %v7469_v56 = vadd.s32 16, %v7467_v52 }
 0x384   : > { %v7345_v27 = vadd.f32 %v7344_v59, %v7326_v13  ;;  %v7381_v33 = vadd.f32 %v7380_v57, %v7362_v26  ;;  %vm7473_vm0 = vcmp.lt.s32.totalorder %v7469_v56, 18 }
 0x389   : > { %v7363_v60 = vpop.f32.mrf.mxu2  ;;  %v7328_v62 = vpop.f32.mrf.mxu0 }
 0x38a   : > { %v7382_v50 = vpop.f32.mrf.mxu3  ;;  %v7347_v63 = vpop.f32.mrf.mxu1  ;;  %v7364_v32 = vadd.f32 %v7363_v60, %v7345_v27  ;;  %v7329_v34 = vadd.f32 %v7328_v62, %v7310_v5 }
 0x38c   : > { %v7383_v31 = vadd.f32 %v7382_v50, %v7364_v32  ;;  %v7348_v36 = vadd.f32 %v7347_v63, %v7329_v34 }
 0x391   : > { %v7366_v7 = vpop.f32.mrf.mxu2  ;;  %v7330_v9 = vpop.f32.mrf.mxu0 }
 0x392   : > { %v7385_v6 = vpop.f32.mrf.mxu3  ;;  %v7331_v10 = vadd.f32 %v7330_v9, %v7312_v51  ;;  %v7349_v11 = vpop.f32.mrf.mxu1  ;;  %v7367_v39 = vadd.f32 %v7366_v7, %v7348_v36 }
 0x394   : > { %v7350_v15 = vadd.f32 %v7349_v11, %v7331_v10  ;;  %v7386_v47 = vadd.f32 %v7385_v6, %v7367_v39 }
 0x399   : > { %v7368_v2 = vpop.f32.mrf.mxu2  ;;  %v7399_v23 = vpop.f32.mrf.mxu0 }
 0x39a   : > { %v7369_v20 = vadd.f32 %v7368_v2, %v7350_v15  ;;  %v7387_v22 = vpop.f32.mrf.mxu3  ;;  %v7418_v24 = vpop.f32.mrf.mxu1  ;;  %v7400_v30 = vadd.f32 %v7399_v23, %v7381_v33 }
 0x39c   : > { %v7388_v28 = vadd.f32 %v7387_v22, %v7369_v20  ;;  %v7419_v40 = vadd.f32 %v7418_v24, %v7400_v30 }
 0x3a1   : > { %v7437_v29 = vpop.f32.mrf.mxu2  ;;  %v7401_v25 = vpop.f32.mrf.mxu0 }
 0x3a2   : > { %v7456_v35 = vpop.f32.mrf.mxu3  ;;  %v7402_v37 = vadd.f32 %v7401_v25, %v7383_v31  ;;  %v7420_v38 = vpop.f32.mrf.mxu1  ;;  %v7438_v43 = vadd.f32 %v7437_v29, %v7419_v40 }
 0x3a4   : > { %v7421_v44 = vadd.f32 %v7420_v38, %v7402_v37  ;;  %v7457_v53 = vadd.f32 %v7456_v35, %v7438_v43  ;;  %v9372_v38 = vld [vmem:[%s4418_s6] ss:$0 sm:$0xff] }
 0x3a9   : > { %v7439_v46 = vpop.f32.mrf.mxu2  ;;  %v7404_v49 = vpop.f32.mrf.mxu0 }
 0x3aa   : > { %v7440_v48 = vadd.f32 %v7439_v46, %v7421_v44  ;;  %v7458_v45 = vpop.f32.mrf.mxu3  ;;  %v7405_v55 = vadd.f32 %v7404_v49, %v7386_v47  ;;  %v7423_v51 = vpop.f32.mrf.mxu1  ;;  %v9373_v44 = vld [vmem:[%s4421_s8] ss:$0 sm:$0xff] }
 0x3ac   : > { %v7459_v54 = vadd.f32 %v7458_v45, %v7440_v48  ;;  %v7424_v57 = vadd.f32 %v7423_v51, %v7405_v55 }
 0x3ae   : > { %v7487_v41 = vadd.f32 %v7459_v54, %v7457_v53 }
 0x3b1   : > { %v7442_v58 = vpop.f32.mrf.mxu2  ;;  %v7406_v63 = vpop.f32.mrf.mxu0 }
 0x3b2   : > { %v7443_v59 = vadd.f32 %v7442_v58, %v7424_v57  ;;  %v7461_v60 = vpop.f32.mrf.mxu3  ;;  %v7407_v3 = vadd.f32 %v7406_v63, %v7388_v28  ;;  %v7425_v7 = vpop.f32.mrf.mxu1 }
 0x3b4   : > { %v7462_v61 = vadd.f32 %v7461_v60, %v7443_v59  ;;  %v7426_v9 = vadd.f32 %v7425_v7, %v7407_v3 }
 0x3b6   : > { %v7485_v50 = vsel %vm7473_vm0, %v7462_v61, 0.0 }
 0x3b7   : > { %v7488_v62 = vadd.f32 %v7487_v41, %v7485_v50 }
 0x3b9   : > { %v7490_v0 = vrot.slane %v7488_v62, 4  ;;  %v7444_v8 = vpop.f32.mrf.mxu2 }
 0x3ba   : > { %v7445_v11 = vadd.f32 %v7444_v8, %v7426_v9  ;;  %v7463_v14 = vpop.f32.mrf.mxu3 }
 0x3bb   : > { %v7491_v1 = vadd.f32 %v7490_v0, %v7488_v62 }
 0x3bc   : > { %v7464_v16 = vadd.f32 %v7463_v14, %v7445_v11 }
 0x3bd   : > { %v7492_v4 = vrot.slane %v7491_v1, 2 }
 0x3bf   : > { %v7493_v6 = vadd.f32 %v7492_v4, %v7491_v1 }
 0x3c1   : > { %v7494_v10 = vrot.slane %v7493_v6, 1 }
 0x3c3   : > { %v7495_v12 = vadd.f32 %v7494_v10, %v7493_v6 }
 0x3c5   : > { %v7496_v15 = vmul.f32 0.055555556, %v7495_v12 }
 0x3c7   : > { %v7497_v17 = vsub.f32 %v7457_v53, %v7496_v15  ;;  %v7498_v18 = vsub.f32 %v7459_v54, %v7496_v15  ;;  %v7499_v13 = vsub.f32 %v7462_v61, %v7496_v15  ;;  %v7500_v2 = vsub.f32 %v7464_v16, %v7496_v15 }
 0x3c9   : > { %v7503_v19 = vsel %vm7473_vm0, %v7499_v13, 0.0  ;;  %v7505_v21 = vmul.f32 %v7497_v17, %v7497_v17  ;;  %v7506_v20 = vmul.f32 %v7498_v18, %v7498_v18 }
 0x3ca   : > { %v7507_v22 = vmul.f32 %v7503_v19, %v7503_v19 }
 0x3cb   : > { %v7509_v23 = vadd.f32 %v7506_v20, %v7505_v21 }
 0x3cd   : > { %v7510_v24 = vadd.f32 %v7509_v23, %v7507_v22 }
 0x3cf   : > { %v7512_v26 = vrot.slane %v7510_v24, 4 }
 0x3d1   : > { %v7513_v27 = vadd.f32 %v7512_v26, %v7510_v24 }
 0x3d3   : > { %v7514_v28 = vrot.slane %v7513_v27, 2 }
 0x3d5   : > { %v7515_v5 = vadd.f32 %v7514_v28, %v7513_v27 }
 0x3d7   : > { %v7516_v32 = vrot.slane %v7515_v5, 1 }
 0x3d9   : > { %v7517_v33 = vadd.f32 %v7516_v32, %v7515_v5 }
 0x3db   : > { %v7518_v34 = vmul.f32 0.055555556, %v7517_v33 }
 0x3dd   : > { %v7519_v29 = vadd.f32 1e-05, %v7518_v34 }
 0x3df   : > { %9374 = vrsqrt.f32 %v7519_v29  ;;  %vm7526_vm2 = vweird.f32 %v7519_v29 }
 0x3e5   : > { %v9375_v31 = vpop.eup %9374 }
 0x3e6   : > { %v7521_v30 = vmul.f32 %v9375_v31, %v7519_v29  ;;  %vm7527_vm1 = vweird.f32 %v9375_v31 }
 0x3e7   : > { %vm7528_vm3 = vmor %vm7526_vm2, %vm7527_vm1 }
 0x3e8   : > { %v7522_v35 = vmul.f32 %v9375_v31, %v7521_v30 }
 0x3ea   : > { %v7523_v25 = vmul.f32 0.5, %v7522_v35 }
 0x3ec   : > { %v7524_v36 = vsub.f32 1.5, %v7523_v25 }
 0x3ee   : > { %v7525_v37 = vmul.f32 %v9375_v31, %v7524_v36 }
 0x3f0   : > { %v7529_v39 = vsel %vm7528_vm3, %v9375_v31, %v7525_v37 }
 0x3f1   : > { %v7530_v40 = vmul.f32 %v7529_v39, %v7497_v17  ;;  %v7531_v42 = vmul.f32 %v7529_v39, %v7498_v18  ;;  %v7532_v43 = vmul.f32 %v7529_v39, %v7499_v13  ;;  %v7533_v46 = vmul.f32 %v7529_v39, %v7500_v2 }
 0x3f3   : > { %v7538_v47 = vmul.f32 %v9372_v38, %v7530_v40  ;;  %v7539_v48 = vmul.f32 %v9372_v38, %v7531_v42  ;;  %v7540_v45 = vmul.f32 %v9372_v38, %v7532_v43  ;;  %v7541_v49 = vmul.f32 %v9372_v38, %v7533_v46 }
 0x3f5   : > { %v7546_v52 = vadd.f32 %v9373_v44, %v7538_v47  ;;  %v7547_v53 = vadd.f32 %v9373_v44, %v7539_v48  ;;  %v7548_v54 = vadd.f32 %v9373_v44, %v7540_v45  ;;  %v7549_v55 = vadd.f32 %v9373_v44, %v7541_v49 }
 0x3f7   : > { %vm7550_vm4 = vcmp.ge.f32.partialorder %v7546_v52, 0.0  ;;  %vm7551_vm5 = vcmp.ge.f32.partialorder %v7547_v53, 0.0  ;;  %vm7552_vm6 = vcmp.ge.f32.partialorder %v7548_v54, 0.0  ;;  %v7554_v41 = vmul.f32 0.2, %v7546_v52 }
 0x3f8   : > { %v7555_v51 = vmul.f32 0.2, %v7547_v53  ;;  %v7556_v56 = vmul.f32 0.2, %v7548_v54  ;;  %vm7553_vm7 = vcmp.ge.f32.partialorder %v7549_v55, 0.0 }
 0x3f9   : > { %v7557_v57 = vmul.f32 0.2, %v7549_v55  ;;  %v7558_v58 = vsel %vm7550_vm4, %v7546_v52, %v7554_v41 }
 0x3fa   : > { %v7560_v59 = vsel %vm7552_vm6, %v7548_v54, %v7556_v56  ;;  %v7559_v60 = vsel %vm7551_vm5, %v7547_v53, %v7555_v51  ;;  %7576 = sbr.rel (!%p9461_p5) target bundleno = 1033 (0x409), region = 96 }
 0x3fb   : > { %v7561_v61 = vsel %vm7553_vm7, %v7549_v55, %v7557_v57  ;;  %v9339_v50 = vpack.c.bf16 %v7559_v60, %v7558_v58 }
 0x3fc   : > { %v9344_v62 = vpack.c.bf16 %v7561_v61, %v7560_v59 }
 0x3fd   : > { %9340 = vst [vmem:[%s4412_s16] sm:$0xff] %v9339_v50  }
 0x3fe   : > { %9346 = vst [vmem:[%s4412_s16 + $0x8] sm:$0xff] %v9344_v62  }
 0x404   : > { %v7595_v63 = vld [vmem:[%s4412_s16] sm:$0xf]  ;;  %v7597_v0 = vld [vmem:[%s4412_s16 + $0x4] sm:$0xf] }
 0x405   : > { %v7599_v1 = vld [vmem:[%s4412_s16 + $0x8] sm:$0xf]  ;;  %7596 = vst [vmem:[%s7578_s20] sm:$0xf] %v7595_v63  ;;  %v7601_v3 = vld [vmem:[%s4412_s16 + $0xc] sm:$0xf] }
 0x406   : > { %7598 = vst [vmem:[%s7578_s20 + $0x10] sm:$0xf] %v7597_v0 }
 0x407   : > { %7600 = vst [vmem:[%s7578_s20 + $0x20] sm:$0xf] %v7599_v1 }
 0x408   : > { %7602 = vst [vmem:[%s7578_s20 + $0x30] sm:$0xf] %v7601_v3 }
 0x409 PF: > { %p12_p11 = scmp.ge.s32.totalorder %s9449_s22, 6   ;;  %s11237_s18 = smov %s9394_s19 }
 0x40a   : > { %s11238_s19 = smov %s9459_s25  ;;  %s11239_s20 = smov %s9449_s22 }
 0x40b   :  { %14 = sbr.rel (!%p12_p11) target bundleno = 2 (0x2), region = 181 }

// kernel: discriminator_forward.9
= control target key start
LH: loop header
LB: loop body
LE: loop exit
PB: predicated region body
PF: predicated region fallthrough
CT: control target
= control target key end

     0   :  { %s10359_s1 = inlined_call_operand.vmem [shape: bf16[8192,128], index: 1, kind: input, shape index: {}]   ;;  %s10360_s0 = inlined_call_operand.vmem [shape: bf16[16,8192], index: 0, kind: input, shape index: {}]   ;;  %s10361_s2 = inlined_call_operand.vmem [shape: f32[1,128], index: 2, kind: input, shape index: {}]   ;;  %s10362_s3 = inlined_call_operand.vmem [shape: bf16[16,128], index: 3, kind: output, shape index: {}]  }
   0x1   :  { %v7815_v0 = vld [vmem:[%s10359_s1 + $0x38] sm:$0xff]  ;;  %v7814_v4 = vld [vmem:[%s10359_s1 + $0x30] sm:$0xff]  ;;  %v7813_v8 = vld [vmem:[%s10359_s1 + $0x28] sm:$0xff] }
   0x2   :  { %v7823_v1 = vld [vmem:[%s10359_s1 + $0x78] sm:$0xff]  ;;  %4498 = vmatpush.bf16.msra.mxu0 %v7815_v0  ;;  %v7822_v5 = vld [vmem:[%s10359_s1 + $0x70] sm:$0xff]  ;;  %v7821_v9 = vld [vmem:[%s10359_s1 + $0x68] sm:$0xff] }
   0x3   :  { %v7831_v2 = vld [vmem:[%s10359_s1 + $0xb8] sm:$0xff]  ;;  %4512 = vmatpush.bf16.msra.mxu1 %v7823_v1  ;;  %v7830_v6 = vld [vmem:[%s10359_s1 + $0xb0] sm:$0xff]  ;;  %v7829_v10 = vld [vmem:[%s10359_s1 + $0xa8] sm:$0xff] }
   0x4   :  { %v7839_v3 = vld [vmem:[%s10359_s1 + $0xf8] sm:$0xff]  ;;  %4526 = vmatpush.bf16.msra.mxu2 %v7831_v2  ;;  %v7838_v7 = vld [vmem:[%s10359_s1 + $0xf0] sm:$0xff]  ;;  %v7837_v11 = vld [vmem:[%s10359_s1 + $0xe8] sm:$0xff] }
   0x5   :  { %4540 = vmatpush.bf16.msra.mxu3 %v7839_v3  ;;  %v7812_v12 = vld [vmem:[%s10359_s1 + $0x20] sm:$0xff]  ;;  %v7811_v16 = vld [vmem:[%s10359_s1 + $0x18] sm:$0xff]  ;;  %v7810_v20 = vld [vmem:[%s10359_s1 + $0x10] sm:$0xff] }
   0x6   :  { %4499 = vmatpush.bf16.msra.mxu0 %v7814_v4  ;;  %v7820_v13 = vld [vmem:[%s10359_s1 + $0x60] sm:$0xff]  ;;  %v7819_v17 = vld [vmem:[%s10359_s1 + $0x58] sm:$0xff]  ;;  %v7818_v21 = vld [vmem:[%s10359_s1 + $0x50] sm:$0xff] }
   0x7   :  { %4513 = vmatpush.bf16.msra.mxu1 %v7822_v5  ;;  %v7828_v14 = vld [vmem:[%s10359_s1 + $0xa0] sm:$0xff]  ;;  %v7827_v18 = vld [vmem:[%s10359_s1 + $0x98] sm:$0xff]  ;;  %v7826_v22 = vld [vmem:[%s10359_s1 + $0x90] sm:$0xff] }
   0x8   :  { %4527 = vmatpush.bf16.msra.mxu2 %v7830_v6  ;;  %v7836_v15 = vld [vmem:[%s10359_s1 + $0xe0] sm:$0xff]  ;;  %v7835_v19 = vld [vmem:[%s10359_s1 + $0xd8] sm:$0xff]  ;;  %v7834_v23 = vld [vmem:[%s10359_s1 + $0xd0] sm:$0xff] }
   0x9   :  { %4541 = vmatpush.bf16.msra.mxu3 %v7838_v7  ;;  %v7809_v24 = vld [vmem:[%s10359_s1 + $0x8] sm:$0xff]  ;;  %v7808_v28 = vld [vmem:[%s10359_s1] sm:$0xff]  ;;  %v7847_v32 = vld [vmem:[%s10359_s1 + $0x138] sm:$0xff] }
   0xa   :  { %4500 = vmatpush.bf16.msra.mxu0 %v7813_v8  ;;  %v7817_v25 = vld [vmem:[%s10359_s1 + $0x48] sm:$0xff]  ;;  %v7816_v29 = vld [vmem:[%s10359_s1 + $0x40] sm:$0xff]  ;;  %v7855_v33 = vld [vmem:[%s10359_s1 + $0x178] sm:$0xff] }
   0xb   :  { %4514 = vmatpush.bf16.msra.mxu1 %v7821_v9  ;;  %v7825_v26 = vld [vmem:[%s10359_s1 + $0x88] sm:$0xff]  ;;  %v7824_v30 = vld [vmem:[%s10359_s1 + $0x80] sm:$0xff]  ;;  %v7863_v42 = vld [vmem:[%s10359_s1 + $0x1b8] sm:$0xff] }
   0xc   :  { %4528 = vmatpush.bf16.msra.mxu2 %v7829_v10  ;;  %v7833_v27 = vld [vmem:[%s10359_s1 + $0xc8] sm:$0xff]  ;;  %v7832_v31 = vld [vmem:[%s10359_s1 + $0xc0] sm:$0xff]  ;;  %v7871_v43 = vld [vmem:[%s10359_s1 + $0x1f8] sm:$0xff] }
   0xd   :  { %4542 = vmatpush.bf16.msra.mxu3 %v7837_v11  ;;  %v5442_v34 = vld [vmem:[%s10360_s0] sm:$0xf]  ;;  %v5450_v36 = vld [vmem:[%s10360_s0 + $0x8] sm:$0xf]  ;;  %v7744_v38 = vld [vmem:[%s10360_s0 + $0x4] sm:$0xf] }
   0xe   :  { %4501 = vmatpush.bf16.msra.mxu0 %v7812_v12  ;;  %v7776_v35 = vld [vmem:[%s10360_s0 + $0xfc] sm:$0xf0]  ;;  %v7777_v37 = vld [vmem:[%s10360_s0 + $0x104] sm:$0xf0]  ;;  %v5444_v39 = vld [vmem:[%s10360_s0 + $0x100] sm:$0xf0] }
   0xf   :  { %4515 = vmatpush.bf16.msra.mxu1 %v7820_v13  ;;  %v7745_v40 = vld [vmem:[%s10360_s0 + $0xc] sm:$0xf]  ;;  %v5443_v44 = vor.u32 %v7776_v35, %v5442_v34  ;;  %v5451_v45 = vor.u32 %v7777_v37, %v5450_v36  ;;  %v5447_v46 = vor.u32 %v7744_v38, %v5444_v39  ;;  %v7846_v48 = vld [vmem:[%s10359_s1 + $0x130] sm:$0xff]  ;;  %v7844_v56 = vld [vmem:[%s10359_s1 + $0x120] sm:$0xff] }
  0x10   :  { %4529 = vmatpush.bf16.msra.mxu2 %v7828_v14  ;;  %v5452_v41 = vld [vmem:[%s10360_s0 + $0x108] sm:$0xf0]  ;;  %v7854_v49 = vld [vmem:[%s10359_s1 + $0x170] sm:$0xff]  ;;  %v7852_v57 = vld [vmem:[%s10359_s1 + $0x160] sm:$0xff] }
  0x11   :  { %4543 = vmatpush.bf16.msra.mxu3 %v7836_v15  ;;  %v5455_v47 = vor.u32 %v7745_v40, %v5452_v41  ;;  %v7862_v50 = vld [vmem:[%s10359_s1 + $0x1b0] sm:$0xff]  ;;  %v7845_v52 = vld [vmem:[%s10359_s1 + $0x128] sm:$0xff]  ;;  %v7860_v58 = vld [vmem:[%s10359_s1 + $0x1a0] sm:$0xff] }
  0x12   :  { %4502 = vmatpush.bf16.msra.mxu0 %v7811_v16  ;;  %v7870_v51 = vld [vmem:[%s10359_s1 + $0x1f0] sm:$0xff]  ;;  %v7853_v53 = vld [vmem:[%s10359_s1 + $0x168] sm:$0xff]  ;;  %v7868_v59 = vld [vmem:[%s10359_s1 + $0x1e0] sm:$0xff] }
  0x13   :  { %4516 = vmatpush.bf16.msra.mxu1 %v7819_v17  ;;  %v7861_v54 = vld [vmem:[%s10359_s1 + $0x1a8] sm:$0xff]  ;;  %v7843_v60 = vld [vmem:[%s10359_s1 + $0x118] sm:$0xff]  ;;  %v7842_v0 = vld [vmem:[%s10359_s1 + $0x110] sm:$0xff] }
  0x14   :  { %4530 = vmatpush.bf16.msra.mxu2 %v7827_v18  ;;  %v7869_v55 = vld [vmem:[%s10359_s1 + $0x1e8] sm:$0xff]  ;;  %v7851_v61 = vld [vmem:[%s10359_s1 + $0x158] sm:$0xff]  ;;  %v7850_v1 = vld [vmem:[%s10359_s1 + $0x150] sm:$0xff] }
  0x15   :  { %4544 = vmatpush.bf16.msra.mxu3 %v7835_v19  ;;  %v7859_v62 = vld [vmem:[%s10359_s1 + $0x198] sm:$0xff]  ;;  %v7858_v2 = vld [vmem:[%s10359_s1 + $0x190] sm:$0xff]  ;;  %v7841_v4 = vld [vmem:[%s10359_s1 + $0x108] sm:$0xff] }
  0x16   :  { %4503 = vmatpush.bf16.msra.mxu0 %v7810_v20  ;;  %v7867_v63 = vld [vmem:[%s10359_s1 + $0x1d8] sm:$0xff]  ;;  %v7866_v3 = vld [vmem:[%s10359_s1 + $0x1d0] sm:$0xff]  ;;  %v7849_v5 = vld [vmem:[%s10359_s1 + $0x148] sm:$0xff] }
  0x17   :  { %4517 = vmatpush.bf16.msra.mxu1 %v7818_v21  ;;  %v7857_v6 = vld [vmem:[%s10359_s1 + $0x188] sm:$0xff]  ;;  %v7840_v8 = vld [vmem:[%s10359_s1 + $0x100] sm:$0xff]  ;;  %v7879_v12 = vld [vmem:[%s10359_s1 + $0x238] sm:$0xff] }
  0x18   :  { %4531 = vmatpush.bf16.msra.mxu2 %v7826_v22  ;;  %v7865_v7 = vld [vmem:[%s10359_s1 + $0x1c8] sm:$0xff]  ;;  %v7848_v9 = vld [vmem:[%s10359_s1 + $0x140] sm:$0xff]  ;;  %v7887_v13 = vld [vmem:[%s10359_s1 + $0x278] sm:$0xff] }
  0x19   :  { %4545 = vmatpush.bf16.msra.mxu3 %v7834_v23  ;;  %v7856_v10 = vld [vmem:[%s10359_s1 + $0x180] sm:$0xff]  ;;  %v5458_v14 = vld [vmem:[%s10360_s0 + $0x10] sm:$0xf]  ;;  %v5466_v16 = vld [vmem:[%s10360_s0 + $0x18] sm:$0xf] }
  0x1a   :  { %4504 = vmatpush.bf16.msra.mxu0 %v7809_v24  ;;  %v7864_v11 = vld [vmem:[%s10359_s1 + $0x1c0] sm:$0xff]  ;;  %v7778_v15 = vld [vmem:[%s10360_s0 + $0x10c] sm:$0xf0]  ;;  %v7779_v17 = vld [vmem:[%s10360_s0 + $0x114] sm:$0xf0] }
  0x1b   :  { %4518 = vmatpush.bf16.msra.mxu1 %v7817_v25  ;;  %v7746_v18 = vld [vmem:[%s10360_s0 + $0x14] sm:$0xf]  ;;  %v7747_v20 = vld [vmem:[%s10360_s0 + $0x1c] sm:$0xf]  ;;  %v5459_v24 = vor.u32 %v7778_v15, %v5458_v14  ;;  %v5467_v25 = vor.u32 %v7779_v17, %v5466_v16  ;;  %v7893_v34 = vld [vmem:[%s10359_s1 + $0x2a8] sm:$0xff] }
  0x1c   :  { %4532 = vmatpush.bf16.msra.mxu2 %v7825_v26  ;;  %v5460_v19 = vld [vmem:[%s10360_s0 + $0x110] sm:$0xf0]  ;;  %v5468_v21 = vld [vmem:[%s10360_s0 + $0x118] sm:$0xf0]  ;;  %v7901_v35 = vld [vmem:[%s10359_s1 + $0x2e8] sm:$0xff] }
  0x1d   :  { %4546 = vmatpush.bf16.msra.mxu3 %v7833_v27  ;;  %v7895_v22 = vld [vmem:[%s10359_s1 + $0x2b8] sm:$0xff]  ;;  %v5463_v26 = vor.u32 %v7746_v18, %v5460_v19  ;;  %v5471_v27 = vor.u32 %v7747_v20, %v5468_v21  ;;  %v7876_v36 = vld [vmem:[%s10359_s1 + $0x220] sm:$0xff]  ;;  %v7925_v14 = vld [vmem:[%s10359_s1 + $0x3a8] sm:$0xff] }
  0x1e   :  { %4505 = vmatpush.bf16.msra.mxu0 %v7808_v28  ;;  %v7903_v23 = vld [vmem:[%s10359_s1 + $0x2f8] sm:$0xff]  ;;  %v7878_v28 = vld [vmem:[%s10359_s1 + $0x230] sm:$0xff]  ;;  %v7884_v37 = vld [vmem:[%s10359_s1 + $0x260] sm:$0xff] }
  0x1f   :  { %4519 = vmatpush.bf16.msra.mxu1 %v7816_v29  ;;  %v7886_v29 = vld [vmem:[%s10359_s1 + $0x270] sm:$0xff]  ;;  %v7892_v38 = vld [vmem:[%s10359_s1 + $0x2a0] sm:$0xff]  ;;  %v7875_v40 = vld [vmem:[%s10359_s1 + $0x218] sm:$0xff] }
  0x20   :  { %4533 = vmatpush.bf16.msra.mxu2 %v7824_v30  ;;  %v7894_v30 = vld [vmem:[%s10359_s1 + $0x2b0] sm:$0xff]  ;;  %v7900_v39 = vld [vmem:[%s10359_s1 + $0x2e0] sm:$0xff]  ;;  %v7883_v41 = vld [vmem:[%s10359_s1 + $0x258] sm:$0xff] }
  0x21   :  { %4547 = vmatpush.bf16.msra.mxu3 %v7832_v31  ;;  %4506 = vmatmul.bf16.vlgmr.msra.gmra.mxu0 %v5443_v44  ;;  %v7902_v31 = vld [vmem:[%s10359_s1 + $0x2f0] sm:$0xff]  ;;  %v7933_v15 = vld [vmem:[%s10359_s1 + $0x3e8] sm:$0xff]  ;;  %v7908_v16 = vld [vmem:[%s10359_s1 + $0x320] sm:$0xff] }
  0x22   :  { %4554 = vmatpush.bf16.msrb.mxu0 %v7847_v32  ;;  %4520 = vmatmul.bf16.vlgmr.msra.gmra.mxu1 %v5447_v46  ;;  %v7877_v32 = vld [vmem:[%s10359_s1 + $0x228] sm:$0xff]  ;;  %v7874_v44 = vld [vmem:[%s10359_s1 + $0x210] sm:$0xff]  ;;  %v7916_v17 = vld [vmem:[%s10359_s1 + $0x360] sm:$0xff] }
  0x23   :  { %4568 = vmatpush.bf16.msrb.mxu1 %v7855_v33  ;;  %4534 = vmatmul.bf16.vlgmr.msra.gmra.mxu2 %v5451_v45  ;;  %v7885_v33 = vld [vmem:[%s10359_s1 + $0x268] sm:$0xff]  ;;  %v7882_v45 = vld [vmem:[%s10359_s1 + $0x250] sm:$0xff]  ;;  %v7924_v18 = vld [vmem:[%s10359_s1 + $0x3a0] sm:$0xff] }
  0x24   :  { %4582 = vmatpush.bf16.msrb.mxu2 %v7863_v42  ;;  %4548 = vmatmul.bf16.vlgmr.msra.gmra.mxu3 %v5455_v47  ;;  %v7891_v42 = vld [vmem:[%s10359_s1 + $0x298] sm:$0xff]  ;;  %v7890_v46 = vld [vmem:[%s10359_s1 + $0x290] sm:$0xff]  ;;  %v7932_v19 = vld [vmem:[%s10359_s1 + $0x3e0] sm:$0xff] }
  0x25   :  { %4596 = vmatpush.bf16.msrb.mxu3 %v7871_v43  ;;  %v7899_v43 = vld [vmem:[%s10359_s1 + $0x2d8] sm:$0xff]  ;;  %v7898_v47 = vld [vmem:[%s10359_s1 + $0x2d0] sm:$0xff] }
  0x26   :  { %4555 = vmatpush.bf16.msrb.mxu0 %v7846_v48  ;;  %v7873_v48 = vld [vmem:[%s10359_s1 + $0x208] sm:$0xff]  ;;  %v7907_v20 = vld [vmem:[%s10359_s1 + $0x318] sm:$0xff] }
  0x27   :  { %4569 = vmatpush.bf16.msrb.mxu1 %v7854_v49  ;;  %v7881_v49 = vld [vmem:[%s10359_s1 + $0x248] sm:$0xff]  ;;  %v7915_v21 = vld [vmem:[%s10359_s1 + $0x358] sm:$0xff] }
  0x28   :  { %4583 = vmatpush.bf16.msrb.mxu2 %v7862_v50  ;;  %v7889_v50 = vld [vmem:[%s10359_s1 + $0x288] sm:$0xff] }
  0x29   :  { %4597 = vmatpush.bf16.msrb.mxu3 %v7870_v51  ;;  %v7897_v51 = vld [vmem:[%s10359_s1 + $0x2c8] sm:$0xff] }
  0x2a   :  { %4556 = vmatpush.bf16.msrb.mxu0 %v7845_v52  ;;  %v7872_v52 = vld [vmem:[%s10359_s1 + $0x200] sm:$0xff] }
  0x2b   :  { %4570 = vmatpush.bf16.msrb.mxu1 %v7853_v53  ;;  %v7880_v53 = vld [vmem:[%s10359_s1 + $0x240] sm:$0xff] }
  0x2c   :  { %4584 = vmatpush.bf16.msrb.mxu2 %v7861_v54  ;;  %v7888_v54 = vld [vmem:[%s10359_s1 + $0x280] sm:$0xff] }
  0x2d   :  { %4598 = vmatpush.bf16.msrb.mxu3 %v7869_v55  ;;  %v7896_v55 = vld [vmem:[%s10359_s1 + $0x2c0] sm:$0xff] }
  0x2e   :  { %4557 = vmatpush.bf16.msrb.mxu0 %v7844_v56  ;;  %v7911_v56 = vld [vmem:[%s10359_s1 + $0x338] sm:$0xff] }
  0x2f   :  { %4571 = vmatpush.bf16.msrb.mxu1 %v7852_v57  ;;  %v7919_v57 = vld [vmem:[%s10359_s1 + $0x378] sm:$0xff] }
  0x30   :  { %4585 = vmatpush.bf16.msrb.mxu2 %v7860_v58  ;;  %v5474_v58 = vld [vmem:[%s10360_s0 + $0x20] sm:$0xf] }
  0x31   :  { %4599 = vmatpush.bf16.msrb.mxu3 %v7868_v59  ;;  %v7780_v59 = vld [vmem:[%s10360_s0 + $0x11c] sm:$0xf0] }
  0x32   :  { %4558 = vmatpush.bf16.msrb.mxu0 %v7843_v60  ;;  %v5482_v60 = vld [vmem:[%s10360_s0 + $0x28] sm:$0xf] }
  0x33   :  { %4572 = vmatpush.bf16.msrb.mxu1 %v7851_v61  ;;  %v7781_v61 = vld [vmem:[%s10360_s0 + $0x124] sm:$0xf0] }
  0x34   :  { %4586 = vmatpush.bf16.msrb.mxu2 %v7859_v62  ;;  %v7748_v62 = vld [vmem:[%s10360_s0 + $0x24] sm:$0xf] }
  0x35   :  { %4600 = vmatpush.bf16.msrb.mxu3 %v7867_v63  ;;  %v5476_v63 = vld [vmem:[%s10360_s0 + $0x120] sm:$0xf0] }
  0x36   :  { %4559 = vmatpush.bf16.msrb.mxu0 %v7842_v0  ;;  %v7749_v0 = vld [vmem:[%s10360_s0 + $0x2c] sm:$0xf] }
  0x37   :  { %4573 = vmatpush.bf16.msrb.mxu1 %v7850_v1  ;;  %v5484_v1 = vld [vmem:[%s10360_s0 + $0x128] sm:$0xf0] }
  0x38   :  { %4587 = vmatpush.bf16.msrb.mxu2 %v7858_v2  ;;  %v7927_v2 = vld [vmem:[%s10359_s1 + $0x3b8] sm:$0xff] }
  0x39   :  { %4601 = vmatpush.bf16.msrb.mxu3 %v7866_v3  ;;  %v7935_v3 = vld [vmem:[%s10359_s1 + $0x3f8] sm:$0xff] }
  0x3a   :  { %4560 = vmatpush.bf16.msrb.mxu0 %v7841_v4  ;;  %v5475_v4 = vor.u32 %v7780_v59, %v5474_v58  ;;  %v7957_v58 = vld [vmem:[%s10359_s1 + $0x4a8] sm:$0xff] }
  0x3b   :  { %4574 = vmatpush.bf16.msrb.mxu1 %v7849_v5  ;;  %v5483_v5 = vor.u32 %v7781_v61, %v5482_v60  ;;  %v7965_v59 = vld [vmem:[%s10359_s1 + $0x4e8] sm:$0xff]  ;;  %v7940_v60 = vld [vmem:[%s10359_s1 + $0x420] sm:$0xff] }
  0x3c   :  { %4588 = vmatpush.bf16.msrb.mxu2 %v7857_v6  ;;  %v5479_v6 = vor.u32 %v7748_v62, %v5476_v63  ;;  %v7948_v61 = vld [vmem:[%s10359_s1 + $0x460] sm:$0xff] }
  0x3d   :  { %4602 = vmatpush.bf16.msrb.mxu3 %v7865_v7  ;;  %v5487_v7 = vor.u32 %v7749_v0, %v5484_v1  ;;  %v7956_v62 = vld [vmem:[%s10359_s1 + $0x4a0] sm:$0xff]  ;;  %v7939_v0 = vld [vmem:[%s10359_s1 + $0x418] sm:$0xff] }
  0x3e   :  { %4561 = vmatpush.bf16.msrb.mxu0 %v7840_v8  ;;  %v7910_v8 = vld [vmem:[%s10359_s1 + $0x330] sm:$0xff]  ;;  %v7964_v63 = vld [vmem:[%s10359_s1 + $0x4e0] sm:$0xff]  ;;  %v7947_v1 = vld [vmem:[%s10359_s1 + $0x458] sm:$0xff] }
  0x3f   :  { %4575 = vmatpush.bf16.msrb.mxu1 %v7848_v9  ;;  %v7918_v9 = vld [vmem:[%s10359_s1 + $0x370] sm:$0xff] }
  0x40   :  { %4589 = vmatpush.bf16.msrb.mxu2 %v7856_v10  ;;  %v7926_v10 = vld [vmem:[%s10359_s1 + $0x3b0] sm:$0xff] }
  0x41   :  { %4603 = vmatpush.bf16.msrb.mxu3 %v7864_v11  ;;  %4562 = vmatmul.bf16.vlgmr.msrb.gmra.mxu0 %v5459_v24  ;;  %v7934_v11 = vld [vmem:[%s10359_s1 + $0x3f0] sm:$0xff] }
  0x42   :  { %4610 = vmatpush.bf16.msra.mxu0 %v7879_v12  ;;  %4576 = vmatmul.bf16.vlgmr.msrb.gmra.mxu1 %v5463_v26  ;;  %v7909_v12 = vld [vmem:[%s10359_s1 + $0x328] sm:$0xff]  ;;  %v7906_v24 = vld [vmem:[%s10359_s1 + $0x310] sm:$0xff] }
  0x43   :  { %4624 = vmatpush.bf16.msra.mxu1 %v7887_v13  ;;  %4590 = vmatmul.bf16.vlgmr.msrb.gmra.mxu2 %v5467_v25  ;;  %v7917_v13 = vld [vmem:[%s10359_s1 + $0x368] sm:$0xff]  ;;  %v7914_v25 = vld [vmem:[%s10359_s1 + $0x350] sm:$0xff] }
  0x44   :  { %4638 = vmatpush.bf16.msra.mxu2 %v7895_v22  ;;  %4604 = vmatmul.bf16.vlgmr.msrb.gmra.mxu3 %v5471_v27  ;;  %v7923_v22 = vld [vmem:[%s10359_s1 + $0x398] sm:$0xff]  ;;  %v7922_v26 = vld [vmem:[%s10359_s1 + $0x390] sm:$0xff] }
  0x45   :  { %4652 = vmatpush.bf16.msra.mxu3 %v7903_v23  ;;  %v7931_v23 = vld [vmem:[%s10359_s1 + $0x3d8] sm:$0xff]  ;;  %v7930_v27 = vld [vmem:[%s10359_s1 + $0x3d0] sm:$0xff] }
  0x46   :  { %4611 = vmatpush.bf16.msra.mxu0 %v7878_v28  ;;  %v7905_v28 = vld [vmem:[%s10359_s1 + $0x308] sm:$0xff] }
  0x47   :  { %4625 = vmatpush.bf16.msra.mxu1 %v7886_v29  ;;  %v7913_v29 = vld [vmem:[%s10359_s1 + $0x348] sm:$0xff] }
  0x48   :  { %4639 = vmatpush.bf16.msra.mxu2 %v7894_v30  ;;  %v7921_v30 = vld [vmem:[%s10359_s1 + $0x388] sm:$0xff] }
  0x49   :  { %4653 = vmatpush.bf16.msra.mxu3 %v7902_v31  ;;  %v7929_v31 = vld [vmem:[%s10359_s1 + $0x3c8] sm:$0xff] }
  0x4a   :  { %4612 = vmatpush.bf16.msra.mxu0 %v7877_v32  ;;  %v7904_v32 = vld [vmem:[%s10359_s1 + $0x300] sm:$0xff] }
  0x4b   :  { %4626 = vmatpush.bf16.msra.mxu1 %v7885_v33  ;;  %v7912_v33 = vld [vmem:[%s10359_s1 + $0x340] sm:$0xff] }
  0x4c   :  { %4640 = vmatpush.bf16.msra.mxu2 %v7893_v34  ;;  %v7920_v34 = vld [vmem:[%s10359_s1 + $0x380] sm:$0xff] }
  0x4d   :  { %4654 = vmatpush.bf16.msra.mxu3 %v7901_v35  ;;  %v7928_v35 = vld [vmem:[%s10359_s1 + $0x3c0] sm:$0xff] }
  0x4e   :  { %4613 = vmatpush.bf16.msra.mxu0 %v7876_v36  ;;  %v7943_v36 = vld [vmem:[%s10359_s1 + $0x438] sm:$0xff] }
  0x4f   :  { %4627 = vmatpush.bf16.msra.mxu1 %v7884_v37  ;;  %v7951_v37 = vld [vmem:[%s10359_s1 + $0x478] sm:$0xff] }
  0x50   :  { %4641 = vmatpush.bf16.msra.mxu2 %v7892_v38  ;;  %v5490_v38 = vld [vmem:[%s10360_s0 + $0x30] sm:$0xf] }
  0x51   :  { %4655 = vmatpush.bf16.msra.mxu3 %v7900_v39  ;;  %v7782_v39 = vld [vmem:[%s10360_s0 + $0x12c] sm:$0xf0] }
  0x52   :  { %4614 = vmatpush.bf16.msra.mxu0 %v7875_v40  ;;  %v5498_v40 = vld [vmem:[%s10360_s0 + $0x38] sm:$0xf] }
  0x53   :  { %4628 = vmatpush.bf16.msra.mxu1 %v7883_v41  ;;  %v7783_v41 = vld [vmem:[%s10360_s0 + $0x134] sm:$0xf0] }
  0x54   :  { %4642 = vmatpush.bf16.msra.mxu2 %v7891_v42  ;;  %v7750_v42 = vld [vmem:[%s10360_s0 + $0x34] sm:$0xf] }
  0x55   :  { %4656 = vmatpush.bf16.msra.mxu3 %v7899_v43  ;;  %v5492_v43 = vld [vmem:[%s10360_s0 + $0x130] sm:$0xf0] }
  0x56   :  { %4615 = vmatpush.bf16.msra.mxu0 %v7874_v44  ;;  %v7751_v44 = vld [vmem:[%s10360_s0 + $0x3c] sm:$0xf] }
  0x57   :  { %4629 = vmatpush.bf16.msra.mxu1 %v7882_v45  ;;  %v5500_v45 = vld [vmem:[%s10360_s0 + $0x138] sm:$0xf0] }
  0x58   :  { %4643 = vmatpush.bf16.msra.mxu2 %v7890_v46  ;;  %v7959_v46 = vld [vmem:[%s10359_s1 + $0x4b8] sm:$0xff] }
  0x59   :  { %4657 = vmatpush.bf16.msra.mxu3 %v7898_v47  ;;  %v7967_v47 = vld [vmem:[%s10359_s1 + $0x4f8] sm:$0xff] }
  0x5a   :  { %4616 = vmatpush.bf16.msra.mxu0 %v7873_v48  ;;  %v5491_v48 = vor.u32 %v7782_v39, %v5490_v38  ;;  %v8987_v38 = vld [vmem:[%s10361_s2] ss:$0 sm:$0xff]  ;;  %v7989_v39 = vld [vmem:[%s10359_s1 + $0x5a8] sm:$0xff] }
  0x5b   :  { %4630 = vmatpush.bf16.msra.mxu1 %v7881_v49  ;;  %v5499_v49 = vor.u32 %v7783_v41, %v5498_v40  ;;  %v7997_v40 = vld [vmem:[%s10359_s1 + $0x5e8] sm:$0xff] }
  0x5c   :  { %4644 = vmatpush.bf16.msra.mxu2 %v7889_v50  ;;  %v5495_v50 = vor.u32 %v7750_v42, %v5492_v43  ;;  %v7972_v42 = vld [vmem:[%s10359_s1 + $0x520] sm:$0xff] }
  0x5d   :  { %4658 = vmatpush.bf16.msra.mxu3 %v7897_v51  ;;  %v5503_v51 = vor.u32 %v7751_v44, %v5500_v45  ;;  %v7980_v43 = vld [vmem:[%s10359_s1 + $0x560] sm:$0xff] }
  0x5e   :  { %4617 = vmatpush.bf16.msra.mxu0 %v7872_v52  ;;  %v7942_v52 = vld [vmem:[%s10359_s1 + $0x430] sm:$0xff]  ;;  %v7988_v45 = vld [vmem:[%s10359_s1 + $0x5a0] sm:$0xff] }
  0x5f   :  { %4631 = vmatpush.bf16.msra.mxu1 %v7880_v53  ;;  %v7950_v53 = vld [vmem:[%s10359_s1 + $0x470] sm:$0xff] }
  0x60   :  { %4645 = vmatpush.bf16.msra.mxu2 %v7888_v54  ;;  %v7958_v54 = vld [vmem:[%s10359_s1 + $0x4b0] sm:$0xff] }
  0x61   :  { %4659 = vmatpush.bf16.msra.mxu3 %v7896_v55  ;;  %4618 = vmatmul.bf16.vlgmr.msra.gmra.mxu0 %v5475_v4  ;;  %v7966_v55 = vld [vmem:[%s10359_s1 + $0x4f0] sm:$0xff] }
  0x62   :  { %4666 = vmatpush.bf16.msrb.mxu0 %v7911_v56  ;;  %4632 = vmatmul.bf16.vlgmr.msra.gmra.mxu1 %v5479_v6  ;;  %v7941_v56 = vld [vmem:[%s10359_s1 + $0x428] sm:$0xff]  ;;  %v7938_v4 = vld [vmem:[%s10359_s1 + $0x410] sm:$0xff] }
  0x63   :  { %4680 = vmatpush.bf16.msrb.mxu1 %v7919_v57  ;;  %4646 = vmatmul.bf16.vlgmr.msra.gmra.mxu2 %v5483_v5  ;;  %v7949_v57 = vld [vmem:[%s10359_s1 + $0x468] sm:$0xff]  ;;  %v7946_v5 = vld [vmem:[%s10359_s1 + $0x450] sm:$0xff] }
  0x64   :  { %4694 = vmatpush.bf16.msrb.mxu2 %v7927_v2  ;;  %4660 = vmatmul.bf16.vlgmr.msra.gmra.mxu3 %v5487_v7  ;;  %v7955_v2 = vld [vmem:[%s10359_s1 + $0x498] sm:$0xff]  ;;  %v7954_v6 = vld [vmem:[%s10359_s1 + $0x490] sm:$0xff] }
  0x65   :  { %4708 = vmatpush.bf16.msrb.mxu3 %v7935_v3  ;;  %v7963_v3 = vld [vmem:[%s10359_s1 + $0x4d8] sm:$0xff]  ;;  %v7962_v7 = vld [vmem:[%s10359_s1 + $0x4d0] sm:$0xff] }
  0x66   :  { %4667 = vmatpush.bf16.msrb.mxu0 %v7910_v8  ;;  %v7937_v8 = vld [vmem:[%s10359_s1 + $0x408] sm:$0xff] }
  0x67   :  { %4681 = vmatpush.bf16.msrb.mxu1 %v7918_v9  ;;  %v7945_v9 = vld [vmem:[%s10359_s1 + $0x448] sm:$0xff] }
  0x68   :  { %4695 = vmatpush.bf16.msrb.mxu2 %v7926_v10  ;;  %v7953_v10 = vld [vmem:[%s10359_s1 + $0x488] sm:$0xff] }
  0x69   :  { %4709 = vmatpush.bf16.msrb.mxu3 %v7934_v11  ;;  %v7961_v11 = vld [vmem:[%s10359_s1 + $0x4c8] sm:$0xff] }
  0x6a   :  { %4668 = vmatpush.bf16.msrb.mxu0 %v7909_v12  ;;  %v7936_v12 = vld [vmem:[%s10359_s1 + $0x400] sm:$0xff] }
  0x6b   :  { %4682 = vmatpush.bf16.msrb.mxu1 %v7917_v13  ;;  %v7944_v13 = vld [vmem:[%s10359_s1 + $0x440] sm:$0xff] }
  0x6c   :  { %4696 = vmatpush.bf16.msrb.mxu2 %v7925_v14  ;;  %v7952_v14 = vld [vmem:[%s10359_s1 + $0x480] sm:$0xff] }
  0x6d   :  { %4710 = vmatpush.bf16.msrb.mxu3 %v7933_v15  ;;  %v7960_v15 = vld [vmem:[%s10359_s1 + $0x4c0] sm:$0xff] }
  0x6e   :  { %4669 = vmatpush.bf16.msrb.mxu0 %v7908_v16  ;;  %v7975_v16 = vld [vmem:[%s10359_s1 + $0x538] sm:$0xff] }
  0x6f   :  { %4683 = vmatpush.bf16.msrb.mxu1 %v7916_v17  ;;  %v7983_v17 = vld [vmem:[%s10359_s1 + $0x578] sm:$0xff] }
  0x70   :  { %4697 = vmatpush.bf16.msrb.mxu2 %v7924_v18  ;;  %v5506_v18 = vld [vmem:[%s10360_s0 + $0x40] sm:$0xf] }
  0x71   :  { %4711 = vmatpush.bf16.msrb.mxu3 %v7932_v19  ;;  %v7784_v19 = vld [vmem:[%s10360_s0 + $0x13c] sm:$0xf0] }
  0x72   :  { %4670 = vmatpush.bf16.msrb.mxu0 %v7907_v20  ;;  %v5514_v20 = vld [vmem:[%s10360_s0 + $0x48] sm:$0xf] }
  0x73   :  { %4684 = vmatpush.bf16.msrb.mxu1 %v7915_v21  ;;  %v7785_v21 = vld [vmem:[%s10360_s0 + $0x144] sm:$0xf0] }
  0x74   :  { %4698 = vmatpush.bf16.msrb.mxu2 %v7923_v22  ;;  %v7752_v22 = vld [vmem:[%s10360_s0 + $0x44] sm:$0xf] }
  0x75   :  { %4712 = vmatpush.bf16.msrb.mxu3 %v7931_v23  ;;  %v5508_v23 = vld [vmem:[%s10360_s0 + $0x140] sm:$0xf0] }
  0x76   :  { %4671 = vmatpush.bf16.msrb.mxu0 %v7906_v24  ;;  %v7753_v24 = vld [vmem:[%s10360_s0 + $0x4c] sm:$0xf] }
  0x77   :  { %4685 = vmatpush.bf16.msrb.mxu1 %v7914_v25  ;;  %v5516_v25 = vld [vmem:[%s10360_s0 + $0x148] sm:$0xf0] }
  0x78   :  { %4699 = vmatpush.bf16.msrb.mxu2 %v7922_v26  ;;  %v7991_v26 = vld [vmem:[%s10359_s1 + $0x5b8] sm:$0xff] }
  0x79   :  { %4713 = vmatpush.bf16.msrb.mxu3 %v7930_v27  ;;  %v7999_v27 = vld [vmem:[%s10359_s1 + $0x5f8] sm:$0xff] }
  0x7a   :  { %4672 = vmatpush.bf16.msrb.mxu0 %v7905_v28  ;;  %v5507_v28 = vor.u32 %v7784_v19, %v5506_v18 }
  0x7b   :  { %4686 = vmatpush.bf16.msrb.mxu1 %v7913_v29  ;;  %v5515_v29 = vor.u32 %v7785_v21, %v5514_v20 }
  0x7c   :  { %4700 = vmatpush.bf16.msrb.mxu2 %v7921_v30  ;;  %v5511_v30 = vor.u32 %v7752_v22, %v5508_v23  ;;  %v8006_v23 = vld [vmem:[%s10359_s1 + $0x630] sm:$0xff] }
  0x7d   :  { %4714 = vmatpush.bf16.msrb.mxu3 %v7929_v31  ;;  %v5519_v31 = vor.u32 %v7753_v24, %v5516_v25  ;;  %v8014_v24 = vld [vmem:[%s10359_s1 + $0x670] sm:$0xff] }
  0x7e   :  { %4673 = vmatpush.bf16.msrb.mxu0 %v7904_v32  ;;  %v7974_v32 = vld [vmem:[%s10359_s1 + $0x530] sm:$0xff] }
  0x7f   :  { %4687 = vmatpush.bf16.msrb.mxu1 %v7912_v33  ;;  %v7982_v33 = vld [vmem:[%s10359_s1 + $0x570] sm:$0xff] }
  0x80   :  { %4701 = vmatpush.bf16.msrb.mxu2 %v7920_v34  ;;  %v7990_v34 = vld [vmem:[%s10359_s1 + $0x5b0] sm:$0xff] }
  0x81   :  { %4715 = vmatpush.bf16.msrb.mxu3 %v7928_v35  ;;  %4674 = vmatmul.bf16.vlgmr.msrb.gmra.mxu0 %v5491_v48  ;;  %v7998_v35 = vld [vmem:[%s10359_s1 + $0x5f0] sm:$0xff] }
  0x82   :  { %4722 = vmatpush.bf16.msra.mxu0 %v7943_v36  ;;  %4688 = vmatmul.bf16.vlgmr.msrb.gmra.mxu1 %v5495_v50  ;;  %v7973_v36 = vld [vmem:[%s10359_s1 + $0x528] sm:$0xff]  ;;  %v7979_v50 = vld [vmem:[%s10359_s1 + $0x558] sm:$0xff]  ;;  %v8022_v25 = vld [vmem:[%s10359_s1 + $0x6b0] sm:$0xff] }
  0x83   :  { %4736 = vmatpush.bf16.msra.mxu1 %v7951_v37  ;;  %4702 = vmatmul.bf16.vlgmr.msrb.gmra.mxu2 %v5499_v49  ;;  %v7981_v37 = vld [vmem:[%s10359_s1 + $0x568] sm:$0xff]  ;;  %v7971_v49 = vld [vmem:[%s10359_s1 + $0x518] sm:$0xff] }
  0x84   :  { %4750 = vmatpush.bf16.msra.mxu2 %v7959_v46  ;;  %4716 = vmatmul.bf16.vlgmr.msrb.gmra.mxu3 %v5503_v51  ;;  %v7996_v46 = vld [vmem:[%s10359_s1 + $0x5e0] sm:$0xff]  ;;  %v7987_v51 = vld [vmem:[%s10359_s1 + $0x598] sm:$0xff] }
  0x85   :  { %4764 = vmatpush.bf16.msra.mxu3 %v7967_v47 }
  0x86   :  { %4723 = vmatpush.bf16.msra.mxu0 %v7942_v52  ;;  %v7995_v52 = vld [vmem:[%s10359_s1 + $0x5d8] sm:$0xff] }
  0x87   :  { %4737 = vmatpush.bf16.msra.mxu1 %v7950_v53 }
  0x88   :  { %4751 = vmatpush.bf16.msra.mxu2 %v7958_v54 }
  0x89   :  { %4765 = vmatpush.bf16.msra.mxu3 %v7966_v55 }
  0x8a   :  { %4724 = vmatpush.bf16.msra.mxu0 %v7941_v56  ;;  %v7970_v56 = vld [vmem:[%s10359_s1 + $0x510] sm:$0xff] }
  0x8b   :  { %4738 = vmatpush.bf16.msra.mxu1 %v7949_v57  ;;  %v7978_v57 = vld [vmem:[%s10359_s1 + $0x550] sm:$0xff] }
  0x8c   :  { %4752 = vmatpush.bf16.msra.mxu2 %v7957_v58 }
  0x8d   :  { %4766 = vmatpush.bf16.msra.mxu3 %v7965_v59  ;;  %v7986_v59 = vld [vmem:[%s10359_s1 + $0x590] sm:$0xff] }
  0x8e   :  { %4725 = vmatpush.bf16.msra.mxu0 %v7940_v60  ;;  %v7994_v60 = vld [vmem:[%s10359_s1 + $0x5d0] sm:$0xff] }
  0x8f   :  { %4739 = vmatpush.bf16.msra.mxu1 %v7948_v61  ;;  %v7969_v61 = vld [vmem:[%s10359_s1 + $0x508] sm:$0xff] }
  0x90   :  { %4753 = vmatpush.bf16.msra.mxu2 %v7956_v62  ;;  %v7977_v62 = vld [vmem:[%s10359_s1 + $0x548] sm:$0xff] }
  0x91   :  { %4767 = vmatpush.bf16.msra.mxu3 %v7964_v63  ;;  %v7985_v63 = vld [vmem:[%s10359_s1 + $0x588] sm:$0xff] }
  0x92   :  { %4726 = vmatpush.bf16.msra.mxu0 %v7939_v0  ;;  %v7993_v0 = vld [vmem:[%s10359_s1 + $0x5c8] sm:$0xff] }
  0x93   :  { %4740 = vmatpush.bf16.msra.mxu1 %v7947_v1  ;;  %v7968_v1 = vld [vmem:[%s10359_s1 + $0x500] sm:$0xff] }
  0x94   :  { %4754 = vmatpush.bf16.msra.mxu2 %v7955_v2  ;;  %v7976_v2 = vld [vmem:[%s10359_s1 + $0x540] sm:$0xff] }
  0x95   :  { %4768 = vmatpush.bf16.msra.mxu3 %v7963_v3  ;;  %v7984_v3 = vld [vmem:[%s10359_s1 + $0x580] sm:$0xff] }
  0x96   :  { %4727 = vmatpush.bf16.msra.mxu0 %v7938_v4  ;;  %v7992_v4 = vld [vmem:[%s10359_s1 + $0x5c0] sm:$0xff] }
  0x97   :  { %4741 = vmatpush.bf16.msra.mxu1 %v7946_v5  ;;  %v8007_v5 = vld [vmem:[%s10359_s1 + $0x638] sm:$0xff] }
  0x98   :  { %4755 = vmatpush.bf16.msra.mxu2 %v7954_v6  ;;  %v8015_v6 = vld [vmem:[%s10359_s1 + $0x678] sm:$0xff] }
  0x99   :  { %4769 = vmatpush.bf16.msra.mxu3 %v7962_v7  ;;  %v5522_v7 = vld [vmem:[%s10360_s0 + $0x50] sm:$0xf] }
  0x9a   :  { %4728 = vmatpush.bf16.msra.mxu0 %v7937_v8  ;;  %v7786_v8 = vld [vmem:[%s10360_s0 + $0x14c] sm:$0xf0] }
  0x9b   :  { %4742 = vmatpush.bf16.msra.mxu1 %v7945_v9  ;;  %v5530_v9 = vld [vmem:[%s10360_s0 + $0x58] sm:$0xf]  ;;  %v5523_v18 = vor.u32 %v7786_v8, %v5522_v7  ;;  %v5548_v7 = vld [vmem:[%s10360_s0 + $0x168] sm:$0xf0] }
  0x9c   :  { %4756 = vmatpush.bf16.msra.mxu2 %v7953_v10  ;;  %v7787_v10 = vld [vmem:[%s10360_s0 + $0x154] sm:$0xf0] }
  0x9d   :  { %4770 = vmatpush.bf16.msra.mxu3 %v7961_v11  ;;  %v7754_v11 = vld [vmem:[%s10360_s0 + $0x54] sm:$0xf]  ;;  %v5531_v19 = vor.u32 %v7787_v10, %v5530_v9  ;;  %v8055_v8 = vld [vmem:[%s10359_s1 + $0x7b8] sm:$0xff] }
  0x9e   :  { %4729 = vmatpush.bf16.msra.mxu0 %v7936_v12  ;;  %v4507_v41 = vpop.f32.mrf.mxu0  ;;  %v5524_v12 = vld [vmem:[%s10360_s0 + $0x150] sm:$0xf0]  ;;  %v8063_v9 = vld [vmem:[%s10359_s1 + $0x7f8] sm:$0xff] }
  0x9f   :  { %4743 = vmatpush.bf16.msra.mxu1 %v7944_v13  ;;  %v4508_v44 = vadd.f32 %v8987_v38, %v4507_v41  ;;  %v4521_v47 = vpop.f32.mrf.mxu1  ;;  %v7755_v13 = vld [vmem:[%s10360_s0 + $0x5c] sm:$0xf]  ;;  %v5527_v20 = vor.u32 %v7754_v11, %v5524_v12 }
  0xa0   :  { %4757 = vmatpush.bf16.msra.mxu2 %v7952_v14  ;;  %v5532_v14 = vld [vmem:[%s10360_s0 + $0x158] sm:$0xf0] }
  0xa1   :  { %4771 = vmatpush.bf16.msra.mxu3 %v7960_v15  ;;  %4730 = vmatmul.bf16.vlgmr.msra.gmra.mxu0 %v5507_v28  ;;  %v4522_v48 = vadd.f32 %v4521_v47, %v4508_v44  ;;  %v8023_v15 = vld [vmem:[%s10359_s1 + $0x6b8] sm:$0xff]  ;;  %v5535_v21 = vor.u32 %v7755_v13, %v5532_v14  ;;  %v8005_v28 = vld [vmem:[%s10359_s1 + $0x628] sm:$0xff] }
  0xa2   :  { %4778 = vmatpush.bf16.msrb.mxu0 %v7975_v16  ;;  %4744 = vmatmul.bf16.vlgmr.msra.gmra.mxu1 %v5511_v30  ;;  %v8031_v16 = vld [vmem:[%s10359_s1 + $0x6f8] sm:$0xff]  ;;  %v8021_v30 = vld [vmem:[%s10359_s1 + $0x6a8] sm:$0xff] }
  0xa3   :  { %4792 = vmatpush.bf16.msrb.mxu1 %v7983_v17  ;;  %4758 = vmatmul.bf16.vlgmr.msra.gmra.mxu2 %v5515_v29  ;;  %v8013_v29 = vld [vmem:[%s10359_s1 + $0x668] sm:$0xff]  ;;  %v8019_v44 = vld [vmem:[%s10359_s1 + $0x698] sm:$0xff] }
  0xa4   :  { %4806 = vmatpush.bf16.msrb.mxu2 %v7991_v26  ;;  %4772 = vmatmul.bf16.vlgmr.msra.gmra.mxu3 %v5519_v31  ;;  %v8030_v26 = vld [vmem:[%s10359_s1 + $0x6f0] sm:$0xff]  ;;  %v8029_v31 = vld [vmem:[%s10359_s1 + $0x6e8] sm:$0xff] }
  0xa5   :  { %4820 = vmatpush.bf16.msrb.mxu3 %v7999_v27 }
  0xa6   :  { %4779 = vmatpush.bf16.msrb.mxu0 %v7974_v32  ;;  %v4535_v53 = vpop.f32.mrf.mxu2  ;;  %v9094_v17 = vpop.f32.mrf.mxu0 }
  0xa7   :  { %4793 = vmatpush.bf16.msrb.mxu1 %v7982_v33  ;;  %v4536_v54 = vadd.f32 %v4535_v53, %v4522_v48  ;;  %v4549_v55 = vpop.f32.mrf.mxu3  ;;  %v9096_v22 = vpop.f32.mrf.mxu1  ;;  %v8026_v53 = vld [vmem:[%s10359_s1 + $0x6d0] sm:$0xff] }
  0xa8   :  { %4807 = vmatpush.bf16.msrb.mxu2 %v7990_v34 }
  0xa9   :  { %4821 = vmatpush.bf16.msrb.mxu3 %v7998_v35  ;;  %v9026_v58 = vadd.f32 %v4549_v55, %v4536_v54  ;;  %v8004_v35 = vld [vmem:[%s10359_s1 + $0x620] sm:$0xff]  ;;  %v8001_v54 = vld [vmem:[%s10359_s1 + $0x608] sm:$0xff] }
  0xaa   :  { %4780 = vmatpush.bf16.msrb.mxu0 %v7973_v36  ;;  %v8012_v36 = vld [vmem:[%s10359_s1 + $0x660] sm:$0xff]  ;;  %v8009_v55 = vld [vmem:[%s10359_s1 + $0x648] sm:$0xff] }
  0xab   :  { %4794 = vmatpush.bf16.msrb.mxu1 %v7981_v37  ;;  %v8020_v37 = vld [vmem:[%s10359_s1 + $0x6a0] sm:$0xff] }
  0xac   :  { %4808 = vmatpush.bf16.msrb.mxu2 %v7989_v39  ;;  %v8028_v39 = vld [vmem:[%s10359_s1 + $0x6e0] sm:$0xff] }
  0xad   :  { %4822 = vmatpush.bf16.msrb.mxu3 %v7997_v40 }
  0xae   :  { %4781 = vmatpush.bf16.msrb.mxu0 %v7972_v42  ;;  %v9110_v27 = vpop.f32.mrf.mxu2  ;;  %v8003_v42 = vld [vmem:[%s10359_s1 + $0x618] sm:$0xff] }
  0xaf   :  { %4795 = vmatpush.bf16.msrb.mxu1 %v7980_v43  ;;  %v9124_v32 = vpop.f32.mrf.mxu3  ;;  %v8011_v43 = vld [vmem:[%s10359_s1 + $0x658] sm:$0xff] }
  0xb0   :  { %4809 = vmatpush.bf16.msrb.mxu2 %v7988_v45  ;;  %v8027_v45 = vld [vmem:[%s10359_s1 + $0x6d8] sm:$0xff] }
  0xb1   :  { %4823 = vmatpush.bf16.msrb.mxu3 %v7996_v46 }
  0xb2   :  { %4782 = vmatpush.bf16.msrb.mxu0 %v7971_v49 }
  0xb3   :  { %4796 = vmatpush.bf16.msrb.mxu1 %v7979_v50  ;;  %v8002_v50 = vld [vmem:[%s10359_s1 + $0x610] sm:$0xff] }
  0xb4   :  { %4810 = vmatpush.bf16.msrb.mxu2 %v7987_v51  ;;  %v8010_v51 = vld [vmem:[%s10359_s1 + $0x650] sm:$0xff] }
  0xb5   :  { %4824 = vmatpush.bf16.msrb.mxu3 %v7995_v52  ;;  %v8018_v52 = vld [vmem:[%s10359_s1 + $0x690] sm:$0xff] }
  0xb6   :  { %4783 = vmatpush.bf16.msrb.mxu0 %v7970_v56  ;;  %v8017_v56 = vld [vmem:[%s10359_s1 + $0x688] sm:$0xff] }
  0xb7   :  { %4797 = vmatpush.bf16.msrb.mxu1 %v7978_v57  ;;  %v8025_v57 = vld [vmem:[%s10359_s1 + $0x6c8] sm:$0xff] }
  0xb8   :  { %4811 = vmatpush.bf16.msrb.mxu2 %v7986_v59  ;;  %v8008_v59 = vld [vmem:[%s10359_s1 + $0x640] sm:$0xff] }
  0xb9   :  { %4825 = vmatpush.bf16.msrb.mxu3 %v7994_v60  ;;  %v8016_v60 = vld [vmem:[%s10359_s1 + $0x680] sm:$0xff] }
  0xba   :  { %4784 = vmatpush.bf16.msrb.mxu0 %v7969_v61  ;;  %v8024_v61 = vld [vmem:[%s10359_s1 + $0x6c0] sm:$0xff] }
  0xbb   :  { %4798 = vmatpush.bf16.msrb.mxu1 %v7977_v62  ;;  %v8039_v62 = vld [vmem:[%s10359_s1 + $0x738] sm:$0xff] }
  0xbc   :  { %4812 = vmatpush.bf16.msrb.mxu2 %v7985_v63  ;;  %v8047_v63 = vld [vmem:[%s10359_s1 + $0x778] sm:$0xff] }
  0xbd   :  { %4826 = vmatpush.bf16.msrb.mxu3 %v7993_v0  ;;  %v5538_v0 = vld [vmem:[%s10360_s0 + $0x60] sm:$0xf] }
  0xbe   :  { %4785 = vmatpush.bf16.msrb.mxu0 %v7968_v1  ;;  %v4563_v33 = vpop.f32.mrf.mxu0  ;;  %v7788_v1 = vld [vmem:[%s10360_s0 + $0x15c] sm:$0xf0] }
  0xbf   :  { %4799 = vmatpush.bf16.msrb.mxu1 %v7976_v2  ;;  %v4564_v34 = vadd.f32 %v4563_v33, %v9026_v58  ;;  %v4577_v40 = vpop.f32.mrf.mxu1  ;;  %v8000_v58 = vld [vmem:[%s10359_s1 + $0x600] sm:$0xff]  ;;  %v5546_v2 = vld [vmem:[%s10360_s0 + $0x68] sm:$0xf]  ;;  %v5539_v10 = vor.u32 %v7788_v1, %v5538_v0  ;;  %v7758_v0 = vld [vmem:[%s10360_s0 + $0x74] sm:$0xf] }
  0xc0   :  { %4813 = vmatpush.bf16.msrb.mxu2 %v7984_v3  ;;  %v7789_v3 = vld [vmem:[%s10360_s0 + $0x164] sm:$0xf0]  ;;  %v8044_v33 = vld [vmem:[%s10359_s1 + $0x760] sm:$0xff]  ;;  %v5556_v1 = vld [vmem:[%s10360_s0 + $0x170] sm:$0xf0] }
  0xc1   :  { %4827 = vmatpush.bf16.msrb.mxu3 %v7992_v4  ;;  %4786 = vmatmul.bf16.vlgmr.msrb.gmra.mxu0 %v5523_v18  ;;  %v4578_v41 = vadd.f32 %v4577_v40, %v4564_v34  ;;  %v7756_v4 = vld [vmem:[%s10360_s0 + $0x64] sm:$0xf]  ;;  %v5547_v11 = vor.u32 %v7789_v3, %v5546_v2  ;;  %v8046_v18 = vld [vmem:[%s10359_s1 + $0x770] sm:$0xff]  ;;  %v8043_v40 = vld [vmem:[%s10359_s1 + $0x758] sm:$0xff] }
  0xc2   :  { %4834 = vmatpush.bf16.msra.mxu0 %v8007_v5  ;;  %4800 = vmatmul.bf16.vlgmr.msrb.gmra.mxu1 %v5527_v20  ;;  %v5540_v5 = vld [vmem:[%s10360_s0 + $0x160] sm:$0xf0]  ;;  %v8062_v20 = vld [vmem:[%s10359_s1 + $0x7f0] sm:$0xff]  ;;  %v7759_v2 = vld [vmem:[%s10360_s0 + $0x7c] sm:$0xf] }
  0xc3   :  { %4848 = vmatpush.bf16.msra.mxu1 %v8015_v6  ;;  %4814 = vmatmul.bf16.vlgmr.msrb.gmra.mxu2 %v5531_v19  ;;  %v7757_v6 = vld [vmem:[%s10360_s0 + $0x6c] sm:$0xf]  ;;  %v5543_v13 = vor.u32 %v7756_v4, %v5540_v5  ;;  %v8054_v19 = vld [vmem:[%s10359_s1 + $0x7b0] sm:$0xff]  ;;  %v5564_v3 = vld [vmem:[%s10360_s0 + $0x178] sm:$0xf0] }
  0xc4   :  { %4862 = vmatpush.bf16.msra.mxu2 %v8023_v15  ;;  %4828 = vmatmul.bf16.vlgmr.msrb.gmra.mxu3 %v5535_v21  ;;  %v5551_v14 = vor.u32 %v7757_v6, %v5548_v7  ;;  %v8037_v21 = vld [vmem:[%s10359_s1 + $0x728] sm:$0xff]  ;;  %v8087_v4 = vld [vmem:[%s10359_s1 + $0x8b8] sm:$0xff] }
  0xc5   :  { %4876 = vmatpush.bf16.msra.mxu3 %v8031_v16  ;;  %v8038_v16 = vld [vmem:[%s10359_s1 + $0x730] sm:$0xff]  ;;  %v8095_v5 = vld [vmem:[%s10359_s1 + $0x8f8] sm:$0xff] }
  0xc6   :  { %4835 = vmatpush.bf16.msra.mxu0 %v8006_v23  ;;  %v4591_v46 = vpop.f32.mrf.mxu2  ;;  %v9225_v12 = vpop.f32.mrf.mxu0  ;;  %v8045_v23 = vld [vmem:[%s10359_s1 + $0x768] sm:$0xff] }
  0xc7   :  { %4849 = vmatpush.bf16.msra.mxu1 %v8014_v24  ;;  %v4592_v47 = vadd.f32 %v4591_v46, %v4578_v41  ;;  %v4605_v48 = vpop.f32.mrf.mxu3  ;;  %v9227_v15 = vpop.f32.mrf.mxu1  ;;  %v8051_v41 = vld [vmem:[%s10359_s1 + $0x798] sm:$0xff] }
  0xc8   :  { %4863 = vmatpush.bf16.msra.mxu2 %v8022_v25  ;;  %v8053_v25 = vld [vmem:[%s10359_s1 + $0x7a8] sm:$0xff] }
  0xc9   :  { %4877 = vmatpush.bf16.msra.mxu3 %v8030_v26  ;;  %v9151_v49 = vadd.f32 %v4605_v48, %v4592_v47  ;;  %v8061_v26 = vld [vmem:[%s10359_s1 + $0x7e8] sm:$0xff]  ;;  %v8034_v47 = vld [vmem:[%s10359_s1 + $0x710] sm:$0xff] }
  0xca   :  { %4836 = vmatpush.bf16.msra.mxu0 %v8005_v28  ;;  %v8042_v48 = vld [vmem:[%s10359_s1 + $0x750] sm:$0xff] }
  0xcb   :  { %4850 = vmatpush.bf16.msra.mxu1 %v8013_v29 }
  0xcc   :  { %4864 = vmatpush.bf16.msra.mxu2 %v8021_v30 }
  0xcd   :  { %4878 = vmatpush.bf16.msra.mxu3 %v8029_v31  ;;  %v8036_v31 = vld [vmem:[%s10359_s1 + $0x720] sm:$0xff] }
  0xce   :  { %4837 = vmatpush.bf16.msra.mxu0 %v8004_v35  ;;  %v9247_v24 = vpop.f32.mrf.mxu2  ;;  %v8052_v35 = vld [vmem:[%s10359_s1 + $0x7a0] sm:$0xff] }
  0xcf   :  { %4851 = vmatpush.bf16.msra.mxu1 %v8012_v36  ;;  %v9255_v28 = vpop.f32.mrf.mxu3  ;;  %v8060_v36 = vld [vmem:[%s10359_s1 + $0x7e0] sm:$0xff] }
  0xd0   :  { %4865 = vmatpush.bf16.msra.mxu2 %v8020_v37 }
  0xd1   :  { %4879 = vmatpush.bf16.msra.mxu3 %v8028_v39  ;;  %v8035_v39 = vld [vmem:[%s10359_s1 + $0x718] sm:$0xff] }
  0xd2   :  { %4838 = vmatpush.bf16.msra.mxu0 %v8003_v42  ;;  %v8059_v42 = vld [vmem:[%s10359_s1 + $0x7d8] sm:$0xff] }
  0xd3   :  { %4852 = vmatpush.bf16.msra.mxu1 %v8011_v43 }
  0xd4   :  { %4866 = vmatpush.bf16.msra.mxu2 %v8019_v44 }
  0xd5   :  { %4880 = vmatpush.bf16.msra.mxu3 %v8027_v45 }
  0xd6   :  { %4839 = vmatpush.bf16.msra.mxu0 %v8002_v50  ;;  %v8058_v50 = vld [vmem:[%s10359_s1 + $0x7d0] sm:$0xff] }
  0xd7   :  { %4853 = vmatpush.bf16.msra.mxu1 %v8010_v51  ;;  %v8033_v51 = vld [vmem:[%s10359_s1 + $0x708] sm:$0xff] }
  0xd8   :  { %4867 = vmatpush.bf16.msra.mxu2 %v8018_v52  ;;  %v8041_v52 = vld [vmem:[%s10359_s1 + $0x748] sm:$0xff] }
  0xd9   :  { %4881 = vmatpush.bf16.msra.mxu3 %v8026_v53  ;;  %v8049_v53 = vld [vmem:[%s10359_s1 + $0x788] sm:$0xff] }
  0xda   :  { %4840 = vmatpush.bf16.msra.mxu0 %v8001_v54  ;;  %v8057_v54 = vld [vmem:[%s10359_s1 + $0x7c8] sm:$0xff] }
  0xdb   :  { %4854 = vmatpush.bf16.msra.mxu1 %v8009_v55  ;;  %v8032_v55 = vld [vmem:[%s10359_s1 + $0x700] sm:$0xff] }
  0xdc   :  { %4868 = vmatpush.bf16.msra.mxu2 %v8017_v56  ;;  %v8040_v56 = vld [vmem:[%s10359_s1 + $0x740] sm:$0xff] }
  0xdd   :  { %4882 = vmatpush.bf16.msra.mxu3 %v8025_v57  ;;  %v8048_v57 = vld [vmem:[%s10359_s1 + $0x780] sm:$0xff] }
  0xde   :  { %4841 = vmatpush.bf16.msra.mxu0 %v8000_v58  ;;  %v4619_v29 = vpop.f32.mrf.mxu0  ;;  %v8056_v58 = vld [vmem:[%s10359_s1 + $0x7c0] sm:$0xff] }
  0xdf   :  { %4855 = vmatpush.bf16.msra.mxu1 %v8008_v59  ;;  %v4620_v30 = vadd.f32 %v4619_v29, %v9151_v49  ;;  %v4633_v34 = vpop.f32.mrf.mxu1  ;;  %v8050_v49 = vld [vmem:[%s10359_s1 + $0x790] sm:$0xff]  ;;  %v4510_v59 = vadd.f32 %v8987_v38, %v9094_v17  ;;  %v5562_v38 = vld [vmem:[%s10360_s0 + $0x78] sm:$0xf] }
  0xe0   :  { %4869 = vmatpush.bf16.msra.mxu2 %v8016_v60  ;;  %v8071_v60 = vld [vmem:[%s10359_s1 + $0x838] sm:$0xff] }
  0xe1   :  { %4883 = vmatpush.bf16.msra.mxu3 %v8024_v61  ;;  %4842 = vmatmul.bf16.vlgmr.msra.gmra.mxu0 %v5539_v10  ;;  %v4634_v37 = vadd.f32 %v4633_v34, %v4620_v30  ;;  %v8079_v61 = vld [vmem:[%s10359_s1 + $0x878] sm:$0xff]  ;;  %v4524_v6 = vadd.f32 %v9096_v22, %v4510_v59  ;;  %v5559_v10 = vor.u32 %v7758_v0, %v5556_v1  ;;  %v8078_v22 = vld [vmem:[%s10359_s1 + $0x870] sm:$0xff]  ;;  %v8076_v34 = vld [vmem:[%s10359_s1 + $0x860] sm:$0xff] }
  0xe2   :  { %4890 = vmatpush.bf16.msrb.mxu0 %v8039_v62  ;;  %4856 = vmatmul.bf16.vlgmr.msra.gmra.mxu1 %v5543_v13  ;;  %v5554_v62 = vld [vmem:[%s10360_s0 + $0x70] sm:$0xf]  ;;  %v7791_v17 = vld [vmem:[%s10360_s0 + $0x174] sm:$0xf0]  ;;  %v8088_v59 = vld [vmem:[%s10359_s1 + $0x8c0] sm:$0xff] }
  0xe3   :  { %4904 = vmatpush.bf16.msrb.mxu1 %v8047_v63  ;;  %4870 = vmatmul.bf16.vlgmr.msra.gmra.mxu2 %v5547_v11  ;;  %v7790_v63 = vld [vmem:[%s10360_s0 + $0x16c] sm:$0xf0]  ;;  %v5567_v11 = vor.u32 %v7759_v2, %v5564_v3  ;;  %v7760_v0 = vld [vmem:[%s10360_s0 + $0x84] sm:$0xf]  ;;  %v7761_v3 = vld [vmem:[%s10360_s0 + $0x8c] sm:$0xf] }
  0xe4   :  { %4918 = vmatpush.bf16.msrb.mxu2 %v8055_v8  ;;  %4884 = vmatmul.bf16.vlgmr.msra.gmra.mxu3 %v5551_v14  ;;  %v5555_v7 = vor.u32 %v7790_v63, %v5554_v62  ;;  %v5563_v8 = vor.u32 %v7791_v17, %v5562_v38  ;;  %v8070_v14 = vld [vmem:[%s10359_s1 + $0x830] sm:$0xff]  ;;  %v5570_v62 = vld [vmem:[%s10360_s0 + $0x80] sm:$0xf]  ;;  %v5578_v38 = vld [vmem:[%s10360_s0 + $0x88] sm:$0xf] }
  0xe5   :  { %4932 = vmatpush.bf16.msrb.mxu3 %v8063_v9  ;;  %v7792_v63 = vld [vmem:[%s10360_s0 + $0x17c] sm:$0xf0]  ;;  %v7793_v17 = vld [vmem:[%s10360_s0 + $0x184] sm:$0xf0]  ;;  %v5572_v2 = vld [vmem:[%s10360_s0 + $0x180] sm:$0xf0] }
  0xe6   :  { %4891 = vmatpush.bf16.msrb.mxu0 %v8038_v16  ;;  %v4647_v43 = vpop.f32.mrf.mxu2  ;;  %v9359_v9 = vpop.f32.mrf.mxu0  ;;  %v8086_v16 = vld [vmem:[%s10359_s1 + $0x8b0] sm:$0xff] }
  0xe7   :  { %4905 = vmatpush.bf16.msrb.mxu1 %v8046_v18  ;;  %v4648_v44 = vadd.f32 %v4647_v43, %v4634_v37  ;;  %v4661_v45 = vpop.f32.mrf.mxu3  ;;  %v9361_v13 = vpop.f32.mrf.mxu1  ;;  %v8094_v18 = vld [vmem:[%s10359_s1 + $0x8f0] sm:$0xff] }
  0xe8   :  { %4919 = vmatpush.bf16.msrb.mxu2 %v8054_v19  ;;  %v4538_v19 = vadd.f32 %v9110_v27, %v4524_v6  ;;  %v8085_v27 = vld [vmem:[%s10359_s1 + $0x8a8] sm:$0xff]  ;;  %v8127_v6 = vld [vmem:[%s10359_s1 + $0x9f8] sm:$0xff] }
  0xe9   :  { %4933 = vmatpush.bf16.msrb.mxu3 %v8062_v20  ;;  %v9282_v46 = vadd.f32 %v4661_v45, %v4648_v44  ;;  %v8069_v20 = vld [vmem:[%s10359_s1 + $0x828] sm:$0xff] }
  0xea   :  { %4892 = vmatpush.bf16.msrb.mxu0 %v8037_v21  ;;  %v8077_v21 = vld [vmem:[%s10359_s1 + $0x868] sm:$0xff] }
  0xeb   :  { %4906 = vmatpush.bf16.msrb.mxu1 %v8045_v23 }
  0xec   :  { %4920 = vmatpush.bf16.msrb.mxu2 %v8053_v25  ;;  %v8093_v25 = vld [vmem:[%s10359_s1 + $0x8e8] sm:$0xff] }
  0xed   :  { %4934 = vmatpush.bf16.msrb.mxu3 %v8061_v26  ;;  %v4552_v26 = vadd.f32 %v9124_v32, %v4538_v19  ;;  %v8084_v32 = vld [vmem:[%s10359_s1 + $0x8a0] sm:$0xff]  ;;  %v8126_v19 = vld [vmem:[%s10359_s1 + $0x9f0] sm:$0xff] }
  0xee   :  { %4893 = vmatpush.bf16.msrb.mxu0 %v8036_v31  ;;  %v9382_v23 = vpop.f32.mrf.mxu2 }
  0xef   :  { %4907 = vmatpush.bf16.msrb.mxu1 %v8044_v33  ;;  %v9391_v29 = vpop.f32.mrf.mxu3  ;;  %v8068_v33 = vld [vmem:[%s10359_s1 + $0x820] sm:$0xff]  ;;  %v4566_v37 = vadd.f32 %v9225_v12, %v4552_v26  ;;  %v8091_v12 = vld [vmem:[%s10359_s1 + $0x8d8] sm:$0xff]  ;;  %v8117_v26 = vld [vmem:[%s10359_s1 + $0x9a8] sm:$0xff] }
  0xf0   :  { %4921 = vmatpush.bf16.msrb.mxu2 %v8052_v35 }
  0xf1   :  { %4935 = vmatpush.bf16.msrb.mxu3 %v8060_v36  ;;  %v8092_v36 = vld [vmem:[%s10359_s1 + $0x8e0] sm:$0xff]  ;;  %v4580_v44 = vadd.f32 %v9227_v15, %v4566_v37  ;;  %v8082_v15 = vld [vmem:[%s10359_s1 + $0x890] sm:$0xff] }
  0xf2   :  { %4894 = vmatpush.bf16.msrb.mxu0 %v8035_v39  ;;  %v8116_v37 = vld [vmem:[%s10359_s1 + $0x9a0] sm:$0xff] }
  0xf3   :  { %4908 = vmatpush.bf16.msrb.mxu1 %v8043_v40  ;;  %v8067_v40 = vld [vmem:[%s10359_s1 + $0x818] sm:$0xff] }
  0xf4   :  { %4922 = vmatpush.bf16.msrb.mxu2 %v8051_v41  ;;  %v8075_v41 = vld [vmem:[%s10359_s1 + $0x858] sm:$0xff] }
  0xf5   :  { %4936 = vmatpush.bf16.msrb.mxu3 %v8059_v42  ;;  %v8083_v42 = vld [vmem:[%s10359_s1 + $0x898] sm:$0xff] }
  0xf6   :  { %4895 = vmatpush.bf16.msrb.mxu0 %v8034_v47  ;;  %v4594_v47 = vadd.f32 %v9247_v24, %v4580_v44  ;;  %v8090_v24 = vld [vmem:[%s10359_s1 + $0x8d0] sm:$0xff]  ;;  %v8123_v44 = vld [vmem:[%s10359_s1 + $0x9d8] sm:$0xff] }
  0xf7   :  { %4909 = vmatpush.bf16.msrb.mxu1 %v8042_v48 }
  0xf8   :  { %4923 = vmatpush.bf16.msrb.mxu2 %v8050_v49  ;;  %v8066_v49 = vld [vmem:[%s10359_s1 + $0x810] sm:$0xff] }
  0xf9   :  { %4937 = vmatpush.bf16.msrb.mxu3 %v8058_v50  ;;  %v8074_v50 = vld [vmem:[%s10359_s1 + $0x850] sm:$0xff] }
  0xfa   :  { %4896 = vmatpush.bf16.msrb.mxu0 %v8033_v51  ;;  %v4608_v51 = vadd.f32 %v9255_v28, %v4594_v47  ;;  %v8089_v28 = vld [vmem:[%s10359_s1 + $0x8c8] sm:$0xff] }
  0xfb   :  { %4910 = vmatpush.bf16.msrb.mxu1 %v8041_v52  ;;  %v8065_v52 = vld [vmem:[%s10359_s1 + $0x808] sm:$0xff] }
  0xfc   :  { %4924 = vmatpush.bf16.msrb.mxu2 %v8049_v53  ;;  %v8073_v53 = vld [vmem:[%s10359_s1 + $0x848] sm:$0xff] }
  0xfd   :  { %4938 = vmatpush.bf16.msrb.mxu3 %v8057_v54  ;;  %v8081_v54 = vld [vmem:[%s10359_s1 + $0x888] sm:$0xff] }
  0xfe   :  { %4897 = vmatpush.bf16.msrb.mxu0 %v8032_v55  ;;  %v4675_v30 = vpop.f32.mrf.mxu0  ;;  %v4622_v55 = vadd.f32 %v9359_v9, %v4608_v51  ;;  %v5579_v9 = vor.u32 %v7793_v17, %v5578_v38  ;;  %v8106_v51 = vld [vmem:[%s10359_s1 + $0x950] sm:$0xff]  ;;  %v8112_v38 = vld [vmem:[%s10359_s1 + $0x980] sm:$0xff] }
  0xff   :  { %4911 = vmatpush.bf16.msrb.mxu1 %v8040_v56  ;;  %v4676_v31 = vadd.f32 %v4675_v30, %v9282_v46  ;;  %v4689_v35 = vpop.f32.mrf.mxu1  ;;  %v8064_v56 = vld [vmem:[%s10359_s1 + $0x800] sm:$0xff] }
 0x100   :  { %4925 = vmatpush.bf16.msrb.mxu2 %v8048_v57  ;;  %v8072_v57 = vld [vmem:[%s10359_s1 + $0x840] sm:$0xff]  ;;  %v4636_v1 = vadd.f32 %v9361_v13, %v4622_v55  ;;  %v8097_v55 = vld [vmem:[%s10359_s1 + $0x908] sm:$0xff] }
 0x101   :  { %4939 = vmatpush.bf16.msrb.mxu3 %v8056_v58  ;;  %4898 = vmatmul.bf16.vlgmr.msrb.gmra.mxu0 %v5555_v7  ;;  %v4690_v39 = vadd.f32 %v4689_v35, %v4676_v31  ;;  %v8080_v58 = vld [vmem:[%s10359_s1 + $0x880] sm:$0xff] }
 0x102   :  { %4946 = vmatpush.bf16.msra.mxu0 %v8071_v60  ;;  %4912 = vmatmul.bf16.vlgmr.msrb.gmra.mxu1 %v5559_v10  ;;  %v8103_v60 = vld [vmem:[%s10359_s1 + $0x938] sm:$0xff]  ;;  %v4650_v7 = vadd.f32 %v9382_v23, %v4636_v1  ;;  %v8101_v23 = vld [vmem:[%s10359_s1 + $0x928] sm:$0xff]  ;;  %v8100_v35 = vld [vmem:[%s10359_s1 + $0x920] sm:$0xff] }
 0x103   :  { %4960 = vmatpush.bf16.msra.mxu1 %v8079_v61  ;;  %4926 = vmatmul.bf16.vlgmr.msrb.gmra.mxu2 %v5563_v8  ;;  %v8111_v61 = vld [vmem:[%s10359_s1 + $0x978] sm:$0xff]  ;;  %v5571_v8 = vor.u32 %v7792_v63, %v5570_v62  ;;  %v8096_v62 = vld [vmem:[%s10359_s1 + $0x900] sm:$0xff] }
 0x104   :  { %4974 = vmatpush.bf16.msra.mxu2 %v8087_v4  ;;  %4940 = vmatmul.bf16.vlgmr.msrb.gmra.mxu3 %v5567_v11  ;;  %v5580_v4 = vld [vmem:[%s10360_s0 + $0x188] sm:$0xf0]  ;;  %v5575_v11 = vor.u32 %v7760_v0, %v5572_v2  ;;  %v8104_v63 = vld [vmem:[%s10359_s1 + $0x940] sm:$0xff]  ;;  %v8135_v1 = vld [vmem:[%s10359_s1 + $0xa38] sm:$0xff] }
 0x105   :  { %4988 = vmatpush.bf16.msra.mxu3 %v8095_v5  ;;  %v8119_v5 = vld [vmem:[%s10359_s1 + $0x9b8] sm:$0xff]  ;;  %v5583_v13 = vor.u32 %v7761_v3, %v5580_v4  ;;  %v8120_v17 = vld [vmem:[%s10359_s1 + $0x9c0] sm:$0xff]  ;;  %v5586_v3 = vld [vmem:[%s10360_s0 + $0x90] sm:$0xf] }
 0x106   :  { %4947 = vmatpush.bf16.msra.mxu0 %v8070_v14  ;;  %v4703_v43 = vpop.f32.mrf.mxu2  ;;  %v4677_v10 = vpop.f32.mrf.mxu0  ;;  %v8143_v2 = vld [vmem:[%s10359_s1 + $0xa78] sm:$0xff]  ;;  %v7794_v4 = vld [vmem:[%s10360_s0 + $0x18c] sm:$0xf0] }
 0x107   :  { %4961 = vmatpush.bf16.msra.mxu1 %v8078_v22  ;;  %v4704_v45 = vadd.f32 %v4703_v43, %v4690_v39  ;;  %v4717_v46 = vpop.f32.mrf.mxu3  ;;  %v4691_v14 = vpop.f32.mrf.mxu1  ;;  %v8102_v22 = vld [vmem:[%s10359_s1 + $0x930] sm:$0xff]  ;;  %v8124_v39 = vld [vmem:[%s10359_s1 + $0x9e0] sm:$0xff]  ;;  %v8115_v43 = vld [vmem:[%s10359_s1 + $0x998] sm:$0xff] }
 0x108   :  { %4975 = vmatpush.bf16.msra.mxu2 %v8086_v16  ;;  %v8110_v16 = vld [vmem:[%s10359_s1 + $0x970] sm:$0xff] }
 0x109   :  { %4989 = vmatpush.bf16.msra.mxu3 %v8094_v18  ;;  %v9421_v48 = vadd.f32 %v4717_v46, %v4704_v45  ;;  %v8118_v18 = vld [vmem:[%s10359_s1 + $0x9b0] sm:$0xff] }
 0x10a   :  { %4948 = vmatpush.bf16.msra.mxu0 %v8069_v20  ;;  %v4664_v20 = vadd.f32 %v9391_v29, %v4650_v7  ;;  %v8125_v29 = vld [vmem:[%s10359_s1 + $0x9e8] sm:$0xff]  ;;  %v7762_v7 = vld [vmem:[%s10360_s0 + $0x94] sm:$0xf] }
 0x10b   :  { %4962 = vmatpush.bf16.msra.mxu1 %v8077_v21 }
 0x10c   :  { %4976 = vmatpush.bf16.msra.mxu2 %v8085_v27  ;;  %v4678_v21 = vadd.f32 %v4677_v10, %v4664_v20  ;;  %v8109_v27 = vld [vmem:[%s10359_s1 + $0x968] sm:$0xff]  ;;  %v5596_v10 = vld [vmem:[%s10360_s0 + $0x198] sm:$0xf0]  ;;  %v8142_v20 = vld [vmem:[%s10359_s1 + $0xa70] sm:$0xff] }
 0x10d   :  { %4990 = vmatpush.bf16.msra.mxu3 %v8093_v25 }
 0x10e   :  { %4949 = vmatpush.bf16.msra.mxu0 %v8068_v33  ;;  %v4705_v25 = vpop.f32.mrf.mxu2  ;;  %v4692_v33 = vadd.f32 %v4691_v14, %v4678_v21  ;;  %v5587_v14 = vor.u32 %v7794_v4, %v5586_v3  ;;  %v8150_v21 = vld [vmem:[%s10359_s1 + $0xab0] sm:$0xff]  ;;  %v7764_v3 = vld [vmem:[%s10360_s0 + $0xa4] sm:$0xf] }
 0x10f   :  { %4963 = vmatpush.bf16.msra.mxu1 %v8076_v34  ;;  %v4719_v30 = vpop.f32.mrf.mxu3  ;;  %v5604_v4 = vld [vmem:[%s10360_s0 + $0x1a0] sm:$0xf0] }
 0x110   :  { %4977 = vmatpush.bf16.msra.mxu2 %v8084_v32  ;;  %v8108_v32 = vld [vmem:[%s10359_s1 + $0x960] sm:$0xff] }
 0x111   :  { %4991 = vmatpush.bf16.msra.mxu3 %v8092_v36 }
 0x112   :  { %4950 = vmatpush.bf16.msra.mxu0 %v8067_v40  ;;  %v4706_v40 = vadd.f32 %v4705_v25, %v4692_v33  ;;  %v8141_v25 = vld [vmem:[%s10359_s1 + $0xa68] sm:$0xff]  ;;  %v8132_v33 = vld [vmem:[%s10359_s1 + $0xa20] sm:$0xff] }
 0x113   :  { %4964 = vmatpush.bf16.msra.mxu1 %v8075_v41 }
 0x114   :  { %4978 = vmatpush.bf16.msra.mxu2 %v8083_v42  ;;  %v8099_v42 = vld [vmem:[%s10359_s1 + $0x918] sm:$0xff]  ;;  %v4720_v46 = vadd.f32 %v4719_v30, %v4706_v40 }
 0x115   :  { %4992 = vmatpush.bf16.msra.mxu3 %v8091_v12  ;;  %v8107_v12 = vld [vmem:[%s10359_s1 + $0x958] sm:$0xff] }
 0x116   :  { %4951 = vmatpush.bf16.msra.mxu0 %v8066_v49  ;;  %v8139_v40 = vld [vmem:[%s10359_s1 + $0xa58] sm:$0xff] }
 0x117   :  { %4965 = vmatpush.bf16.msra.mxu1 %v8074_v50 }
 0x118   :  { %4979 = vmatpush.bf16.msra.mxu2 %v8082_v15 }
 0x119   :  { %4993 = vmatpush.bf16.msra.mxu3 %v8090_v24  ;;  %v8098_v24 = vld [vmem:[%s10359_s1 + $0x910] sm:$0xff] }
 0x11a   :  { %4952 = vmatpush.bf16.msra.mxu0 %v8065_v52 }
 0x11b   :  { %4966 = vmatpush.bf16.msra.mxu1 %v8073_v53  ;;  %v8114_v53 = vld [vmem:[%s10359_s1 + $0x990] sm:$0xff] }
 0x11c   :  { %4980 = vmatpush.bf16.msra.mxu2 %v8081_v54  ;;  %v8122_v54 = vld [vmem:[%s10359_s1 + $0x9d0] sm:$0xff] }
 0x11d   :  { %4994 = vmatpush.bf16.msra.mxu3 %v8089_v28 }
 0x11e   :  { %4953 = vmatpush.bf16.msra.mxu0 %v8064_v56  ;;  %v4731_v31 = vpop.f32.mrf.mxu0  ;;  %v8105_v56 = vld [vmem:[%s10359_s1 + $0x948] sm:$0xff] }
 0x11f   :  { %4967 = vmatpush.bf16.msra.mxu1 %v8072_v57  ;;  %v4732_v34 = vadd.f32 %v4731_v31, %v9421_v48  ;;  %v4745_v36 = vpop.f32.mrf.mxu1  ;;  %v8113_v57 = vld [vmem:[%s10359_s1 + $0x988] sm:$0xff] }
 0x120   :  { %4981 = vmatpush.bf16.msra.mxu2 %v8080_v58  ;;  %v8121_v58 = vld [vmem:[%s10359_s1 + $0x9c8] sm:$0xff] }
 0x121   :  { %4995 = vmatpush.bf16.msra.mxu3 %v8088_v59  ;;  %4954 = vmatmul.bf16.vlgmr.msra.gmra.mxu0 %v5571_v8  ;;  %v4746_v41 = vadd.f32 %v4745_v36, %v4732_v34  ;;  %v5588_v8 = vld [vmem:[%s10360_s0 + $0x190] sm:$0xf0]  ;;  %v8140_v34 = vld [vmem:[%s10359_s1 + $0xa60] sm:$0xff] }
 0x122   :  { %5002 = vmatpush.bf16.msrb.mxu0 %v8103_v60  ;;  %4968 = vmatmul.bf16.vlgmr.msra.gmra.mxu1 %v5575_v11  ;;  %v8151_v11 = vld [vmem:[%s10359_s1 + $0xab8] sm:$0xff]  ;;  %v8156_v36 = vld [vmem:[%s10359_s1 + $0xae0] sm:$0xff] }
 0x123   :  { %5016 = vmatpush.bf16.msrb.mxu1 %v8111_v61  ;;  %4982 = vmatmul.bf16.vlgmr.msra.gmra.mxu2 %v5579_v9  ;;  %v7763_v9 = vld [vmem:[%s10360_s0 + $0x9c] sm:$0xf] }
 0x124   :  { %5030 = vmatpush.bf16.msrb.mxu2 %v8119_v5  ;;  %4996 = vmatmul.bf16.vlgmr.msra.gmra.mxu3 %v5583_v13  ;;  %v5594_v5 = vld [vmem:[%s10360_s0 + $0x98] sm:$0xf] }
 0x125   :  { %5044 = vmatpush.bf16.msrb.mxu3 %v8127_v6  ;;  %v7795_v6 = vld [vmem:[%s10360_s0 + $0x194] sm:$0xf0] }
 0x126   :  { %5003 = vmatpush.bf16.msrb.mxu0 %v8102_v22  ;;  %v4759_v45 = vpop.f32.mrf.mxu2  ;;  %v4733_v49 = vpop.f32.mrf.mxu0  ;;  %v8159_v13 = vld [vmem:[%s10359_s1 + $0xaf8] sm:$0xff]  ;;  %v5595_v22 = vor.u32 %v7795_v6, %v5594_v5  ;;  %v7765_v5 = vld [vmem:[%s10360_s0 + $0xac] sm:$0xf] }
 0x127   :  { %5017 = vmatpush.bf16.msrb.mxu1 %v8110_v16  ;;  %v4760_v47 = vadd.f32 %v4759_v45, %v4746_v41  ;;  %v4773_v48 = vpop.f32.mrf.mxu3  ;;  %v4734_v50 = vadd.f32 %v4733_v49, %v4720_v46  ;;  %v4747_v52 = vpop.f32.mrf.mxu1  ;;  %v5591_v16 = vor.u32 %v7762_v7, %v5588_v8  ;;  %v8147_v41 = vld [vmem:[%s10359_s1 + $0xa98] sm:$0xff]  ;;  %v8138_v49 = vld [vmem:[%s10359_s1 + $0xa50] sm:$0xff]  ;;  %v5612_v6 = vld [vmem:[%s10360_s0 + $0x1a8] sm:$0xf0] }
 0x128   :  { %5031 = vmatpush.bf16.msrb.mxu2 %v8118_v18  ;;  %v5599_v18 = vor.u32 %v7763_v9, %v5596_v10  ;;  %v8183_v7 = vld [vmem:[%s10359_s1 + $0xbb8] sm:$0xff] }
 0x129   :  { %5045 = vmatpush.bf16.msrb.mxu3 %v8126_v19  ;;  %v9549_v15 = vadd.f32 %v4773_v48, %v4760_v47  ;;  %v4748_v28 = vadd.f32 %v4747_v52, %v4734_v50  ;;  %v8134_v19 = vld [vmem:[%s10359_s1 + $0xa30] sm:$0xff]  ;;  %v8129_v52 = vld [vmem:[%s10359_s1 + $0xa08] sm:$0xff]  ;;  %v8191_v8 = vld [vmem:[%s10359_s1 + $0xbf8] sm:$0xff] }
 0x12a   :  { %5004 = vmatpush.bf16.msrb.mxu0 %v8101_v23  ;;  %v8158_v23 = vld [vmem:[%s10359_s1 + $0xaf0] sm:$0xff] }
 0x12b   :  { %5018 = vmatpush.bf16.msrb.mxu1 %v8109_v27  ;;  %v8133_v27 = vld [vmem:[%s10359_s1 + $0xa28] sm:$0xff]  ;;  %v8130_v48 = vld [vmem:[%s10359_s1 + $0xa10] sm:$0xff] }
 0x12c   :  { %5032 = vmatpush.bf16.msrb.mxu2 %v8117_v26  ;;  %v8149_v26 = vld [vmem:[%s10359_s1 + $0xaa8] sm:$0xff] }
 0x12d   :  { %5046 = vmatpush.bf16.msrb.mxu3 %v8125_v29  ;;  %v8157_v29 = vld [vmem:[%s10359_s1 + $0xae8] sm:$0xff] }
 0x12e   :  { %5005 = vmatpush.bf16.msrb.mxu0 %v8100_v35  ;;  %v4761_v59 = vpop.f32.mrf.mxu2 }
 0x12f   :  { %5019 = vmatpush.bf16.msrb.mxu1 %v8108_v32  ;;  %v4762_v60 = vadd.f32 %v4761_v59, %v4748_v28  ;;  %v4775_v61 = vpop.f32.mrf.mxu3  ;;  %v8148_v32 = vld [vmem:[%s10359_s1 + $0xaa0] sm:$0xff]  ;;  %v8153_v28 = vld [vmem:[%s10359_s1 + $0xac8] sm:$0xff] }
 0x130   :  { %5033 = vmatpush.bf16.msrb.mxu2 %v8116_v37  ;;  %v8136_v59 = vld [vmem:[%s10359_s1 + $0xa40] sm:$0xff] }
 0x131   :  { %5047 = vmatpush.bf16.msrb.mxu3 %v8124_v39  ;;  %v9587_v0 = vadd.f32 %v4775_v61, %v4762_v60  ;;  %v8131_v39 = vld [vmem:[%s10359_s1 + $0xa18] sm:$0xff]  ;;  %v8144_v60 = vld [vmem:[%s10359_s1 + $0xa80] sm:$0xff] }
 0x132   :  { %5006 = vmatpush.bf16.msrb.mxu0 %v8099_v42  ;;  %v8155_v42 = vld [vmem:[%s10359_s1 + $0xad8] sm:$0xff]  ;;  %v8152_v61 = vld [vmem:[%s10359_s1 + $0xac0] sm:$0xff] }
 0x133   :  { %5020 = vmatpush.bf16.msrb.mxu1 %v8107_v12 }
 0x134   :  { %5034 = vmatpush.bf16.msrb.mxu2 %v8115_v43 }
 0x135   :  { %5048 = vmatpush.bf16.msrb.mxu3 %v8123_v44 }
 0x136   :  { %5007 = vmatpush.bf16.msrb.mxu0 %v8098_v24  ;;  %v8154_v24 = vld [vmem:[%s10359_s1 + $0xad0] sm:$0xff] }
 0x137   :  { %5021 = vmatpush.bf16.msrb.mxu1 %v8106_v51 }
 0x138   :  { %5035 = vmatpush.bf16.msrb.mxu2 %v8114_v53  ;;  %v8137_v53 = vld [vmem:[%s10359_s1 + $0xa48] sm:$0xff] }
 0x139   :  { %5049 = vmatpush.bf16.msrb.mxu3 %v8122_v54  ;;  %v8145_v54 = vld [vmem:[%s10359_s1 + $0xa88] sm:$0xff] }
 0x13a   :  { %5008 = vmatpush.bf16.msrb.mxu0 %v8097_v55 }
 0x13b   :  { %5022 = vmatpush.bf16.msrb.mxu1 %v8105_v56 }
 0x13c   :  { %5036 = vmatpush.bf16.msrb.mxu2 %v8113_v57 }
 0x13d   :  { %5050 = vmatpush.bf16.msrb.mxu3 %v8121_v58  ;;  %v8128_v58 = vld [vmem:[%s10359_s1 + $0xa00] sm:$0xff] }
 0x13e   :  { %5009 = vmatpush.bf16.msrb.mxu0 %v8096_v62  ;;  %v4787_v30 = vpop.f32.mrf.mxu0 }
 0x13f   :  { %5023 = vmatpush.bf16.msrb.mxu1 %v8104_v63  ;;  %v4788_v31 = vadd.f32 %v4787_v30, %v9549_v15  ;;  %v4801_v35 = vpop.f32.mrf.mxu1  ;;  %v8146_v15 = vld [vmem:[%s10359_s1 + $0xa90] sm:$0xff]  ;;  %v8167_v63 = vld [vmem:[%s10359_s1 + $0xb38] sm:$0xff] }
 0x140   :  { %5037 = vmatpush.bf16.msrb.mxu2 %v8112_v38  ;;  %v8175_v38 = vld [vmem:[%s10359_s1 + $0xb78] sm:$0xff] }
 0x141   :  { %5051 = vmatpush.bf16.msrb.mxu3 %v8120_v17  ;;  %5010 = vmatmul.bf16.vlgmr.msrb.gmra.mxu0 %v5587_v14  ;;  %v4802_v37 = vadd.f32 %v4801_v35, %v4788_v31  ;;  %v5602_v17 = vld [vmem:[%s10360_s0 + $0xa0] sm:$0xf]  ;;  %v8166_v14 = vld [vmem:[%s10359_s1 + $0xb30] sm:$0xff]  ;;  %v8163_v35 = vld [vmem:[%s10359_s1 + $0xb18] sm:$0xff] }
 0x142   :  { %5058 = vmatpush.bf16.msra.mxu0 %v8135_v1  ;;  %5024 = vmatmul.bf16.vlgmr.msrb.gmra.mxu1 %v5591_v16  ;;  %v5610_v1 = vld [vmem:[%s10360_s0 + $0xa8] sm:$0xf]  ;;  %v8182_v16 = vld [vmem:[%s10359_s1 + $0xbb0] sm:$0xff]  ;;  %v8180_v31 = vld [vmem:[%s10359_s1 + $0xba0] sm:$0xff] }
 0x143   :  { %5072 = vmatpush.bf16.msra.mxu1 %v8143_v2  ;;  %5038 = vmatmul.bf16.vlgmr.msrb.gmra.mxu2 %v5595_v22  ;;  %v7797_v2 = vld [vmem:[%s10360_s0 + $0x1a4] sm:$0xf0]  ;;  %v8174_v22 = vld [vmem:[%s10359_s1 + $0xb70] sm:$0xff] }
 0x144   :  { %5086 = vmatpush.bf16.msra.mxu2 %v8151_v11  ;;  %5052 = vmatmul.bf16.vlgmr.msrb.gmra.mxu3 %v5599_v18  ;;  %v5611_v10 = vor.u32 %v7797_v2, %v5610_v1  ;;  %v5607_v11 = vor.u32 %v7764_v3, %v5604_v4  ;;  %v8190_v18 = vld [vmem:[%s10359_s1 + $0xbf0] sm:$0xff]  ;;  %v7767_v1 = vld [vmem:[%s10360_s0 + $0xbc] sm:$0xf] }
 0x145   :  { %5100 = vmatpush.bf16.msra.mxu3 %v8159_v13  ;;  %v5615_v13 = vor.u32 %v7765_v5, %v5612_v6  ;;  %v5628_v2 = vld [vmem:[%s10360_s0 + $0x1b8] sm:$0xf0] }
 0x146   :  { %5059 = vmatpush.bf16.msra.mxu0 %v8134_v19  ;;  %v4815_v12 = vpop.f32.mrf.mxu2  ;;  %v4789_v45 = vpop.f32.mrf.mxu0  ;;  %v8165_v19 = vld [vmem:[%s10359_s1 + $0xb28] sm:$0xff]  ;;  %v8215_v3 = vld [vmem:[%s10359_s1 + $0xcb8] sm:$0xff] }
 0x147   :  { %5073 = vmatpush.bf16.msra.mxu1 %v8142_v20  ;;  %v4816_v43 = vadd.f32 %v4815_v12, %v4802_v37  ;;  %v4829_v44 = vpop.f32.mrf.mxu3  ;;  %v4790_v46 = vadd.f32 %v4789_v45, %v9587_v0  ;;  %v4803_v50 = vpop.f32.mrf.mxu1  ;;  %v7796_v0 = vld [vmem:[%s10360_s0 + $0x19c] sm:$0xf0]  ;;  %v8173_v20 = vld [vmem:[%s10359_s1 + $0xb68] sm:$0xff]  ;;  %v8187_v37 = vld [vmem:[%s10359_s1 + $0xbd8] sm:$0xff] }
 0x148   :  { %5087 = vmatpush.bf16.msra.mxu2 %v8150_v21  ;;  %v5603_v9 = vor.u32 %v7796_v0, %v5602_v17  ;;  %v8181_v21 = vld [vmem:[%s10359_s1 + $0xba8] sm:$0xff]  ;;  %v8170_v45 = vld [vmem:[%s10359_s1 + $0xb50] sm:$0xff]  ;;  %v8223_v4 = vld [vmem:[%s10359_s1 + $0xcf8] sm:$0xff] }
 0x149   :  { %5101 = vmatpush.bf16.msra.mxu3 %v8158_v23  ;;  %v9675_v47 = vadd.f32 %v4829_v44, %v4816_v43  ;;  %v4804_v51 = vadd.f32 %v4803_v50, %v4790_v46  ;;  %v8189_v23 = vld [vmem:[%s10359_s1 + $0xbe8] sm:$0xff]  ;;  %v8162_v44 = vld [vmem:[%s10359_s1 + $0xb10] sm:$0xff] }
 0x14a   :  { %5060 = vmatpush.bf16.msra.mxu0 %v8133_v27  ;;  %v8161_v50 = vld [vmem:[%s10359_s1 + $0xb08] sm:$0xff]  ;;  %v7766_v17 = vld [vmem:[%s10360_s0 + $0xb4] sm:$0xf] }
 0x14b   :  { %5074 = vmatpush.bf16.msra.mxu1 %v8141_v25  ;;  %v5620_v0 = vld [vmem:[%s10360_s0 + $0x1b0] sm:$0xf0] }
 0x14c   :  { %5088 = vmatpush.bf16.msra.mxu2 %v8149_v26  ;;  %v8164_v26 = vld [vmem:[%s10359_s1 + $0xb20] sm:$0xff] }
 0x14d   :  { %5102 = vmatpush.bf16.msra.mxu3 %v8157_v29  ;;  %v8172_v29 = vld [vmem:[%s10359_s1 + $0xb60] sm:$0xff] }
 0x14e   :  { %5061 = vmatpush.bf16.msra.mxu0 %v8132_v33  ;;  %v4817_v55 = vpop.f32.mrf.mxu2  ;;  %v8188_v33 = vld [vmem:[%s10359_s1 + $0xbe0] sm:$0xff] }
 0x14f   :  { %5075 = vmatpush.bf16.msra.mxu1 %v8140_v34  ;;  %v4818_v56 = vadd.f32 %v4817_v55, %v4804_v51  ;;  %v4831_v57 = vpop.f32.mrf.mxu3  ;;  %v8185_v51 = vld [vmem:[%s10359_s1 + $0xbc8] sm:$0xff]  ;;  %v8168_v55 = vld [vmem:[%s10359_s1 + $0xb40] sm:$0xff] }
 0x150   :  { %5089 = vmatpush.bf16.msra.mxu2 %v8148_v32  ;;  %v8171_v32 = vld [vmem:[%s10359_s1 + $0xb58] sm:$0xff] }
 0x151   :  { %5103 = vmatpush.bf16.msra.mxu3 %v8156_v36  ;;  %v9713_v62 = vadd.f32 %v4831_v57, %v4818_v56  ;;  %v8179_v36 = vld [vmem:[%s10359_s1 + $0xb98] sm:$0xff]  ;;  %v8176_v56 = vld [vmem:[%s10359_s1 + $0xb80] sm:$0xff] }
 0x152   :  { %5062 = vmatpush.bf16.msra.mxu0 %v8131_v39  ;;  %v8184_v57 = vld [vmem:[%s10359_s1 + $0xbc0] sm:$0xff] }
 0x153   :  { %5076 = vmatpush.bf16.msra.mxu1 %v8139_v40 }
 0x154   :  { %5090 = vmatpush.bf16.msra.mxu2 %v8147_v41 }
 0x155   :  { %5104 = vmatpush.bf16.msra.mxu3 %v8155_v42 }
 0x156   :  { %5063 = vmatpush.bf16.msra.mxu0 %v8130_v48  ;;  %v8186_v48 = vld [vmem:[%s10359_s1 + $0xbd0] sm:$0xff] }
 0x157   :  { %5077 = vmatpush.bf16.msra.mxu1 %v8138_v49 }
 0x158   :  { %5091 = vmatpush.bf16.msra.mxu2 %v8146_v15  ;;  %v8169_v15 = vld [vmem:[%s10359_s1 + $0xb48] sm:$0xff] }
 0x159   :  { %5105 = vmatpush.bf16.msra.mxu3 %v8154_v24  ;;  %v8177_v24 = vld [vmem:[%s10359_s1 + $0xb88] sm:$0xff] }
 0x15a   :  { %5064 = vmatpush.bf16.msra.mxu0 %v8129_v52 }
 0x15b   :  { %5078 = vmatpush.bf16.msra.mxu1 %v8137_v53 }
 0x15c   :  { %5092 = vmatpush.bf16.msra.mxu2 %v8145_v54 }
 0x15d   :  { %5106 = vmatpush.bf16.msra.mxu3 %v8153_v28  ;;  %v8160_v28 = vld [vmem:[%s10359_s1 + $0xb00] sm:$0xff] }
 0x15e   :  { %5065 = vmatpush.bf16.msra.mxu0 %v8128_v58  ;;  %v4843_v27 = vpop.f32.mrf.mxu0 }
 0x15f   :  { %5079 = vmatpush.bf16.msra.mxu1 %v8136_v59  ;;  %v4844_v25 = vadd.f32 %v4843_v27, %v9675_v47  ;;  %v4857_v30 = vpop.f32.mrf.mxu1  ;;  %v8178_v47 = vld [vmem:[%s10359_s1 + $0xb90] sm:$0xff]  ;;  %v8199_v59 = vld [vmem:[%s10359_s1 + $0xc38] sm:$0xff] }
 0x160   :  { %5093 = vmatpush.bf16.msra.mxu2 %v8144_v60  ;;  %v8207_v60 = vld [vmem:[%s10359_s1 + $0xc78] sm:$0xff] }
 0x161   :  { %5107 = vmatpush.bf16.msra.mxu3 %v8152_v61  ;;  %5066 = vmatmul.bf16.vlgmr.msra.gmra.mxu0 %v5603_v9  ;;  %v4858_v34 = vadd.f32 %v4857_v30, %v4844_v25  ;;  %v5618_v61 = vld [vmem:[%s10360_s0 + $0xb0] sm:$0xf]  ;;  %v8212_v25 = vld [vmem:[%s10359_s1 + $0xca0] sm:$0xff]  ;;  %v8195_v30 = vld [vmem:[%s10359_s1 + $0xc18] sm:$0xff] }
 0x162   :  { %5114 = vmatpush.bf16.msrb.mxu0 %v8167_v63  ;;  %5080 = vmatmul.bf16.vlgmr.msra.gmra.mxu1 %v5607_v11  ;;  %v5626_v63 = vld [vmem:[%s10360_s0 + $0xb8] sm:$0xf]  ;;  %v8198_v9 = vld [vmem:[%s10359_s1 + $0xc30] sm:$0xff] }
 0x163   :  { %5128 = vmatpush.bf16.msrb.mxu1 %v8175_v38  ;;  %5094 = vmatmul.bf16.vlgmr.msra.gmra.mxu2 %v5611_v10  ;;  %v7799_v38 = vld [vmem:[%s10360_s0 + $0x1b4] sm:$0xf0]  ;;  %v8206_v10 = vld [vmem:[%s10359_s1 + $0xc70] sm:$0xff] }
 0x164   :  { %5142 = vmatpush.bf16.msrb.mxu2 %v8183_v7  ;;  %5108 = vmatmul.bf16.vlgmr.msra.gmra.mxu3 %v5615_v13  ;;  %v5627_v6 = vor.u32 %v7799_v38, %v5626_v63  ;;  %v5623_v7 = vor.u32 %v7766_v17, %v5620_v0  ;;  %v8214_v11 = vld [vmem:[%s10359_s1 + $0xcb0] sm:$0xff]  ;;  %v7769_v63 = vld [vmem:[%s10360_s0 + $0xcc] sm:$0xf]  ;;  %v8247_v17 = vld [vmem:[%s10359_s1 + $0xdb8] sm:$0xff] }
 0x165   :  { %5156 = vmatpush.bf16.msrb.mxu3 %v8191_v8  ;;  %v5631_v8 = vor.u32 %v7767_v1, %v5628_v2  ;;  %v8222_v13 = vld [vmem:[%s10359_s1 + $0xcf0] sm:$0xff]  ;;  %v5644_v38 = vld [vmem:[%s10360_s0 + $0x1c8] sm:$0xf0]  ;;  %v8255_v0 = vld [vmem:[%s10359_s1 + $0xdf8] sm:$0xff] }
 0x166   :  { %5115 = vmatpush.bf16.msrb.mxu0 %v8166_v14  ;;  %v4871_v39 = vpop.f32.mrf.mxu2  ;;  %v4845_v42 = vpop.f32.mrf.mxu0  ;;  %v8197_v14 = vld [vmem:[%s10359_s1 + $0xc28] sm:$0xff] }
 0x167   :  { %5129 = vmatpush.bf16.msrb.mxu1 %v8174_v22  ;;  %v4872_v40 = vadd.f32 %v4871_v39, %v4858_v34  ;;  %v4885_v41 = vpop.f32.mrf.mxu3  ;;  %v4846_v12 = vadd.f32 %v4845_v42, %v9713_v62  ;;  %v4859_v46 = vpop.f32.mrf.mxu1  ;;  %v7798_v62 = vld [vmem:[%s10360_s0 + $0x1ac] sm:$0xf0]  ;;  %v8205_v22 = vld [vmem:[%s10359_s1 + $0xc68] sm:$0xff]  ;;  %v8219_v34 = vld [vmem:[%s10359_s1 + $0xcd8] sm:$0xff] }
 0x168   :  { %5143 = vmatpush.bf16.msrb.mxu2 %v8182_v16  ;;  %v5619_v5 = vor.u32 %v7798_v62, %v5618_v61  ;;  %v8213_v16 = vld [vmem:[%s10359_s1 + $0xca8] sm:$0xff]  ;;  %v8202_v42 = vld [vmem:[%s10359_s1 + $0xc50] sm:$0xff]  ;;  %v7768_v61 = vld [vmem:[%s10360_s0 + $0xc4] sm:$0xf] }
 0x169   :  { %5157 = vmatpush.bf16.msrb.mxu3 %v8190_v18  ;;  %v9801_v43 = vadd.f32 %v4885_v41, %v4872_v40  ;;  %v4860_v49 = vadd.f32 %v4859_v46, %v4846_v12  ;;  %v8221_v18 = vld [vmem:[%s10359_s1 + $0xce8] sm:$0xff]  ;;  %v8194_v41 = vld [vmem:[%s10359_s1 + $0xc10] sm:$0xff]  ;;  %v5636_v62 = vld [vmem:[%s10360_s0 + $0x1c0] sm:$0xf0] }
 0x16a   :  { %5116 = vmatpush.bf16.msrb.mxu0 %v8165_v19  ;;  %v8193_v46 = vld [vmem:[%s10359_s1 + $0xc08] sm:$0xff] }
 0x16b   :  { %5130 = vmatpush.bf16.msrb.mxu1 %v8173_v20 }
 0x16c   :  { %5144 = vmatpush.bf16.msrb.mxu2 %v8181_v21  ;;  %v8196_v21 = vld [vmem:[%s10359_s1 + $0xc20] sm:$0xff] }
 0x16d   :  { %5158 = vmatpush.bf16.msrb.mxu3 %v8189_v23  ;;  %v8204_v23 = vld [vmem:[%s10359_s1 + $0xc60] sm:$0xff] }
 0x16e   :  { %5117 = vmatpush.bf16.msrb.mxu0 %v8164_v26  ;;  %v4873_v52 = vpop.f32.mrf.mxu2  ;;  %v8220_v26 = vld [vmem:[%s10359_s1 + $0xce0] sm:$0xff] }
 0x16f   :  { %5131 = vmatpush.bf16.msrb.mxu1 %v8172_v29  ;;  %v4874_v53 = vadd.f32 %v4873_v52, %v4860_v49  ;;  %v4887_v54 = vpop.f32.mrf.mxu3  ;;  %v8217_v49 = vld [vmem:[%s10359_s1 + $0xcc8] sm:$0xff]  ;;  %v8200_v52 = vld [vmem:[%s10359_s1 + $0xc40] sm:$0xff] }
 0x170   :  { %5145 = vmatpush.bf16.msrb.mxu2 %v8180_v31  ;;  %v8203_v31 = vld [vmem:[%s10359_s1 + $0xc58] sm:$0xff] }
 0x171   :  { %5159 = vmatpush.bf16.msrb.mxu3 %v8188_v33  ;;  %v9839_v58 = vadd.f32 %v4887_v54, %v4874_v53  ;;  %v8211_v33 = vld [vmem:[%s10359_s1 + $0xc98] sm:$0xff]  ;;  %v8208_v53 = vld [vmem:[%s10359_s1 + $0xc80] sm:$0xff] }
 0x172   :  { %5118 = vmatpush.bf16.msrb.mxu0 %v8163_v35  ;;  %v8216_v54 = vld [vmem:[%s10359_s1 + $0xcc0] sm:$0xff] }
 0x173   :  { %5132 = vmatpush.bf16.msrb.mxu1 %v8171_v32 }
 0x174   :  { %5146 = vmatpush.bf16.msrb.mxu2 %v8179_v36 }
 0x175   :  { %5160 = vmatpush.bf16.msrb.mxu3 %v8187_v37 }
 0x176   :  { %5119 = vmatpush.bf16.msrb.mxu0 %v8162_v44  ;;  %v8218_v44 = vld [vmem:[%s10359_s1 + $0xcd0] sm:$0xff] }
 0x177   :  { %5133 = vmatpush.bf16.msrb.mxu1 %v8170_v45 }
 0x178   :  { %5147 = vmatpush.bf16.msrb.mxu2 %v8178_v47  ;;  %v8201_v47 = vld [vmem:[%s10359_s1 + $0xc48] sm:$0xff] }
 0x179   :  { %5161 = vmatpush.bf16.msrb.mxu3 %v8186_v48  ;;  %v8209_v48 = vld [vmem:[%s10359_s1 + $0xc88] sm:$0xff] }
 0x17a   :  { %5120 = vmatpush.bf16.msrb.mxu0 %v8161_v50 }
 0x17b   :  { %5134 = vmatpush.bf16.msrb.mxu1 %v8169_v15 }
 0x17c   :  { %5148 = vmatpush.bf16.msrb.mxu2 %v8177_v24 }
 0x17d   :  { %5162 = vmatpush.bf16.msrb.mxu3 %v8185_v51  ;;  %v8192_v51 = vld [vmem:[%s10359_s1 + $0xc00] sm:$0xff] }
 0x17e   :  { %5121 = vmatpush.bf16.msrb.mxu0 %v8160_v28  ;;  %v4899_v19 = vpop.f32.mrf.mxu0 }
 0x17f   :  { %5135 = vmatpush.bf16.msrb.mxu1 %v8168_v55  ;;  %v4900_v20 = vadd.f32 %v4899_v19, %v9801_v43  ;;  %v4913_v27 = vpop.f32.mrf.mxu1  ;;  %v8210_v43 = vld [vmem:[%s10359_s1 + $0xc90] sm:$0xff]  ;;  %v8231_v55 = vld [vmem:[%s10359_s1 + $0xd38] sm:$0xff] }
 0x180   :  { %5149 = vmatpush.bf16.msrb.mxu2 %v8176_v56  ;;  %v8239_v56 = vld [vmem:[%s10359_s1 + $0xd78] sm:$0xff] }
 0x181   :  { %5163 = vmatpush.bf16.msrb.mxu3 %v8184_v57  ;;  %5122 = vmatmul.bf16.vlgmr.msrb.gmra.mxu0 %v5619_v5  ;;  %v4914_v29 = vadd.f32 %v4913_v27, %v4900_v20  ;;  %v5634_v57 = vld [vmem:[%s10360_s0 + $0xc0] sm:$0xf]  ;;  %v8230_v5 = vld [vmem:[%s10359_s1 + $0xd30] sm:$0xff]  ;;  %v8227_v27 = vld [vmem:[%s10359_s1 + $0xd18] sm:$0xff] }
 0x182   :  { %5170 = vmatpush.bf16.msra.mxu0 %v8199_v59  ;;  %5136 = vmatmul.bf16.vlgmr.msrb.gmra.mxu1 %v5623_v7  ;;  %v5642_v59 = vld [vmem:[%s10360_s0 + $0xc8] sm:$0xf]  ;;  %v8246_v7 = vld [vmem:[%s10359_s1 + $0xdb0] sm:$0xff]  ;;  %v8244_v20 = vld [vmem:[%s10359_s1 + $0xda0] sm:$0xff] }
 0x183   :  { %5184 = vmatpush.bf16.msra.mxu1 %v8207_v60  ;;  %5150 = vmatmul.bf16.vlgmr.msrb.gmra.mxu2 %v5627_v6  ;;  %v7801_v60 = vld [vmem:[%s10360_s0 + $0x1c4] sm:$0xf0]  ;;  %v8238_v6 = vld [vmem:[%s10359_s1 + $0xd70] sm:$0xff] }
 0x184   :  { %5198 = vmatpush.bf16.msra.mxu2 %v8215_v3  ;;  %5164 = vmatmul.bf16.vlgmr.msrb.gmra.mxu3 %v5631_v8  ;;  %v5643_v2 = vor.u32 %v7801_v60, %v5642_v59  ;;  %v5639_v3 = vor.u32 %v7768_v61, %v5636_v62  ;;  %v8254_v8 = vld [vmem:[%s10359_s1 + $0xdf0] sm:$0xff] }
 0x185   :  { %5212 = vmatpush.bf16.msra.mxu3 %v8223_v4  ;;  %v5647_v4 = vor.u32 %v7769_v63, %v5644_v38  ;;  %v8262_v60 = vld [vmem:[%s10359_s1 + $0xe30] sm:$0xff]  ;;  %v8261_v38 = vld [vmem:[%s10359_s1 + $0xe28] sm:$0xff] }
 0x186   :  { %5171 = vmatpush.bf16.msra.mxu0 %v8198_v9  ;;  %v4927_v35 = vpop.f32.mrf.mxu2  ;;  %v4901_v37 = vpop.f32.mrf.mxu0  ;;  %v8229_v9 = vld [vmem:[%s10359_s1 + $0xd28] sm:$0xff]  ;;  %v8270_v61 = vld [vmem:[%s10359_s1 + $0xe70] sm:$0xff] }
 0x187   :  { %5185 = vmatpush.bf16.msra.mxu1 %v8206_v10  ;;  %v4928_v32 = vadd.f32 %v4927_v35, %v4914_v29  ;;  %v4941_v36 = vpop.f32.mrf.mxu3  ;;  %v4902_v39 = vadd.f32 %v4901_v37, %v9839_v58  ;;  %v4915_v12 = vpop.f32.mrf.mxu1  ;;  %v7800_v58 = vld [vmem:[%s10360_s0 + $0x1bc] sm:$0xf0]  ;;  %v8237_v10 = vld [vmem:[%s10359_s1 + $0xd68] sm:$0xff]  ;;  %v8251_v29 = vld [vmem:[%s10359_s1 + $0xdd8] sm:$0xff] }
 0x188   :  { %5199 = vmatpush.bf16.msra.mxu2 %v8214_v11  ;;  %v5635_v1 = vor.u32 %v7800_v58, %v5634_v57  ;;  %v8245_v11 = vld [vmem:[%s10359_s1 + $0xda8] sm:$0xff]  ;;  %v8226_v35 = vld [vmem:[%s10359_s1 + $0xd10] sm:$0xff] }
 0x189   :  { %5213 = vmatpush.bf16.msra.mxu3 %v8222_v13  ;;  %v9927_v40 = vadd.f32 %v4941_v36, %v4928_v32  ;;  %v4916_v45 = vadd.f32 %v4915_v12, %v4902_v39  ;;  %v8253_v13 = vld [vmem:[%s10359_s1 + $0xde8] sm:$0xff]  ;;  %v8234_v32 = vld [vmem:[%s10359_s1 + $0xd50] sm:$0xff]  ;;  %v8224_v12 = vld [vmem:[%s10359_s1 + $0xd00] sm:$0xff] }
 0x18a   :  { %5172 = vmatpush.bf16.msra.mxu0 %v8197_v14  ;;  %v8242_v36 = vld [vmem:[%s10359_s1 + $0xd90] sm:$0xff]  ;;  %v8225_v39 = vld [vmem:[%s10359_s1 + $0xd08] sm:$0xff] }
 0x18b   :  { %5186 = vmatpush.bf16.msra.mxu1 %v8205_v22  ;;  %v8250_v37 = vld [vmem:[%s10359_s1 + $0xdd0] sm:$0xff] }
 0x18c   :  { %5200 = vmatpush.bf16.msra.mxu2 %v8213_v16  ;;  %v8228_v16 = vld [vmem:[%s10359_s1 + $0xd20] sm:$0xff]  ;;  %v8278_v62 = vld [vmem:[%s10359_s1 + $0xeb0] sm:$0xff] }
 0x18d   :  { %5214 = vmatpush.bf16.msra.mxu3 %v8221_v18  ;;  %v8236_v18 = vld [vmem:[%s10359_s1 + $0xd60] sm:$0xff]  ;;  %v8286_v63 = vld [vmem:[%s10359_s1 + $0xef0] sm:$0xff] }
 0x18e   :  { %5173 = vmatpush.bf16.msra.mxu0 %v8196_v21  ;;  %v4929_v50 = vpop.f32.mrf.mxu2  ;;  %v8252_v21 = vld [vmem:[%s10359_s1 + $0xde0] sm:$0xff] }
 0x18f   :  { %5187 = vmatpush.bf16.msra.mxu1 %v8204_v23  ;;  %v4930_v15 = vadd.f32 %v4929_v50, %v4916_v45  ;;  %v4943_v24 = vpop.f32.mrf.mxu3  ;;  %v8248_v45 = vld [vmem:[%s10359_s1 + $0xdc0] sm:$0xff]  ;;  %v5658_v50 = vld [vmem:[%s10360_s0 + $0xd8] sm:$0xf] }
 0x190   :  { %5201 = vmatpush.bf16.msra.mxu2 %v8212_v25  ;;  %v8235_v25 = vld [vmem:[%s10359_s1 + $0xd58] sm:$0xff] }
 0x191   :  { %5215 = vmatpush.bf16.msra.mxu3 %v8220_v26  ;;  %v9965_v28 = vadd.f32 %v4943_v24, %v4930_v15  ;;  %v8243_v26 = vld [vmem:[%s10359_s1 + $0xd98] sm:$0xff]  ;;  %v7770_v24 = vld [vmem:[%s10360_s0 + $0xd4] sm:$0xf] }
 0x192   :  { %5174 = vmatpush.bf16.msra.mxu0 %v8195_v30  ;;  %v7803_v15 = vld [vmem:[%s10360_s0 + $0x1d4] sm:$0xf0] }
 0x193   :  { %5188 = vmatpush.bf16.msra.mxu1 %v8203_v31  ;;  %v5659_v57 = vor.u32 %v7803_v15, %v5658_v50  ;;  %v8309_v50 = vld [vmem:[%s10359_s1 + $0xfa8] sm:$0xff] }
 0x194   :  { %5202 = vmatpush.bf16.msra.mxu2 %v8211_v33  ;;  %v8317_v15 = vld [vmem:[%s10359_s1 + $0xfe8] sm:$0xff] }
 0x195   :  { %5216 = vmatpush.bf16.msra.mxu3 %v8219_v34 }
 0x196   :  { %5175 = vmatpush.bf16.msra.mxu0 %v8194_v41  ;;  %v8241_v41 = vld [vmem:[%s10359_s1 + $0xd88] sm:$0xff] }
 0x197   :  { %5189 = vmatpush.bf16.msra.mxu1 %v8202_v42  ;;  %v8249_v42 = vld [vmem:[%s10359_s1 + $0xdc8] sm:$0xff] }
 0x198   :  { %5203 = vmatpush.bf16.msra.mxu2 %v8210_v43  ;;  %v8232_v43 = vld [vmem:[%s10359_s1 + $0xd40] sm:$0xff] }
 0x199   :  { %5217 = vmatpush.bf16.msra.mxu3 %v8218_v44  ;;  %v8240_v44 = vld [vmem:[%s10359_s1 + $0xd80] sm:$0xff] }
 0x19a   :  { %5176 = vmatpush.bf16.msra.mxu0 %v8193_v46  ;;  %v8263_v46 = vld [vmem:[%s10359_s1 + $0xe38] sm:$0xff] }
 0x19b   :  { %5190 = vmatpush.bf16.msra.mxu1 %v8201_v47  ;;  %v8271_v47 = vld [vmem:[%s10359_s1 + $0xe78] sm:$0xff] }
 0x19c   :  { %5204 = vmatpush.bf16.msra.mxu2 %v8209_v48  ;;  %v5650_v48 = vld [vmem:[%s10360_s0 + $0xd0] sm:$0xf] }
 0x19d   :  { %5218 = vmatpush.bf16.msra.mxu3 %v8217_v49  ;;  %v7802_v49 = vld [vmem:[%s10360_s0 + $0x1cc] sm:$0xf0] }
 0x19e   :  { %5177 = vmatpush.bf16.msra.mxu0 %v8192_v51  ;;  %v4955_v14 = vpop.f32.mrf.mxu0  ;;  %v5652_v51 = vld [vmem:[%s10360_s0 + $0x1d0] sm:$0xf0] }
 0x19f   :  { %5191 = vmatpush.bf16.msra.mxu1 %v8200_v52  ;;  %v4956_v22 = vadd.f32 %v4955_v14, %v9927_v40  ;;  %v4969_v19 = vpop.f32.mrf.mxu1  ;;  %v8233_v40 = vld [vmem:[%s10359_s1 + $0xd48] sm:$0xff]  ;;  %v7771_v52 = vld [vmem:[%s10360_s0 + $0xdc] sm:$0xf]  ;;  %v5655_v58 = vor.u32 %v7770_v24, %v5652_v51  ;;  %v8282_v14 = vld [vmem:[%s10359_s1 + $0xed0] sm:$0xff] }
 0x1a0   :  { %5205 = vmatpush.bf16.msra.mxu2 %v8208_v53  ;;  %v5660_v53 = vld [vmem:[%s10360_s0 + $0x1d8] sm:$0xf0]  ;;  %v8292_v24 = vld [vmem:[%s10359_s1 + $0xf20] sm:$0xff] }
 0x1a1   :  { %5219 = vmatpush.bf16.msra.mxu3 %v8216_v54  ;;  %5178 = vmatmul.bf16.vlgmr.msra.gmra.mxu0 %v5635_v1  ;;  %v4970_v23 = vadd.f32 %v4969_v19, %v4956_v22  ;;  %v8279_v54 = vld [vmem:[%s10359_s1 + $0xeb8] sm:$0xff]  ;;  %v5663_v59 = vor.u32 %v7771_v52, %v5660_v53  ;;  %v8285_v1 = vld [vmem:[%s10359_s1 + $0xee8] sm:$0xff]  ;;  %v8300_v51 = vld [vmem:[%s10359_s1 + $0xf60] sm:$0xff] }
 0x1a2   :  { %5226 = vmatpush.bf16.msrb.mxu0 %v8231_v55  ;;  %5192 = vmatmul.bf16.vlgmr.msra.gmra.mxu1 %v5639_v3  ;;  %v8287_v55 = vld [vmem:[%s10359_s1 + $0xef8] sm:$0xff]  ;;  %v8268_v3 = vld [vmem:[%s10359_s1 + $0xe60] sm:$0xff]  ;;  %v8257_v22 = vld [vmem:[%s10359_s1 + $0xe08] sm:$0xff] }
 0x1a3   :  { %5240 = vmatpush.bf16.msrb.mxu1 %v8239_v56  ;;  %5206 = vmatmul.bf16.vlgmr.msra.gmra.mxu2 %v5643_v2  ;;  %v5651_v56 = vor.u32 %v7802_v49, %v5650_v48  ;;  %v8260_v2 = vld [vmem:[%s10359_s1 + $0xe20] sm:$0xff]  ;;  %v8281_v19 = vld [vmem:[%s10359_s1 + $0xec8] sm:$0xff] }
 0x1a4   :  { %5254 = vmatpush.bf16.msrb.mxu2 %v8247_v17  ;;  %5220 = vmatmul.bf16.vlgmr.msra.gmra.mxu3 %v5647_v4  ;;  %v8269_v17 = vld [vmem:[%s10359_s1 + $0xe68] sm:$0xff]  ;;  %v8276_v4 = vld [vmem:[%s10359_s1 + $0xea0] sm:$0xff] }
 0x1a5   :  { %5268 = vmatpush.bf16.msrb.mxu3 %v8255_v0  ;;  %v8277_v0 = vld [vmem:[%s10359_s1 + $0xea8] sm:$0xff]  ;;  %v8308_v52 = vld [vmem:[%s10359_s1 + $0xfa0] sm:$0xff] }
 0x1a6   :  { %5227 = vmatpush.bf16.msrb.mxu0 %v8230_v5  ;;  %v4983_v30 = vpop.f32.mrf.mxu2  ;;  %v8284_v5 = vld [vmem:[%s10359_s1 + $0xee0] sm:$0xff]  ;;  %v8293_v48 = vld [vmem:[%s10359_s1 + $0xf28] sm:$0xff] }
 0x1a7   :  { %5241 = vmatpush.bf16.msrb.mxu1 %v8238_v6  ;;  %v4984_v31 = vadd.f32 %v4983_v30, %v4970_v23  ;;  %v4997_v33 = vpop.f32.mrf.mxu3  ;;  %v8259_v6 = vld [vmem:[%s10359_s1 + $0xe18] sm:$0xff]  ;;  %v8272_v23 = vld [vmem:[%s10359_s1 + $0xe80] sm:$0xff]  ;;  %v8301_v49 = vld [vmem:[%s10359_s1 + $0xf68] sm:$0xff] }
 0x1a8   :  { %5255 = vmatpush.bf16.msrb.mxu2 %v8246_v7  ;;  %v8267_v7 = vld [vmem:[%s10359_s1 + $0xe58] sm:$0xff]  ;;  %v7804_v30 = vld [vmem:[%s10360_s0 + $0x1dc] sm:$0xf0] }
 0x1a9   :  { %5269 = vmatpush.bf16.msrb.mxu3 %v8254_v8  ;;  %v10052_v34 = vadd.f32 %v4997_v33, %v4984_v31  ;;  %v8275_v8 = vld [vmem:[%s10359_s1 + $0xe98] sm:$0xff]  ;;  %v5674_v31 = vld [vmem:[%s10360_s0 + $0xe8] sm:$0xf]  ;;  %v8316_v53 = vld [vmem:[%s10359_s1 + $0xfe0] sm:$0xff] }
 0x1aa   :  { %5228 = vmatpush.bf16.msrb.mxu0 %v8229_v9  ;;  %v8283_v9 = vld [vmem:[%s10359_s1 + $0xed8] sm:$0xff]  ;;  %v7805_v33 = vld [vmem:[%s10360_s0 + $0x1e4] sm:$0xf0] }
 0x1ab   :  { %5242 = vmatpush.bf16.msrb.mxu1 %v8237_v10  ;;  %v8258_v10 = vld [vmem:[%s10359_s1 + $0xe10] sm:$0xff] }
 0x1ac   :  { %5256 = vmatpush.bf16.msrb.mxu2 %v8245_v11  ;;  %v8266_v11 = vld [vmem:[%s10359_s1 + $0xe50] sm:$0xff] }
 0x1ad   :  { %5270 = vmatpush.bf16.msrb.mxu3 %v8253_v13  ;;  %v8274_v13 = vld [vmem:[%s10359_s1 + $0xe90] sm:$0xff] }
 0x1ae   :  { %5229 = vmatpush.bf16.msrb.mxu0 %v8228_v16  ;;  %v8265_v16 = vld [vmem:[%s10359_s1 + $0xe48] sm:$0xff] }
 0x1af   :  { %5243 = vmatpush.bf16.msrb.mxu1 %v8236_v18  ;;  %v8273_v18 = vld [vmem:[%s10359_s1 + $0xe88] sm:$0xff] }
 0x1b0   :  { %5257 = vmatpush.bf16.msrb.mxu2 %v8244_v20  ;;  %v8256_v20 = vld [vmem:[%s10359_s1 + $0xe00] sm:$0xff] }
 0x1b1   :  { %5271 = vmatpush.bf16.msrb.mxu3 %v8252_v21  ;;  %v8264_v21 = vld [vmem:[%s10359_s1 + $0xe40] sm:$0xff] }
 0x1b2   :  { %5230 = vmatpush.bf16.msrb.mxu0 %v8227_v27  ;;  %v8280_v27 = vld [vmem:[%s10359_s1 + $0xec0] sm:$0xff] }
 0x1b3   :  { %5244 = vmatpush.bf16.msrb.mxu1 %v8235_v25  ;;  %v8295_v25 = vld [vmem:[%s10359_s1 + $0xf38] sm:$0xff] }
 0x1b4   :  { %5258 = vmatpush.bf16.msrb.mxu2 %v8243_v26  ;;  %v8303_v26 = vld [vmem:[%s10359_s1 + $0xf78] sm:$0xff] }
 0x1b5   :  { %5272 = vmatpush.bf16.msrb.mxu3 %v8251_v29  ;;  %v5666_v29 = vld [vmem:[%s10360_s0 + $0xe0] sm:$0xf] }
 0x1b6   :  { %5231 = vmatpush.bf16.msrb.mxu0 %v8226_v35  ;;  %v7772_v35 = vld [vmem:[%s10360_s0 + $0xe4] sm:$0xf] }
 0x1b7   :  { %5245 = vmatpush.bf16.msrb.mxu1 %v8234_v32  ;;  %v5668_v32 = vld [vmem:[%s10360_s0 + $0x1e0] sm:$0xf0] }
 0x1b8   :  { %5259 = vmatpush.bf16.msrb.mxu2 %v8242_v36  ;;  %v7773_v36 = vld [vmem:[%s10360_s0 + $0xec] sm:$0xf] }
 0x1b9   :  { %5273 = vmatpush.bf16.msrb.mxu3 %v8250_v37  ;;  %v5676_v37 = vld [vmem:[%s10360_s0 + $0x1e8] sm:$0xf0] }
 0x1ba   :  { %5232 = vmatpush.bf16.msrb.mxu0 %v8225_v39  ;;  %v8311_v39 = vld [vmem:[%s10359_s1 + $0xfb8] sm:$0xff] }
 0x1bb   :  { %5246 = vmatpush.bf16.msrb.mxu1 %v8233_v40  ;;  %v8319_v40 = vld [vmem:[%s10359_s1 + $0xff8] sm:$0xff] }
 0x1bc   :  { %5260 = vmatpush.bf16.msrb.mxu2 %v8241_v41  ;;  %v5667_v41 = vor.u32 %v7804_v30, %v5666_v29 }
 0x1bd   :  { %5274 = vmatpush.bf16.msrb.mxu3 %v8249_v42  ;;  %v5675_v42 = vor.u32 %v7805_v33, %v5674_v31 }
 0x1be   :  { %5233 = vmatpush.bf16.msrb.mxu0 %v8224_v12  ;;  %v5671_v12 = vor.u32 %v7772_v35, %v5668_v32 }
 0x1bf   :  { %5247 = vmatpush.bf16.msrb.mxu1 %v8232_v43  ;;  %v5679_v43 = vor.u32 %v7773_v36, %v5676_v37 }
 0x1c0   :  { %5261 = vmatpush.bf16.msrb.mxu2 %v8240_v44  ;;  %v8294_v44 = vld [vmem:[%s10359_s1 + $0xf30] sm:$0xff] }
 0x1c1   :  { %5275 = vmatpush.bf16.msrb.mxu3 %v8248_v45  ;;  %5234 = vmatmul.bf16.vlgmr.msrb.gmra.mxu0 %v5651_v56  ;;  %v8302_v45 = vld [vmem:[%s10359_s1 + $0xf70] sm:$0xff]  ;;  %v8307_v56 = vld [vmem:[%s10359_s1 + $0xf98] sm:$0xff] }
 0x1c2   :  { %5282 = vmatpush.bf16.msra.mxu0 %v8263_v46  ;;  %5248 = vmatmul.bf16.vlgmr.msrb.gmra.mxu1 %v5655_v58  ;;  %v8310_v46 = vld [vmem:[%s10359_s1 + $0xfb0] sm:$0xff] }
 0x1c3   :  { %5296 = vmatpush.bf16.msra.mxu1 %v8271_v47  ;;  %5262 = vmatmul.bf16.vlgmr.msrb.gmra.mxu2 %v5659_v57  ;;  %v8318_v47 = vld [vmem:[%s10359_s1 + $0xff0] sm:$0xff]  ;;  %v8315_v57 = vld [vmem:[%s10359_s1 + $0xfd8] sm:$0xff] }
 0x1c4   :  { %5310 = vmatpush.bf16.msra.mxu2 %v8279_v54  ;;  %5276 = vmatmul.bf16.vlgmr.msrb.gmra.mxu3 %v5663_v59  ;;  %v8291_v54 = vld [vmem:[%s10359_s1 + $0xf18] sm:$0xff]  ;;  %v8290_v58 = vld [vmem:[%s10359_s1 + $0xf10] sm:$0xff] }
 0x1c5   :  { %5324 = vmatpush.bf16.msra.mxu3 %v8287_v55  ;;  %v8299_v55 = vld [vmem:[%s10359_s1 + $0xf58] sm:$0xff]  ;;  %v8298_v59 = vld [vmem:[%s10359_s1 + $0xf50] sm:$0xff] }
 0x1c6   :  { %5283 = vmatpush.bf16.msra.mxu0 %v8262_v60  ;;  %v8306_v60 = vld [vmem:[%s10359_s1 + $0xf90] sm:$0xff] }
 0x1c7   :  { %5297 = vmatpush.bf16.msra.mxu1 %v8270_v61  ;;  %v8314_v61 = vld [vmem:[%s10359_s1 + $0xfd0] sm:$0xff] }
 0x1c8   :  { %5311 = vmatpush.bf16.msra.mxu2 %v8278_v62  ;;  %v8289_v62 = vld [vmem:[%s10359_s1 + $0xf08] sm:$0xff] }
 0x1c9   :  { %5325 = vmatpush.bf16.msra.mxu3 %v8286_v63  ;;  %v8297_v63 = vld [vmem:[%s10359_s1 + $0xf48] sm:$0xff] }
 0x1ca   :  { %5284 = vmatpush.bf16.msra.mxu0 %v8261_v38  ;;  %v8305_v38 = vld [vmem:[%s10359_s1 + $0xf88] sm:$0xff] }
 0x1cb   :  { %5298 = vmatpush.bf16.msra.mxu1 %v8269_v17  ;;  %v8313_v17 = vld [vmem:[%s10359_s1 + $0xfc8] sm:$0xff] }
 0x1cc   :  { %5312 = vmatpush.bf16.msra.mxu2 %v8277_v0  ;;  %v8288_v0 = vld [vmem:[%s10359_s1 + $0xf00] sm:$0xff] }
 0x1cd   :  { %5326 = vmatpush.bf16.msra.mxu3 %v8285_v1  ;;  %v8296_v1 = vld [vmem:[%s10359_s1 + $0xf40] sm:$0xff] }
 0x1ce   :  { %5285 = vmatpush.bf16.msra.mxu0 %v8260_v2  ;;  %v8304_v2 = vld [vmem:[%s10359_s1 + $0xf80] sm:$0xff] }
 0x1cf   :  { %5299 = vmatpush.bf16.msra.mxu1 %v8268_v3  ;;  %v8312_v3 = vld [vmem:[%s10359_s1 + $0xfc0] sm:$0xff] }
 0x1d0   :  { %5313 = vmatpush.bf16.msra.mxu2 %v8276_v4  ;;  %v5682_v4 = vld [vmem:[%s10360_s0 + $0xf0] sm:$0xf] }
 0x1d1   :  { %5327 = vmatpush.bf16.msra.mxu3 %v8284_v5  ;;  %v7806_v5 = vld [vmem:[%s10360_s0 + $0x1ec] sm:$0xf0] }
 0x1d2   :  { %5286 = vmatpush.bf16.msra.mxu0 %v8259_v6  ;;  %v7774_v6 = vld [vmem:[%s10360_s0 + $0xf4] sm:$0xf] }
 0x1d3   :  { %5300 = vmatpush.bf16.msra.mxu1 %v8267_v7  ;;  %v5684_v7 = vld [vmem:[%s10360_s0 + $0x1f0] sm:$0xf0] }
 0x1d4   :  { %5314 = vmatpush.bf16.msra.mxu2 %v8275_v8  ;;  %v5690_v8 = vld [vmem:[%s10360_s0 + $0xf8] sm:$0xf] }
 0x1d5   :  { %5328 = vmatpush.bf16.msra.mxu3 %v8283_v9  ;;  %v7807_v9 = vld [vmem:[%s10360_s0 + $0x1f4] sm:$0xf0] }
 0x1d6   :  { %5287 = vmatpush.bf16.msra.mxu0 %v8258_v10  ;;  %v7775_v10 = vld [vmem:[%s10360_s0 + $0xfc] sm:$0xf] }
 0x1d7   :  { %5301 = vmatpush.bf16.msra.mxu1 %v8266_v11  ;;  %v5692_v11 = vld [vmem:[%s10360_s0 + $0x1f8] sm:$0xf0] }
 0x1d8   :  { %5315 = vmatpush.bf16.msra.mxu2 %v8274_v13  ;;  %v5683_v13 = vor.u32 %v7806_v5, %v5682_v4 }
 0x1d9   :  { %5329 = vmatpush.bf16.msra.mxu3 %v8282_v14  ;;  %v5687_v14 = vor.u32 %v7774_v6, %v5684_v7 }
 0x1da   :  { %5288 = vmatpush.bf16.msra.mxu0 %v8257_v22  ;;  %v5691_v22 = vor.u32 %v7807_v9, %v5690_v8 }
 0x1db   :  { %5302 = vmatpush.bf16.msra.mxu1 %v8265_v16  ;;  %v5695_v16 = vor.u32 %v7775_v10, %v5692_v11 }
 0x1dc   :  { %5316 = vmatpush.bf16.msra.mxu2 %v8273_v18  ;;  %v4957_v18 = vpop.f32.mrf.mxu0 }
 0x1dd   :  { %5330 = vmatpush.bf16.msra.mxu3 %v8281_v19  ;;  %v4971_v19 = vpop.f32.mrf.mxu1 }
 0x1de   :  { %5289 = vmatpush.bf16.msra.mxu0 %v8256_v20  ;;  %v4985_v20 = vpop.f32.mrf.mxu2 }
 0x1df   :  { %5303 = vmatpush.bf16.msra.mxu1 %v8264_v21  ;;  %v4999_v21 = vpop.f32.mrf.mxu3 }
 0x1e0   :  { %5317 = vmatpush.bf16.msra.mxu2 %v8272_v23 }
 0x1e1   :  { %5331 = vmatpush.bf16.msra.mxu3 %v8280_v27  ;;  %5290 = vmatmul.bf16.vlgmr.msra.gmra.mxu0 %v5667_v41  ;;  %v4958_v41 = vadd.f32 %v4957_v18, %v9965_v28 }
 0x1e2   :  { %5338 = vmatpush.bf16.msrb.mxu0 %v8295_v25  ;;  %5304 = vmatmul.bf16.vlgmr.msra.gmra.mxu1 %v5671_v12 }
 0x1e3   :  { %5352 = vmatpush.bf16.msrb.mxu1 %v8303_v26  ;;  %5318 = vmatmul.bf16.vlgmr.msra.gmra.mxu2 %v5675_v42 }
 0x1e4   :  { %5366 = vmatpush.bf16.msrb.mxu2 %v8311_v39  ;;  %5332 = vmatmul.bf16.vlgmr.msra.gmra.mxu3 %v5679_v43  ;;  %v5011_v23 = vpop.f32.mrf.mxu0 }
 0x1e5   :  { %5380 = vmatpush.bf16.msrb.mxu3 %v8319_v40  ;;  %v5025_v27 = vpop.f32.mrf.mxu1 }
 0x1e6   :  { %5339 = vmatpush.bf16.msrb.mxu0 %v8294_v44  ;;  %v5039_v25 = vpop.f32.mrf.mxu2  ;;  %v4972_v44 = vadd.f32 %v4971_v19, %v4958_v41 }
 0x1e7   :  { %5353 = vmatpush.bf16.msrb.mxu1 %v8302_v45  ;;  %v5053_v26 = vpop.f32.mrf.mxu3  ;;  %v5012_v45 = vadd.f32 %v5011_v23, %v10052_v34 }
 0x1e8   :  { %5367 = vmatpush.bf16.msrb.mxu2 %v8310_v46 }
 0x1e9   :  { %5381 = vmatpush.bf16.msrb.mxu3 %v8318_v47  ;;  %v4986_v47 = vadd.f32 %v4985_v20, %v4972_v44 }
 0x1ea   :  { %5340 = vmatpush.bf16.msrb.mxu0 %v8293_v48  ;;  %v5026_v48 = vadd.f32 %v5025_v27, %v5012_v45 }
 0x1eb   :  { %5354 = vmatpush.bf16.msrb.mxu1 %v8301_v49 }
 0x1ec   :  { %5368 = vmatpush.bf16.msrb.mxu2 %v8309_v50  ;;  %v5013_v29 = vpop.f32.mrf.mxu0 }
 0x1ed   :  { %5382 = vmatpush.bf16.msrb.mxu3 %v8317_v15  ;;  %v5027_v30 = vpop.f32.mrf.mxu1  ;;  %v5000_v15 = vadd.f32 %v4999_v21, %v4986_v47 }
 0x1ee   :  { %5341 = vmatpush.bf16.msrb.mxu0 %v8292_v24  ;;  %v5041_v31 = vpop.f32.mrf.mxu2  ;;  %v5040_v24 = vadd.f32 %v5039_v25, %v5026_v48 }
 0x1ef   :  { %5355 = vmatpush.bf16.msrb.mxu1 %v8300_v51  ;;  %v5055_v33 = vpop.f32.mrf.mxu3  ;;  %v5014_v51 = vadd.f32 %v5013_v29, %v5000_v15 }
 0x1f0   :  { %5369 = vmatpush.bf16.msrb.mxu2 %v8308_v52 }
 0x1f1   :  { %5383 = vmatpush.bf16.msrb.mxu3 %v8316_v53  ;;  %v5054_v53 = vadd.f32 %v5053_v26, %v5040_v24 }
 0x1f2   :  { %5342 = vmatpush.bf16.msrb.mxu0 %v8291_v54 }
 0x1f3   :  { %5356 = vmatpush.bf16.msrb.mxu1 %v8299_v55  ;;  %v5028_v55 = vadd.f32 %v5027_v30, %v5014_v51 }
 0x1f4   :  { %5370 = vmatpush.bf16.msrb.mxu2 %v8307_v56  ;;  %v5067_v35 = vpop.f32.mrf.mxu0 }
 0x1f5   :  { %5384 = vmatpush.bf16.msrb.mxu3 %v8315_v57  ;;  %v5081_v32 = vpop.f32.mrf.mxu1  ;;  %v5068_v56 = vadd.f32 %v5067_v35, %v5054_v53  ;;  %v5042_v28 = vadd.f32 %v5041_v31, %v5028_v55 }
 0x1f6   :  { %5343 = vmatpush.bf16.msrb.mxu0 %v8290_v58  ;;  %v5095_v36 = vpop.f32.mrf.mxu2 }
 0x1f7   :  { %5357 = vmatpush.bf16.msrb.mxu1 %v8298_v59  ;;  %v5109_v37 = vpop.f32.mrf.mxu3  ;;  %v5082_v59 = vadd.f32 %v5081_v32, %v5068_v56 }
 0x1f8   :  { %5371 = vmatpush.bf16.msrb.mxu2 %v8306_v60 }
 0x1f9   :  { %5385 = vmatpush.bf16.msrb.mxu3 %v8314_v61  ;;  %v5056_v61 = vadd.f32 %v5055_v33, %v5042_v28  ;;  %v5096_v34 = vadd.f32 %v5095_v36, %v5082_v59 }
 0x1fa   :  { %5344 = vmatpush.bf16.msrb.mxu0 %v8289_v62 }
 0x1fb   :  { %5358 = vmatpush.bf16.msrb.mxu1 %v8297_v63 }
 0x1fc   :  { %5372 = vmatpush.bf16.msrb.mxu2 %v8305_v38  ;;  %v5069_v39 = vpop.f32.mrf.mxu0  ;;  %v5110_v38 = vadd.f32 %v5109_v37, %v5096_v34 }
 0x1fd   :  { %5386 = vmatpush.bf16.msrb.mxu3 %v8313_v17  ;;  %v5083_v40 = vpop.f32.mrf.mxu1  ;;  %v5070_v63 = vadd.f32 %v5069_v39, %v5056_v61 }
 0x1fe   :  { %5345 = vmatpush.bf16.msrb.mxu0 %v8288_v0  ;;  %v5097_v42 = vpop.f32.mrf.mxu2 }
 0x1ff   :  { %5359 = vmatpush.bf16.msrb.mxu1 %v8296_v1  ;;  %v5111_v12 = vpop.f32.mrf.mxu3  ;;  %v5084_v1 = vadd.f32 %v5083_v40, %v5070_v63 }
 0x200   :  { %5373 = vmatpush.bf16.msrb.mxu2 %v8304_v2 }
 0x201   :  { %5387 = vmatpush.bf16.msrb.mxu3 %v8312_v3  ;;  %5346 = vmatmul.bf16.vlgmr.msrb.gmra.mxu0 %v5683_v13  ;;  %v5098_v3 = vadd.f32 %v5097_v42, %v5084_v1 }
 0x202   :  { %5360 = vmatmul.bf16.vlgmr.msrb.gmra.mxu1 %v5687_v14 }
 0x203   :  { %5374 = vmatmul.bf16.vlgmr.msrb.gmra.mxu2 %v5691_v22  ;;  %v5112_v7 = vadd.f32 %v5111_v12, %v5098_v3 }
 0x204   :  { %5388 = vmatmul.bf16.vlgmr.msrb.gmra.mxu3 %v5695_v16  ;;  %v5123_v43 = vpop.f32.mrf.mxu0 }
 0x205   :  { %v5137_v46 = vpop.f32.mrf.mxu1  ;;  %v5124_v2 = vadd.f32 %v5123_v43, %v5110_v38 }
 0x206   :  { %v5151_v49 = vpop.f32.mrf.mxu2 }
 0x207   :  { %v5165_v50 = vpop.f32.mrf.mxu3  ;;  %v5138_v5 = vadd.f32 %v5137_v46, %v5124_v2 }
 0x209   :  { %v5152_v8 = vadd.f32 %v5151_v49, %v5138_v5 }
 0x20b   :  { %v5166_v13 = vadd.f32 %v5165_v50, %v5152_v8 }
 0x20c   :  { %v5125_v52 = vpop.f32.mrf.mxu0 }
 0x20d   :  { %v5139_v54 = vpop.f32.mrf.mxu1  ;;  %v5126_v9 = vadd.f32 %v5125_v52, %v5112_v7 }
 0x20e   :  { %v5153_v57 = vpop.f32.mrf.mxu2 }
 0x20f   :  { %v5167_v58 = vpop.f32.mrf.mxu3  ;;  %v5140_v22 = vadd.f32 %v5139_v54, %v5126_v9 }
 0x211   :  { %v5154_v19 = vadd.f32 %v5153_v57, %v5140_v22 }
 0x213   :  { %v5168_v27 = vadd.f32 %v5167_v58, %v5154_v19 }
 0x21e   :  { %v5179_v60 = vpop.f32.mrf.mxu0 }
 0x21f   :  { %v5193_v62 = vpop.f32.mrf.mxu1  ;;  %v5180_v16 = vadd.f32 %v5179_v60, %v5166_v13 }
 0x221   :  { %v5194_v20 = vadd.f32 %v5193_v62, %v5180_v16 }
 0x226   :  { %v5207_v17 = vpop.f32.mrf.mxu2  ;;  %v5181_v4 = vpop.f32.mrf.mxu0 }
 0x227   :  { %v5221_v0 = vpop.f32.mrf.mxu3  ;;  %v5195_v6 = vpop.f32.mrf.mxu1  ;;  %v5208_v25 = vadd.f32 %v5207_v17, %v5194_v20  ;;  %v5182_v26 = vadd.f32 %v5181_v4, %v5168_v27 }
 0x229   :  { %v5222_v30 = vadd.f32 %v5221_v0, %v5208_v25  ;;  %v5196_v33 = vadd.f32 %v5195_v6, %v5182_v26 }
 0x22e   :  { %v5209_v10 = vpop.f32.mrf.mxu2 }
 0x22f   :  { %v5223_v11 = vpop.f32.mrf.mxu3  ;;  %v5210_v32 = vadd.f32 %v5209_v10, %v5196_v33 }
 0x231   :  { %v5224_v41 = vadd.f32 %v5223_v11, %v5210_v32 }
 0x23e   :  { %v5235_v14 = vpop.f32.mrf.mxu0 }
 0x23f   :  { %v5249_v18 = vpop.f32.mrf.mxu1  ;;  %v5236_v35 = vadd.f32 %v5235_v14, %v5222_v30 }
 0x241   :  { %v5250_v39 = vadd.f32 %v5249_v18, %v5236_v35 }
 0x246   :  { %v5263_v21 = vpop.f32.mrf.mxu2  ;;  %v5237_v29 = vpop.f32.mrf.mxu0 }
 0x247   :  { %v5277_v23 = vpop.f32.mrf.mxu3  ;;  %v5251_v31 = vpop.f32.mrf.mxu1  ;;  %v5264_v42 = vadd.f32 %v5263_v21, %v5250_v39  ;;  %v5238_v43 = vadd.f32 %v5237_v29, %v5224_v41 }
 0x249   :  { %v5278_v44 = vadd.f32 %v5277_v23, %v5264_v42  ;;  %v5252_v47 = vadd.f32 %v5251_v31, %v5238_v43 }
 0x24e   :  { %v5265_v36 = vpop.f32.mrf.mxu2 }
 0x24f   :  { %v5279_v37 = vpop.f32.mrf.mxu3  ;;  %v5266_v49 = vadd.f32 %v5265_v36, %v5252_v47 }
 0x251   :  { %v5280_v51 = vadd.f32 %v5279_v37, %v5266_v49 }
 0x25e   :  { %v5291_v40 = vpop.f32.mrf.mxu0 }
 0x25f   :  { %v5305_v12 = vpop.f32.mrf.mxu1  ;;  %v5292_v48 = vadd.f32 %v5291_v40, %v5278_v44 }
 0x261   :  { %v5306_v15 = vadd.f32 %v5305_v12, %v5292_v48 }
 0x266   :  { %v5319_v45 = vpop.f32.mrf.mxu2  ;;  %v5293_v50 = vpop.f32.mrf.mxu0 }
 0x267   :  { %v5333_v46 = vpop.f32.mrf.mxu3  ;;  %v5307_v24 = vpop.f32.mrf.mxu1  ;;  %v5320_v52 = vadd.f32 %v5319_v45, %v5306_v15  ;;  %v5294_v53 = vadd.f32 %v5293_v50, %v5280_v51 }
 0x269   :  { %v5334_v56 = vadd.f32 %v5333_v46, %v5320_v52  ;;  %v5308_v57 = vadd.f32 %v5307_v24, %v5294_v53 }
 0x26e   :  { %v5321_v54 = vpop.f32.mrf.mxu2 }
 0x26f   :  { %v5335_v55 = vpop.f32.mrf.mxu3  ;;  %v5322_v60 = vadd.f32 %v5321_v54, %v5308_v57 }
 0x271   :  { %v5336_v63 = vadd.f32 %v5335_v55, %v5322_v60 }
 0x27e   :  { %v5347_v28 = vpop.f32.mrf.mxu0 }
 0x27f   :  { %v5348_v58 = vadd.f32 %v5347_v28, %v5334_v56  ;;  %v5361_v59 = vpop.f32.mrf.mxu1 }
 0x281   :  { %v5362_v61 = vadd.f32 %v5361_v59, %v5348_v58 }
 0x286   :  { %v5375_v34 = vpop.f32.mrf.mxu2  ;;  %v5349_v17 = vpop.f32.mrf.mxu0 }
 0x287   :  { %v5389_v62 = vpop.f32.mrf.mxu3  ;;  %v5376_v38 = vadd.f32 %v5375_v34, %v5362_v61  ;;  %v5350_v1 = vadd.f32 %v5349_v17, %v5336_v63  ;;  %v5363_v3 = vpop.f32.mrf.mxu1 }
 0x289   :  { %v5390_v0 = vadd.f32 %v5389_v62, %v5376_v38  ;;  %v5364_v5 = vadd.f32 %v5363_v3, %v5350_v1 }
 0x28b   :  { %v5394_v2 = vsub.f32 0.0, %v5390_v0 }
 0x28d   :  { %v5396_v4 = vmul.f32 1.442695, %v5394_v2 }
 0x28e   :  { %v5377_v6 = vpop.f32.mrf.mxu2 }
 0x28f   :  { %8326 = vpow2.f32 %v5396_v4  ;;  %v5378_v7 = vadd.f32 %v5377_v6, %v5364_v5  ;;  %v5391_v8 = vpop.f32.mrf.mxu3 }
 0x291   :  { %v5392_v9 = vadd.f32 %v5391_v8, %v5378_v7 }
 0x293   :  { %v5395_v10 = vsub.f32 0.0, %v5392_v9 }
 0x295   :  { %v8327_v11 = vpop.eup %8326  ;;  %v5398_v13 = vmul.f32 1.442695, %v5395_v10 }
 0x296   :  { %v5400_v14 = vadd.f32 1.0, %v8327_v11 }
 0x297   :  { %8328 = vpow2.f32 %v5398_v13 }
 0x298   :  { %8330 = vrcp.f32 %v5400_v14  ;;  %vm5407_vm1 = vweird.f32 %v5400_v14  ;;  %v5413_v29 = vand.u32 2147483648, %v5400_v14  ;;  %v5411_v31 = vand.u32 2147483647, %v5400_v14 }
 0x29a   :  { %v5414_v37 = vor.u32 1.1754944e-38, %v5413_v29  ;;  %vm5412_vm6 = vcmp.eq.f32.partialorder %v5411_v31, 8.507059e+37 }
 0x29d   :  { %v8329_v22 = vpop.eup %8328 }
 0x29e   :  { %v8331_v16 = vpop.eup %8330  ;;  %v5401_v18 = vadd.f32 1.0, %v8329_v22 }
 0x29f   :  { %v5403_v19 = vmul.f32 %v8331_v16, %v5400_v14  ;;  %vm5408_vm0 = vweird.f32 %v8331_v16 }
 0x2a0   :  { %8332 = vrcp.f32 %v5401_v18  ;;  %v5428_v30 = vand.u32 2147483648, %v5401_v18  ;;  %v5426_v35 = vand.u32 2147483647, %v5401_v18  ;;  %vm5409_vm3 = vmor %vm5407_vm1, %vm5408_vm0  ;;  %vm5422_vm4 = vweird.f32 %v5401_v18 }
 0x2a1   :  { %v5404_v20 = vsub.f32 1.0, %v5403_v19 }
 0x2a2   :  { %v5429_v39 = vor.u32 1.1754944e-38, %v5428_v30  ;;  %vm5427_vm7 = vcmp.eq.f32.partialorder %v5426_v35, 8.507059e+37 }
 0x2a3   :  { %v5405_v21 = vmul.f32 %v8331_v16, %v5404_v20 }
 0x2a5   :  { %v5406_v25 = vadd.f32 %v8331_v16, %v5405_v21 }
 0x2a6   :  { %v8333_v23 = vpop.eup %8332 }
 0x2a7   :  { %v5418_v27 = vmul.f32 %v8333_v23, %v5401_v18  ;;  %vm5423_vm2 = vweird.f32 %v8333_v23  ;;  %v5410_v32 = vsel %vm5409_vm3, %v8331_v16, %v5406_v25 }
 0x2a8   :  { %vm5424_vm5 = vmor %vm5422_vm4, %vm5423_vm2  ;;  %v5415_v41 = vsel %vm5412_vm6, %v5414_v37, %v5410_v32 }
 0x2a9   :  { %v5419_v26 = vsub.f32 1.0, %v5418_v27 }
 0x2ab   :  { %v5420_v33 = vmul.f32 %v8333_v23, %v5419_v26 }
 0x2ad   :  { %v5421_v36 = vadd.f32 %v8333_v23, %v5420_v33 }
 0x2af   :  { %v5425_v40 = vsel %vm5424_vm5, %v8333_v23, %v5421_v36 }
 0x2b0   :  { %v5430_v42 = vsel %vm5427_vm7, %v5429_v39, %v5425_v40 }
 0x2b1   :  { %v8323_v12 = vpack.c.bf16 %v5430_v42, %v5415_v41 }
 0x2b3   :  { %8324 = vst [vmem:[%s10362_s3] sm:$0xff] %v8323_v12  }

</bundles_post_ra>
